<compile_context>
chip_gen: v7x
topology: tpu7x:2x2x1
jax: 0.10.0
libtpu: 0.0.40
codegen_flags: <defaults>
</compile_context>

<pallas_src>
import functools

import jax
import jax.numpy as jnp
from jax.experimental import pallas as pl
from jax.experimental.pallas import tpu as pltpu

HIDDEN_DIM = 32
LATENT_DIM = 8
HEADING_SIZE = 2
FEATURES_DIM = 256
OUTPUT_SIZE = 20
CONV3_C, CONV3_H, CONV3_W = 64, 9, 9
N_FLATTEN = CONV3_C * CONV3_H * CONV3_W       # 5184 for a 100x100 input
LATENT_INPUT = FEATURES_DIM + HEADING_SIZE    # 258

# Row tile for the conv / flatten matmuls.  512 rows x K<=576 f32, double
# buffered, stays well under v5e's 16 MiB scoped-VMEM default and v7x's
# 64 MiB physical VMEM regardless of batch size.
TILE_M = 512

# MXU input dtype for the big conv / flatten matmuls.  float32 preserves the
# PyTorch model's numerics; set to jnp.bfloat16 on v6e/v7x for ~2x MXU
# throughput and half the weight DMA bytes (accumulation stays f32 either way).
MXU_INPUT_DTYPE = jnp.float32


# ---------------------------------------------------------------------------
# Pallas kernels
# ---------------------------------------------------------------------------
def _linear_kernel(x_ref, w_ref, b_ref, o_ref, *, relu, compute_dtype):
    # y = x @ w + b on the MXU with f32 accumulation, optional fused ReLU.
    x = x_ref[...].astype(compute_dtype)
    w = w_ref[...].astype(compute_dtype)
    y = jnp.dot(x, w, preferred_element_type=jnp.float32) + b_ref[...]
    if relu:
        y = jnp.maximum(y, 0.0)
    o_ref[...] = y.astype(o_ref.dtype)


def pallas_linear(x, w_t, b2, *, relu=False, tile_m=TILE_M,
                  compute_dtype=MXU_INPUT_DTYPE):
    """x: (M, K) f32, w_t: (K, N) f32 (pre-transposed), b2: (1, N) f32 -> (M, N).

    Gridded over M row tiles; the weight / bias blocks are pinned (index_map
    returns (0, 0)) so they are DMA'd into VMEM once and stay resident while
    the activation rows stream through the software pipeline.
    """
    M, K = x.shape
    K2, N = w_t.shape
    assert K == K2, (K, K2)
    assert b2.shape == (1, N), b2.shape

    tm = M if M <= tile_m else tile_m          # whole-array block for small M
    grid = (pl.cdiv(M, tm),)
    kernel = functools.partial(_linear_kernel, relu=relu,
                               compute_dtype=compute_dtype)
    return pl.pallas_call(
        kernel,
        out_shape=jax.ShapeDtypeStruct((M, N), jnp.float32),
        grid=grid,
        in_specs=[
            pl.BlockSpec((tm, K), lambda i: (i, 0)),   # activations: row tiles
            pl.BlockSpec((K, N), lambda i: (0, 0)),    # weight: resident
            pl.BlockSpec((1, N), lambda i: (0, 0)),    # bias: resident
        ],
        out_specs=pl.BlockSpec((tm, N), lambda i: (i, 0)),
        compiler_params=pltpu.CompilerParams(
            dimension_semantics=("parallel",)),        # v7x: rows split over 2 TCs
    )(x, w_t, b2)


def _cvae_head_kernel(img_ref, head_ref, path_ref, eps_ref,
                      w_e1p_ref, w_e1i_ref, w_e1h_ref, b_e1_ref,
                      w_mu_ref, b_mu_ref, w_lv_ref, b_lv_ref,
                      w_d1z_ref, w_d1i_ref, w_d1h_ref, b_d1_ref,
                      w_d2_ref, b_d2_ref,
                      mu_ref, logvar_ref, recon_ref):
    """Fused CVAE head: enc1 -> (mu, logvar) -> reparam -> dec1 -> dec2.

    The torch-side concats cat([path, img, heading]) and cat([z, img, heading])
    are realised as split-weight matmuls, so everything stays in VMEM/vregs
    and no concatenated activation is ever materialised.
    """
    f32 = jnp.float32
    img = img_ref[...]                                           # (B, 256)
    head = head_ref[...]                                         # (B, 2)

    # The img contribution to the encoder / decoder hidden layers is shared
    # only through `img`; compute each once.
    h = jnp.dot(path_ref[...], w_e1p_ref[...], preferred_element_type=f32)
    h = h + jnp.dot(img, w_e1i_ref[...], preferred_element_type=f32)
    h = h + jnp.dot(head, w_e1h_ref[...], preferred_element_type=f32)
    h = jnp.maximum(h + b_e1_ref[...], 0.0)                      # (B, 32)

    # mu / logvar projections (two tiny dots; avoids a sub-lane slice).
    mu = jnp.dot(h, w_mu_ref[...], preferred_element_type=f32) + b_mu_ref[...]
    logvar = jnp.dot(h, w_lv_ref[...], preferred_element_type=f32) + b_lv_ref[...]

    # Reparameterization.
    z = mu + eps_ref[...] * jnp.exp(0.5 * logvar)                # (B, 8)

    # Decoder.
    h2 = jnp.dot(z, w_d1z_ref[...], preferred_element_type=f32)
    h2 = h2 + jnp.dot(img, w_d1i_ref[...], preferred_element_type=f32)
    h2 = h2 + jnp.dot(head, w_d1h_ref[...], preferred_element_type=f32)
    h2 = jnp.maximum(h2 + b_d1_ref[...], 0.0)                    # (B, 32)
    recon = jnp.dot(h2, w_d2_ref[...], preferred_element_type=f32) + b_d2_ref[...]

    mu_ref[...] = mu
    logvar_ref[...] = logvar
    recon_ref[...] = recon


def cvae_head(kp, img_feature, heading, path_flat, eps):
    """One pallas_call for the whole MLP head (encoder+reparam+decoder fused)."""
    B = img_feature.shape[0]
    args = (
        img_feature, heading, path_flat, eps,
        kp["enc1_w_path_t"], kp["enc1_w_img_t"], kp["enc1_w_head_t"], kp["enc1_b"],
        kp["enc_mu_w_t"], kp["enc_mu_b"], kp["enc_lv_w_t"], kp["enc_lv_b"],
        kp["dec1_w_z_t"], kp["dec1_w_img_t"], kp["dec1_w_head_t"], kp["dec1_b"],
        kp["dec2_w_t"], kp["dec2_b"],
    )
    vmem = pl.BlockSpec(memory_space=pltpu.MemorySpace.VMEM)
    return pl.pallas_call(
        _cvae_head_kernel,
        out_shape=(
            jax.ShapeDtypeStruct((B, LATENT_DIM), jnp.float32),
            jax.ShapeDtypeStruct((B, LATENT_DIM), jnp.float32),
            jax.ShapeDtypeStruct((B, OUTPUT_SIZE), jnp.float32),
        ),
        in_specs=[vmem] * len(args),
        out_specs=(vmem, vmem, vmem),
    )(*args)


# ---------------------------------------------------------------------------
# Conv2d (valid padding, NHWC) = one patch-extraction op + Pallas GEMM
# ---------------------------------------------------------------------------
def conv2d_relu(x_nhwc, w_flat_t, b2, *, kh, kw, stride):
    """x_nhwc: (B, H, W, C_in); w_flat_t: (C_in*kh*kw, C_out) pre-transposed."""
    B = x_nhwc.shape[0]
    # Single XLA op; output feature order is (C_in, kh, kw) — identical to
    # PyTorch's Conv2d weight.reshape(C_out, -1) flattening.
    patches = jax.lax.conv_general_dilated_patches(
        x_nhwc,
        filter_shape=(kh, kw),
        window_strides=(stride, stride),
        padding="VALID",
        dimension_numbers=("NHWC", "HWIO", "NHWC"),
    )
    _, Ho, Wo, F = patches.shape
    y = pallas_linear(patches.reshape(B * Ho * Wo, F), w_flat_t, b2, relu=True)
    return y.reshape(B, Ho, Wo, -1)          # stay NHWC (no transpose round-trip)


def nature_cnn(kp, obs_nchw):
    # obs: (B, 1, 100, 100) NCHW (PyTorch layout); C=1 so this transpose is a
    # trivial relayout done once at the input.
    x = jnp.transpose(obs_nchw, (0, 2, 3, 1))                            # NHWC
    x = conv2d_relu(x, kp["conv1_w_t"], kp["conv1_b"], kh=8, kw=8, stride=4)  # (B,24,24,32)
    x = conv2d_relu(x, kp["conv2_w_t"], kp["conv2_b"], kh=4, kw=4, stride=2)  # (B,11,11,64)
    x = conv2d_relu(x, kp["conv3_w_t"], kp["conv3_b"], kh=3, kw=3, stride=1)  # (B,9,9,64)
    B = x.shape[0]
    flat = x.reshape(B, -1)     # NHWC flatten; lin weight columns were permuted
                                # at prepare time to match PyTorch's NCHW Flatten.
    return pallas_linear(flat, kp["lin_w_t"], kp["lin_b"], relu=True)    # (B,256)


# ---------------------------------------------------------------------------
# Parameters
# ---------------------------------------------------------------------------
def init_torch_layout_params(key):
    """Deterministic init in the PyTorch layouts (weight: (out, in) / (C_out,C_in,kh,kw))."""
    keys = jax.random.split(key, 20)
    k = iter(keys)

    def w(shape, scale=0.05):
        return (scale * jax.random.normal(next(k), shape)).astype(jnp.float32)

    def b(n):
        return jnp.zeros((n,), jnp.float32)

    return {
        # NatureCNN
        "conv1_w": w((32, 1, 8, 8)),   "conv1_b": b(32),
        "conv2_w": w((64, 32, 4, 4)),  "conv2_b": b(64),
        "conv3_w": w((64, 64, 3, 3)),  "conv3_b": b(64),
        "lin_w":   w((FEATURES_DIM, N_FLATTEN), 0.01), "lin_b": b(FEATURES_DIM),
        # Encoder(latent_input + output_size -> hidden -> latent)
        # enc1 input columns ordered [expert_path(20), img(256), heading(2)]
        "enc1_w": w((HIDDEN_DIM, OUTPUT_SIZE + LATENT_INPUT)), "enc1_b": b(HIDDEN_DIM),
        "enc_mu_w": w((LATENT_DIM, HIDDEN_DIM)), "enc_mu_b": b(LATENT_DIM),
        "enc_lv_w": w((LATENT_DIM, HIDDEN_DIM)), "enc_lv_b": b(LATENT_DIM),
        # Decoder(latent + latent_input -> hidden -> output_size)
        # dec1 input columns ordered [z(8), img(256), heading(2)]
        "dec1_w": w((HIDDEN_DIM, LATENT_DIM + LATENT_INPUT)), "dec1_b": b(HIDDEN_DIM),
        "dec2_w": w((OUTPUT_SIZE, HIDDEN_DIM)), "dec2_b": b(OUTPUT_SIZE),
    }


def prepare_params(tp):
    """One-time conversion of PyTorch-layout params into kernel-ready layout.

    All transposes / merges / column permutations / splits happen here (outside
    jit), so the forward pass never pays for them.
    """
    def conv_wt(w):      # (C_out, C_in, kh, kw) -> (C_in*kh*kw, C_out)
        return w.reshape(w.shape[0], -1).T

    # Permute lin_w's 5184 input columns from NCHW-flatten (c,h,w) order to the
    # NHWC-flatten (h,w,c) order produced by our conv path, then transpose.
    lin_w = tp["lin_w"].reshape(FEATURES_DIM, CONV3_C, CONV3_H, CONV3_W)
    lin_w = lin_w.transpose(0, 2, 3, 1).reshape(FEATURES_DIM, N_FLATTEN)

    enc1_w = tp["enc1_w"]    # (32, 278): [path(20) | img(256) | heading(2)]
    dec1_w = tp["dec1_w"]    # (32, 266): [z(8)     | img(256) | heading(2)]
    p_end = OUTPUT_SIZE                       # 20
    i_end = OUTPUT_SIZE + FEATURES_DIM        # 276
    z_end = LATENT_DIM                        # 8
    zi_end = LATENT_DIM + FEATURES_DIM        # 264

    kp = {
        "conv1_w_t": conv_wt(tp["conv1_w"]), "conv1_b": tp["conv1_b"].reshape(1, -1),
        "conv2_w_t": conv_wt(tp["conv2_w"]), "conv2_b": tp["conv2_b"].reshape(1, -1),
        "conv3_w_t": conv_wt(tp["conv3_w"]), "conv3_b": tp["conv3_b"].reshape(1, -1),
        "lin_w_t": lin_w.T,                  "lin_b": tp["lin_b"].reshape(1, -1),
        # Encoder: split-weight pieces (replace the enc_in concat entirely).
        "enc1_w_path_t": enc1_w[:, :p_end].T,              # (20, 32)
        "enc1_w_img_t":  enc1_w[:, p_end:i_end].T,         # (256, 32)
        "enc1_w_head_t": enc1_w[:, i_end:].T,              # (2, 32)
        "enc1_b": tp["enc1_b"].reshape(1, -1),
        "enc_mu_w_t": tp["enc_mu_w"].T, "enc_mu_b": tp["enc_mu_b"].reshape(1, -1),
        "enc_lv_w_t": tp["enc_lv_w"].T, "enc_lv_b": tp["enc_lv_b"].reshape(1, -1),
        # Decoder: split-weight pieces (replace the dec_in concat entirely).
        "dec1_w_z_t":    dec1_w[:, :z_end].T,              # (8, 32)
        "dec1_w_img_t":  dec1_w[:, z_end:zi_end].T,        # (256, 32)
        "dec1_w_head_t": dec1_w[:, zi_end:].T,             # (2, 32)
        "dec1_b": tp["dec1_b"].reshape(1, -1),
        "dec2_w_t": tp["dec2_w"].T,                        # (32, 20)
        "dec2_b": tp["dec2_b"].reshape(1, -1),
    }
    return jax.tree_util.tree_map(lambda a: jnp.asarray(a, jnp.float32), kp)


# ---------------------------------------------------------------------------
# Forward pass
# ---------------------------------------------------------------------------
def cvae_model_forward(kp, heat_map, heading, expert_path, eps):
    img_feature = nature_cnn(kp, heat_map)                             # (B, 256)
    B = expert_path.shape[0]
    expert_path_flatten = expert_path.reshape(B, -1)                   # (B, 20)

    # Fused encoder -> reparameterize -> decoder head (single Pallas launch).
    # (torch's cat((img_feature, heading), 1) is absorbed into split-weight
    # matmuls inside the kernel, so no concat op is emitted.)
    mu, logvar, recon_batch = cvae_head(kp, img_feature, heading,
                                        expert_path_flatten, eps)
    return mu, logvar, recon_batch, None


# ---------------------------------------------------------------------------
if __name__ == "__main__":
    key = jax.random.PRNGKey(0)
    k_param, k_hm, k_head, k_path, k_eps = jax.random.split(key, 5)

    torch_params = init_torch_layout_params(k_param)
    params = prepare_params(torch_params)       # one-time layout conversion

    B = 2
    heat_map = jax.random.normal(k_hm, (B, 1, 100, 100), jnp.float32)   # NCHW like torch
    heading = jax.random.normal(k_head, (B, HEADING_SIZE), jnp.float32)
    expert_path = jax.random.normal(k_path, (B, 10, 2), jnp.float32)    # flattens to (B, 20)
    # TODO(synk): torch uses fresh torch.randn inside CVAE.forward; here eps is a
    # deterministic host-side draw passed into the fused head kernel.
    eps = jax.random.normal(k_eps, (B, LATENT_DIM), jnp.float32)

    fwd = jax.jit(cvae_model_forward)
    mu, logvar, recon, _ = fwd(params, heat_map, heading, expert_path, eps)
    jax.block_until_ready((mu, logvar, recon))

    assert mu.shape == (B, LATENT_DIM)
    assert logvar.shape == (B, LATENT_DIM)
    assert recon.shape == (B, OUTPUT_SIZE)
    assert bool(jnp.isfinite(mu).all() & jnp.isfinite(logvar).all() & jnp.isfinite(recon).all())
    print("KERNEL_OK")
</pallas_src>

<mosaic_0001>
module attributes {stable_mosaic.version = 11 : i64} {
  func.func @_linear_kernel(%arg0: i32, %arg1: memref<512x64xf32, #tpu.memory_space<vmem>>, %arg2: memref<64x32xf32, #tpu.memory_space<vmem>>, %arg3: memref<1x32xf32, #tpu.memory_space<vmem>>, %arg4: memref<512x32xf32, #tpu.memory_space<vmem>>) attributes {dimension_semantics = [#tpu.dimension_semantics<parallel>], iteration_bounds = array<i64: 3>, scalar_prefetch = 0 : i64, scratch_operands = 0 : i64, tpu.core_type = #tpu.core_type<tc>, window_params = [{transform_indices = @transform_0, window_bounds = array<i64: 512, 64>}, {pipeline_mode = #tpu.pipeline_mode<synchronous>, transform_indices = @transform_1, window_bounds = array<i64: 64, 32>}, {pipeline_mode = #tpu.pipeline_mode<synchronous>, transform_indices = @transform_2, window_bounds = array<i64: 1, 32>}, {transform_indices = @transform_3, window_bounds = array<i64: 512, 32>}]} {
    %c0 = arith.constant 0 : index
    %c0_0 = arith.constant 0 : index
    %0 = vector.load %arg1[%c0, %c0_0] : memref<512x64xf32, #tpu.memory_space<vmem>>, vector<512x64xf32>
    %c0_1 = arith.constant 0 : index
    %c0_2 = arith.constant 0 : index
    %1 = vector.load %arg2[%c0_1, %c0_2] : memref<64x32xf32, #tpu.memory_space<vmem>>, vector<64x32xf32>
    %cst = arith.constant dense<0.000000e+00> : vector<512x32xf32>
    %2 = tpu.matmul %0, %1, %cst {dimension_numbers = #tpu.dot_dimension_numbers<[1], [0], [0], [1], [0, 0, 1, 1], [], []>} : vector<512x64xf32>, vector<64x32xf32>, vector<512x32xf32> -> vector<512x32xf32>
    %c0_3 = arith.constant 0 : index
    %c0_4 = arith.constant 0 : index
    %3 = vector.load %arg3[%c0_3, %c0_4] : memref<1x32xf32, #tpu.memory_space<vmem>>, vector<1x32xf32>
    %4 = vector.broadcast %3 : vector<1x32xf32> to vector<512x32xf32>
    %5 = arith.addf %2, %4 : vector<512x32xf32>
    %cst_5 = arith.constant 0.000000e+00 : f32
    %6 = vector.broadcast %cst_5 : f32 to vector<512x32xf32>
    %7 = arith.maximumf %5, %6 : vector<512x32xf32>
    %c0_6 = arith.constant 0 : index
    %c0_7 = arith.constant 0 : index
    %8 = vector.load %arg4[%c0_6, %c0_7] : memref<512x32xf32, #tpu.memory_space<vmem>>, vector<512x32xf32>
    tpu.vector_store %arg4[%c0_6, %c0_7], %7 {strides = array<i32>} : memref<512x32xf32, #tpu.memory_space<vmem>>, vector<512x32xf32>,
    return
  }
  func.func @transform_0(%arg0: i32) -> (i32, i32) {
    %c0_i32 = arith.constant 0 : i32
    %c0_i32_0 = arith.constant 0 : i32
    return %arg0, %c0_i32 : i32, i32
  }
  func.func @transform_1(%arg0: i32) -> (i32, i32) {
    %c0_i32 = arith.constant 0 : i32
    %c0_i32_0 = arith.constant 0 : i32
    %c0_i32_1 = arith.constant 0 : i32
    return %c0_i32, %c0_i32_0 : i32, i32
  }
  func.func @transform_2(%arg0: i32) -> (i32, i32) {
    %c0_i32 = arith.constant 0 : i32
    %c0_i32_0 = arith.constant 0 : i32
    %c0_i32_1 = arith.constant 0 : i32
    return %c0_i32, %c0_i32_0 : i32, i32
  }
  func.func @transform_3(%arg0: i32) -> (i32, i32) {
    %c0_i32 = arith.constant 0 : i32
    %c0_i32_0 = arith.constant 0 : i32
    return %arg0, %c0_i32 : i32, i32
  }
}

module attributes {stable_mosaic.version = 11 : i64} {
  func.func @_linear_kernel(%arg0: i32, %arg1: memref<242x512xf32, #tpu.memory_space<vmem>>, %arg2: memref<512x64xf32, #tpu.memory_space<vmem>>, %arg3: memref<1x64xf32, #tpu.memory_space<vmem>>, %arg4: memref<242x64xf32, #tpu.memory_space<vmem>>) attributes {dimension_semantics = [#tpu.dimension_semantics<parallel>], iteration_bounds = array<i64: 1>, scalar_prefetch = 0 : i64, scratch_operands = 0 : i64, tpu.core_type = #tpu.core_type<tc>, window_params = [{transform_indices = @transform_0, window_bounds = array<i64: 242, 512>}, {pipeline_mode = #tpu.pipeline_mode<synchronous>, transform_indices = @transform_1, window_bounds = array<i64: 512, 64>}, {pipeline_mode = #tpu.pipeline_mode<synchronous>, transform_indices = @transform_2, window_bounds = array<i64: 1, 64>}, {transform_indices = @transform_3, window_bounds = array<i64: 242, 64>}]} {
    %c0 = arith.constant 0 : index
    %c0_0 = arith.constant 0 : index
    %0 = vector.load %arg1[%c0, %c0_0] : memref<242x512xf32, #tpu.memory_space<vmem>>, vector<242x512xf32>
    %c0_1 = arith.constant 0 : index
    %c0_2 = arith.constant 0 : index
    %1 = vector.load %arg2[%c0_1, %c0_2] : memref<512x64xf32, #tpu.memory_space<vmem>>, vector<512x64xf32>
    %cst = arith.constant dense<0.000000e+00> : vector<242x64xf32>
    %2 = tpu.matmul %0, %1, %cst {dimension_numbers = #tpu.dot_dimension_numbers<[1], [0], [0], [1], [0, 0, 1, 1], [], []>} : vector<242x512xf32>, vector<512x64xf32>, vector<242x64xf32> -> vector<242x64xf32>
    %c0_3 = arith.constant 0 : index
    %c0_4 = arith.constant 0 : index
    %3 = vector.load %arg3[%c0_3, %c0_4] : memref<1x64xf32, #tpu.memory_space<vmem>>, vector<1x64xf32>
    %4 = vector.broadcast %3 : vector<1x64xf32> to vector<242x64xf32>
    %5 = arith.addf %2, %4 : vector<242x64xf32>
    %cst_5 = arith.constant 0.000000e+00 : f32
    %6 = vector.broadcast %cst_5 : f32 to vector<242x64xf32>
    %7 = arith.maximumf %5, %6 : vector<242x64xf32>
    %c0_6 = arith.constant 0 : index
    %c0_7 = arith.constant 0 : index
    %8 = vector.load %arg4[%c0_6, %c0_7] : memref<242x64xf32, #tpu.memory_space<vmem>>, vector<242x64xf32>
    tpu.vector_store %arg4[%c0_6, %c0_7], %7 {strides = array<i32>} : memref<242x64xf32, #tpu.memory_space<vmem>>, vector<242x64xf32>,
    return
  }
  func.func @transform_0(%arg0: i32) -> (i32, i32) {
    %c0_i32 = arith.constant 0 : i32
    %c0_i32_0 = arith.constant 0 : i32
    return %arg0, %c0_i32 : i32, i32
  }
  func.func @transform_1(%arg0: i32) -> (i32, i32) {
    %c0_i32 = arith.constant 0 : i32
    %c0_i32_0 = arith.constant 0 : i32
    %c0_i32_1 = arith.constant 0 : i32
    return %c0_i32, %c0_i32_0 : i32, i32
  }
  func.func @transform_2(%arg0: i32) -> (i32, i32) {
    %c0_i32 = arith.constant 0 : i32
    %c0_i32_0 = arith.constant 0 : i32
    %c0_i32_1 = arith.constant 0 : i32
    return %c0_i32, %c0_i32_0 : i32, i32
  }
  func.func @transform_3(%arg0: i32) -> (i32, i32) {
    %c0_i32 = arith.constant 0 : i32
    %c0_i32_0 = arith.constant 0 : i32
    return %arg0, %c0_i32 : i32, i32
  }
}

module attributes {stable_mosaic.version = 11 : i64} {
  func.func @_linear_kernel(%arg0: i32, %arg1: memref<162x576xf32, #tpu.memory_space<vmem>>, %arg2: memref<576x64xf32, #tpu.memory_space<vmem>>, %arg3: memref<1x64xf32, #tpu.memory_space<vmem>>, %arg4: memref<162x64xf32, #tpu.memory_space<vmem>>) attributes {dimension_semantics = [#tpu.dimension_semantics<parallel>], iteration_bounds = array<i64: 1>, scalar_prefetch = 0 : i64, scratch_operands = 0 : i64, tpu.core_type = #tpu.core_type<tc>, window_params = [{transform_indices = @transform_0, window_bounds = array<i64: 162, 576>}, {pipeline_mode = #tpu.pipeline_mode<synchronous>, transform_indices = @transform_1, window_bounds = array<i64: 576, 64>}, {pipeline_mode = #tpu.pipeline_mode<synchronous>, transform_indices = @transform_2, window_bounds = array<i64: 1, 64>}, {transform_indices = @transform_3, window_bounds = array<i64: 162, 64>}]} {
    %c0 = arith.constant 0 : index
    %c0_0 = arith.constant 0 : index
    %0 = vector.load %arg1[%c0, %c0_0] : memref<162x576xf32, #tpu.memory_space<vmem>>, vector<162x576xf32>
    %c0_1 = arith.constant 0 : index
    %c0_2 = arith.constant 0 : index
    %1 = vector.load %arg2[%c0_1, %c0_2] : memref<576x64xf32, #tpu.memory_space<vmem>>, vector<576x64xf32>
    %cst = arith.constant dense<0.000000e+00> : vector<162x64xf32>
    %2 = tpu.matmul %0, %1, %cst {dimension_numbers = #tpu.dot_dimension_numbers<[1], [0], [0], [1], [0, 0, 1, 1], [], []>} : vector<162x576xf32>, vector<576x64xf32>, vector<162x64xf32> -> vector<162x64xf32>
    %c0_3 = arith.constant 0 : index
    %c0_4 = arith.constant 0 : index
    %3 = vector.load %arg3[%c0_3, %c0_4] : memref<1x64xf32, #tpu.memory_space<vmem>>, vector<1x64xf32>
    %4 = vector.broadcast %3 : vector<1x64xf32> to vector<162x64xf32>
    %5 = arith.addf %2, %4 : vector<162x64xf32>
    %cst_5 = arith.constant 0.000000e+00 : f32
    %6 = vector.broadcast %cst_5 : f32 to vector<162x64xf32>
    %7 = arith.maximumf %5, %6 : vector<162x64xf32>
    %c0_6 = arith.constant 0 : index
    %c0_7 = arith.constant 0 : index
    %8 = vector.load %arg4[%c0_6, %c0_7] : memref<162x64xf32, #tpu.memory_space<vmem>>, vector<162x64xf32>
    tpu.vector_store %arg4[%c0_6, %c0_7], %7 {strides = array<i32>} : memref<162x64xf32, #tpu.memory_space<vmem>>, vector<162x64xf32>,
    return
  }
  func.func @transform_0(%arg0: i32) -> (i32, i32) {
    %c0_i32 = arith.constant 0 : i32
    %c0_i32_0 = arith.constant 0 : i32
    return %arg0, %c0_i32 : i32, i32
  }
  func.func @transform_1(%arg0: i32) -> (i32, i32) {
    %c0_i32 = arith.constant 0 : i32
    %c0_i32_0 = arith.constant 0 : i32
    %c0_i32_1 = arith.constant 0 : i32
    return %c0_i32, %c0_i32_0 : i32, i32
  }
  func.func @transform_2(%arg0: i32) -> (i32, i32) {
    %c0_i32 = arith.constant 0 : i32
    %c0_i32_0 = arith.constant 0 : i32
    %c0_i32_1 = arith.constant 0 : i32
    return %c0_i32, %c0_i32_0 : i32, i32
  }
  func.func @transform_3(%arg0: i32) -> (i32, i32) {
    %c0_i32 = arith.constant 0 : i32
    %c0_i32_0 = arith.constant 0 : i32
    return %arg0, %c0_i32 : i32, i32
  }
}

module attributes {stable_mosaic.version = 11 : i64} {
  func.func @_linear_kernel(%arg0: i32, %arg1: memref<2x5184xf32, #tpu.memory_space<vmem>>, %arg2: memref<5184x256xf32, #tpu.memory_space<vmem>>, %arg3: memref<1x256xf32, #tpu.memory_space<vmem>>, %arg4: memref<2x256xf32, #tpu.memory_space<vmem>>) attributes {dimension_semantics = [#tpu.dimension_semantics<parallel>], iteration_bounds = array<i64: 1>, scalar_prefetch = 0 : i64, scratch_operands = 0 : i64, tpu.core_type = #tpu.core_type<tc>, window_params = [{transform_indices = @transform_0, window_bounds = array<i64: 2, 5184>}, {pipeline_mode = #tpu.pipeline_mode<synchronous>, transform_indices = @transform_1, window_bounds = array<i64: 5184, 256>}, {pipeline_mode = #tpu.pipeline_mode<synchronous>, transform_indices = @transform_2, window_bounds = array<i64: 1, 256>}, {transform_indices = @transform_3, window_bounds = array<i64: 2, 256>}]} {
    %c0 = arith.constant 0 : index
    %c0_0 = arith.constant 0 : index
    %0 = vector.load %arg1[%c0, %c0_0] : memref<2x5184xf32, #tpu.memory_space<vmem>>, vector<2x5184xf32>
    %c0_1 = arith.constant 0 : index
    %c0_2 = arith.constant 0 : index
    %1 = vector.load %arg2[%c0_1, %c0_2] : memref<5184x256xf32, #tpu.memory_space<vmem>>, vector<5184x256xf32>
    %cst = arith.constant dense<0.000000e+00> : vector<2x256xf32>
    %2 = tpu.matmul %0, %1, %cst {dimension_numbers = #tpu.dot_dimension_numbers<[1], [0], [0], [1], [0, 0, 1, 1], [], []>} : vector<2x5184xf32>, vector<5184x256xf32>, vector<2x256xf32> -> vector<2x256xf32>
    %c0_3 = arith.constant 0 : index
    %c0_4 = arith.constant 0 : index
    %3 = vector.load %arg3[%c0_3, %c0_4] : memref<1x256xf32, #tpu.memory_space<vmem>>, vector<1x256xf32>
    %4 = vector.broadcast %3 : vector<1x256xf32> to vector<2x256xf32>
    %5 = arith.addf %2, %4 : vector<2x256xf32>
    %cst_5 = arith.constant 0.000000e+00 : f32
    %6 = vector.broadcast %cst_5 : f32 to vector<2x256xf32>
    %7 = arith.maximumf %5, %6 : vector<2x256xf32>
    %c0_6 = arith.constant 0 : index
    %c0_7 = arith.constant 0 : index
    %8 = vector.load %arg4[%c0_6, %c0_7] : memref<2x256xf32, #tpu.memory_space<vmem>>, vector<2x256xf32>
    tpu.vector_store %arg4[%c0_6, %c0_7], %7 {strides = array<i32>} : memref<2x256xf32, #tpu.memory_space<vmem>>, vector<2x256xf32>,
    return
  }
  func.func @transform_0(%arg0: i32) -> (i32, i32) {
    %c0_i32 = arith.constant 0 : i32
    %c0_i32_0 = arith.constant 0 : i32
    return %arg0, %c0_i32 : i32, i32
  }
  func.func @transform_1(%arg0: i32) -> (i32, i32) {
    %c0_i32 = arith.constant 0 : i32
    %c0_i32_0 = arith.constant 0 : i32
    %c0_i32_1 = arith.constant 0 : i32
    return %c0_i32, %c0_i32_0 : i32, i32
  }
  func.func @transform_2(%arg0: i32) -> (i32, i32) {
    %c0_i32 = arith.constant 0 : i32
    %c0_i32_0 = arith.constant 0 : i32
    %c0_i32_1 = arith.constant 0 : i32
    return %c0_i32, %c0_i32_0 : i32, i32
  }
  func.func @transform_3(%arg0: i32) -> (i32, i32) {
    %c0_i32 = arith.constant 0 : i32
    %c0_i32_0 = arith.constant 0 : i32
    return %arg0, %c0_i32 : i32, i32
  }
}

module attributes {stable_mosaic.version = 11 : i64} {
  func.func @_cvae_head_kernel(%arg0: memref<2x256xf32, #tpu.memory_space<vmem>>, %arg1: memref<2x2xf32, #tpu.memory_space<vmem>>, %arg2: memref<2x20xf32, #tpu.memory_space<vmem>>, %arg3: memref<2x8xf32, #tpu.memory_space<vmem>>, %arg4: memref<20x32xf32, #tpu.memory_space<vmem>>, %arg5: memref<256x32xf32, #tpu.memory_space<vmem>>, %arg6: memref<2x32xf32, #tpu.memory_space<vmem>>, %arg7: memref<1x32xf32, #tpu.memory_space<vmem>>, %arg8: memref<32x8xf32, #tpu.memory_space<vmem>>, %arg9: memref<1x8xf32, #tpu.memory_space<vmem>>, %arg10: memref<32x8xf32, #tpu.memory_space<vmem>>, %arg11: memref<1x8xf32, #tpu.memory_space<vmem>>, %arg12: memref<8x32xf32, #tpu.memory_space<vmem>>, %arg13: memref<256x32xf32, #tpu.memory_space<vmem>>, %arg14: memref<2x32xf32, #tpu.memory_space<vmem>>, %arg15: memref<1x32xf32, #tpu.memory_space<vmem>>, %arg16: memref<32x20xf32, #tpu.memory_space<vmem>>, %arg17: memref<1x20xf32, #tpu.memory_space<vmem>>, %arg18: memref<2x8xf32, #tpu.memory_space<vmem>>, %arg19: memref<2x8xf32, #tpu.memory_space<vmem>>, %arg20: memref<2x20xf32, #tpu.memory_space<vmem>>) attributes {dimension_semantics = [], scalar_prefetch = 0 : i64, scratch_operands = 0 : i64, tpu.core_type = #tpu.core_type<tc>} {
    %c0 = arith.constant 0 : index
    %c0_0 = arith.constant 0 : index
    %0 = vector.load %arg0[%c0, %c0_0] : memref<2x256xf32, #tpu.memory_space<vmem>>, vector<2x256xf32>
    %c0_1 = arith.constant 0 : index
    %c0_2 = arith.constant 0 : index
    %1 = vector.load %arg1[%c0_1, %c0_2] : memref<2x2xf32, #tpu.memory_space<vmem>>, vector<2x2xf32>
    %c0_3 = arith.constant 0 : index
    %c0_4 = arith.constant 0 : index
    %2 = vector.load %arg2[%c0_3, %c0_4] : memref<2x20xf32, #tpu.memory_space<vmem>>, vector<2x20xf32>
    %c0_5 = arith.constant 0 : index
    %c0_6 = arith.constant 0 : index
    %3 = vector.load %arg4[%c0_5, %c0_6] : memref<20x32xf32, #tpu.memory_space<vmem>>, vector<20x32xf32>
    %cst = arith.constant dense<0.000000e+00> : vector<2x32xf32>
    %4 = tpu.matmul %2, %3, %cst {dimension_numbers = #tpu.dot_dimension_numbers<[1], [0], [0], [1], [0, 0, 1, 1], [], []>} : vector<2x20xf32>, vector<20x32xf32>, vector<2x32xf32> -> vector<2x32xf32>
    %c0_7 = arith.constant 0 : index
    %c0_8 = arith.constant 0 : index
    %5 = vector.load %arg5[%c0_7, %c0_8] : memref<256x32xf32, #tpu.memory_space<vmem>>, vector<256x32xf32>
    %cst_9 = arith.constant dense<0.000000e+00> : vector<2x32xf32>
    %6 = tpu.matmul %0, %5, %cst_9 {dimension_numbers = #tpu.dot_dimension_numbers<[1], [0], [0], [1], [0, 0, 1, 1], [], []>} : vector<2x256xf32>, vector<256x32xf32>, vector<2x32xf32> -> vector<2x32xf32>
    %7 = arith.addf %4, %6 : vector<2x32xf32>
    %c0_10 = arith.constant 0 : index
    %c0_11 = arith.constant 0 : index
    %8 = vector.load %arg6[%c0_10, %c0_11] : memref<2x32xf32, #tpu.memory_space<vmem>>, vector<2x32xf32>
    %cst_12 = arith.constant dense<0.000000e+00> : vector<2x32xf32>
    %9 = tpu.matmul %1, %8, %cst_12 {dimension_numbers = #tpu.dot_dimension_numbers<[1], [0], [0], [1], [0, 0, 1, 1], [], []>} : vector<2x2xf32>, vector<2x32xf32>, vector<2x32xf32> -> vector<2x32xf32>
    %10 = arith.addf %7, %9 : vector<2x32xf32>
    %c0_13 = arith.constant 0 : index
    %c0_14 = arith.constant 0 : index
    %11 = vector.load %arg7[%c0_13, %c0_14] : memref<1x32xf32, #tpu.memory_space<vmem>>, vector<1x32xf32>
    %12 = vector.broadcast %11 : vector<1x32xf32> to vector<2x32xf32>
    %13 = arith.addf %10, %12 : vector<2x32xf32>
    %cst_15 = arith.constant 0.000000e+00 : f32
    %14 = vector.broadcast %cst_15 : f32 to vector<2x32xf32>
    %15 = arith.maximumf %13, %14 : vector<2x32xf32>
    %c0_16 = arith.constant 0 : index
    %c0_17 = arith.constant 0 : index
    %16 = vector.load %arg8[%c0_16, %c0_17] : memref<32x8xf32, #tpu.memory_space<vmem>>, vector<32x8xf32>
    %cst_18 = arith.constant dense<0.000000e+00> : vector<2x8xf32>
    %17 = tpu.matmul %15, %16, %cst_18 {dimension_numbers = #tpu.dot_dimension_numbers<[1], [0], [0], [1], [0, 0, 1, 1], [], []>} : vector<2x32xf32>, vector<32x8xf32>, vector<2x8xf32> -> vector<2x8xf32>
    %c0_19 = arith.constant 0 : index
    %c0_20 = arith.constant 0 : index
    %18 = vector.load %arg9[%c0_19, %c0_20] : memref<1x8xf32, #tpu.memory_space<vmem>>, vector<1x8xf32>
    %19 = vector.broadcast %18 : vector<1x8xf32> to vector<2x8xf32>
    %20 = arith.addf %17, %19 : vector<2x8xf32>
    %c0_21 = arith.constant 0 : index
    %c0_22 = arith.constant 0 : index
    %21 = vector.load %arg10[%c0_21, %c0_22] : memref<32x8xf32, #tpu.memory_space<vmem>>, vector<32x8xf32>
    %cst_23 = arith.constant dense<0.000000e+00> : vector<2x8xf32>
    %22 = tpu.matmul %15, %21, %cst_23 {dimension_numbers = #tpu.dot_dimension_numbers<[1], [0], [0], [1], [0, 0, 1, 1], [], []>} : vector<2x32xf32>, vector<32x8xf32>, vector<2x8xf32> -> vector<2x8xf32>
    %c0_24 = arith.constant 0 : index
    %c0_25 = arith.constant 0 : index
    %23 = vector.load %arg11[%c0_24, %c0_25] : memref<1x8xf32, #tpu.memory_space<vmem>>, vector<1x8xf32>
    %24 = vector.broadcast %23 : vector<1x8xf32> to vector<2x8xf32>
    %25 = arith.addf %22, %24 : vector<2x8xf32>
    %c0_26 = arith.constant 0 : index
    %c0_27 = arith.constant 0 : index
    %26 = vector.load %arg3[%c0_26, %c0_27] : memref<2x8xf32, #tpu.memory_space<vmem>>, vector<2x8xf32>
    %cst_28 = arith.constant 5.000000e-01 : f32
    %27 = vector.broadcast %cst_28 : f32 to vector<2x8xf32>
    %28 = arith.mulf %27, %25 : vector<2x8xf32>
    %29 = math.exp %28 : vector<2x8xf32>
    %30 = arith.mulf %26, %29 : vector<2x8xf32>
    %31 = arith.addf %20, %30 : vector<2x8xf32>
    %c0_29 = arith.constant 0 : index
    %c0_30 = arith.constant 0 : index
    %32 = vector.load %arg12[%c0_29, %c0_30] : memref<8x32xf32, #tpu.memory_space<vmem>>, vector<8x32xf32>
    %cst_31 = arith.constant dense<0.000000e+00> : vector<2x32xf32>
    %33 = tpu.matmul %31, %32, %cst_31 {dimension_numbers = #tpu.dot_dimension_numbers<[1], [0], [0], [1], [0, 0, 1, 1], [], []>} : vector<2x8xf32>, vector<8x32xf32>, vector<2x32xf32> -> vector<2x32xf32>
    %c0_32 = arith.constant 0 : index
    %c0_33 = arith.constant 0 : index
    %34 = vector.load %arg13[%c0_32, %c0_33] : memref<256x32xf32, #tpu.memory_space<vmem>>, vector<256x32xf32>
    %cst_34 = arith.constant dense<0.000000e+00> : vector<2x32xf32>
    %35 = tpu.matmul %0, %34, %cst_34 {dimension_numbers = #tpu.dot_dimension_numbers<[1], [0], [0], [1], [0, 0, 1, 1], [], []>} : vector<2x256xf32>, vector<256x32xf32>, vector<2x32xf32> -> vector<2x32xf32>
    %36 = arith.addf %33, %35 : vector<2x32xf32>
    %c0_35 = arith.constant 0 : index
    %c0_36 = arith.constant 0 : index
    %37 = vector.load %arg14[%c0_35, %c0_36] : memref<2x32xf32, #tpu.memory_space<vmem>>, vector<2x32xf32>
    %cst_37 = arith.constant dense<0.000000e+00> : vector<2x32xf32>
    %38 = tpu.matmul %1, %37, %cst_37 {dimension_numbers = #tpu.dot_dimension_numbers<[1], [0], [0], [1], [0, 0, 1, 1], [], []>} : vector<2x2xf32>, vector<2x32xf32>, vector<2x32xf32> -> vector<2x32xf32>
    %39 = arith.addf %36, %38 : vector<2x32xf32>
    %c0_38 = arith.constant 0 : index
    %c0_39 = arith.constant 0 : index
    %40 = vector.load %arg15[%c0_38, %c0_39] : memref<1x32xf32, #tpu.memory_space<vmem>>, vector<1x32xf32>
    %41 = vector.broadcast %40 : vector<1x32xf32> to vector<2x32xf32>
    %42 = arith.addf %39, %41 : vector<2x32xf32>
    %cst_40 = arith.constant 0.000000e+00 : f32
    %43 = vector.broadcast %cst_40 : f32 to vector<2x32xf32>
    %44 = arith.maximumf %42, %43 : vector<2x32xf32>
    %c0_41 = arith.constant 0 : index
    %c0_42 = arith.constant 0 : index
    %45 = vector.load %arg16[%c0_41, %c0_42] : memref<32x20xf32, #tpu.memory_space<vmem>>, vector<32x20xf32>
    %cst_43 = arith.constant dense<0.000000e+00> : vector<2x20xf32>
    %46 = tpu.matmul %44, %45, %cst_43 {dimension_numbers = #tpu.dot_dimension_numbers<[1], [0], [0], [1], [0, 0, 1, 1], [], []>} : vector<2x32xf32>, vector<32x20xf32>, vector<2x20xf32> -> vector<2x20xf32>
    %c0_44 = arith.constant 0 : index
    %c0_45 = arith.constant 0 : index
    %47 = vector.load %arg17[%c0_44, %c0_45] : memref<1x20xf32, #tpu.memory_space<vmem>>, vector<1x20xf32>
    %48 = vector.broadcast %47 : vector<1x20xf32> to vector<2x20xf32>
    %49 = arith.addf %46, %48 : vector<2x20xf32>
    %c0_46 = arith.constant 0 : index
    %c0_47 = arith.constant 0 : index
    %50 = vector.load %arg18[%c0_46, %c0_47] : memref<2x8xf32, #tpu.memory_space<vmem>>, vector<2x8xf32>
    tpu.vector_store %arg18[%c0_46, %c0_47], %20 {strides = array<i32>} : memref<2x8xf32, #tpu.memory_space<vmem>>, vector<2x8xf32>,
    %c0_48 = arith.constant 0 : index
    %c0_49 = arith.constant 0 : index
    %51 = vector.load %arg19[%c0_48, %c0_49] : memref<2x8xf32, #tpu.memory_space<vmem>>, vector<2x8xf32>
    tpu.vector_store %arg19[%c0_48, %c0_49], %25 {strides = array<i32>} : memref<2x8xf32, #tpu.memory_space<vmem>>, vector<2x8xf32>,
    %c0_50 = arith.constant 0 : index
    %c0_51 = arith.constant 0 : index
    %52 = vector.load %arg20[%c0_50, %c0_51] : memref<2x20xf32, #tpu.memory_space<vmem>>, vector<2x20xf32>
    tpu.vector_store %arg20[%c0_50, %c0_51], %49 {strides = array<i32>} : memref<2x20xf32, #tpu.memory_space<vmem>>, vector<2x20xf32>,
    return
  }
}

</mosaic_0001>

<bundles_post_ra>
// kernel: cvae_model_forward.5
= control target key start
LH: loop header
LB: loop body
LE: loop exit
PB: predicated region body
PF: predicated region fallthrough
CT: control target
= control target key end

     0   :  { %s1941_s12 = smov 0   ;;  %s1943_s13 = smov 0   ;;  %s2538_s0 = inlined_call_operand.vmem [shape: f32[1152,64], index: 0, kind: input, shape index: {}]   ;;  %s2539_s1 = inlined_call_operand.vmem [shape: f32[64,32], index: 1, kind: input, shape index: {}]   ;;  %s2540_s2 = inlined_call_operand.vmem [shape: f32[1,32], index: 2, kind: input, shape index: {}]   ;;  %s2541_s3 = inlined_call_operand.vmem [shape: f32[1152,32], index: 3, kind: output, shape index: {}]  }
   0x1   :  { %s1945_s14 = smov 0  }
   0x2 LB: > { %s1954_s15 = sadd.s32 4294967295, %s1887_s14   ;;  %s1956_s16 = sadd.s32 1, %s1887_s14   ;;  %s1887_s14 = sphi %s1945_s14, %s2550_s14   ;;  %s1883_s13 = sphi %s1943_s13, %s2549_s13   ;;  %s1879_s12 = sphi %s1941_s12, %s2548_s12  }
   0x3   : > { %s85_s17 = ssub.s32 %s1887_s14, %s1956_s16  ;;  %s88_s18 = sadd.s32 1, %s1883_s13 }
   0x4   : > { %p86_p0 = scmp.eq.s32.totalorder %s85_s17, 0  ;;  %p98_p1 = scmp.ne.s32.totalorder %s1883_s13, %s1879_s12 }
   0x5   : > { %p99_p2 = scmp.eq.s32.totalorder %s1954_s15, 2  ;;  %p1448_p3 = scmp.ge.s32.totalorder %s1887_s14, 1 }
   0x6   : > { %s1964_s19 = scalar_select %p86_p0, %s1883_s13, %s88_s18  }
   0x7   : > { %p1966_p4 = por %p99_p2, %p98_p1  ;;  %p146_p5 = scmp.lt.s32.totalorder %s1887_s14, 4 }
   0x9   : > { %p147_p6 = pnand %p1448_p3, %p146_p5 }
   0xa   : > { %v256_v0 = vld [vmem:[%s2539_s1] sm:$0xff] (!%p147_p6)  ;;  %v257_v1 = vld [vmem:[%s2539_s1 + $0x8] sm:$0xff] (!%p147_p6)  ;;  %v258_v2 = vld [vmem:[%s2539_s1 + $0x10] sm:$0xff] (!%p147_p6)  ;;  %s1980_s27 = sshll.u32 (!%p147_p6), %s1954_s15, 6  ;;  %vm271_vm0 = vcmask (!%p147_p6), 523264   ;;  %s170_s22 = sand.u32 (!%p147_p6), 1, %s1879_s12  }
   0xb   : > { %150 = sbr.rel (%p147_p6) target bundleno = 379 (0x17b), region = 32  ;;  %v1721_v3 = vpack.c.bf16 (!%p147_p6), %v257_v1, %v256_v0  ;;  %v259_v4 = vld [vmem:[%s2539_s1 + $0x18] sm:$0xff] (!%p147_p6)  ;;  %p178_p7 = scmp.lt.s32.totalorder (!%p147_p6), %s1980_s27, 143  ;;  %v260_v6 = vld [vmem:[%s2539_s1 + $0x20] sm:$0xff] (!%p147_p6)  ;;  %v261_v7 = vld [vmem:[%s2539_s1 + $0x28] sm:$0xff] (!%p147_p6)  ;;  %vm913_vm1 = vcmask (!%p147_p6), 261120  }
   0xc   : > { %v1725_v5 = vpack.c.bf16 (!%p147_p6), %v259_v4, %v258_v2  ;;  %v1729_v8 = vpack.c.bf16 (!%p147_p6), %v261_v7, %v260_v6  ;;  %v262_v9 = vld [vmem:[%s2539_s1 + $0x30] sm:$0xff] (!%p147_p6)  ;;  %v263_v10 = vld [vmem:[%s2539_s1 + $0x38] sm:$0xff] (!%p147_p6)  ;;  %s1449_s25 = sshll.u32 (!%p147_p6), %s170_s22, 9 }
   0xd   : > { %1722 = vmatprep.subr.bf16.mxu0 (!%p147_p6), %v1721_v3  ;;  %1737 = vmatprep.subr.bf16.mxu1 (!%p147_p6), %v1721_v3  ;;  %v1733_v13 = vpack.c.bf16 (!%p147_p6), %v263_v10, %v262_v9  ;;  %s2142_s12 = scalar_lea.vmem (!%p147_p6), [#allocation2], %s1449_s25  }
   0xe   : > { %1724 = vmatpush3.bf16.msra.mxu0 (!%p147_p6), %v1721_v3  ;;  %1741 = vmatpush3.bf16.msra.mxu1 (!%p147_p6), %v1721_v3 }
   0xf   : > { %1726 = vmatprep.subr.bf16.mxu0 (!%p147_p6), %v1725_v5  ;;  %1738 = vmatprep.subr.bf16.mxu1 (!%p147_p6), %v1725_v5 }
  0x12   : > { %s179_s7 = scalar_select %p178_p7, %s1980_s27, 143  ;;  %1728 = vmatpush3.bf16.msra.mxu0 %v1725_v5  ;;  %1742 = vmatpush3.bf16.msra.mxu1 %v1725_v5 }
  0x13   : > { %1730 = vmatprep.subr.bf16.mxu0 %v1729_v8  ;;  %1739 = vmatprep.subr.bf16.mxu1 %v1729_v8  ;;  %s986_s26 = ssub.s32 (%p1966_p4), 144, %s1980_s27  ;;  %s1534_s28 = sshll.u32 (%p1966_p4), %s1954_s15, 9 }
  0x14   : > { %s1451_s8 = sshll.u32 %s179_s7, 3  ;;  %p987_p8 = scmp.lt.s32.totalorder (%p1966_p4), %s986_s26, 64 }
  0x15   : > { %s2002_s21 = scalar_lea.vmem %s2538_s0, %s1451_s8  ;;  %s2339_s4 = scalar_lea.vmem (%p1966_p4), %s2541_s3, %s1534_s28  }
  0x16   : > { %v192_v11 = vld [vmem:[%s2002_s21] sm:$0xff]  ;;  %1732 = vmatpush3.bf16.msra.mxu0 %v1729_v8  ;;  %1743 = vmatpush3.bf16.msra.mxu1 %v1729_v8  ;;  %v193_v14 = vld [vmem:[%s2002_s21 + $0x8] sm:$0xff]  ;;  %v194_v16 = vld [vmem:[%s2002_s21 + $0x10] sm:$0xff] }
  0x17   : > { %v224_v12 = vld [vmem:[%s2002_s21 + $0x100] sm:$0xff]  ;;  %1625 = vmatprep.mubr.msk.f32.mxu0 %vm271_vm0, %v192_v11  ;;  %1734 = vmatprep.subr.bf16.mxu0 %v1733_v13  ;;  %v225_v15 = vld [vmem:[%s2002_s21 + $0x108] sm:$0xff]  ;;  %v226_v17 = vld [vmem:[%s2002_s21 + $0x110] sm:$0xff] }
  0x18   : > { %1673 = vmatprep.mubr.msk.f32.mxu1 %vm271_vm0, %v224_v12  ;;  %1740 = vmatprep.subr.bf16.mxu1 %v1733_v13  ;;  %v195_v18 = vld [vmem:[%s2002_s21 + $0x18] sm:$0xff]  ;;  %v196_v20 = vld [vmem:[%s2002_s21 + $0x20] sm:$0xff]  ;;  %v197_v22 = vld [vmem:[%s2002_s21 + $0x28] sm:$0xff] }
  0x19   : > { %v227_v19 = vld [vmem:[%s2002_s21 + $0x118] sm:$0xff]  ;;  %v228_v21 = vld [vmem:[%s2002_s21 + $0x120] sm:$0xff]  ;;  %v229_v23 = vld [vmem:[%s2002_s21 + $0x128] sm:$0xff] }
  0x1a   : > { %1736 = vmatpush3.bf16.msra.mxu0 %v1733_v13  ;;  %1744 = vmatpush3.bf16.msra.mxu1 %v1733_v13  ;;  %v198_v24 = vld [vmem:[%s2002_s21 + $0x30] sm:$0xff]  ;;  %v199_v26 = vld [vmem:[%s2002_s21 + $0x38] sm:$0xff]  ;;  %v200_v28 = vld [vmem:[%s2002_s21 + $0x40] sm:$0xff] }
  0x1b   : > { %v230_v25 = vld [vmem:[%s2002_s21 + $0x130] sm:$0xff]  ;;  %v231_v27 = vld [vmem:[%s2002_s21 + $0x138] sm:$0xff]  ;;  %v232_v29 = vld [vmem:[%s2002_s21 + $0x140] sm:$0xff] }
  0x1c   : > { %v201_v30 = vld [vmem:[%s2002_s21 + $0x48] sm:$0xff]  ;;  %v202_v32 = vld [vmem:[%s2002_s21 + $0x50] sm:$0xff]  ;;  %v203_v34 = vld [vmem:[%s2002_s21 + $0x58] sm:$0xff] }
  0x1d   : > { %1626 = vmatmul.mubr.msk.f32.vlgmr.msra.gmra.mrb[0].mxu0 %vm271_vm0, %v193_v14  ;;  %1674 = vmatmul.mubr.msk.f32.vlgmr.msra.gmra.mrb[0].mxu1 %vm271_vm0, %v225_v15  ;;  %v233_v31 = vld [vmem:[%s2002_s21 + $0x148] sm:$0xff]  ;;  %v234_v33 = vld [vmem:[%s2002_s21 + $0x150] sm:$0xff]  ;;  %v235_v35 = vld [vmem:[%s2002_s21 + $0x158] sm:$0xff] }
  0x1e   : > { %1628 = vmatprep.mubr.msk.f32.mxu0 %vm271_vm0, %v194_v16  ;;  %1676 = vmatprep.mubr.msk.f32.mxu1 %vm271_vm0, %v226_v17  ;;  %v204_v36 = vld [vmem:[%s2002_s21 + $0x60] sm:$0xff]  ;;  %v205_v38 = vld [vmem:[%s2002_s21 + $0x68] sm:$0xff]  ;;  %v206_v40 = vld [vmem:[%s2002_s21 + $0x70] sm:$0xff] }
  0x1f   : > { %v236_v37 = vld [vmem:[%s2002_s21 + $0x160] sm:$0xff]  ;;  %v237_v39 = vld [vmem:[%s2002_s21 + $0x168] sm:$0xff]  ;;  %v238_v41 = vld [vmem:[%s2002_s21 + $0x170] sm:$0xff] }
  0x20   : > { %v207_v42 = vld [vmem:[%s2002_s21 + $0x78] sm:$0xff]  ;;  %v208_v44 = vld [vmem:[%s2002_s21 + $0x80] sm:$0xff]  ;;  %v209_v46 = vld [vmem:[%s2002_s21 + $0x88] sm:$0xff] }
  0x21   : > { %1629 = vmatmul.mubr.msk.f32.gmra.mrb[2].mxu0 %vm271_vm0, %v195_v18  ;;  %1677 = vmatmul.mubr.msk.f32.gmra.mrb[2].mxu1 %vm271_vm0, %v227_v19  ;;  %v239_v43 = vld [vmem:[%s2002_s21 + $0x178] sm:$0xff]  ;;  %v240_v45 = vld [vmem:[%s2002_s21 + $0x180] sm:$0xff]  ;;  %v241_v47 = vld [vmem:[%s2002_s21 + $0x188] sm:$0xff] }
  0x22   : > { %1631 = vmatprep.mubr.msk.f32.mxu0 %vm271_vm0, %v196_v20  ;;  %1679 = vmatprep.mubr.msk.f32.mxu1 %vm271_vm0, %v228_v21  ;;  %v210_v48 = vld [vmem:[%s2002_s21 + $0x90] sm:$0xff]  ;;  %v211_v50 = vld [vmem:[%s2002_s21 + $0x98] sm:$0xff]  ;;  %v212_v52 = vld [vmem:[%s2002_s21 + $0xa0] sm:$0xff] }
  0x23   : > { %v242_v49 = vld [vmem:[%s2002_s21 + $0x190] sm:$0xff]  ;;  %v243_v51 = vld [vmem:[%s2002_s21 + $0x198] sm:$0xff]  ;;  %v244_v53 = vld [vmem:[%s2002_s21 + $0x1a0] sm:$0xff] }
  0x24   : > { %v213_v54 = vld [vmem:[%s2002_s21 + $0xa8] sm:$0xff]  ;;  %v214_v56 = vld [vmem:[%s2002_s21 + $0xb0] sm:$0xff]  ;;  %v215_v58 = vld [vmem:[%s2002_s21 + $0xb8] sm:$0xff] }
  0x25   : > { %1632 = vmatmul.mubr.msk.f32.gmra.mrb[4].mxu0 %vm271_vm0, %v197_v22  ;;  %1680 = vmatmul.mubr.msk.f32.gmra.mrb[4].mxu1 %vm271_vm0, %v229_v23  ;;  %v245_v55 = vld [vmem:[%s2002_s21 + $0x1a8] sm:$0xff]  ;;  %v246_v57 = vld [vmem:[%s2002_s21 + $0x1b0] sm:$0xff]  ;;  %v247_v59 = vld [vmem:[%s2002_s21 + $0x1b8] sm:$0xff] }
  0x26   : > { %1634 = vmatprep.mubr.msk.f32.mxu0 %vm271_vm0, %v198_v24  ;;  %1682 = vmatprep.mubr.msk.f32.mxu1 %vm271_vm0, %v230_v25  ;;  %v216_v60 = vld [vmem:[%s2002_s21 + $0xc0] sm:$0xff]  ;;  %v217_v62 = vld [vmem:[%s2002_s21 + $0xc8] sm:$0xff]  ;;  %v218_v0 = vld [vmem:[%s2002_s21 + $0xd0] sm:$0xff] }
  0x27   : > { %v248_v61 = vld [vmem:[%s2002_s21 + $0x1c0] sm:$0xff]  ;;  %v249_v63 = vld [vmem:[%s2002_s21 + $0x1c8] sm:$0xff]  ;;  %v250_v1 = vld [vmem:[%s2002_s21 + $0x1d0] sm:$0xff] }
  0x28   : > { %v219_v2 = vld [vmem:[%s2002_s21 + $0xd8] sm:$0xff]  ;;  %v220_v4 = vld [vmem:[%s2002_s21 + $0xe0] sm:$0xff]  ;;  %v221_v6 = vld [vmem:[%s2002_s21 + $0xe8] sm:$0xff] }
  0x29   : > { %1635 = vmatmul.mubr.msk.f32.gmra.mrb[6].mxu0 %vm271_vm0, %v199_v26  ;;  %1683 = vmatmul.mubr.msk.f32.gmra.mrb[6].mxu1 %vm271_vm0, %v231_v27  ;;  %v251_v3 = vld [vmem:[%s2002_s21 + $0x1d8] sm:$0xff]  ;;  %v252_v5 = vld [vmem:[%s2002_s21 + $0x1e0] sm:$0xff]  ;;  %v253_v7 = vld [vmem:[%s2002_s21 + $0x1e8] sm:$0xff] }
  0x2a   : > { %1637 = vmatprep.mubr.msk.f32.mxu0 %vm271_vm0, %v200_v28  ;;  %1685 = vmatprep.mubr.msk.f32.mxu1 %vm271_vm0, %v232_v29  ;;  %v222_v8 = vld [vmem:[%s2002_s21 + $0xf0] sm:$0xff]  ;;  %v223_v10 = vld [vmem:[%s2002_s21 + $0xf8] sm:$0xff]  ;;  %v2136_v12 = vld [vmem:[%s2540_s2] ss:$0 sm:$0xff] }
  0x2b   : > { %v254_v9 = vld [vmem:[%s2002_s21 + $0x1f0] sm:$0xff]  ;;  %v255_v11 = vld [vmem:[%s2002_s21 + $0x1f8] sm:$0xff] }
  0x2d   : > { %1638 = vmatmul.mubr.msk.f32.gmra.mrb[8].mxu0 %vm271_vm0, %v201_v30  ;;  %1686 = vmatmul.mubr.msk.f32.gmra.mrb[8].mxu1 %vm271_vm0, %v233_v31 }
  0x2e   : > { %1640 = vmatprep.mubr.msk.f32.mxu0 %vm271_vm0, %v202_v32  ;;  %1688 = vmatprep.mubr.msk.f32.mxu1 %vm271_vm0, %v234_v33 }
  0x31   : > { %1641 = vmatmul.mubr.msk.f32.gmra.mrb[10].mxu0 %vm271_vm0, %v203_v34  ;;  %1689 = vmatmul.mubr.msk.f32.gmra.mrb[10].mxu1 %vm271_vm0, %v235_v35 }
  0x32   : > { %1643 = vmatprep.mubr.msk.f32.mxu0 %vm271_vm0, %v204_v36  ;;  %1691 = vmatprep.mubr.msk.f32.mxu1 %vm271_vm0, %v236_v37 }
  0x35   : > { %1644 = vmatmul.mubr.msk.f32.gmra.mrb[12].mxu0 %vm271_vm0, %v205_v38  ;;  %1692 = vmatmul.mubr.msk.f32.gmra.mrb[12].mxu1 %vm271_vm0, %v237_v39 }
  0x36   : > { %1646 = vmatprep.mubr.msk.f32.mxu0 %vm271_vm0, %v206_v40  ;;  %1694 = vmatprep.mubr.msk.f32.mxu1 %vm271_vm0, %v238_v41 }
  0x39   : > { %1647 = vmatmul.mubr.msk.f32.gmra.mrb[14].mxu0 %vm271_vm0, %v207_v42  ;;  %1695 = vmatmul.mubr.msk.f32.gmra.mrb[14].mxu1 %vm271_vm0, %v239_v43 }
  0x3a   : > { %1649 = vmatprep.mubr.msk.f32.mxu0 %vm271_vm0, %v208_v44  ;;  %1697 = vmatprep.mubr.msk.f32.mxu1 %vm271_vm0, %v240_v45 }
  0x3d   : > { %1650 = vmatmul.mubr.msk.f32.gmra.mrb[16].mxu0 %vm271_vm0, %v209_v46  ;;  %1698 = vmatmul.mubr.msk.f32.gmra.mrb[16].mxu1 %vm271_vm0, %v241_v47 }
  0x3e   : > { %1652 = vmatprep.mubr.msk.f32.mxu0 %vm271_vm0, %v210_v48  ;;  %1700 = vmatprep.mubr.msk.f32.mxu1 %vm271_vm0, %v242_v49 }
  0x41   : > { %1653 = vmatmul.mubr.msk.f32.gmra.mrb[18].mxu0 %vm271_vm0, %v211_v50  ;;  %1701 = vmatmul.mubr.msk.f32.gmra.mrb[18].mxu1 %vm271_vm0, %v243_v51 }
  0x42   : > { %1655 = vmatprep.mubr.msk.f32.mxu0 %vm271_vm0, %v212_v52  ;;  %1703 = vmatprep.mubr.msk.f32.mxu1 %vm271_vm0, %v244_v53 }
  0x45   : > { %1656 = vmatmul.mubr.msk.f32.gmra.mrb[20].mxu0 %vm271_vm0, %v213_v54  ;;  %1704 = vmatmul.mubr.msk.f32.gmra.mrb[20].mxu1 %vm271_vm0, %v245_v55 }
  0x46   : > { %1658 = vmatprep.mubr.msk.f32.mxu0 %vm271_vm0, %v214_v56  ;;  %1706 = vmatprep.mubr.msk.f32.mxu1 %vm271_vm0, %v246_v57 }
  0x49   : > { %1659 = vmatmul.mubr.msk.f32.gmra.mrb[22].mxu0 %vm271_vm0, %v215_v58  ;;  %1707 = vmatmul.mubr.msk.f32.gmra.mrb[22].mxu1 %vm271_vm0, %v247_v59 }
  0x4a   : > { %1661 = vmatprep.mubr.msk.f32.mxu0 %vm271_vm0, %v216_v60  ;;  %1709 = vmatprep.mubr.msk.f32.mxu1 %vm271_vm0, %v248_v61 }
  0x4d   : > { %1662 = vmatmul.mubr.msk.f32.gmra.mrb[24].mxu0 %vm271_vm0, %v217_v62  ;;  %1710 = vmatmul.mubr.msk.f32.gmra.mrb[24].mxu1 %vm271_vm0, %v249_v63 }
  0x4e   : > { %1664 = vmatprep.mubr.msk.f32.mxu0 %vm271_vm0, %v218_v0  ;;  %1712 = vmatprep.mubr.msk.f32.mxu1 %vm271_vm0, %v250_v1 }
  0x51   : > { %1665 = vmatmul.mubr.msk.f32.gmra.mrb[26].mxu0 %vm271_vm0, %v219_v2  ;;  %1713 = vmatmul.mubr.msk.f32.gmra.mrb[26].mxu1 %vm271_vm0, %v251_v3 }
  0x52   : > { %1667 = vmatprep.mubr.msk.f32.mxu0 %vm271_vm0, %v220_v4  ;;  %1715 = vmatprep.mubr.msk.f32.mxu1 %vm271_vm0, %v252_v5 }
  0x55   : > { %1668 = vmatmul.mubr.msk.f32.gmra.mrb[28].mxu0 %vm271_vm0, %v221_v6  ;;  %1716 = vmatmul.mubr.msk.f32.gmra.mrb[28].mxu1 %vm271_vm0, %v253_v7 }
  0x56   : > { %1670 = vmatprep.mubr.msk.f32.mxu0 %vm271_vm0, %v222_v8  ;;  %1718 = vmatprep.mubr.msk.f32.mxu1 %vm271_vm0, %v254_v9 }
  0x59   : > { %1671 = vmatmul.mubr.msk.f32.gmra.mrb[30].mxu0 %vm271_vm0, %v223_v10  ;;  %1719 = vmatmul.mubr.msk.f32.gmra.mrb[30].mxu1 %vm271_vm0, %v255_v11 }
  0xf0   : > { %v1627_v13 = vpop.f32.mrb[0].mxu0  ;;  %v1675_v14 = vpop.f32.mrb[0].mxu1 }
  0xf1   : > { %v536_v15 = vadd.f32 %v1627_v13, %v2136_v12  ;;  %v696_v16 = vadd.f32 %v1675_v14, %v2136_v12  ;;  %v530_v17 = vpop.f32.mrb[1].mxu0  ;;  %v690_v18 = vpop.f32.mrb[1].mxu1 }
  0xf2   : > { %v531_v19 = vadd.f32 %v2136_v12, %v530_v17  ;;  %v691_v20 = vadd.f32 %v2136_v12, %v690_v18 }
  0xf3   : > { %v850_v21 = vmax.f32 %v536_v15, 0.0  ;;  %v882_v22 = vmax.f32 %v696_v16, 0.0 }
  0xf4   : > { %v849_v23 = vmax.f32 %v531_v19, 0.0  ;;  %v881_v24 = vmax.f32 %v691_v20, 0.0  ;;  %v1630_v25 = vpop.f32.mrb[2].mxu0  ;;  %v1678_v26 = vpop.f32.mrb[2].mxu1 }
  0xf5   : > { %915 = vst.msk [vmem:[%s2142_s12 + $0x8] sm:$0xff] %vm913_vm1, %v850_v21  ;;  %947 = vst.msk [vmem:[%s2142_s12 + $0x108] sm:$0xff] %vm913_vm1, %v882_v22  ;;  %v546_v27 = vadd.f32 %v1630_v25, %v2136_v12  ;;  %v706_v28 = vadd.f32 %v1678_v26, %v2136_v12  ;;  %v540_v29 = vpop.f32.mrb[3].mxu0  ;;  %v700_v30 = vpop.f32.mrb[3].mxu1 }
  0xf6   : > { %914 = vst.msk [vmem:[%s2142_s12] sm:$0xff] %vm913_vm1, %v849_v23  ;;  %946 = vst.msk [vmem:[%s2142_s12 + $0x100] sm:$0xff] %vm913_vm1, %v881_v24  ;;  %v541_v31 = vadd.f32 %v2136_v12, %v540_v29  ;;  %v701_v32 = vadd.f32 %v2136_v12, %v700_v30 }
  0xf7   : > { %v852_v33 = vmax.f32 %v546_v27, 0.0  ;;  %v884_v34 = vmax.f32 %v706_v28, 0.0 }
  0xf8   : > { %v851_v35 = vmax.f32 %v541_v31, 0.0  ;;  %v883_v36 = vmax.f32 %v701_v32, 0.0  ;;  %v1633_v37 = vpop.f32.mrb[4].mxu0  ;;  %v1681_v38 = vpop.f32.mrb[4].mxu1 }
  0xf9   : > { %917 = vst.msk [vmem:[%s2142_s12 + $0x18] sm:$0xff] %vm913_vm1, %v852_v33  ;;  %949 = vst.msk [vmem:[%s2142_s12 + $0x118] sm:$0xff] %vm913_vm1, %v884_v34  ;;  %v556_v39 = vadd.f32 %v1633_v37, %v2136_v12  ;;  %v716_v40 = vadd.f32 %v1681_v38, %v2136_v12  ;;  %v550_v41 = vpop.f32.mrb[5].mxu0  ;;  %v710_v42 = vpop.f32.mrb[5].mxu1 }
  0xfa   : > { %916 = vst.msk [vmem:[%s2142_s12 + $0x10] sm:$0xff] %vm913_vm1, %v851_v35  ;;  %948 = vst.msk [vmem:[%s2142_s12 + $0x110] sm:$0xff] %vm913_vm1, %v883_v36  ;;  %v551_v43 = vadd.f32 %v2136_v12, %v550_v41  ;;  %v711_v44 = vadd.f32 %v2136_v12, %v710_v42 }
  0xfb   : > { %v854_v45 = vmax.f32 %v556_v39, 0.0  ;;  %v886_v46 = vmax.f32 %v716_v40, 0.0 }
  0xfc   : > { %v853_v47 = vmax.f32 %v551_v43, 0.0  ;;  %v885_v48 = vmax.f32 %v711_v44, 0.0  ;;  %v1636_v49 = vpop.f32.mrb[6].mxu0  ;;  %v1684_v50 = vpop.f32.mrb[6].mxu1 }
  0xfd   : > { %919 = vst.msk [vmem:[%s2142_s12 + $0x28] sm:$0xff] %vm913_vm1, %v854_v45  ;;  %951 = vst.msk [vmem:[%s2142_s12 + $0x128] sm:$0xff] %vm913_vm1, %v886_v46  ;;  %v566_v51 = vadd.f32 %v1636_v49, %v2136_v12  ;;  %v726_v52 = vadd.f32 %v1684_v50, %v2136_v12  ;;  %v560_v53 = vpop.f32.mrb[7].mxu0  ;;  %v720_v54 = vpop.f32.mrb[7].mxu1 }
  0xfe   : > { %918 = vst.msk [vmem:[%s2142_s12 + $0x20] sm:$0xff] %vm913_vm1, %v853_v47  ;;  %950 = vst.msk [vmem:[%s2142_s12 + $0x120] sm:$0xff] %vm913_vm1, %v885_v48  ;;  %v561_v55 = vadd.f32 %v2136_v12, %v560_v53  ;;  %v721_v56 = vadd.f32 %v2136_v12, %v720_v54 }
  0xff   : > { %v856_v57 = vmax.f32 %v566_v51, 0.0  ;;  %v888_v58 = vmax.f32 %v726_v52, 0.0 }
 0x100   : > { %v855_v59 = vmax.f32 %v561_v55, 0.0  ;;  %v887_v60 = vmax.f32 %v721_v56, 0.0  ;;  %v1639_v61 = vpop.f32.mrb[8].mxu0  ;;  %v1687_v62 = vpop.f32.mrb[8].mxu1 }
 0x101   : > { %921 = vst.msk [vmem:[%s2142_s12 + $0x38] sm:$0xff] %vm913_vm1, %v856_v57  ;;  %953 = vst.msk [vmem:[%s2142_s12 + $0x138] sm:$0xff] %vm913_vm1, %v888_v58  ;;  %v576_v63 = vadd.f32 %v1639_v61, %v2136_v12  ;;  %v736_v0 = vadd.f32 %v1687_v62, %v2136_v12  ;;  %v570_v1 = vpop.f32.mrb[9].mxu0  ;;  %v730_v2 = vpop.f32.mrb[9].mxu1 }
 0x102   : > { %920 = vst.msk [vmem:[%s2142_s12 + $0x30] sm:$0xff] %vm913_vm1, %v855_v59  ;;  %952 = vst.msk [vmem:[%s2142_s12 + $0x130] sm:$0xff] %vm913_vm1, %v887_v60  ;;  %v571_v3 = vadd.f32 %v2136_v12, %v570_v1  ;;  %v731_v4 = vadd.f32 %v2136_v12, %v730_v2 }
 0x103   : > { %v858_v5 = vmax.f32 %v576_v63, 0.0  ;;  %v890_v6 = vmax.f32 %v736_v0, 0.0 }
 0x104   : > { %v857_v7 = vmax.f32 %v571_v3, 0.0  ;;  %v889_v8 = vmax.f32 %v731_v4, 0.0  ;;  %v1642_v9 = vpop.f32.mrb[10].mxu0  ;;  %v1690_v10 = vpop.f32.mrb[10].mxu1 }
 0x105   : > { %923 = vst.msk [vmem:[%s2142_s12 + $0x48] sm:$0xff] %vm913_vm1, %v858_v5  ;;  %955 = vst.msk [vmem:[%s2142_s12 + $0x148] sm:$0xff] %vm913_vm1, %v890_v6  ;;  %v586_v11 = vadd.f32 %v1642_v9, %v2136_v12  ;;  %v746_v13 = vadd.f32 %v1690_v10, %v2136_v12  ;;  %v580_v14 = vpop.f32.mrb[11].mxu0  ;;  %v740_v15 = vpop.f32.mrb[11].mxu1 }
 0x106   : > { %922 = vst.msk [vmem:[%s2142_s12 + $0x40] sm:$0xff] %vm913_vm1, %v857_v7  ;;  %954 = vst.msk [vmem:[%s2142_s12 + $0x140] sm:$0xff] %vm913_vm1, %v889_v8  ;;  %v581_v16 = vadd.f32 %v2136_v12, %v580_v14  ;;  %v741_v17 = vadd.f32 %v2136_v12, %v740_v15 }
 0x107   : > { %v860_v18 = vmax.f32 %v586_v11, 0.0  ;;  %v892_v19 = vmax.f32 %v746_v13, 0.0 }
 0x108   : > { %v859_v20 = vmax.f32 %v581_v16, 0.0  ;;  %v891_v21 = vmax.f32 %v741_v17, 0.0  ;;  %v1645_v22 = vpop.f32.mrb[12].mxu0  ;;  %v1693_v23 = vpop.f32.mrb[12].mxu1 }
 0x109   : > { %925 = vst.msk [vmem:[%s2142_s12 + $0x58] sm:$0xff] %vm913_vm1, %v860_v18  ;;  %957 = vst.msk [vmem:[%s2142_s12 + $0x158] sm:$0xff] %vm913_vm1, %v892_v19  ;;  %v596_v24 = vadd.f32 %v1645_v22, %v2136_v12  ;;  %v756_v25 = vadd.f32 %v1693_v23, %v2136_v12  ;;  %v590_v26 = vpop.f32.mrb[13].mxu0  ;;  %v750_v27 = vpop.f32.mrb[13].mxu1 }
 0x10a   : > { %924 = vst.msk [vmem:[%s2142_s12 + $0x50] sm:$0xff] %vm913_vm1, %v859_v20  ;;  %956 = vst.msk [vmem:[%s2142_s12 + $0x150] sm:$0xff] %vm913_vm1, %v891_v21  ;;  %v591_v28 = vadd.f32 %v2136_v12, %v590_v26  ;;  %v751_v29 = vadd.f32 %v2136_v12, %v750_v27 }
 0x10b   : > { %v862_v30 = vmax.f32 %v596_v24, 0.0  ;;  %v894_v31 = vmax.f32 %v756_v25, 0.0 }
 0x10c   : > { %v861_v32 = vmax.f32 %v591_v28, 0.0  ;;  %v893_v33 = vmax.f32 %v751_v29, 0.0  ;;  %v1648_v34 = vpop.f32.mrb[14].mxu0  ;;  %v1696_v35 = vpop.f32.mrb[14].mxu1 }
 0x10d   : > { %927 = vst.msk [vmem:[%s2142_s12 + $0x68] sm:$0xff] %vm913_vm1, %v862_v30  ;;  %959 = vst.msk [vmem:[%s2142_s12 + $0x168] sm:$0xff] %vm913_vm1, %v894_v31  ;;  %v606_v36 = vadd.f32 %v1648_v34, %v2136_v12  ;;  %v766_v37 = vadd.f32 %v1696_v35, %v2136_v12  ;;  %v600_v38 = vpop.f32.mrb[15].mxu0  ;;  %v760_v39 = vpop.f32.mrb[15].mxu1 }
 0x10e   : > { %926 = vst.msk [vmem:[%s2142_s12 + $0x60] sm:$0xff] %vm913_vm1, %v861_v32  ;;  %958 = vst.msk [vmem:[%s2142_s12 + $0x160] sm:$0xff] %vm913_vm1, %v893_v33  ;;  %v601_v40 = vadd.f32 %v2136_v12, %v600_v38  ;;  %v761_v41 = vadd.f32 %v2136_v12, %v760_v39 }
 0x10f   : > { %v864_v42 = vmax.f32 %v606_v36, 0.0  ;;  %v896_v43 = vmax.f32 %v766_v37, 0.0 }
 0x110   : > { %v863_v44 = vmax.f32 %v601_v40, 0.0  ;;  %v895_v45 = vmax.f32 %v761_v41, 0.0  ;;  %v1651_v46 = vpop.f32.mrb[16].mxu0  ;;  %v1699_v47 = vpop.f32.mrb[16].mxu1 }
 0x111   : > { %929 = vst.msk [vmem:[%s2142_s12 + $0x78] sm:$0xff] %vm913_vm1, %v864_v42  ;;  %961 = vst.msk [vmem:[%s2142_s12 + $0x178] sm:$0xff] %vm913_vm1, %v896_v43  ;;  %v616_v48 = vadd.f32 %v1651_v46, %v2136_v12  ;;  %v776_v49 = vadd.f32 %v1699_v47, %v2136_v12  ;;  %v610_v50 = vpop.f32.mrb[17].mxu0  ;;  %v770_v51 = vpop.f32.mrb[17].mxu1 }
 0x112   : > { %928 = vst.msk [vmem:[%s2142_s12 + $0x70] sm:$0xff] %vm913_vm1, %v863_v44  ;;  %960 = vst.msk [vmem:[%s2142_s12 + $0x170] sm:$0xff] %vm913_vm1, %v895_v45  ;;  %v611_v52 = vadd.f32 %v2136_v12, %v610_v50  ;;  %v771_v53 = vadd.f32 %v2136_v12, %v770_v51 }
 0x113   : > { %v866_v54 = vmax.f32 %v616_v48, 0.0  ;;  %v898_v55 = vmax.f32 %v776_v49, 0.0 }
 0x114   : > { %v865_v56 = vmax.f32 %v611_v52, 0.0  ;;  %v897_v57 = vmax.f32 %v771_v53, 0.0  ;;  %v1654_v58 = vpop.f32.mrb[18].mxu0  ;;  %v1702_v59 = vpop.f32.mrb[18].mxu1 }
 0x115   : > { %931 = vst.msk [vmem:[%s2142_s12 + $0x88] sm:$0xff] %vm913_vm1, %v866_v54  ;;  %963 = vst.msk [vmem:[%s2142_s12 + $0x188] sm:$0xff] %vm913_vm1, %v898_v55  ;;  %v626_v60 = vadd.f32 %v1654_v58, %v2136_v12  ;;  %v786_v61 = vadd.f32 %v1702_v59, %v2136_v12  ;;  %v620_v62 = vpop.f32.mrb[19].mxu0  ;;  %v780_v63 = vpop.f32.mrb[19].mxu1 }
 0x116   : > { %930 = vst.msk [vmem:[%s2142_s12 + $0x80] sm:$0xff] %vm913_vm1, %v865_v56  ;;  %962 = vst.msk [vmem:[%s2142_s12 + $0x180] sm:$0xff] %vm913_vm1, %v897_v57  ;;  %v621_v0 = vadd.f32 %v2136_v12, %v620_v62  ;;  %v781_v1 = vadd.f32 %v2136_v12, %v780_v63 }
 0x117   : > { %v868_v2 = vmax.f32 %v626_v60, 0.0  ;;  %v900_v3 = vmax.f32 %v786_v61, 0.0 }
 0x118   : > { %v867_v4 = vmax.f32 %v621_v0, 0.0  ;;  %v899_v5 = vmax.f32 %v781_v1, 0.0  ;;  %v1657_v6 = vpop.f32.mrb[20].mxu0  ;;  %v1705_v7 = vpop.f32.mrb[20].mxu1 }
 0x119   : > { %933 = vst.msk [vmem:[%s2142_s12 + $0x98] sm:$0xff] %vm913_vm1, %v868_v2  ;;  %965 = vst.msk [vmem:[%s2142_s12 + $0x198] sm:$0xff] %vm913_vm1, %v900_v3  ;;  %v636_v8 = vadd.f32 %v1657_v6, %v2136_v12  ;;  %v796_v9 = vadd.f32 %v1705_v7, %v2136_v12  ;;  %v630_v10 = vpop.f32.mrb[21].mxu0  ;;  %v790_v11 = vpop.f32.mrb[21].mxu1 }
 0x11a   : > { %932 = vst.msk [vmem:[%s2142_s12 + $0x90] sm:$0xff] %vm913_vm1, %v867_v4  ;;  %964 = vst.msk [vmem:[%s2142_s12 + $0x190] sm:$0xff] %vm913_vm1, %v899_v5  ;;  %v631_v13 = vadd.f32 %v2136_v12, %v630_v10  ;;  %v791_v14 = vadd.f32 %v2136_v12, %v790_v11 }
 0x11b   : > { %v870_v15 = vmax.f32 %v636_v8, 0.0  ;;  %v902_v16 = vmax.f32 %v796_v9, 0.0 }
 0x11c   : > { %v869_v17 = vmax.f32 %v631_v13, 0.0  ;;  %v901_v18 = vmax.f32 %v791_v14, 0.0  ;;  %v1660_v19 = vpop.f32.mrb[22].mxu0  ;;  %v1708_v20 = vpop.f32.mrb[22].mxu1 }
 0x11d   : > { %935 = vst.msk [vmem:[%s2142_s12 + $0xa8] sm:$0xff] %vm913_vm1, %v870_v15  ;;  %967 = vst.msk [vmem:[%s2142_s12 + $0x1a8] sm:$0xff] %vm913_vm1, %v902_v16  ;;  %v646_v21 = vadd.f32 %v1660_v19, %v2136_v12  ;;  %v806_v22 = vadd.f32 %v1708_v20, %v2136_v12  ;;  %v640_v23 = vpop.f32.mrb[23].mxu0  ;;  %v800_v24 = vpop.f32.mrb[23].mxu1 }
 0x11e   : > { %934 = vst.msk [vmem:[%s2142_s12 + $0xa0] sm:$0xff] %vm913_vm1, %v869_v17  ;;  %966 = vst.msk [vmem:[%s2142_s12 + $0x1a0] sm:$0xff] %vm913_vm1, %v901_v18  ;;  %v641_v25 = vadd.f32 %v2136_v12, %v640_v23  ;;  %v801_v26 = vadd.f32 %v2136_v12, %v800_v24 }
 0x11f   : > { %v872_v27 = vmax.f32 %v646_v21, 0.0  ;;  %v904_v28 = vmax.f32 %v806_v22, 0.0 }
 0x120   : > { %v871_v29 = vmax.f32 %v641_v25, 0.0  ;;  %v903_v30 = vmax.f32 %v801_v26, 0.0  ;;  %v1663_v31 = vpop.f32.mrb[24].mxu0  ;;  %v1711_v32 = vpop.f32.mrb[24].mxu1 }
 0x121   : > { %937 = vst.msk [vmem:[%s2142_s12 + $0xb8] sm:$0xff] %vm913_vm1, %v872_v27  ;;  %969 = vst.msk [vmem:[%s2142_s12 + $0x1b8] sm:$0xff] %vm913_vm1, %v904_v28  ;;  %v656_v33 = vadd.f32 %v1663_v31, %v2136_v12  ;;  %v816_v34 = vadd.f32 %v1711_v32, %v2136_v12  ;;  %v650_v35 = vpop.f32.mrb[25].mxu0  ;;  %v810_v36 = vpop.f32.mrb[25].mxu1 }
 0x122   : > { %936 = vst.msk [vmem:[%s2142_s12 + $0xb0] sm:$0xff] %vm913_vm1, %v871_v29  ;;  %968 = vst.msk [vmem:[%s2142_s12 + $0x1b0] sm:$0xff] %vm913_vm1, %v903_v30  ;;  %v651_v37 = vadd.f32 %v2136_v12, %v650_v35  ;;  %v811_v38 = vadd.f32 %v2136_v12, %v810_v36 }
 0x123   : > { %v874_v39 = vmax.f32 %v656_v33, 0.0  ;;  %v906_v40 = vmax.f32 %v816_v34, 0.0 }
 0x124   : > { %v873_v41 = vmax.f32 %v651_v37, 0.0  ;;  %v905_v42 = vmax.f32 %v811_v38, 0.0  ;;  %v1666_v43 = vpop.f32.mrb[26].mxu0  ;;  %v1714_v44 = vpop.f32.mrb[26].mxu1 }
 0x125   : > { %939 = vst.msk [vmem:[%s2142_s12 + $0xc8] sm:$0xff] %vm913_vm1, %v874_v39  ;;  %971 = vst.msk [vmem:[%s2142_s12 + $0x1c8] sm:$0xff] %vm913_vm1, %v906_v40  ;;  %v666_v45 = vadd.f32 %v1666_v43, %v2136_v12  ;;  %v826_v46 = vadd.f32 %v1714_v44, %v2136_v12  ;;  %v660_v47 = vpop.f32.mrb[27].mxu0  ;;  %v820_v48 = vpop.f32.mrb[27].mxu1 }
 0x126   : > { %938 = vst.msk [vmem:[%s2142_s12 + $0xc0] sm:$0xff] %vm913_vm1, %v873_v41  ;;  %970 = vst.msk [vmem:[%s2142_s12 + $0x1c0] sm:$0xff] %vm913_vm1, %v905_v42  ;;  %v661_v49 = vadd.f32 %v2136_v12, %v660_v47  ;;  %v821_v50 = vadd.f32 %v2136_v12, %v820_v48 }
 0x127   : > { %v876_v51 = vmax.f32 %v666_v45, 0.0  ;;  %v908_v52 = vmax.f32 %v826_v46, 0.0 }
 0x128   : > { %v875_v53 = vmax.f32 %v661_v49, 0.0  ;;  %v907_v54 = vmax.f32 %v821_v50, 0.0  ;;  %v1669_v55 = vpop.f32.mrb[28].mxu0  ;;  %v1717_v56 = vpop.f32.mrb[28].mxu1 }
 0x129   : > { %941 = vst.msk [vmem:[%s2142_s12 + $0xd8] sm:$0xff] %vm913_vm1, %v876_v51  ;;  %973 = vst.msk [vmem:[%s2142_s12 + $0x1d8] sm:$0xff] %vm913_vm1, %v908_v52  ;;  %v676_v57 = vadd.f32 %v1669_v55, %v2136_v12  ;;  %v836_v58 = vadd.f32 %v1717_v56, %v2136_v12  ;;  %v670_v59 = vpop.f32.mrb[29].mxu0  ;;  %v830_v60 = vpop.f32.mrb[29].mxu1 }
 0x12a   : > { %940 = vst.msk [vmem:[%s2142_s12 + $0xd0] sm:$0xff] %vm913_vm1, %v875_v53  ;;  %972 = vst.msk [vmem:[%s2142_s12 + $0x1d0] sm:$0xff] %vm913_vm1, %v907_v54  ;;  %v671_v61 = vadd.f32 %v2136_v12, %v670_v59  ;;  %v831_v62 = vadd.f32 %v2136_v12, %v830_v60 }
 0x12b   : > { %v878_v63 = vmax.f32 %v676_v57, 0.0  ;;  %v910_v0 = vmax.f32 %v836_v58, 0.0 }
 0x12c   : > { %v877_v1 = vmax.f32 %v671_v61, 0.0  ;;  %v909_v2 = vmax.f32 %v831_v62, 0.0  ;;  %v1672_v3 = vpop.f32.mrb[30].mxu0  ;;  %v1720_v4 = vpop.f32.mrb[30].mxu1  ;;  %984 = sbr.rel (!%p1966_p4) target bundleno = 379 (0x17b), region = 36 }
 0x12d   : > { %943 = vst.msk [vmem:[%s2142_s12 + $0xe8] sm:$0xff] %vm913_vm1, %v878_v63  ;;  %975 = vst.msk [vmem:[%s2142_s12 + $0x1e8] sm:$0xff] %vm913_vm1, %v910_v0  ;;  %v686_v5 = vadd.f32 %v1672_v3, %v2136_v12  ;;  %v846_v6 = vadd.f32 %v1720_v4, %v2136_v12  ;;  %v680_v7 = vpop.f32.mrb[31].mxu0  ;;  %v840_v8 = vpop.f32.mrb[31].mxu1 }
 0x12e   : > { %942 = vst.msk [vmem:[%s2142_s12 + $0xe0] sm:$0xff] %vm913_vm1, %v877_v1  ;;  %974 = vst.msk [vmem:[%s2142_s12 + $0x1e0] sm:$0xff] %vm913_vm1, %v909_v2  ;;  %v681_v9 = vadd.f32 %v2136_v12, %v680_v7  ;;  %v841_v10 = vadd.f32 %v2136_v12, %v840_v8 }
 0x12f   : > { %v880_v11 = vmax.f32 %v686_v5, 0.0  ;;  %v912_v13 = vmax.f32 %v846_v6, 0.0 }
 0x130   : > { %v879_v14 = vmax.f32 %v681_v9, 0.0  ;;  %v911_v15 = vmax.f32 %v841_v10, 0.0 }
 0x131   : > { %945 = vst.msk [vmem:[%s2142_s12 + $0xf8] sm:$0xff] %vm913_vm1, %v880_v11  ;;  %977 = vst.msk [vmem:[%s2142_s12 + $0x1f8] sm:$0xff] %vm913_vm1, %v912_v13 }
 0x132   : > { %944 = vst.msk [vmem:[%s2142_s12 + $0xf0] sm:$0xff] %vm913_vm1, %v879_v14  ;;  %976 = vst.msk [vmem:[%s2142_s12 + $0x1f0] sm:$0xff] %vm913_vm1, %v911_v15 }
 0x133   : > { %s2552_s26 = smov (!%p987_p8, %s986_s26), 64 }
 0x134   : > { %s1519_s5 = sshll.u32 %s2552_s26, 7 }
 0x135   : > { %p1522_p9 = scmp.eq.s32.totalorder %s1519_s5, 0 }
 0x136   : > { %s2345_s6 = sshrl.u32 (!%p1522_p9), %s2552_s26, 6 }
 0x137   : > { %995 = sbr.rel (%p1522_p9) target bundleno = 379 (0x17b), region = 40  ;;  %p1523_p10 = scmp.le.s32.totalorder (!%p1522_p9), %s2345_s6, 0 }
 0x13e   : > { %1401 = sbr.rel (%p1523_p10) target bundleno = 358 (0x166), region = 116  ;;  %s2543_s15 = smov (!%p1523_p10), %s2339_s4 }
 0x13f   : > { %s2544_s20 = smov (!%p1523_p10), %s2142_s12  ;;  %s2354_s27 = smov (!%p1523_p10), 0  }
 0x140   : > { %s2356_s7 = smov (!%p1523_p10), 0  }
 0x145 LB: >> { %v1183_v12 = vld [vmem:[%s1895_s20] sm:$0xff]  ;;  %v1185_v16 = vld [vmem:[%s1895_s20 + $0x8] sm:$0xff]  ;;  %v1187_v17 = vld [vmem:[%s1895_s20 + $0x10] sm:$0xff]  ;;  %s1311_s8 = sadd.s32 1, %s1899_s27  ;;  %s1177_s7 = sadd.s32 1, %s1903_s7   ;;  %s1903_s7 = sphi %s2356_s7, %s1177_s7   ;;  %s1899_s27 = sphi %s2354_s27, %s2547_s27   ;;  %s1895_s20 = sphi %s2544_s20, %s2546_s20   ;;  %s1891_s15 = sphi %s2543_s15, %s2545_s15  }
 0x146   : >> { %1184 = vst [vmem:[%s1891_s15] sm:$0xff] %v1183_v12  ;;  %1186 = vst [vmem:[%s1891_s15 + $0x8] sm:$0xff] %v1185_v16  ;;  %v1189_v18 = vld [vmem:[%s1895_s20 + $0x18] sm:$0xff]  ;;  %v1191_v19 = vld [vmem:[%s1895_s20 + $0x20] sm:$0xff]  ;;  %p1312_p11 = scmp.ge.s32.totalorder %s1311_s8, %s2345_s6  ;;  %p1176_p12 = scmp.ge.s32.totalorder %s1177_s7, %s2345_s6 }
 0x147   : >> { %1188 = vst [vmem:[%s1891_s15 + $0x10] sm:$0xff] %v1187_v17  ;;  %v1193_v20 = vld [vmem:[%s1895_s20 + $0x28] sm:$0xff]  ;;  %1190 = vst [vmem:[%s1891_s15 + $0x18] sm:$0xff] %v1189_v18  ;;  %v1195_v21 = vld [vmem:[%s1895_s20 + $0x30] sm:$0xff] }
 0x148   : >> { %1192 = vst [vmem:[%s1891_s15 + $0x20] sm:$0xff] %v1191_v19  ;;  %1194 = vst [vmem:[%s1891_s15 + $0x28] sm:$0xff] %v1193_v20  ;;  %v1197_v22 = vld [vmem:[%s1895_s20 + $0x38] sm:$0xff]  ;;  %v1199_v23 = vld [vmem:[%s1895_s20 + $0x40] sm:$0xff]  ;;  %s2554_s8 = smov (%p1312_p11, %s1311_s8), 0 }
 0x149   : >> { %1196 = vst [vmem:[%s1891_s15 + $0x30] sm:$0xff] %v1195_v21  ;;  %1198 = vst [vmem:[%s1891_s15 + $0x38] sm:$0xff] %v1197_v22  ;;  %v1201_v24 = vld [vmem:[%s1895_s20 + $0x48] sm:$0xff]  ;;  %v1203_v25 = vld [vmem:[%s1895_s20 + $0x50] sm:$0xff]  ;;  %s1524_s9 = sshll.u32 %s2554_s8, 9  ;;  %s2547_s27 = smov %s2554_s8 }
 0x14a   : >> { %1200 = vst [vmem:[%s1891_s15 + $0x40] sm:$0xff] %v1199_v23  ;;  %v1205_v26 = vld [vmem:[%s1895_s20 + $0x58] sm:$0xff]  ;;  %1202 = vst [vmem:[%s1891_s15 + $0x48] sm:$0xff] %v1201_v24  ;;  %v1207_v27 = vld [vmem:[%s1895_s20 + $0x60] sm:$0xff]  ;;  %s2412_s10 = scalar_lea.vmem %s2142_s12, %s1524_s9 [#allocation2]   ;;  %s2415_s11 = scalar_lea.vmem %s2339_s4, %s1524_s9  }
 0x14b   : >> { %1204 = vst [vmem:[%s1891_s15 + $0x50] sm:$0xff] %v1203_v25  ;;  %1206 = vst [vmem:[%s1891_s15 + $0x58] sm:$0xff] %v1205_v26  ;;  %v1209_v28 = vld [vmem:[%s1895_s20 + $0x68] sm:$0xff]  ;;  %v1211_v29 = vld [vmem:[%s1895_s20 + $0x70] sm:$0xff] }
 0x14c   : >> { %1208 = vst [vmem:[%s1891_s15 + $0x60] sm:$0xff] %v1207_v27  ;;  %1210 = vst [vmem:[%s1891_s15 + $0x68] sm:$0xff] %v1209_v28  ;;  %v1213_v30 = vld [vmem:[%s1895_s20 + $0x78] sm:$0xff]  ;;  %v1215_v31 = vld [vmem:[%s1895_s20 + $0x80] sm:$0xff] }
 0x14d   : >> { %1212 = vst [vmem:[%s1891_s15 + $0x70] sm:$0xff] %v1211_v29  ;;  %v1217_v32 = vld [vmem:[%s1895_s20 + $0x88] sm:$0xff]  ;;  %1214 = vst [vmem:[%s1891_s15 + $0x78] sm:$0xff] %v1213_v30  ;;  %v1219_v33 = vld [vmem:[%s1895_s20 + $0x90] sm:$0xff] }
 0x14e   : >> { %1216 = vst [vmem:[%s1891_s15 + $0x80] sm:$0xff] %v1215_v31  ;;  %1218 = vst [vmem:[%s1891_s15 + $0x88] sm:$0xff] %v1217_v32  ;;  %v1221_v34 = vld [vmem:[%s1895_s20 + $0x98] sm:$0xff]  ;;  %v1223_v35 = vld [vmem:[%s1895_s20 + $0xa0] sm:$0xff] }
 0x14f   : >> { %1220 = vst [vmem:[%s1891_s15 + $0x90] sm:$0xff] %v1219_v33  ;;  %1222 = vst [vmem:[%s1891_s15 + $0x98] sm:$0xff] %v1221_v34  ;;  %v1225_v36 = vld [vmem:[%s1895_s20 + $0xa8] sm:$0xff]  ;;  %v1227_v37 = vld [vmem:[%s1895_s20 + $0xb0] sm:$0xff] }
 0x150   : >> { %1224 = vst [vmem:[%s1891_s15 + $0xa0] sm:$0xff] %v1223_v35  ;;  %v1229_v38 = vld [vmem:[%s1895_s20 + $0xb8] sm:$0xff]  ;;  %1226 = vst [vmem:[%s1891_s15 + $0xa8] sm:$0xff] %v1225_v36  ;;  %v1231_v39 = vld [vmem:[%s1895_s20 + $0xc0] sm:$0xff] }
 0x151   : >> { %1228 = vst [vmem:[%s1891_s15 + $0xb0] sm:$0xff] %v1227_v37  ;;  %1230 = vst [vmem:[%s1891_s15 + $0xb8] sm:$0xff] %v1229_v38  ;;  %v1233_v40 = vld [vmem:[%s1895_s20 + $0xc8] sm:$0xff]  ;;  %v1235_v41 = vld [vmem:[%s1895_s20 + $0xd0] sm:$0xff] }
 0x152   : >> { %1232 = vst [vmem:[%s1891_s15 + $0xc0] sm:$0xff] %v1231_v39  ;;  %1234 = vst [vmem:[%s1891_s15 + $0xc8] sm:$0xff] %v1233_v40  ;;  %v1237_v42 = vld [vmem:[%s1895_s20 + $0xd8] sm:$0xff]  ;;  %v1239_v43 = vld [vmem:[%s1895_s20 + $0xe0] sm:$0xff] }
 0x153   : >> { %1236 = vst [vmem:[%s1891_s15 + $0xd0] sm:$0xff] %v1235_v41  ;;  %v1241_v44 = vld [vmem:[%s1895_s20 + $0xe8] sm:$0xff]  ;;  %1238 = vst [vmem:[%s1891_s15 + $0xd8] sm:$0xff] %v1237_v42  ;;  %v1243_v45 = vld [vmem:[%s1895_s20 + $0xf0] sm:$0xff] }
 0x154   : >> { %1240 = vst [vmem:[%s1891_s15 + $0xe0] sm:$0xff] %v1239_v43  ;;  %1242 = vst [vmem:[%s1891_s15 + $0xe8] sm:$0xff] %v1241_v44  ;;  %v1245_v46 = vld [vmem:[%s1895_s20 + $0xf8] sm:$0xff]  ;;  %v1247_v47 = vld [vmem:[%s1895_s20 + $0x100] sm:$0xff] }
 0x155   : >> { %1244 = vst [vmem:[%s1891_s15 + $0xf0] sm:$0xff] %v1243_v45  ;;  %1246 = vst [vmem:[%s1891_s15 + $0xf8] sm:$0xff] %v1245_v46  ;;  %v1249_v48 = vld [vmem:[%s1895_s20 + $0x108] sm:$0xff]  ;;  %v1251_v49 = vld [vmem:[%s1895_s20 + $0x110] sm:$0xff] }
 0x156   : >> { %1248 = vst [vmem:[%s1891_s15 + $0x100] sm:$0xff] %v1247_v47  ;;  %v1253_v50 = vld [vmem:[%s1895_s20 + $0x118] sm:$0xff]  ;;  %1250 = vst [vmem:[%s1891_s15 + $0x108] sm:$0xff] %v1249_v48  ;;  %v1255_v51 = vld [vmem:[%s1895_s20 + $0x120] sm:$0xff] }
 0x157   : >> { %1252 = vst [vmem:[%s1891_s15 + $0x110] sm:$0xff] %v1251_v49  ;;  %1254 = vst [vmem:[%s1891_s15 + $0x118] sm:$0xff] %v1253_v50  ;;  %v1257_v52 = vld [vmem:[%s1895_s20 + $0x128] sm:$0xff]  ;;  %v1259_v53 = vld [vmem:[%s1895_s20 + $0x130] sm:$0xff] }
 0x158   : >> { %1256 = vst [vmem:[%s1891_s15 + $0x120] sm:$0xff] %v1255_v51  ;;  %1258 = vst [vmem:[%s1891_s15 + $0x128] sm:$0xff] %v1257_v52  ;;  %v1261_v54 = vld [vmem:[%s1895_s20 + $0x138] sm:$0xff]  ;;  %v1263_v55 = vld [vmem:[%s1895_s20 + $0x140] sm:$0xff] }
 0x159   : >> { %1260 = vst [vmem:[%s1891_s15 + $0x130] sm:$0xff] %v1259_v53  ;;  %v1265_v56 = vld [vmem:[%s1895_s20 + $0x148] sm:$0xff]  ;;  %1262 = vst [vmem:[%s1891_s15 + $0x138] sm:$0xff] %v1261_v54  ;;  %v1267_v57 = vld [vmem:[%s1895_s20 + $0x150] sm:$0xff] }
 0x15a   : >> { %1264 = vst [vmem:[%s1891_s15 + $0x140] sm:$0xff] %v1263_v55  ;;  %1266 = vst [vmem:[%s1891_s15 + $0x148] sm:$0xff] %v1265_v56  ;;  %v1269_v58 = vld [vmem:[%s1895_s20 + $0x158] sm:$0xff]  ;;  %v1271_v59 = vld [vmem:[%s1895_s20 + $0x160] sm:$0xff] }
 0x15b   : >> { %1268 = vst [vmem:[%s1891_s15 + $0x150] sm:$0xff] %v1267_v57  ;;  %1270 = vst [vmem:[%s1891_s15 + $0x158] sm:$0xff] %v1269_v58  ;;  %v1273_v60 = vld [vmem:[%s1895_s20 + $0x168] sm:$0xff]  ;;  %v1275_v61 = vld [vmem:[%s1895_s20 + $0x170] sm:$0xff] }
 0x15c   : >> { %1272 = vst [vmem:[%s1891_s15 + $0x160] sm:$0xff] %v1271_v59  ;;  %v1277_v62 = vld [vmem:[%s1895_s20 + $0x178] sm:$0xff]  ;;  %1274 = vst [vmem:[%s1891_s15 + $0x168] sm:$0xff] %v1273_v60  ;;  %v1279_v63 = vld [vmem:[%s1895_s20 + $0x180] sm:$0xff] }
 0x15d   : >> { %1276 = vst [vmem:[%s1891_s15 + $0x170] sm:$0xff] %v1275_v61  ;;  %1278 = vst [vmem:[%s1891_s15 + $0x178] sm:$0xff] %v1277_v62  ;;  %v1281_v0 = vld [vmem:[%s1895_s20 + $0x188] sm:$0xff]  ;;  %v1283_v1 = vld [vmem:[%s1895_s20 + $0x190] sm:$0xff] }
 0x15e   : >> { %1280 = vst [vmem:[%s1891_s15 + $0x180] sm:$0xff] %v1279_v63  ;;  %1282 = vst [vmem:[%s1891_s15 + $0x188] sm:$0xff] %v1281_v0  ;;  %v1285_v2 = vld [vmem:[%s1895_s20 + $0x198] sm:$0xff]  ;;  %v1287_v3 = vld [vmem:[%s1895_s20 + $0x1a0] sm:$0xff] }
 0x15f   : >> { %1284 = vst [vmem:[%s1891_s15 + $0x190] sm:$0xff] %v1283_v1  ;;  %v1289_v4 = vld [vmem:[%s1895_s20 + $0x1a8] sm:$0xff]  ;;  %1286 = vst [vmem:[%s1891_s15 + $0x198] sm:$0xff] %v1285_v2  ;;  %v1291_v5 = vld [vmem:[%s1895_s20 + $0x1b0] sm:$0xff]  ;;  %1179 = sbr.rel (!%p1176_p12) target bundleno = 325 (0x145), region = 122 }
 0x160   : >> { %1288 = vst [vmem:[%s1891_s15 + $0x1a0] sm:$0xff] %v1287_v3  ;;  %1290 = vst [vmem:[%s1891_s15 + $0x1a8] sm:$0xff] %v1289_v4  ;;  %v1293_v6 = vld [vmem:[%s1895_s20 + $0x1b8] sm:$0xff]  ;;  %v1295_v7 = vld [vmem:[%s1895_s20 + $0x1c0] sm:$0xff] }
 0x161   : >> { %1292 = vst [vmem:[%s1891_s15 + $0x1b0] sm:$0xff] %v1291_v5  ;;  %1294 = vst [vmem:[%s1891_s15 + $0x1b8] sm:$0xff] %v1293_v6  ;;  %v1297_v8 = vld [vmem:[%s1895_s20 + $0x1c8] sm:$0xff]  ;;  %v1299_v9 = vld [vmem:[%s1895_s20 + $0x1d0] sm:$0xff] }
 0x162   : >> { %1296 = vst [vmem:[%s1891_s15 + $0x1c0] sm:$0xff] %v1295_v7  ;;  %v1301_v10 = vld [vmem:[%s1895_s20 + $0x1d8] sm:$0xff]  ;;  %1298 = vst [vmem:[%s1891_s15 + $0x1c8] sm:$0xff] %v1297_v8  ;;  %v1303_v11 = vld [vmem:[%s1895_s20 + $0x1e0] sm:$0xff] }
 0x163   : >> { %1300 = vst [vmem:[%s1891_s15 + $0x1d0] sm:$0xff] %v1299_v9  ;;  %1302 = vst [vmem:[%s1891_s15 + $0x1d8] sm:$0xff] %v1301_v10  ;;  %v1305_v13 = vld [vmem:[%s1895_s20 + $0x1e8] sm:$0xff]  ;;  %v1307_v14 = vld [vmem:[%s1895_s20 + $0x1f0] sm:$0xff] }
 0x164   : >> { %1304 = vst [vmem:[%s1891_s15 + $0x1e0] sm:$0xff] %v1303_v11  ;;  %1306 = vst [vmem:[%s1891_s15 + $0x1e8] sm:$0xff] %v1305_v13  ;;  %v1309_v15 = vld [vmem:[%s1895_s20 + $0x1f8] sm:$0xff]  ;;  %s2546_s20 = smov %s2412_s10 }
 0x165   : >> { %1308 = vst [vmem:[%s1891_s15 + $0x1f0] sm:$0xff] %v1307_v14  ;;  %1310 = vst [vmem:[%s1891_s15 + $0x1f8] sm:$0xff] %v1309_v15  ;;  %s2545_s15 = smov %s2415_s11 }
 0x166 PF: > { %s2520_s14 = sand.u32 63, %s2552_s26   ;;  %s1535_s17 = sshll.u32 %s2345_s6, 9 }
 0x167   : > { %s1322_s18 = scalar_lea.vmem %s2142_s12, %s1535_s17 [#allocation2]   ;;  %s1324_s21 = scalar_lea.vmem %s2339_s4, %s1535_s17  }
 0x168   : > { %p1529_p13 = scmp.le.s32.totalorder %s2520_s14, 0 }
 0x169   : > { %s1905_s22 = smov (!%p1529_p13), %s1324_s21   ;;  %s1909_s23 = smov (!%p1529_p13), %s1322_s18  }
 0x16a   : > { %1415 = sbr.rel (%p1529_p13) target bundleno = 379 (0x17b), region = 127  ;;  %s1913_s24 = smov (!%p1529_p13), 0  }
 0x16b   : > { %s1917_s25 = smov (!%p1529_p13), 0  }
 0x171 LB: >> { %v1334_v12 = vld [vmem:[%s1911_s23] sm:$0xff]  ;;  %s1336_s26 = sadd.s32 1, %s1915_s24  ;;  %s1328_s25 = sadd.s32 1, %s1919_s25   ;;  %s1919_s25 = sphi %s1917_s25, %s1328_s25   ;;  %s1915_s24 = sphi %s1913_s24, %s1914_s24   ;;  %s1911_s23 = sphi %s1909_s23, %s1341_s23   ;;  %s1907_s22 = sphi %s1905_s22, %s1342_s22  }
 0x172   : >> { %1335 = vst [vmem:[%s1907_s22] sm:$0xff] %v1334_v12  ;;  %p1337_p0 = scmp.ge.s32.totalorder %s1336_s26, %s2520_s14  ;;  %p1327_p1 = scmp.ge.s32.totalorder %s1328_s25, %s2520_s14 }
 0x174   : >> { %s2556_s26 = smov (%p1337_p0, %s1336_s26), 0  ;;  %1330 = sbr.rel (!%p1327_p1) target bundleno = 369 (0x171), region = 133 }
 0x175   : >> { %s1530_s12 = sshll.u32 %s2556_s26, 3  ;;  %s1914_s24 = smov %s2556_s26  }
 0x176   : >> { %s1341_s23 = scalar_lea.vmem %s1322_s18, %s1530_s12 [#allocation2]   ;;  %s1342_s22 = scalar_lea.vmem %s1324_s21, %s1530_s12  }
 0x17b PF: > { %p10_p2 = scmp.ge.s32.totalorder %s1956_s16, 5   ;;  %s2548_s12 = smov %s1883_s13 }
 0x17c   : > { %s2549_s13 = smov %s1964_s19  ;;  %s2550_s14 = smov %s1956_s16 }
 0x17d   :  { %12 = sbr.rel (!%p10_p2) target bundleno = 2 (0x2), region = 144 }

// kernel: cvae_model_forward.6
= control target key start
LH: loop header
LB: loop body
LE: loop exit
PB: predicated region body
PF: predicated region fallthrough
CT: control target
= control target key end

     0   :  { %v877_v0 = vmov 0.0|0.0   ;;  %vm680_vm0 = vcmask 523264   ;;  %vm711_vm1 = vcmask 517120   ;;  %s1653_s1 = inlined_call_operand.vmem [shape: f32[512,64], index: 1, kind: input, shape index: {}]   ;;  %s1654_s0 = inlined_call_operand.vmem [shape: f32[242,512], index: 0, kind: input, shape index: {}]   ;;  %s1655_s2 = inlined_call_operand.vmem [shape: f32[1,64], index: 2, kind: input, shape index: {}]   ;;  %s1656_s3 = inlined_call_operand.vmem [shape: f32[242,64], index: 3, kind: output, shape index: {}]  }
   0x1   :  { %718 = vmatprep.subr.bf16.mxu1 %v877_v0  ;;  %v138_v1 = vld [vmem:[%s1653_s1] sm:$0xff]  ;;  %v139_v2 = vld [vmem:[%s1653_s1 + $0x8] sm:$0xff]  ;;  %766 = vmatprep.subr.bf16.mxu0 %v877_v0  ;;  %v140_v6 = vld [vmem:[%s1653_s1 + $0x10] sm:$0xff] }
   0x2   :  { %v170_v3 = vld [vmem:[%s1653_s1 + $0x100] sm:$0xff]  ;;  %v719_v4 = vpack.c.bf16 %v139_v2, %v138_v1  ;;  %v171_v5 = vld [vmem:[%s1653_s1 + $0x108] sm:$0xff]  ;;  %v141_v7 = vld [vmem:[%s1653_s1 + $0x18] sm:$0xff] }
   0x3   :  { %v767_v8 = vpack.c.bf16 %v171_v5, %v170_v3  ;;  %v172_v9 = vld [vmem:[%s1653_s1 + $0x110] sm:$0xff]  ;;  %v173_v10 = vld [vmem:[%s1653_s1 + $0x118] sm:$0xff]  ;;  %v722_v11 = vpack.c.bf16 %v141_v7, %v140_v6  ;;  %v142_v13 = vld [vmem:[%s1653_s1 + $0x20] sm:$0xff] }
   0x4   :  { %720 = vmatpush1.bf16.msra.mxu1 %v719_v4  ;;  %v770_v12 = vpack.c.bf16 %v173_v10, %v172_v9  ;;  %v143_v14 = vld [vmem:[%s1653_s1 + $0x28] sm:$0xff]  ;;  %v174_v15 = vld [vmem:[%s1653_s1 + $0x120] sm:$0xff]  ;;  %v144_v19 = vld [vmem:[%s1653_s1 + $0x30] sm:$0xff] }
   0x5   :  { %768 = vmatpush1.bf16.msra.mxu0 %v767_v8  ;;  %721 = vmatprep.subr.bf16.mxu1 %v877_v0  ;;  %v175_v16 = vld [vmem:[%s1653_s1 + $0x128] sm:$0xff]  ;;  %v725_v17 = vpack.c.bf16 %v143_v14, %v142_v13  ;;  %v145_v20 = vld [vmem:[%s1653_s1 + $0x38] sm:$0xff]  ;;  %v176_v21 = vld [vmem:[%s1653_s1 + $0x130] sm:$0xff] }
   0x6   :  { %769 = vmatprep.subr.bf16.mxu0 %v877_v0  ;;  %v773_v18 = vpack.c.bf16 %v175_v16, %v174_v15  ;;  %v177_v22 = vld [vmem:[%s1653_s1 + $0x138] sm:$0xff]  ;;  %v728_v23 = vpack.c.bf16 %v145_v20, %v144_v19  ;;  %v146_v25 = vld [vmem:[%s1653_s1 + $0x40] sm:$0xff]  ;;  %v147_v26 = vld [vmem:[%s1653_s1 + $0x48] sm:$0xff] }
   0x7   :  { %v776_v24 = vpack.c.bf16 %v177_v22, %v176_v21  ;;  %v178_v27 = vld [vmem:[%s1653_s1 + $0x140] sm:$0xff]  ;;  %v179_v28 = vld [vmem:[%s1653_s1 + $0x148] sm:$0xff]  ;;  %v731_v29 = vpack.c.bf16 %v147_v26, %v146_v25  ;;  %v148_v31 = vld [vmem:[%s1653_s1 + $0x50] sm:$0xff] }
   0x8   :  { %723 = vmatpush1.bf16.msra.mxu1 %v722_v11  ;;  %v779_v30 = vpack.c.bf16 %v179_v28, %v178_v27  ;;  %v149_v32 = vld [vmem:[%s1653_s1 + $0x58] sm:$0xff]  ;;  %v180_v33 = vld [vmem:[%s1653_s1 + $0x150] sm:$0xff]  ;;  %v150_v37 = vld [vmem:[%s1653_s1 + $0x60] sm:$0xff] }
   0x9   :  { %771 = vmatpush1.bf16.msra.mxu0 %v770_v12  ;;  %724 = vmatprep.subr.bf16.mxu1 %v877_v0  ;;  %v181_v34 = vld [vmem:[%s1653_s1 + $0x158] sm:$0xff]  ;;  %v734_v35 = vpack.c.bf16 %v149_v32, %v148_v31  ;;  %v151_v38 = vld [vmem:[%s1653_s1 + $0x68] sm:$0xff]  ;;  %v182_v39 = vld [vmem:[%s1653_s1 + $0x160] sm:$0xff] }
   0xa   :  { %772 = vmatprep.subr.bf16.mxu0 %v877_v0  ;;  %v782_v36 = vpack.c.bf16 %v181_v34, %v180_v33  ;;  %v183_v40 = vld [vmem:[%s1653_s1 + $0x168] sm:$0xff]  ;;  %v17_v42 = vld [vmem:[%s1654_s0 + $0x18] sm:$0xff]  ;;  %v737_v43 = vpack.c.bf16 %v151_v38, %v150_v37  ;;  %v152_v45 = vld [vmem:[%s1653_s1 + $0x70] sm:$0xff] }
   0xb   :  { %v15_v41 = vld [vmem:[%s1654_s0 + $0x8] sm:$0xff]  ;;  %493 = vmatprep.mubr.f32.mxu0 %v17_v42  ;;  %v785_v44 = vpack.c.bf16 %v183_v40, %v182_v39  ;;  %v153_v46 = vld [vmem:[%s1653_s1 + $0x78] sm:$0xff]  ;;  %v184_v47 = vld [vmem:[%s1653_s1 + $0x170] sm:$0xff] }
   0xc   :  { %726 = vmatpush1.bf16.msra.mxu1 %v725_v17  ;;  %273 = vmatprep.mubr.f32.mxu1 %v15_v41  ;;  %v185_v48 = vld [vmem:[%s1653_s1 + $0x178] sm:$0xff]  ;;  %v740_v49 = vpack.c.bf16 %v153_v46, %v152_v45  ;;  %v154_v51 = vld [vmem:[%s1653_s1 + $0x80] sm:$0xff]  ;;  %v155_v52 = vld [vmem:[%s1653_s1 + $0x88] sm:$0xff] }
   0xd   :  { %774 = vmatpush1.bf16.msra.mxu0 %v773_v18  ;;  %727 = vmatprep.subr.bf16.mxu1 %v877_v0  ;;  %v788_v50 = vpack.c.bf16 %v185_v48, %v184_v47  ;;  %v186_v53 = vld [vmem:[%s1653_s1 + $0x180] sm:$0xff]  ;;  %v187_v54 = vld [vmem:[%s1653_s1 + $0x188] sm:$0xff]  ;;  %v743_v55 = vpack.c.bf16 %v155_v52, %v154_v51  ;;  %v156_v57 = vld [vmem:[%s1653_s1 + $0x90] sm:$0xff] }
   0xe   :  { %775 = vmatprep.subr.bf16.mxu0 %v877_v0  ;;  %v791_v56 = vpack.c.bf16 %v187_v54, %v186_v53  ;;  %v157_v58 = vld [vmem:[%s1653_s1 + $0x98] sm:$0xff]  ;;  %v188_v59 = vld [vmem:[%s1653_s1 + $0x190] sm:$0xff]  ;;  %v158_v63 = vld [vmem:[%s1653_s1 + $0xa0] sm:$0xff] }
   0xf   :  { %v189_v60 = vld [vmem:[%s1653_s1 + $0x198] sm:$0xff]  ;;  %v746_v61 = vpack.c.bf16 %v157_v58, %v156_v57  ;;  %v159_v1 = vld [vmem:[%s1653_s1 + $0xa8] sm:$0xff]  ;;  %v190_v2 = vld [vmem:[%s1653_s1 + $0x1a0] sm:$0xff] }
  0x10   :  { %729 = vmatpush1.bf16.msra.mxu1 %v728_v23  ;;  %v794_v62 = vpack.c.bf16 %v189_v60, %v188_v59  ;;  %v191_v3 = vld [vmem:[%s1653_s1 + $0x1a8] sm:$0xff]  ;;  %v749_v4 = vpack.c.bf16 %v159_v1, %v158_v63  ;;  %v160_v6 = vld [vmem:[%s1653_s1 + $0xb0] sm:$0xff]  ;;  %v161_v7 = vld [vmem:[%s1653_s1 + $0xb8] sm:$0xff] }
  0x11   :  { %777 = vmatpush1.bf16.msra.mxu0 %v776_v24  ;;  %730 = vmatprep.subr.bf16.mxu1 %v877_v0  ;;  %v797_v5 = vpack.c.bf16 %v191_v3, %v190_v2  ;;  %v192_v8 = vld [vmem:[%s1653_s1 + $0x1b0] sm:$0xff]  ;;  %v193_v9 = vld [vmem:[%s1653_s1 + $0x1b8] sm:$0xff]  ;;  %v752_v10 = vpack.c.bf16 %v161_v7, %v160_v6  ;;  %v162_v12 = vld [vmem:[%s1653_s1 + $0xc0] sm:$0xff] }
  0x12   :  { %778 = vmatprep.subr.bf16.mxu0 %v877_v0  ;;  %v800_v11 = vpack.c.bf16 %v193_v9, %v192_v8  ;;  %v163_v13 = vld [vmem:[%s1653_s1 + $0xc8] sm:$0xff]  ;;  %v194_v14 = vld [vmem:[%s1653_s1 + $0x1c0] sm:$0xff]  ;;  %v164_v18 = vld [vmem:[%s1653_s1 + $0xd0] sm:$0xff] }
  0x13   :  { %v195_v15 = vld [vmem:[%s1653_s1 + $0x1c8] sm:$0xff]  ;;  %v755_v16 = vpack.c.bf16 %v163_v13, %v162_v12  ;;  %v165_v19 = vld [vmem:[%s1653_s1 + $0xd8] sm:$0xff]  ;;  %v196_v20 = vld [vmem:[%s1653_s1 + $0x1d0] sm:$0xff] }
  0x14   :  { %732 = vmatpush1.bf16.msra.mxu1 %v731_v29  ;;  %v803_v17 = vpack.c.bf16 %v195_v15, %v194_v14  ;;  %v197_v21 = vld [vmem:[%s1653_s1 + $0x1d8] sm:$0xff]  ;;  %v758_v22 = vpack.c.bf16 %v165_v19, %v164_v18  ;;  %v166_v24 = vld [vmem:[%s1653_s1 + $0xe0] sm:$0xff]  ;;  %v167_v25 = vld [vmem:[%s1653_s1 + $0xe8] sm:$0xff] }
  0x15   :  { %780 = vmatpush1.bf16.msra.mxu0 %v779_v30  ;;  %733 = vmatprep.subr.bf16.mxu1 %v877_v0  ;;  %v806_v23 = vpack.c.bf16 %v197_v21, %v196_v20  ;;  %v198_v26 = vld [vmem:[%s1653_s1 + $0x1e0] sm:$0xff]  ;;  %v199_v27 = vld [vmem:[%s1653_s1 + $0x1e8] sm:$0xff]  ;;  %v761_v28 = vpack.c.bf16 %v167_v25, %v166_v24  ;;  %v168_v30 = vld [vmem:[%s1653_s1 + $0xf0] sm:$0xff] }
  0x16   :  { %781 = vmatprep.subr.bf16.mxu0 %v877_v0  ;;  %v809_v29 = vpack.c.bf16 %v199_v27, %v198_v26  ;;  %v169_v31 = vld [vmem:[%s1653_s1 + $0xf8] sm:$0xff]  ;;  %v200_v32 = vld [vmem:[%s1653_s1 + $0x1f0] sm:$0xff]  ;;  %v19_v38 = vld [vmem:[%s1654_s0 + $0x28] sm:$0xff] }
  0x17   :  { %v201_v33 = vld [vmem:[%s1653_s1 + $0x1f8] sm:$0xff]  ;;  %v764_v34 = vpack.c.bf16 %v169_v31, %v168_v30  ;;  %v16_v37 = vld [vmem:[%s1654_s0 + $0x10] sm:$0xff]  ;;  %v23_v41 = vld [vmem:[%s1654_s0 + $0x48] sm:$0xff] }
  0x18   :  { %735 = vmatpush1.bf16.msra.mxu1 %v734_v35  ;;  %v812_v35 = vpack.c.bf16 %v201_v33, %v200_v32  ;;  %v21_v39 = vld [vmem:[%s1654_s0 + $0x38] sm:$0xff]  ;;  %v20_v40 = vld [vmem:[%s1654_s0 + $0x30] sm:$0xff]  ;;  %v27_v45 = vld [vmem:[%s1654_s0 + $0x68] sm:$0xff] }
  0x19   :  { %783 = vmatpush1.bf16.msra.mxu0 %v782_v36  ;;  %736 = vmatprep.subr.bf16.mxu1 %v877_v0  ;;  %v14_v36 = vld [vmem:[%s1654_s0] sm:$0xff]  ;;  %v25_v42 = vld [vmem:[%s1654_s0 + $0x58] sm:$0xff]  ;;  %v28_v48 = vld [vmem:[%s1654_s0 + $0x70] sm:$0xff] }
  0x1a   :  { %784 = vmatprep.subr.bf16.mxu0 %v877_v0  ;;  %v29_v46 = vld [vmem:[%s1654_s0 + $0x78] sm:$0xff]  ;;  %v26_v47 = vld [vmem:[%s1654_s0 + $0x60] sm:$0xff]  ;;  %v32_v52 = vld [vmem:[%s1654_s0 + $0x90] sm:$0xff] }
  0x1b   :  { %v30_v51 = vld [vmem:[%s1654_s0 + $0x80] sm:$0xff]  ;;  %v35_v53 = vld [vmem:[%s1654_s0 + $0xa8] sm:$0xff]  ;;  %v37_v54 = vld [vmem:[%s1654_s0 + $0xb8] sm:$0xff] }
  0x1c   :  { %738 = vmatpush1.bf16.msra.mxu1 %v737_v43  ;;  %v22_v43 = vld [vmem:[%s1654_s0 + $0x40] sm:$0xff]  ;;  %v39_v57 = vld [vmem:[%s1654_s0 + $0xc8] sm:$0xff]  ;;  %v41_v58 = vld [vmem:[%s1654_s0 + $0xd8] sm:$0xff] }
  0x1d   :  { %786 = vmatpush1.bf16.msra.mxu0 %v785_v44  ;;  %739 = vmatprep.subr.bf16.mxu1 %v877_v0  ;;  %v24_v44 = vld [vmem:[%s1654_s0 + $0x50] sm:$0xff]  ;;  %v38_v59 = vld [vmem:[%s1654_s0 + $0xc0] sm:$0xff]  ;;  %v47_v2 = vld [vmem:[%s1654_s0 + $0x108] sm:$0xff] }
  0x1e   :  { %787 = vmatprep.subr.bf16.mxu0 %v877_v0  ;;  %v40_v60 = vld [vmem:[%s1654_s0 + $0xd0] sm:$0xff]  ;;  %v42_v63 = vld [vmem:[%s1654_s0 + $0xe0] sm:$0xff]  ;;  %v49_v3 = vld [vmem:[%s1654_s0 + $0x118] sm:$0xff] }
  0x1f   :  { %v44_v1 = vld [vmem:[%s1654_s0 + $0xf0] sm:$0xff]  ;;  %v51_v6 = vld [vmem:[%s1654_s0 + $0x128] sm:$0xff]  ;;  %v53_v7 = vld [vmem:[%s1654_s0 + $0x138] sm:$0xff] }
  0x20   :  { %741 = vmatpush1.bf16.msra.mxu1 %v740_v49  ;;  %v31_v49 = vld [vmem:[%s1654_s0 + $0x88] sm:$0xff]  ;;  %v50_v8 = vld [vmem:[%s1654_s0 + $0x120] sm:$0xff]  ;;  %v52_v9 = vld [vmem:[%s1654_s0 + $0x130] sm:$0xff] }
  0x21   :  { %789 = vmatpush1.bf16.msra.mxu0 %v788_v50  ;;  %742 = vmatprep.subr.bf16.mxu1 %v877_v0  ;;  %v33_v50 = vld [vmem:[%s1654_s0 + $0x98] sm:$0xff]  ;;  %v54_v12 = vld [vmem:[%s1654_s0 + $0x140] sm:$0xff]  ;;  %v56_v13 = vld [vmem:[%s1654_s0 + $0x150] sm:$0xff] }
  0x22   :  { %790 = vmatprep.subr.bf16.mxu0 %v877_v0  ;;  %v59_v14 = vld [vmem:[%s1654_s0 + $0x168] sm:$0xff]  ;;  %v61_v15 = vld [vmem:[%s1654_s0 + $0x178] sm:$0xff]  ;;  %v62_v20 = vld [vmem:[%s1654_s0 + $0x180] sm:$0xff] }
  0x23   :  { %v63_v18 = vld [vmem:[%s1654_s0 + $0x188] sm:$0xff]  ;;  %v65_v19 = vld [vmem:[%s1654_s0 + $0x198] sm:$0xff]  ;;  %v64_v21 = vld [vmem:[%s1654_s0 + $0x190] sm:$0xff] }
  0x24   :  { %744 = vmatpush1.bf16.msra.mxu1 %v743_v55  ;;  %v34_v55 = vld [vmem:[%s1654_s0 + $0xa0] sm:$0xff]  ;;  %v68_v25 = vld [vmem:[%s1654_s0 + $0x1b0] sm:$0xff]  ;;  %v71_v26 = vld [vmem:[%s1654_s0 + $0x1c8] sm:$0xff] }
  0x25   :  { %792 = vmatpush1.bf16.msra.mxu0 %v791_v56  ;;  %745 = vmatprep.subr.bf16.mxu1 %v877_v0  ;;  %v36_v56 = vld [vmem:[%s1654_s0 + $0xb0] sm:$0xff]  ;;  %v66_v24 = vld [vmem:[%s1654_s0 + $0x1a0] sm:$0xff]  ;;  %v73_v27 = vld [vmem:[%s1654_s0 + $0x1d8] sm:$0xff] }
  0x26   :  { %793 = vmatprep.subr.bf16.mxu0 %v877_v0  ;;  %v75_v30 = vld [vmem:[%s1654_s0 + $0x1e8] sm:$0xff]  ;;  %v77_v31 = vld [vmem:[%s1654_s0 + $0x1f8] sm:$0xff]  ;;  %v74_v32 = vld [vmem:[%s1654_s0 + $0x1e0] sm:$0xff] }
  0x27   :  { %v76_v33 = vld [vmem:[%s1654_s0 + $0x1f0] sm:$0xff] }
  0x28   :  { %747 = vmatpush1.bf16.msra.mxu1 %v746_v61  ;;  %v43_v61 = vld [vmem:[%s1654_s0 + $0xe8] sm:$0xff] }
  0x29   :  { %795 = vmatpush1.bf16.msra.mxu0 %v794_v62  ;;  %748 = vmatprep.subr.bf16.mxu1 %v877_v0  ;;  %v45_v62 = vld [vmem:[%s1654_s0 + $0xf8] sm:$0xff] }
  0x2a   :  { %796 = vmatprep.subr.bf16.mxu0 %v877_v0 }
  0x2c   :  { %750 = vmatpush1.bf16.msra.mxu1 %v749_v4  ;;  %v46_v4 = vld [vmem:[%s1654_s0 + $0x100] sm:$0xff] }
  0x2d   :  { %798 = vmatpush1.bf16.msra.mxu0 %v797_v5  ;;  %751 = vmatprep.subr.bf16.mxu1 %v877_v0  ;;  %v48_v5 = vld [vmem:[%s1654_s0 + $0x110] sm:$0xff] }
  0x2e   :  { %799 = vmatprep.subr.bf16.mxu0 %v877_v0 }
  0x30   :  { %753 = vmatpush1.bf16.msra.mxu1 %v752_v10  ;;  %v55_v10 = vld [vmem:[%s1654_s0 + $0x148] sm:$0xff] }
  0x31   :  { %801 = vmatpush1.bf16.msra.mxu0 %v800_v11  ;;  %754 = vmatprep.subr.bf16.mxu1 %v877_v0  ;;  %v57_v11 = vld [vmem:[%s1654_s0 + $0x158] sm:$0xff] }
  0x32   :  { %802 = vmatprep.subr.bf16.mxu0 %v877_v0 }
  0x34   :  { %756 = vmatpush1.bf16.msra.mxu1 %v755_v16  ;;  %v58_v16 = vld [vmem:[%s1654_s0 + $0x160] sm:$0xff] }
  0x35   :  { %804 = vmatpush1.bf16.msra.mxu0 %v803_v17  ;;  %757 = vmatprep.subr.bf16.mxu1 %v877_v0  ;;  %v60_v17 = vld [vmem:[%s1654_s0 + $0x170] sm:$0xff] }
  0x36   :  { %805 = vmatprep.subr.bf16.mxu0 %v877_v0 }
  0x38   :  { %759 = vmatpush1.bf16.msra.mxu1 %v758_v22  ;;  %v67_v22 = vld [vmem:[%s1654_s0 + $0x1a8] sm:$0xff] }
  0x39   :  { %807 = vmatpush1.bf16.msra.mxu0 %v806_v23  ;;  %760 = vmatprep.subr.bf16.mxu1 %v877_v0  ;;  %v69_v23 = vld [vmem:[%s1654_s0 + $0x1b8] sm:$0xff] }
  0x3a   :  { %808 = vmatprep.subr.bf16.mxu0 %v877_v0 }
  0x3c   :  { %762 = vmatpush1.bf16.msra.mxu1 %v761_v28  ;;  %v70_v28 = vld [vmem:[%s1654_s0 + $0x1c0] sm:$0xff] }
  0x3d   :  { %810 = vmatpush1.bf16.msra.mxu0 %v809_v29  ;;  %763 = vmatprep.subr.bf16.mxu1 %v877_v0  ;;  %v72_v29 = vld [vmem:[%s1654_s0 + $0x1d0] sm:$0xff] }
  0x3e   :  { %811 = vmatprep.subr.bf16.mxu0 %v877_v0  ;;  %v18_v0 = vld [vmem:[%s1654_s0 + $0x20] sm:$0xff] }
  0x40   :  { %765 = vmatpush1.bf16.msra.mxu1 %v764_v34  ;;  %v79_v34 = vld [vmem:[%s1654_s0 + $0x208] sm:$0xff] }
  0x41   :  { %813 = vmatpush1.bf16.msra.mxu0 %v812_v35  ;;  %v81_v35 = vld [vmem:[%s1654_s0 + $0x218] sm:$0xff] }
  0x43   :  { %274 = vmatmul.mubr.f32.vlgmr.msra.gmra.mrb[0].mxu1 %v14_v36  ;;  %v78_v36 = vld [vmem:[%s1654_s0 + $0x200] sm:$0xff] }
  0x44   :  { %494 = vmatmul.mubr.f32.vlgmr.msra.gmra.mrb[0].mxu0 %v16_v37  ;;  %278 = vmatprep.mubr.f32.mxu1 %v19_v38  ;;  %v80_v37 = vld [vmem:[%s1654_s0 + $0x210] sm:$0xff]  ;;  %v83_v38 = vld [vmem:[%s1654_s0 + $0x228] sm:$0xff] }
  0x45   :  { %498 = vmatprep.mubr.f32.mxu0 %v21_v39  ;;  %v85_v39 = vld [vmem:[%s1654_s0 + $0x238] sm:$0xff] }
  0x47   :  { %279 = vmatmul.mubr.f32.gmra.mrb[2].mxu1 %v18_v0  ;;  %v82_v0 = vld [vmem:[%s1654_s0 + $0x220] sm:$0xff] }
  0x48   :  { %499 = vmatmul.mubr.f32.gmra.mrb[2].mxu0 %v20_v40  ;;  %283 = vmatprep.mubr.f32.mxu1 %v23_v41  ;;  %v84_v40 = vld [vmem:[%s1654_s0 + $0x230] sm:$0xff]  ;;  %v87_v41 = vld [vmem:[%s1654_s0 + $0x248] sm:$0xff] }
  0x49   :  { %503 = vmatprep.mubr.f32.mxu0 %v25_v42  ;;  %v89_v42 = vld [vmem:[%s1654_s0 + $0x258] sm:$0xff] }
  0x4b   :  { %284 = vmatmul.mubr.f32.gmra.mrb[4].mxu1 %v22_v43  ;;  %v86_v43 = vld [vmem:[%s1654_s0 + $0x240] sm:$0xff] }
  0x4c   :  { %504 = vmatmul.mubr.f32.gmra.mrb[4].mxu0 %v24_v44  ;;  %288 = vmatprep.mubr.f32.mxu1 %v27_v45  ;;  %v88_v44 = vld [vmem:[%s1654_s0 + $0x250] sm:$0xff]  ;;  %v91_v45 = vld [vmem:[%s1654_s0 + $0x268] sm:$0xff] }
  0x4d   :  { %508 = vmatprep.mubr.f32.mxu0 %v29_v46  ;;  %v93_v46 = vld [vmem:[%s1654_s0 + $0x278] sm:$0xff] }
  0x4f   :  { %289 = vmatmul.mubr.f32.gmra.mrb[6].mxu1 %v26_v47  ;;  %v90_v47 = vld [vmem:[%s1654_s0 + $0x260] sm:$0xff] }
  0x50   :  { %509 = vmatmul.mubr.f32.gmra.mrb[6].mxu0 %v28_v48  ;;  %293 = vmatprep.mubr.f32.mxu1 %v31_v49  ;;  %v92_v48 = vld [vmem:[%s1654_s0 + $0x270] sm:$0xff]  ;;  %v95_v49 = vld [vmem:[%s1654_s0 + $0x288] sm:$0xff] }
  0x51   :  { %513 = vmatprep.mubr.f32.mxu0 %v33_v50  ;;  %v97_v50 = vld [vmem:[%s1654_s0 + $0x298] sm:$0xff] }
  0x53   :  { %294 = vmatmul.mubr.f32.gmra.mrb[8].mxu1 %v30_v51  ;;  %v94_v51 = vld [vmem:[%s1654_s0 + $0x280] sm:$0xff] }
  0x54   :  { %514 = vmatmul.mubr.f32.gmra.mrb[8].mxu0 %v32_v52  ;;  %298 = vmatprep.mubr.f32.mxu1 %v35_v53  ;;  %v96_v52 = vld [vmem:[%s1654_s0 + $0x290] sm:$0xff]  ;;  %v99_v53 = vld [vmem:[%s1654_s0 + $0x2a8] sm:$0xff] }
  0x55   :  { %518 = vmatprep.mubr.f32.mxu0 %v37_v54  ;;  %v101_v54 = vld [vmem:[%s1654_s0 + $0x2b8] sm:$0xff] }
  0x57   :  { %299 = vmatmul.mubr.f32.gmra.mrb[10].mxu1 %v34_v55  ;;  %v98_v55 = vld [vmem:[%s1654_s0 + $0x2a0] sm:$0xff] }
  0x58   :  { %519 = vmatmul.mubr.f32.gmra.mrb[10].mxu0 %v36_v56  ;;  %303 = vmatprep.mubr.f32.mxu1 %v39_v57  ;;  %v100_v56 = vld [vmem:[%s1654_s0 + $0x2b0] sm:$0xff]  ;;  %v103_v57 = vld [vmem:[%s1654_s0 + $0x2c8] sm:$0xff] }
  0x59   :  { %523 = vmatprep.mubr.f32.mxu0 %v41_v58  ;;  %v105_v58 = vld [vmem:[%s1654_s0 + $0x2d8] sm:$0xff] }
  0x5b   :  { %304 = vmatmul.mubr.f32.gmra.mrb[12].mxu1 %v38_v59  ;;  %v102_v59 = vld [vmem:[%s1654_s0 + $0x2c0] sm:$0xff] }
  0x5c   :  { %524 = vmatmul.mubr.f32.gmra.mrb[12].mxu0 %v40_v60  ;;  %308 = vmatprep.mubr.f32.mxu1 %v43_v61  ;;  %v104_v60 = vld [vmem:[%s1654_s0 + $0x2d0] sm:$0xff]  ;;  %v107_v61 = vld [vmem:[%s1654_s0 + $0x2e8] sm:$0xff] }
  0x5d   :  { %528 = vmatprep.mubr.f32.mxu0 %v45_v62  ;;  %v109_v62 = vld [vmem:[%s1654_s0 + $0x2f8] sm:$0xff] }
  0x5f   :  { %309 = vmatmul.mubr.f32.gmra.mrb[14].mxu1 %v42_v63  ;;  %v106_v63 = vld [vmem:[%s1654_s0 + $0x2e0] sm:$0xff] }
  0x60   :  { %529 = vmatmul.mubr.f32.gmra.mrb[14].mxu0 %v44_v1  ;;  %313 = vmatprep.mubr.f32.mxu1 %v47_v2  ;;  %v108_v1 = vld [vmem:[%s1654_s0 + $0x2f0] sm:$0xff]  ;;  %v111_v2 = vld [vmem:[%s1654_s0 + $0x308] sm:$0xff] }
  0x61   :  { %533 = vmatprep.mubr.f32.mxu0 %v49_v3  ;;  %v113_v3 = vld [vmem:[%s1654_s0 + $0x318] sm:$0xff] }
  0x63   :  { %314 = vmatmul.mubr.f32.gmra.mrb[16].mxu1 %v46_v4  ;;  %v110_v4 = vld [vmem:[%s1654_s0 + $0x300] sm:$0xff] }
  0x64   :  { %534 = vmatmul.mubr.f32.gmra.mrb[16].mxu0 %v48_v5  ;;  %318 = vmatprep.mubr.f32.mxu1 %v51_v6  ;;  %v112_v5 = vld [vmem:[%s1654_s0 + $0x310] sm:$0xff]  ;;  %v115_v6 = vld [vmem:[%s1654_s0 + $0x328] sm:$0xff] }
  0x65   :  { %538 = vmatprep.mubr.f32.mxu0 %v53_v7  ;;  %v117_v7 = vld [vmem:[%s1654_s0 + $0x338] sm:$0xff] }
  0x67   :  { %319 = vmatmul.mubr.f32.gmra.mrb[18].mxu1 %v50_v8  ;;  %v114_v8 = vld [vmem:[%s1654_s0 + $0x320] sm:$0xff] }
  0x68   :  { %539 = vmatmul.mubr.f32.gmra.mrb[18].mxu0 %v52_v9  ;;  %323 = vmatprep.mubr.f32.mxu1 %v55_v10  ;;  %v116_v9 = vld [vmem:[%s1654_s0 + $0x330] sm:$0xff]  ;;  %v119_v10 = vld [vmem:[%s1654_s0 + $0x348] sm:$0xff] }
  0x69   :  { %543 = vmatprep.mubr.f32.mxu0 %v57_v11  ;;  %v121_v11 = vld [vmem:[%s1654_s0 + $0x358] sm:$0xff] }
  0x6b   :  { %324 = vmatmul.mubr.f32.gmra.mrb[20].mxu1 %v54_v12  ;;  %v118_v12 = vld [vmem:[%s1654_s0 + $0x340] sm:$0xff] }
  0x6c   :  { %544 = vmatmul.mubr.f32.gmra.mrb[20].mxu0 %v56_v13  ;;  %328 = vmatprep.mubr.f32.mxu1 %v59_v14  ;;  %v120_v13 = vld [vmem:[%s1654_s0 + $0x350] sm:$0xff]  ;;  %v123_v14 = vld [vmem:[%s1654_s0 + $0x368] sm:$0xff] }
  0x6d   :  { %548 = vmatprep.mubr.f32.mxu0 %v61_v15  ;;  %v125_v15 = vld [vmem:[%s1654_s0 + $0x378] sm:$0xff] }
  0x6f   :  { %329 = vmatmul.mubr.f32.gmra.mrb[22].mxu1 %v58_v16  ;;  %v122_v16 = vld [vmem:[%s1654_s0 + $0x360] sm:$0xff] }
  0x70   :  { %549 = vmatmul.mubr.f32.gmra.mrb[22].mxu0 %v60_v17  ;;  %333 = vmatprep.mubr.f32.mxu1 %v63_v18  ;;  %v124_v17 = vld [vmem:[%s1654_s0 + $0x370] sm:$0xff]  ;;  %v127_v18 = vld [vmem:[%s1654_s0 + $0x388] sm:$0xff] }
  0x71   :  { %553 = vmatprep.mubr.f32.mxu0 %v65_v19  ;;  %v129_v19 = vld [vmem:[%s1654_s0 + $0x398] sm:$0xff] }
  0x73   :  { %334 = vmatmul.mubr.f32.gmra.mrb[24].mxu1 %v62_v20  ;;  %v126_v20 = vld [vmem:[%s1654_s0 + $0x380] sm:$0xff] }
  0x74   :  { %554 = vmatmul.mubr.f32.gmra.mrb[24].mxu0 %v64_v21  ;;  %338 = vmatprep.mubr.f32.mxu1 %v67_v22  ;;  %v128_v21 = vld [vmem:[%s1654_s0 + $0x390] sm:$0xff]  ;;  %v131_v22 = vld [vmem:[%s1654_s0 + $0x3a8] sm:$0xff] }
  0x75   :  { %558 = vmatprep.mubr.f32.mxu0 %v69_v23  ;;  %v133_v23 = vld [vmem:[%s1654_s0 + $0x3b8] sm:$0xff] }
  0x77   :  { %339 = vmatmul.mubr.f32.gmra.mrb[26].mxu1 %v66_v24  ;;  %v130_v24 = vld [vmem:[%s1654_s0 + $0x3a0] sm:$0xff] }
  0x78   :  { %559 = vmatmul.mubr.f32.gmra.mrb[26].mxu0 %v68_v25  ;;  %343 = vmatprep.mubr.f32.mxu1 %v71_v26  ;;  %v132_v25 = vld [vmem:[%s1654_s0 + $0x3b0] sm:$0xff]  ;;  %v135_v26 = vld [vmem:[%s1654_s0 + $0x3c8] sm:$0x3] }
  0x79   :  { %563 = vmatprep.mubr.f32.mxu0 %v73_v27  ;;  %v137_v27 = vld [vmem:[%s1654_s0 + $0x3d8] sm:$0x3] }
  0x7b   :  { %344 = vmatmul.mubr.f32.gmra.mrb[28].mxu1 %v70_v28  ;;  %v134_v28 = vld [vmem:[%s1654_s0 + $0x3c0] sm:$0x3] }
  0x7c   :  { %564 = vmatmul.mubr.f32.gmra.mrb[28].mxu0 %v72_v29  ;;  %348 = vmatprep.mubr.f32.mxu1 %v75_v30  ;;  %v136_v29 = vld [vmem:[%s1654_s0 + $0x3d0] sm:$0x3]  ;;  %v1497_v30 = vld [vmem:[%s1655_s2] ss:$0 sm:$0xff] }
  0x7d   :  { %568 = vmatprep.mubr.f32.mxu0 %v77_v31 }
  0x7f   :  { %349 = vmatmul.mubr.f32.gmra.mrb[30].mxu1 %v74_v32 }
  0x80   :  { %569 = vmatmul.mubr.f32.gmra.mrb[30].mxu0 %v76_v33  ;;  %353 = vmatprep.mubr.f32.mxu1 %v79_v34 }
  0x81   :  { %573 = vmatprep.mubr.f32.mxu0 %v81_v35 }
  0x83   :  { %354 = vmatmul.mubr.f32.gmra.mrb[32].mxu1 %v78_v36 }
  0x84   :  { %574 = vmatmul.mubr.f32.gmra.mrb[32].mxu0 %v80_v37  ;;  %358 = vmatprep.mubr.f32.mxu1 %v83_v38 }
  0x85   :  { %578 = vmatprep.mubr.f32.mxu0 %v85_v39 }
  0x87   :  { %359 = vmatmul.mubr.f32.gmra.mrb[34].mxu1 %v82_v0 }
  0x88   :  { %579 = vmatmul.mubr.f32.gmra.mrb[34].mxu0 %v84_v40  ;;  %363 = vmatprep.mubr.f32.mxu1 %v87_v41 }
  0x89   :  { %583 = vmatprep.mubr.f32.mxu0 %v89_v42 }
  0x8b   :  { %364 = vmatmul.mubr.f32.gmra.mrb[36].mxu1 %v86_v43 }
  0x8c   :  { %584 = vmatmul.mubr.f32.gmra.mrb[36].mxu0 %v88_v44  ;;  %368 = vmatprep.mubr.f32.mxu1 %v91_v45 }
  0x8d   :  { %588 = vmatprep.mubr.f32.mxu0 %v93_v46 }
  0x8f   :  { %369 = vmatmul.mubr.f32.gmra.mrb[38].mxu1 %v90_v47 }
  0x90   :  { %589 = vmatmul.mubr.f32.gmra.mrb[38].mxu0 %v92_v48  ;;  %373 = vmatprep.mubr.f32.mxu1 %v95_v49 }
  0x91   :  { %593 = vmatprep.mubr.f32.mxu0 %v97_v50 }
  0x93   :  { %374 = vmatmul.mubr.f32.gmra.mrb[40].mxu1 %v94_v51 }
  0x94   :  { %594 = vmatmul.mubr.f32.gmra.mrb[40].mxu0 %v96_v52  ;;  %378 = vmatprep.mubr.f32.mxu1 %v99_v53 }
  0x95   :  { %598 = vmatprep.mubr.f32.mxu0 %v101_v54 }
  0x97   :  { %379 = vmatmul.mubr.f32.gmra.mrb[42].mxu1 %v98_v55 }
  0x98   :  { %599 = vmatmul.mubr.f32.gmra.mrb[42].mxu0 %v100_v56  ;;  %383 = vmatprep.mubr.f32.mxu1 %v103_v57 }
  0x99   :  { %603 = vmatprep.mubr.f32.mxu0 %v105_v58 }
  0x9b   :  { %384 = vmatmul.mubr.f32.gmra.mrb[44].mxu1 %v102_v59 }
  0x9c   :  { %604 = vmatmul.mubr.f32.gmra.mrb[44].mxu0 %v104_v60  ;;  %388 = vmatprep.mubr.f32.mxu1 %v107_v61 }
  0x9d   :  { %608 = vmatprep.mubr.f32.mxu0 %v109_v62 }
  0x9f   :  { %389 = vmatmul.mubr.f32.gmra.mrb[46].mxu1 %v106_v63 }
  0xa0   :  { %609 = vmatmul.mubr.f32.gmra.mrb[46].mxu0 %v108_v1  ;;  %393 = vmatprep.mubr.f32.mxu1 %v111_v2 }
  0xa1   :  { %613 = vmatprep.mubr.f32.mxu0 %v113_v3 }
  0xa3   :  { %394 = vmatmul.mubr.f32.gmra.mrb[48].mxu1 %v110_v4 }
  0xa4   :  { %614 = vmatmul.mubr.f32.gmra.mrb[48].mxu0 %v112_v5  ;;  %398 = vmatprep.mubr.f32.mxu1 %v115_v6 }
  0xa5   :  { %618 = vmatprep.mubr.f32.mxu0 %v117_v7 }
  0xa7   :  { %399 = vmatmul.mubr.f32.gmra.mrb[50].mxu1 %v114_v8 }
  0xa8   :  { %619 = vmatmul.mubr.f32.gmra.mrb[50].mxu0 %v116_v9  ;;  %403 = vmatprep.mubr.f32.mxu1 %v119_v10 }
  0xa9   :  { %623 = vmatprep.mubr.f32.mxu0 %v121_v11 }
  0xab   :  { %404 = vmatmul.mubr.f32.gmra.mrb[52].mxu1 %v118_v12 }
  0xac   :  { %624 = vmatmul.mubr.f32.gmra.mrb[52].mxu0 %v120_v13  ;;  %408 = vmatprep.mubr.f32.mxu1 %v123_v14 }
  0xad   :  { %628 = vmatprep.mubr.f32.mxu0 %v125_v15 }
  0xaf   :  { %409 = vmatmul.mubr.f32.gmra.mrb[54].mxu1 %v122_v16 }
  0xb0   :  { %629 = vmatmul.mubr.f32.gmra.mrb[54].mxu0 %v124_v17  ;;  %413 = vmatprep.mubr.f32.mxu1 %v127_v18 }
  0xb1   :  { %633 = vmatprep.mubr.f32.mxu0 %v129_v19 }
  0xb3   :  { %414 = vmatmul.mubr.f32.gmra.mrb[56].mxu1 %v126_v20 }
  0xb4   :  { %634 = vmatmul.mubr.f32.gmra.mrb[56].mxu0 %v128_v21  ;;  %418 = vmatprep.mubr.f32.mxu1 %v131_v22 }
  0xb5   :  { %638 = vmatprep.mubr.f32.mxu0 %v133_v23 }
  0xb7   :  { %419 = vmatmul.mubr.f32.gmra.mrb[58].mxu1 %v130_v24 }
  0xb8   :  { %639 = vmatmul.mubr.f32.gmra.mrb[58].mxu0 %v132_v25  ;;  %423 = vmatprep.mubr.f32.mxu1 %v135_v26 }
  0xb9   :  { %643 = vmatprep.mubr.f32.mxu0 %v137_v27 }
  0xbb   :  { %424 = vmatmul.mubr.f32.gmra.mrb[60].mxu1 %v134_v28 }
  0xbc   :  { %644 = vmatmul.mubr.f32.gmra.mrb[60].mxu0 %v136_v29 }
 0x116   :  { %v275_v31 = vpop.f32.mrb[0].mxu1 }
 0x117   :  { %v276_v32 = vadd.f32 %v1497_v30, %v275_v31  ;;  %v277_v33 = vpop.f32.mrb[1].mxu1  ;;  %v495_v34 = vpop.f32.mrb[0].mxu0 }
 0x118   :  { %v497_v35 = vpop.f32.mrb[1].mxu0 }
 0x119   :  { %v496_v36 = vadd.f32 %v495_v34, %v276_v32 }
 0x11a   :  { %v280_v37 = vpop.f32.mrb[2].mxu1 }
 0x11b   :  { %v649_v38 = vmax.f32 %v496_v36, 0.0  ;;  %v281_v39 = vadd.f32 %v1497_v30, %v280_v37  ;;  %v282_v0 = vpop.f32.mrb[3].mxu1  ;;  %v500_v40 = vpop.f32.mrb[2].mxu0 }
 0x11c   :  { %v502_v41 = vpop.f32.mrb[3].mxu0 }
 0x11d   :  { %681 = vst.msk [vmem:[%s1656_s3] sm:$0xff] %vm680_vm0, %v649_v38  ;;  %v501_v42 = vadd.f32 %v500_v40, %v281_v39 }
 0x11e   :  { %v285_v43 = vpop.f32.mrb[4].mxu1 }
 0x11f   :  { %v650_v44 = vmax.f32 %v501_v42, 0.0  ;;  %v286_v45 = vadd.f32 %v1497_v30, %v285_v43  ;;  %v287_v46 = vpop.f32.mrb[5].mxu1  ;;  %v505_v47 = vpop.f32.mrb[4].mxu0 }
 0x120   :  { %v507_v48 = vpop.f32.mrb[5].mxu0 }
 0x121   :  { %682 = vst.msk [vmem:[%s1656_s3 + $0x8] sm:$0xff] %vm680_vm0, %v650_v44  ;;  %v506_v49 = vadd.f32 %v505_v47, %v286_v45 }
 0x122   :  { %v290_v50 = vpop.f32.mrb[6].mxu1 }
 0x123   :  { %v651_v51 = vmax.f32 %v506_v49, 0.0  ;;  %v291_v52 = vadd.f32 %v1497_v30, %v290_v50  ;;  %v292_v53 = vpop.f32.mrb[7].mxu1  ;;  %v510_v54 = vpop.f32.mrb[6].mxu0 }
 0x124   :  { %v512_v55 = vpop.f32.mrb[7].mxu0 }
 0x125   :  { %683 = vst.msk [vmem:[%s1656_s3 + $0x10] sm:$0xff] %vm680_vm0, %v651_v51  ;;  %v511_v56 = vadd.f32 %v510_v54, %v291_v52 }
 0x126   :  { %v295_v57 = vpop.f32.mrb[8].mxu1 }
 0x127   :  { %v652_v58 = vmax.f32 %v511_v56, 0.0  ;;  %v296_v59 = vadd.f32 %v1497_v30, %v295_v57  ;;  %v297_v60 = vpop.f32.mrb[9].mxu1  ;;  %v515_v61 = vpop.f32.mrb[8].mxu0 }
 0x128   :  { %v517_v62 = vpop.f32.mrb[9].mxu0 }
 0x129   :  { %684 = vst.msk [vmem:[%s1656_s3 + $0x18] sm:$0xff] %vm680_vm0, %v652_v58  ;;  %v516_v63 = vadd.f32 %v515_v61, %v296_v59 }
 0x12a   :  { %v300_v1 = vpop.f32.mrb[10].mxu1 }
 0x12b   :  { %v653_v2 = vmax.f32 %v516_v63, 0.0  ;;  %v301_v3 = vadd.f32 %v1497_v30, %v300_v1  ;;  %v302_v4 = vpop.f32.mrb[11].mxu1  ;;  %v520_v5 = vpop.f32.mrb[10].mxu0 }
 0x12c   :  { %v522_v6 = vpop.f32.mrb[11].mxu0 }
 0x12d   :  { %685 = vst.msk [vmem:[%s1656_s3 + $0x20] sm:$0xff] %vm680_vm0, %v653_v2  ;;  %v521_v7 = vadd.f32 %v520_v5, %v301_v3 }
 0x12e   :  { %v305_v8 = vpop.f32.mrb[12].mxu1 }
 0x12f   :  { %v654_v9 = vmax.f32 %v521_v7, 0.0  ;;  %v306_v10 = vadd.f32 %v1497_v30, %v305_v8  ;;  %v307_v11 = vpop.f32.mrb[13].mxu1  ;;  %v525_v12 = vpop.f32.mrb[12].mxu0 }
 0x130   :  { %v527_v13 = vpop.f32.mrb[13].mxu0 }
 0x131   :  { %686 = vst.msk [vmem:[%s1656_s3 + $0x28] sm:$0xff] %vm680_vm0, %v654_v9  ;;  %v526_v14 = vadd.f32 %v525_v12, %v306_v10 }
 0x132   :  { %v310_v15 = vpop.f32.mrb[14].mxu1 }
 0x133   :  { %v655_v16 = vmax.f32 %v526_v14, 0.0  ;;  %v311_v17 = vadd.f32 %v1497_v30, %v310_v15  ;;  %v312_v18 = vpop.f32.mrb[15].mxu1  ;;  %v530_v19 = vpop.f32.mrb[14].mxu0 }
 0x134   :  { %v532_v20 = vpop.f32.mrb[15].mxu0 }
 0x135   :  { %687 = vst.msk [vmem:[%s1656_s3 + $0x30] sm:$0xff] %vm680_vm0, %v655_v16  ;;  %v531_v21 = vadd.f32 %v530_v19, %v311_v17 }
 0x136   :  { %v315_v22 = vpop.f32.mrb[16].mxu1 }
 0x137   :  { %v656_v23 = vmax.f32 %v531_v21, 0.0  ;;  %v316_v24 = vadd.f32 %v1497_v30, %v315_v22  ;;  %v317_v25 = vpop.f32.mrb[17].mxu1  ;;  %v535_v26 = vpop.f32.mrb[16].mxu0 }
 0x138   :  { %v537_v27 = vpop.f32.mrb[17].mxu0 }
 0x139   :  { %688 = vst.msk [vmem:[%s1656_s3 + $0x38] sm:$0xff] %vm680_vm0, %v656_v23  ;;  %v536_v28 = vadd.f32 %v535_v26, %v316_v24 }
 0x13a   :  { %v320_v29 = vpop.f32.mrb[18].mxu1 }
 0x13b   :  { %v657_v31 = vmax.f32 %v536_v28, 0.0  ;;  %v321_v32 = vadd.f32 %v1497_v30, %v320_v29  ;;  %v322_v33 = vpop.f32.mrb[19].mxu1  ;;  %v540_v34 = vpop.f32.mrb[18].mxu0 }
 0x13c   :  { %v542_v35 = vpop.f32.mrb[19].mxu0 }
 0x13d   :  { %689 = vst.msk [vmem:[%s1656_s3 + $0x40] sm:$0xff] %vm680_vm0, %v657_v31  ;;  %v541_v36 = vadd.f32 %v540_v34, %v321_v32 }
 0x13e   :  { %v325_v37 = vpop.f32.mrb[20].mxu1 }
 0x13f   :  { %v658_v38 = vmax.f32 %v541_v36, 0.0  ;;  %v326_v39 = vadd.f32 %v1497_v30, %v325_v37  ;;  %v327_v0 = vpop.f32.mrb[21].mxu1  ;;  %v545_v40 = vpop.f32.mrb[20].mxu0 }
 0x140   :  { %v547_v41 = vpop.f32.mrb[21].mxu0 }
 0x141   :  { %690 = vst.msk [vmem:[%s1656_s3 + $0x48] sm:$0xff] %vm680_vm0, %v658_v38  ;;  %v546_v42 = vadd.f32 %v545_v40, %v326_v39 }
 0x142   :  { %v330_v43 = vpop.f32.mrb[22].mxu1 }
 0x143   :  { %v659_v44 = vmax.f32 %v546_v42, 0.0  ;;  %v331_v45 = vadd.f32 %v1497_v30, %v330_v43  ;;  %v332_v46 = vpop.f32.mrb[23].mxu1  ;;  %v550_v47 = vpop.f32.mrb[22].mxu0 }
 0x144   :  { %v552_v48 = vpop.f32.mrb[23].mxu0 }
 0x145   :  { %691 = vst.msk [vmem:[%s1656_s3 + $0x50] sm:$0xff] %vm680_vm0, %v659_v44  ;;  %v551_v49 = vadd.f32 %v550_v47, %v331_v45 }
 0x146   :  { %v335_v50 = vpop.f32.mrb[24].mxu1 }
 0x147   :  { %v660_v51 = vmax.f32 %v551_v49, 0.0  ;;  %v336_v52 = vadd.f32 %v1497_v30, %v335_v50  ;;  %v337_v53 = vpop.f32.mrb[25].mxu1  ;;  %v555_v54 = vpop.f32.mrb[24].mxu0 }
 0x148   :  { %v557_v55 = vpop.f32.mrb[25].mxu0 }
 0x149   :  { %692 = vst.msk [vmem:[%s1656_s3 + $0x58] sm:$0xff] %vm680_vm0, %v660_v51  ;;  %v556_v56 = vadd.f32 %v555_v54, %v336_v52 }
 0x14a   :  { %v340_v57 = vpop.f32.mrb[26].mxu1 }
 0x14b   :  { %v661_v58 = vmax.f32 %v556_v56, 0.0  ;;  %v341_v59 = vadd.f32 %v1497_v30, %v340_v57  ;;  %v342_v60 = vpop.f32.mrb[27].mxu1  ;;  %v560_v61 = vpop.f32.mrb[26].mxu0 }
 0x14c   :  { %v562_v62 = vpop.f32.mrb[27].mxu0 }
 0x14d   :  { %693 = vst.msk [vmem:[%s1656_s3 + $0x60] sm:$0xff] %vm680_vm0, %v661_v58  ;;  %v561_v63 = vadd.f32 %v560_v61, %v341_v59 }
 0x14e   :  { %v345_v1 = vpop.f32.mrb[28].mxu1 }
 0x14f   :  { %v662_v2 = vmax.f32 %v561_v63, 0.0  ;;  %v346_v3 = vadd.f32 %v1497_v30, %v345_v1  ;;  %v347_v4 = vpop.f32.mrb[29].mxu1  ;;  %v565_v5 = vpop.f32.mrb[28].mxu0 }
 0x150   :  { %v567_v6 = vpop.f32.mrb[29].mxu0 }
 0x151   :  { %694 = vst.msk [vmem:[%s1656_s3 + $0x68] sm:$0xff] %vm680_vm0, %v662_v2  ;;  %v566_v7 = vadd.f32 %v565_v5, %v346_v3 }
 0x152   :  { %v350_v8 = vpop.f32.mrb[30].mxu1 }
 0x153   :  { %v663_v9 = vmax.f32 %v566_v7, 0.0  ;;  %v351_v10 = vadd.f32 %v1497_v30, %v350_v8  ;;  %v352_v11 = vpop.f32.mrb[31].mxu1  ;;  %v570_v12 = vpop.f32.mrb[30].mxu0 }
 0x154   :  { %v572_v13 = vpop.f32.mrb[31].mxu0 }
 0x155   :  { %695 = vst.msk [vmem:[%s1656_s3 + $0x70] sm:$0xff] %vm680_vm0, %v663_v9  ;;  %v571_v14 = vadd.f32 %v570_v12, %v351_v10 }
 0x156   :  { %v355_v15 = vpop.f32.mrb[32].mxu1 }
 0x157   :  { %v664_v16 = vmax.f32 %v571_v14, 0.0  ;;  %v356_v17 = vadd.f32 %v1497_v30, %v355_v15  ;;  %v357_v18 = vpop.f32.mrb[33].mxu1  ;;  %v575_v19 = vpop.f32.mrb[32].mxu0 }
 0x158   :  { %v577_v20 = vpop.f32.mrb[33].mxu0 }
 0x159   :  { %696 = vst.msk [vmem:[%s1656_s3 + $0x78] sm:$0xff] %vm680_vm0, %v664_v16  ;;  %v576_v21 = vadd.f32 %v575_v19, %v356_v17 }
 0x15a   :  { %v360_v22 = vpop.f32.mrb[34].mxu1 }
 0x15b   :  { %v665_v23 = vmax.f32 %v576_v21, 0.0  ;;  %v361_v24 = vadd.f32 %v1497_v30, %v360_v22  ;;  %v362_v25 = vpop.f32.mrb[35].mxu1  ;;  %v580_v26 = vpop.f32.mrb[34].mxu0 }
 0x15c   :  { %v582_v27 = vpop.f32.mrb[35].mxu0 }
 0x15d   :  { %697 = vst.msk [vmem:[%s1656_s3 + $0x80] sm:$0xff] %vm680_vm0, %v665_v23  ;;  %v581_v28 = vadd.f32 %v580_v26, %v361_v24 }
 0x15e   :  { %v365_v29 = vpop.f32.mrb[36].mxu1 }
 0x15f   :  { %v666_v31 = vmax.f32 %v581_v28, 0.0  ;;  %v366_v32 = vadd.f32 %v1497_v30, %v365_v29  ;;  %v367_v33 = vpop.f32.mrb[37].mxu1  ;;  %v585_v34 = vpop.f32.mrb[36].mxu0 }
 0x160   :  { %v587_v35 = vpop.f32.mrb[37].mxu0 }
 0x161   :  { %698 = vst.msk [vmem:[%s1656_s3 + $0x88] sm:$0xff] %vm680_vm0, %v666_v31  ;;  %v586_v36 = vadd.f32 %v585_v34, %v366_v32 }
 0x162   :  { %v370_v37 = vpop.f32.mrb[38].mxu1 }
 0x163   :  { %v667_v38 = vmax.f32 %v586_v36, 0.0  ;;  %v371_v39 = vadd.f32 %v1497_v30, %v370_v37  ;;  %v372_v0 = vpop.f32.mrb[39].mxu1  ;;  %v590_v40 = vpop.f32.mrb[38].mxu0 }
 0x164   :  { %v592_v41 = vpop.f32.mrb[39].mxu0 }
 0x165   :  { %699 = vst.msk [vmem:[%s1656_s3 + $0x90] sm:$0xff] %vm680_vm0, %v667_v38  ;;  %v591_v42 = vadd.f32 %v590_v40, %v371_v39 }
 0x166   :  { %v375_v43 = vpop.f32.mrb[40].mxu1 }
 0x167   :  { %v668_v44 = vmax.f32 %v591_v42, 0.0  ;;  %v376_v45 = vadd.f32 %v1497_v30, %v375_v43  ;;  %v377_v46 = vpop.f32.mrb[41].mxu1  ;;  %v595_v47 = vpop.f32.mrb[40].mxu0 }
 0x168   :  { %v597_v48 = vpop.f32.mrb[41].mxu0 }
 0x169   :  { %700 = vst.msk [vmem:[%s1656_s3 + $0x98] sm:$0xff] %vm680_vm0, %v668_v44  ;;  %v596_v49 = vadd.f32 %v595_v47, %v376_v45 }
 0x16a   :  { %v380_v50 = vpop.f32.mrb[42].mxu1 }
 0x16b   :  { %v669_v51 = vmax.f32 %v596_v49, 0.0  ;;  %v381_v52 = vadd.f32 %v1497_v30, %v380_v50  ;;  %v382_v53 = vpop.f32.mrb[43].mxu1  ;;  %v600_v54 = vpop.f32.mrb[42].mxu0 }
 0x16c   :  { %v602_v55 = vpop.f32.mrb[43].mxu0 }
 0x16d   :  { %701 = vst.msk [vmem:[%s1656_s3 + $0xa0] sm:$0xff] %vm680_vm0, %v669_v51  ;;  %v601_v56 = vadd.f32 %v600_v54, %v381_v52 }
 0x16e   :  { %v385_v57 = vpop.f32.mrb[44].mxu1 }
 0x16f   :  { %v670_v58 = vmax.f32 %v601_v56, 0.0  ;;  %v386_v59 = vadd.f32 %v1497_v30, %v385_v57  ;;  %v387_v60 = vpop.f32.mrb[45].mxu1  ;;  %v605_v61 = vpop.f32.mrb[44].mxu0 }
 0x170   :  { %v607_v62 = vpop.f32.mrb[45].mxu0 }
 0x171   :  { %702 = vst.msk [vmem:[%s1656_s3 + $0xa8] sm:$0xff] %vm680_vm0, %v670_v58  ;;  %v606_v63 = vadd.f32 %v605_v61, %v386_v59 }
 0x172   :  { %v390_v1 = vpop.f32.mrb[46].mxu1 }
 0x173   :  { %v671_v2 = vmax.f32 %v606_v63, 0.0  ;;  %v391_v3 = vadd.f32 %v1497_v30, %v390_v1  ;;  %v392_v4 = vpop.f32.mrb[47].mxu1  ;;  %v610_v5 = vpop.f32.mrb[46].mxu0 }
 0x174   :  { %v612_v6 = vpop.f32.mrb[47].mxu0 }
 0x175   :  { %703 = vst.msk [vmem:[%s1656_s3 + $0xb0] sm:$0xff] %vm680_vm0, %v671_v2  ;;  %v611_v7 = vadd.f32 %v610_v5, %v391_v3 }
 0x176   :  { %v395_v8 = vpop.f32.mrb[48].mxu1 }
 0x177   :  { %v672_v9 = vmax.f32 %v611_v7, 0.0  ;;  %v396_v10 = vadd.f32 %v1497_v30, %v395_v8  ;;  %v397_v11 = vpop.f32.mrb[49].mxu1  ;;  %v615_v12 = vpop.f32.mrb[48].mxu0 }
 0x178   :  { %v617_v13 = vpop.f32.mrb[49].mxu0 }
 0x179   :  { %704 = vst.msk [vmem:[%s1656_s3 + $0xb8] sm:$0xff] %vm680_vm0, %v672_v9  ;;  %v616_v14 = vadd.f32 %v615_v12, %v396_v10 }
 0x17a   :  { %v400_v15 = vpop.f32.mrb[50].mxu1 }
 0x17b   :  { %v673_v16 = vmax.f32 %v616_v14, 0.0  ;;  %v401_v17 = vadd.f32 %v1497_v30, %v400_v15  ;;  %v402_v18 = vpop.f32.mrb[51].mxu1  ;;  %v620_v19 = vpop.f32.mrb[50].mxu0 }
 0x17c   :  { %v622_v20 = vpop.f32.mrb[51].mxu0 }
 0x17d   :  { %705 = vst.msk [vmem:[%s1656_s3 + $0xc0] sm:$0xff] %vm680_vm0, %v673_v16  ;;  %v621_v21 = vadd.f32 %v620_v19, %v401_v17 }
 0x17e   :  { %v405_v22 = vpop.f32.mrb[52].mxu1 }
 0x17f   :  { %v674_v23 = vmax.f32 %v621_v21, 0.0  ;;  %v406_v24 = vadd.f32 %v1497_v30, %v405_v22  ;;  %v407_v25 = vpop.f32.mrb[53].mxu1  ;;  %v625_v26 = vpop.f32.mrb[52].mxu0 }
 0x180   :  { %v627_v27 = vpop.f32.mrb[53].mxu0 }
 0x181   :  { %706 = vst.msk [vmem:[%s1656_s3 + $0xc8] sm:$0xff] %vm680_vm0, %v674_v23  ;;  %v626_v28 = vadd.f32 %v625_v26, %v406_v24 }
 0x182   :  { %v410_v29 = vpop.f32.mrb[54].mxu1 }
 0x183   :  { %v675_v31 = vmax.f32 %v626_v28, 0.0  ;;  %v411_v32 = vadd.f32 %v1497_v30, %v410_v29  ;;  %v412_v33 = vpop.f32.mrb[55].mxu1  ;;  %v630_v34 = vpop.f32.mrb[54].mxu0 }
 0x184   :  { %v632_v35 = vpop.f32.mrb[55].mxu0 }
 0x185   :  { %707 = vst.msk [vmem:[%s1656_s3 + $0xd0] sm:$0xff] %vm680_vm0, %v675_v31  ;;  %v631_v36 = vadd.f32 %v630_v34, %v411_v32 }
 0x186   :  { %v415_v37 = vpop.f32.mrb[56].mxu1 }
 0x187   :  { %v676_v38 = vmax.f32 %v631_v36, 0.0  ;;  %v416_v39 = vadd.f32 %v1497_v30, %v415_v37  ;;  %v417_v0 = vpop.f32.mrb[57].mxu1  ;;  %v635_v40 = vpop.f32.mrb[56].mxu0 }
 0x188   :  { %v637_v41 = vpop.f32.mrb[57].mxu0 }
 0x189   :  { %708 = vst.msk [vmem:[%s1656_s3 + $0xd8] sm:$0xff] %vm680_vm0, %v676_v38  ;;  %v636_v42 = vadd.f32 %v635_v40, %v416_v39 }
 0x18a   :  { %v420_v43 = vpop.f32.mrb[58].mxu1 }
 0x18b   :  { %v677_v44 = vmax.f32 %v636_v42, 0.0  ;;  %v421_v45 = vadd.f32 %v1497_v30, %v420_v43  ;;  %v422_v46 = vpop.f32.mrb[59].mxu1  ;;  %v640_v47 = vpop.f32.mrb[58].mxu0 }
 0x18c   :  { %v642_v48 = vpop.f32.mrb[59].mxu0 }
 0x18d   :  { %709 = vst.msk [vmem:[%s1656_s3 + $0xe0] sm:$0xff] %vm680_vm0, %v677_v44  ;;  %v641_v49 = vadd.f32 %v640_v47, %v421_v45 }
 0x18e   :  { %v425_v50 = vpop.f32.mrb[60].mxu1 }
 0x18f   :  { %v678_v51 = vmax.f32 %v641_v49, 0.0  ;;  %v426_v52 = vadd.f32 %v1497_v30, %v425_v50  ;;  %v427_v53 = vpop.f32.mrb[61].mxu1  ;;  %v645_v54 = vpop.f32.mrb[60].mxu0 }
 0x190   :  { %v647_v55 = vpop.f32.mrb[61].mxu0 }
 0x191   :  { %710 = vst.msk [vmem:[%s1656_s3 + $0xe8] sm:$0xff] %vm680_vm0, %v678_v51  ;;  %v646_v56 = vadd.f32 %v645_v54, %v426_v52 }
 0x193   :  { %v679_v57 = vmax.f32 %v646_v56, 0.0 }
 0x195   :  { %712 = vst.msk [vmem:[%s1656_s3 + $0xf0] sm:$0x3] %vm711_vm1, %v679_v57 }

// kernel: cvae_model_forward.7
= control target key start
LH: loop header
LB: loop body
LE: loop exit
PB: predicated region body
PF: predicated region fallthrough
CT: control target
= control target key end

     0   :  { %v1176_v0 = vmov 0.0|0.0   ;;  %vm1177_vm0 = vmmov 0   ;;  %vm198_vm1 = vcmask 523264   ;;  %vm813_vm2 = vcmask 517120   ;;  %s2018_s1 = inlined_call_operand.vmem [shape: f32[576,64], index: 1, kind: input, shape index: {}]   ;;  %s2019_s0 = inlined_call_operand.vmem [shape: f32[162,576], index: 0, kind: input, shape index: {}]   ;;  %s2020_s2 = inlined_call_operand.vmem [shape: f32[1,64], index: 2, kind: input, shape index: {}]   ;;  %s2021_s3 = inlined_call_operand.vmem [shape: f32[162,64], index: 3, kind: output, shape index: {}]  }
   0x1   :  { %949 = vmatprep.subr.bf16.mxu1 %v1176_v0  ;;  %997 = vmatprep.subr.bf16.mxu0 %v1176_v0  ;;  %v119_v1 = vld [vmem:[%s2018_s1] sm:$0xff]  ;;  %v120_v2 = vld [vmem:[%s2018_s1 + $0x8] sm:$0xff]  ;;  %v121_v6 = vld [vmem:[%s2018_s1 + $0x10] sm:$0xff] }
   0x2   :  { %v151_v3 = vld [vmem:[%s2018_s1 + $0x100] sm:$0xff]  ;;  %v950_v4 = vpack.c.bf16 %v120_v2, %v119_v1  ;;  %v152_v5 = vld [vmem:[%s2018_s1 + $0x108] sm:$0xff]  ;;  %v122_v7 = vld [vmem:[%s2018_s1 + $0x18] sm:$0xff] }
   0x3   :  { %v1219_v8 = vpack.c.bf16 %v152_v5, %v151_v3  ;;  %v153_v9 = vld [vmem:[%s2018_s1 + $0x110] sm:$0xff]  ;;  %v154_v10 = vld [vmem:[%s2018_s1 + $0x118] sm:$0xff]  ;;  %v953_v11 = vpack.c.bf16 %v122_v7, %v121_v6  ;;  %v123_v13 = vld [vmem:[%s2018_s1 + $0x20] sm:$0xff] }
   0x4   :  { %951 = vmatpush1.bf16.msra.mxu1 %v950_v4  ;;  %v1229_v12 = vpack.c.bf16 %v154_v10, %v153_v9  ;;  %v124_v14 = vld [vmem:[%s2018_s1 + $0x28] sm:$0xff]  ;;  %v155_v15 = vld [vmem:[%s2018_s1 + $0x120] sm:$0xff]  ;;  %v125_v19 = vld [vmem:[%s2018_s1 + $0x30] sm:$0xff] }
   0x5   :  { %999 = vmatpush1.bf16.msra.mxu0 %v1219_v8  ;;  %952 = vmatprep.subr.bf16.mxu1 %v1176_v0  ;;  %v156_v16 = vld [vmem:[%s2018_s1 + $0x128] sm:$0xff]  ;;  %v956_v17 = vpack.c.bf16 %v124_v14, %v123_v13  ;;  %v126_v20 = vld [vmem:[%s2018_s1 + $0x38] sm:$0xff]  ;;  %v157_v21 = vld [vmem:[%s2018_s1 + $0x130] sm:$0xff] }
   0x6   :  { %1000 = vmatprep.subr.bf16.mxu0 %v1176_v0  ;;  %v1246_v18 = vpack.c.bf16 %v156_v16, %v155_v15  ;;  %v158_v22 = vld [vmem:[%s2018_s1 + $0x138] sm:$0xff]  ;;  %v959_v23 = vpack.c.bf16 %v126_v20, %v125_v19  ;;  %v127_v25 = vld [vmem:[%s2018_s1 + $0x40] sm:$0xff]  ;;  %v128_v26 = vld [vmem:[%s2018_s1 + $0x48] sm:$0xff] }
   0x7   :  { %v1263_v24 = vpack.c.bf16 %v158_v22, %v157_v21  ;;  %v159_v27 = vld [vmem:[%s2018_s1 + $0x140] sm:$0xff]  ;;  %v160_v28 = vld [vmem:[%s2018_s1 + $0x148] sm:$0xff]  ;;  %v962_v29 = vpack.c.bf16 %v128_v26, %v127_v25  ;;  %v129_v31 = vld [vmem:[%s2018_s1 + $0x50] sm:$0xff] }
   0x8   :  { %954 = vmatpush1.bf16.msra.mxu1 %v953_v11  ;;  %v1280_v30 = vpack.c.bf16 %v160_v28, %v159_v27  ;;  %v130_v32 = vld [vmem:[%s2018_s1 + $0x58] sm:$0xff]  ;;  %v161_v33 = vld [vmem:[%s2018_s1 + $0x150] sm:$0xff]  ;;  %v131_v37 = vld [vmem:[%s2018_s1 + $0x60] sm:$0xff] }
   0x9   :  { %1002 = vmatpush1.bf16.msra.mxu0 %v1229_v12  ;;  %955 = vmatprep.subr.bf16.mxu1 %v1176_v0  ;;  %v162_v34 = vld [vmem:[%s2018_s1 + $0x158] sm:$0xff]  ;;  %v965_v35 = vpack.c.bf16 %v130_v32, %v129_v31  ;;  %v132_v38 = vld [vmem:[%s2018_s1 + $0x68] sm:$0xff]  ;;  %v163_v39 = vld [vmem:[%s2018_s1 + $0x160] sm:$0xff] }
   0xa   :  { %1003 = vmatprep.subr.bf16.mxu0 %v1176_v0  ;;  %v1297_v36 = vpack.c.bf16 %v162_v34, %v161_v33  ;;  %v164_v40 = vld [vmem:[%s2018_s1 + $0x168] sm:$0xff]  ;;  %v17_v42 = vld [vmem:[%s2019_s0 + $0x18] sm:$0xff]  ;;  %v968_v43 = vpack.c.bf16 %v132_v38, %v131_v37  ;;  %v133_v45 = vld [vmem:[%s2018_s1 + $0x70] sm:$0xff] }
   0xb   :  { %v15_v41 = vld [vmem:[%s2019_s0 + $0x8] sm:$0xff]  ;;  %496 = vmatprep.mubr.f32.mxu0 %v17_v42  ;;  %v1320_v44 = vpack.c.bf16 %v164_v40, %v163_v39  ;;  %v134_v46 = vld [vmem:[%s2018_s1 + $0x78] sm:$0xff]  ;;  %v165_v47 = vld [vmem:[%s2018_s1 + $0x170] sm:$0xff] }
   0xc   :  { %957 = vmatpush1.bf16.msra.mxu1 %v956_v17  ;;  %326 = vmatprep.mubr.f32.mxu1 %v15_v41  ;;  %v166_v48 = vld [vmem:[%s2018_s1 + $0x178] sm:$0xff]  ;;  %v971_v49 = vpack.c.bf16 %v134_v46, %v133_v45  ;;  %v135_v51 = vld [vmem:[%s2018_s1 + $0x80] sm:$0xff]  ;;  %v136_v52 = vld [vmem:[%s2018_s1 + $0x88] sm:$0xff] }
   0xd   :  { %1005 = vmatpush1.bf16.msra.mxu0 %v1246_v18  ;;  %958 = vmatprep.subr.bf16.mxu1 %v1176_v0  ;;  %v1337_v50 = vpack.c.bf16 %v166_v48, %v165_v47  ;;  %v167_v53 = vld [vmem:[%s2018_s1 + $0x180] sm:$0xff]  ;;  %v168_v54 = vld [vmem:[%s2018_s1 + $0x188] sm:$0xff]  ;;  %v974_v55 = vpack.c.bf16 %v136_v52, %v135_v51  ;;  %v137_v57 = vld [vmem:[%s2018_s1 + $0x90] sm:$0xff] }
   0xe   :  { %1006 = vmatprep.subr.bf16.mxu0 %v1176_v0  ;;  %v1354_v56 = vpack.c.bf16 %v168_v54, %v167_v53  ;;  %v138_v58 = vld [vmem:[%s2018_s1 + $0x98] sm:$0xff]  ;;  %v169_v59 = vld [vmem:[%s2018_s1 + $0x190] sm:$0xff]  ;;  %v139_v63 = vld [vmem:[%s2018_s1 + $0xa0] sm:$0xff] }
   0xf   :  { %v170_v60 = vld [vmem:[%s2018_s1 + $0x198] sm:$0xff]  ;;  %v977_v61 = vpack.c.bf16 %v138_v58, %v137_v57  ;;  %v140_v1 = vld [vmem:[%s2018_s1 + $0xa8] sm:$0xff]  ;;  %v171_v2 = vld [vmem:[%s2018_s1 + $0x1a0] sm:$0xff] }
  0x10   :  { %960 = vmatpush1.bf16.msra.mxu1 %v959_v23  ;;  %v1371_v62 = vpack.c.bf16 %v170_v60, %v169_v59  ;;  %v172_v3 = vld [vmem:[%s2018_s1 + $0x1a8] sm:$0xff]  ;;  %v980_v4 = vpack.c.bf16 %v140_v1, %v139_v63  ;;  %v141_v6 = vld [vmem:[%s2018_s1 + $0xb0] sm:$0xff]  ;;  %v142_v7 = vld [vmem:[%s2018_s1 + $0xb8] sm:$0xff] }
  0x11   :  { %1008 = vmatpush1.bf16.msra.mxu0 %v1263_v24  ;;  %961 = vmatprep.subr.bf16.mxu1 %v1176_v0  ;;  %v1388_v5 = vpack.c.bf16 %v172_v3, %v171_v2  ;;  %v173_v9 = vld [vmem:[%s2018_s1 + $0x1b0] sm:$0xff]  ;;  %v174_v10 = vld [vmem:[%s2018_s1 + $0x1b8] sm:$0xff]  ;;  %v983_v11 = vpack.c.bf16 %v142_v7, %v141_v6  ;;  %v143_v14 = vld [vmem:[%s2018_s1 + $0xc0] sm:$0xff] }
  0x12   :  { %1009 = vmatprep.subr.bf16.mxu0 %v1176_v0  ;;  %v1405_v13 = vpack.c.bf16 %v174_v10, %v173_v9  ;;  %v144_v15 = vld [vmem:[%s2018_s1 + $0xc8] sm:$0xff]  ;;  %v175_v16 = vld [vmem:[%s2018_s1 + $0x1c0] sm:$0xff]  ;;  %v145_v21 = vld [vmem:[%s2018_s1 + $0xd0] sm:$0xff] }
  0x13   :  { %v176_v17 = vld [vmem:[%s2018_s1 + $0x1c8] sm:$0xff]  ;;  %v986_v19 = vpack.c.bf16 %v144_v15, %v143_v14  ;;  %v146_v22 = vld [vmem:[%s2018_s1 + $0xd8] sm:$0xff]  ;;  %v177_v23 = vld [vmem:[%s2018_s1 + $0x1d0] sm:$0xff] }
  0x14   :  { %963 = vmatpush1.bf16.msra.mxu1 %v962_v29  ;;  %v1422_v20 = vpack.c.bf16 %v176_v17, %v175_v16  ;;  %v178_v25 = vld [vmem:[%s2018_s1 + $0x1d8] sm:$0xff]  ;;  %v989_v26 = vpack.c.bf16 %v146_v22, %v145_v21  ;;  %v147_v28 = vld [vmem:[%s2018_s1 + $0xe0] sm:$0xff]  ;;  %v148_v29 = vld [vmem:[%s2018_s1 + $0xe8] sm:$0xff] }
  0x15   :  { %1011 = vmatpush1.bf16.msra.mxu0 %v1280_v30  ;;  %964 = vmatprep.subr.bf16.mxu1 %v1176_v0  ;;  %v1439_v27 = vpack.c.bf16 %v178_v25, %v177_v23  ;;  %v179_v31 = vld [vmem:[%s2018_s1 + $0x1e0] sm:$0xff]  ;;  %v180_v32 = vld [vmem:[%s2018_s1 + $0x1e8] sm:$0xff]  ;;  %v992_v33 = vpack.c.bf16 %v148_v29, %v147_v28  ;;  %v150_v37 = vld [vmem:[%s2018_s1 + $0xf8] sm:$0xff] }
  0x16   :  { %1012 = vmatprep.subr.bf16.mxu0 %v1176_v0  ;;  %v1456_v34 = vpack.c.bf16 %v180_v32, %v179_v31  ;;  %v181_v38 = vld [vmem:[%s2018_s1 + $0x1f0] sm:$0xff]  ;;  %v182_v39 = vld [vmem:[%s2018_s1 + $0x1f8] sm:$0xff]  ;;  %v183_v42 = vld [vmem:[%s2018_s1 + $0x200] sm:$0xff] }
  0x17   :  { %v1473_v41 = vpack.c.bf16 %v182_v39, %v181_v38  ;;  %v14_v45 = vld [vmem:[%s2019_s0] sm:$0xff]  ;;  %v16_v46 = vld [vmem:[%s2019_s0 + $0x10] sm:$0xff]  ;;  %v186_v52 = vld [vmem:[%s2018_s1 + $0x218] sm:$0xff] }
  0x18   :  { %966 = vmatpush1.bf16.msra.mxu1 %v965_v35  ;;  %v149_v35 = vld [vmem:[%s2018_s1 + $0xf0] sm:$0xff]  ;;  %v19_v53 = vld [vmem:[%s2019_s0 + $0x28] sm:$0xff]  ;;  %v21_v54 = vld [vmem:[%s2019_s0 + $0x38] sm:$0xff] }
  0x19   :  { %1014 = vmatpush1.bf16.msra.mxu0 %v1297_v36  ;;  %967 = vmatprep.subr.bf16.mxu1 %v1176_v0  ;;  %v995_v40 = vpack.c.bf16 %v150_v37, %v149_v35  ;;  %v20_v48 = vld [vmem:[%s2019_s0 + $0x30] sm:$0xff]  ;;  %v27_v57 = vld [vmem:[%s2019_s0 + $0x68] sm:$0xff]  ;;  %v30_v63 = vld [vmem:[%s2019_s0 + $0x80] sm:$0xff] }
  0x1a   :  { %1015 = vmatprep.subr.bf16.mxu0 %v1176_v0  ;;  %v185_v51 = vld [vmem:[%s2018_s1 + $0x210] sm:$0xff]  ;;  %v188_v59 = vld [vmem:[%s2018_s1 + $0x228] sm:$0xff]  ;;  %v37_v9 = vld [vmem:[%s2019_s0 + $0xb8] sm:$0xff] }
  0x1b   :  { %v1049_v58 = vpack.c.bf16 %v186_v52, %v185_v51  ;;  %v24_v60 = vld [vmem:[%s2019_s0 + $0x50] sm:$0xff]  ;;  %v31_v6 = vld [vmem:[%s2019_s0 + $0x88] sm:$0xff]  ;;  %v42_v15 = vld [vmem:[%s2019_s0 + $0xe0] sm:$0xff] }
  0x1c   :  { %969 = vmatpush1.bf16.msra.mxu1 %v968_v43  ;;  %v184_v43 = vld [vmem:[%s2018_s1 + $0x208] sm:$0xff]  ;;  %v32_v1 = vld [vmem:[%s2019_s0 + $0x90] sm:$0xff]  ;;  %v41_v17 = vld [vmem:[%s2019_s0 + $0xd8] sm:$0xff] }
  0x1d   :  { %1017 = vmatpush1.bf16.msra.mxu0 %v1320_v44  ;;  %970 = vmatprep.subr.bf16.mxu1 %v1176_v0  ;;  %v1046_v47 = vpack.c.bf16 %v184_v43, %v183_v42  ;;  %v189_v3 = vld [vmem:[%s2018_s1 + $0x230] sm:$0xff]  ;;  %v35_v7 = vld [vmem:[%s2019_s0 + $0xa8] sm:$0xff]  ;;  %v46_v22 = vld [vmem:[%s2019_s0 + $0x100] sm:$0xff]  ;;  %v1178_v42 = vmov 0.0  }
  0x1e   :  { %1018 = vmatprep.subr.bf16.mxu0 %v1176_v0  ;;  %v40_v14 = vld [vmem:[%s2019_s0 + $0xd0] sm:$0xff]  ;;  %v39_v16 = vld [vmem:[%s2019_s0 + $0xc8] sm:$0xff]  ;;  %v49_v25 = vld [vmem:[%s2019_s0 + $0x118] sm:$0xff] }
  0x1f   :  { %v44_v21 = vld [vmem:[%s2019_s0 + $0xf0] sm:$0xff]  ;;  %v57_v28 = vld [vmem:[%s2019_s0 + $0x158] sm:$0xff]  ;;  %v54_v29 = vld [vmem:[%s2019_s0 + $0x140] sm:$0xff] }
  0x20   :  { %972 = vmatpush1.bf16.msra.mxu1 %v971_v49  ;;  %v22_v49 = vld [vmem:[%s2019_s0 + $0x40] sm:$0xff]  ;;  %v52_v23 = vld [vmem:[%s2019_s0 + $0x130] sm:$0xff]  ;;  %v61_v35 = vld [vmem:[%s2019_s0 + $0x178] sm:$0xff] }
  0x21   :  { %1020 = vmatpush1.bf16.msra.mxu0 %v1337_v50  ;;  %973 = vmatprep.subr.bf16.mxu1 %v1176_v0  ;;  %v56_v31 = vld [vmem:[%s2019_s0 + $0x150] sm:$0xff]  ;;  %v62_v32 = vld [vmem:[%s2019_s0 + $0x180] sm:$0xff]  ;;  %v67_v37 = vld [vmem:[%s2019_s0 + $0x1a8] sm:$0xff] }
  0x22   :  { %1021 = vmatprep.subr.bf16.mxu0 %v1176_v0  ;;  %v64_v38 = vld [vmem:[%s2019_s0 + $0x190] sm:$0xff]  ;;  %v66_v39 = vld [vmem:[%s2019_s0 + $0x1a0] sm:$0xff]  ;;  %v33_v51 = vld [vmem:[%s2019_s0 + $0x98] sm:$0xff] }
  0x23   :  { %v18_v43 = vld [vmem:[%s2019_s0 + $0x20] sm:$0xff]  ;;  %v89_v52 = vld [vmem:[%s2019_s0 + $0x258] sm:$0xff] }
  0x24   :  { %975 = vmatpush1.bf16.msra.mxu1 %v974_v55  ;;  %v25_v55 = vld [vmem:[%s2019_s0 + $0x58] sm:$0xff] }
  0x25   :  { %1023 = vmatpush1.bf16.msra.mxu0 %v1354_v56  ;;  %976 = vmatprep.subr.bf16.mxu1 %v1176_v0 }
  0x26   :  { %1024 = vmatprep.subr.bf16.mxu0 %v1176_v0 }
  0x28   :  { %978 = vmatpush1.bf16.msra.mxu1 %v977_v61  ;;  %v26_v61 = vld [vmem:[%s2019_s0 + $0x60] sm:$0xff] }
  0x29   :  { %1026 = vmatpush1.bf16.msra.mxu0 %v1371_v62  ;;  %979 = vmatprep.subr.bf16.mxu1 %v1176_v0 }
  0x2a   :  { %1027 = vmatprep.subr.bf16.mxu0 %v1176_v0 }
  0x2c   :  { %981 = vmatpush1.bf16.msra.mxu1 %v980_v4  ;;  %v29_v4 = vld [vmem:[%s2019_s0 + $0x78] sm:$0xff] }
  0x2d   :  { %1029 = vmatpush1.bf16.msra.mxu0 %v1388_v5  ;;  %982 = vmatprep.subr.bf16.mxu1 %v1176_v0 }
  0x2e   :  { %1030 = vmatprep.subr.bf16.mxu0 %v1176_v0 }
  0x30   :  { %984 = vmatpush1.bf16.msra.mxu1 %v983_v11  ;;  %v36_v11 = vld [vmem:[%s2019_s0 + $0xb0] sm:$0xff] }
  0x31   :  { %1032 = vmatpush1.bf16.msra.mxu0 %v1405_v13  ;;  %985 = vmatprep.subr.bf16.mxu1 %v1176_v0 }
  0x32   :  { %1033 = vmatprep.subr.bf16.mxu0 %v1176_v0 }
  0x34   :  { %987 = vmatpush1.bf16.msra.mxu1 %v986_v19  ;;  %v47_v19 = vld [vmem:[%s2019_s0 + $0x108] sm:$0xff] }
  0x35   :  { %1035 = vmatpush1.bf16.msra.mxu0 %v1422_v20  ;;  %988 = vmatprep.subr.bf16.mxu1 %v1176_v0 }
  0x36   :  { %1036 = vmatprep.subr.bf16.mxu0 %v1176_v0 }
  0x38   :  { %990 = vmatpush1.bf16.msra.mxu1 %v989_v26  ;;  %v51_v26 = vld [vmem:[%s2019_s0 + $0x128] sm:$0xff] }
  0x39   :  { %1038 = vmatpush1.bf16.msra.mxu0 %v1439_v27  ;;  %991 = vmatprep.subr.bf16.mxu1 %v1176_v0 }
  0x3a   :  { %1039 = vmatprep.subr.bf16.mxu0 %v1176_v0 }
  0x3c   :  { %993 = vmatpush1.bf16.msra.mxu1 %v992_v33  ;;  %v59_v33 = vld [vmem:[%s2019_s0 + $0x168] sm:$0xff] }
  0x3d   :  { %1041 = vmatpush1.bf16.msra.mxu0 %v1456_v34  ;;  %994 = vmatprep.subr.bf16.mxu1 %v1176_v0 }
  0x3e   :  { %1042 = vmatprep.subr.bf16.mxu0 %v1176_v0 }
  0x40   :  { %996 = vmatpush1.bf16.msra.mxu1 %v995_v40  ;;  %v69_v40 = vld [vmem:[%s2019_s0 + $0x1b8] sm:$0xff] }
  0x41   :  { %1044 = vmatpush1.bf16.msra.mxu0 %v1473_v41  ;;  %1057 = vmatprep.subr.bf16.mxu1 %v1176_v0 }
  0x42   :  { %1045 = vmatprep.subr.bf16.mxu0 %v1176_v0 }
  0x43   :  { %327 = vmatmul.mubr.f32.vlgmr.msra.gmra.mrb[0].mxu1 %v14_v45  ;;  %v74_v45 = vld [vmem:[%s2019_s0 + $0x1e0] sm:$0xff] }
  0x44   :  { %497 = vmatmul.mubr.f32.vlgmr.msra.gmra.mrb[0].mxu0 %v16_v46  ;;  %331 = vmatprep.mubr.f32.mxu1 %v20_v48  ;;  %v23_v46 = vld [vmem:[%s2019_s0 + $0x48] sm:$0xff]  ;;  %v28_v48 = vld [vmem:[%s2019_s0 + $0x70] sm:$0xff] }
  0x45   :  { %1047 = vmatpush3.bf16.msra.mxu0 %v1046_v47  ;;  %1073 = vmatpush1.bf16.msra.mxu1 %v1219_v8  ;;  %v187_v8 = vld [vmem:[%s2018_s1 + $0x220] sm:$0xff]  ;;  %v79_v47 = vld [vmem:[%s2019_s0 + $0x208] sm:$0xff] }
  0x46   :  { %501 = vmatprep.mubr.f32.mxu0 %v22_v49  ;;  %1058 = vmatprep.subr.bf16.mxu1 %v1176_v0  ;;  %v1052_v2 = vpack.c.bf16 %v188_v59, %v187_v8  ;;  %v84_v49 = vld [vmem:[%s2019_s0 + $0x230] sm:$0xff]  ;;  %v53_v8 = vld [vmem:[%s2019_s0 + $0x138] sm:$0xff]  ;;  %v110_v59 = vld [vmem:[%s2019_s0 + $0x300] sm:$0xff] }
  0x47   :  { %332 = vmatmul.mubr.f32.gmra.mrb[2].mxu1 %v19_v53  ;;  %1048 = vmatprep.subr.bf16.mxu0 %v1176_v0  ;;  %v38_v53 = vld [vmem:[%s2019_s0 + $0xc0] sm:$0xff] }
  0x48   :  { %502 = vmatmul.mubr.f32.gmra.mrb[2].mxu0 %v21_v54  ;;  %336 = vmatprep.mubr.f32.mxu1 %v25_v55  ;;  %v94_v54 = vld [vmem:[%s2019_s0 + $0x280] sm:$0xff]  ;;  %v43_v55 = vld [vmem:[%s2019_s0 + $0xe8] sm:$0xff] }
  0x49   :  { %506 = vmatprep.mubr.f32.mxu0 %v27_v57  ;;  %1074 = vmatpush1.bf16.msra.mxu1 %v1229_v12  ;;  %v190_v12 = vld [vmem:[%s2018_s1 + $0x238] sm:$0xff]  ;;  %v48_v57 = vld [vmem:[%s2019_s0 + $0x110] sm:$0xff] }
  0x4a   :  { %1050 = vmatpush3.bf16.msra.mxu0 %v1049_v58  ;;  %1059 = vmatprep.subr.bf16.mxu1 %v1176_v0  ;;  %v1055_v10 = vpack.c.bf16 %v190_v12, %v189_v3  ;;  %v105_v58 = vld [vmem:[%s2019_s0 + $0x2d8] sm:$0xff]  ;;  %v72_v3 = vld [vmem:[%s2019_s0 + $0x1d0] sm:$0xff]  ;;  %v71_v12 = vld [vmem:[%s2019_s0 + $0x1c8] sm:$0xff] }
  0x4b   :  { %337 = vmatmul.mubr.f32.gmra.mrb[4].mxu1 %v24_v60  ;;  %1051 = vmatprep.subr.bf16.mxu0 %v1176_v0  ;;  %v109_v60 = vld [vmem:[%s2019_s0 + $0x2f8] sm:$0xff] }
  0x4c   :  { %507 = vmatmul.mubr.f32.gmra.mrb[4].mxu0 %v26_v61  ;;  %341 = vmatprep.mubr.f32.mxu1 %v30_v63  ;;  %v58_v61 = vld [vmem:[%s2019_s0 + $0x160] sm:$0xff]  ;;  %v115_v63 = vld [vmem:[%s2019_s0 + $0x328] sm:$0x3] }
  0x4d   :  { %511 = vmatprep.mubr.f32.mxu0 %v32_v1  ;;  %1075 = vmatpush1.bf16.msra.mxu1 %v1246_v18  ;;  %v34_v18 = vld [vmem:[%s2019_s0 + $0xa0] sm:$0xff] }
  0x4e   :  { %1060 = vmatprep.subr.bf16.mxu1 %v1176_v0  ;;  %1053 = vmatpush3.bf16.msra.mxu0 %v1052_v2  ;;  %v114_v1 = vld [vmem:[%s2019_s0 + $0x320] sm:$0x3]  ;;  %v63_v2 = vld [vmem:[%s2019_s0 + $0x188] sm:$0xff] }
  0x4f   :  { %342 = vmatmul.mubr.f32.gmra.mrb[6].mxu1 %v29_v4  ;;  %1054 = vmatprep.subr.bf16.mxu0 %v1176_v0  ;;  %v68_v4 = vld [vmem:[%s2019_s0 + $0x1b0] sm:$0xff] }
  0x50   :  { %512 = vmatmul.mubr.f32.gmra.mrb[6].mxu0 %v31_v6  ;;  %346 = vmatprep.mubr.f32.mxu1 %v35_v7  ;;  %v77_v6 = vld [vmem:[%s2019_s0 + $0x1f8] sm:$0xff]  ;;  %v76_v7 = vld [vmem:[%s2019_s0 + $0x1f0] sm:$0xff] }
  0x51   :  { %516 = vmatprep.mubr.f32.mxu0 %v37_v9  ;;  %1076 = vmatpush1.bf16.msra.mxu1 %v1263_v24  ;;  %v45_v24 = vld [vmem:[%s2019_s0 + $0xf8] sm:$0xff] }
  0x52   :  { %1061 = vmatprep.subr.bf16.mxu1 %v1176_v0  ;;  %1056 = vmatpush3.bf16.msra.mxu0 %v1055_v10  ;;  %v73_v9 = vld [vmem:[%s2019_s0 + $0x1d8] sm:$0xff]  ;;  %v82_v10 = vld [vmem:[%s2019_s0 + $0x220] sm:$0xff] }
  0x53   :  { %347 = vmatmul.mubr.f32.gmra.mrb[8].mxu1 %v34_v18  ;;  %v81_v18 = vld [vmem:[%s2019_s0 + $0x218] sm:$0xff] }
  0x54   :  { %517 = vmatmul.mubr.f32.gmra.mrb[8].mxu0 %v36_v11  ;;  %351 = vmatprep.mubr.f32.mxu1 %v40_v14  ;;  %v78_v11 = vld [vmem:[%s2019_s0 + $0x200] sm:$0xff]  ;;  %v87_v14 = vld [vmem:[%s2019_s0 + $0x248] sm:$0xff] }
  0x55   :  { %521 = vmatprep.mubr.f32.mxu0 %v42_v15  ;;  %1077 = vmatpush1.bf16.msra.mxu1 %v1280_v30  ;;  %v50_v30 = vld [vmem:[%s2019_s0 + $0x120] sm:$0xff] }
  0x56   :  { %1062 = vmatprep.subr.bf16.mxu1 %v1176_v0  ;;  %v86_v15 = vld [vmem:[%s2019_s0 + $0x240] sm:$0xff] }
  0x57   :  { %352 = vmatmul.mubr.f32.gmra.mrb[10].mxu1 %v39_v16  ;;  %v83_v16 = vld [vmem:[%s2019_s0 + $0x228] sm:$0xff] }
  0x58   :  { %522 = vmatmul.mubr.f32.gmra.mrb[10].mxu0 %v41_v17  ;;  %356 = vmatprep.mubr.f32.mxu1 %v45_v24  ;;  %v92_v17 = vld [vmem:[%s2019_s0 + $0x270] sm:$0xff]  ;;  %v91_v24 = vld [vmem:[%s2019_s0 + $0x268] sm:$0xff] }
  0x59   :  { %526 = vmatprep.mubr.f32.mxu0 %v47_v19  ;;  %1078 = vmatpush1.bf16.msra.mxu1 %v1297_v36  ;;  %v55_v36 = vld [vmem:[%s2019_s0 + $0x148] sm:$0xff]  ;;  %v88_v19 = vld [vmem:[%s2019_s0 + $0x250] sm:$0xff] }
  0x5a   :  { %1063 = vmatprep.subr.bf16.mxu1 %v1176_v0 }
  0x5b   :  { %357 = vmatmul.mubr.f32.gmra.mrb[12].mxu1 %v44_v21  ;;  %v97_v21 = vld [vmem:[%s2019_s0 + $0x298] sm:$0xff] }
  0x5c   :  { %527 = vmatmul.mubr.f32.gmra.mrb[12].mxu0 %v46_v22  ;;  %361 = vmatprep.mubr.f32.mxu1 %v50_v30  ;;  %v96_v22 = vld [vmem:[%s2019_s0 + $0x290] sm:$0xff]  ;;  %v93_v30 = vld [vmem:[%s2019_s0 + $0x278] sm:$0xff] }
  0x5d   :  { %531 = vmatprep.mubr.f32.mxu0 %v52_v23  ;;  %1079 = vmatpush1.bf16.msra.mxu1 %v1320_v44  ;;  %v60_v44 = vld [vmem:[%s2019_s0 + $0x170] sm:$0xff]  ;;  %v102_v23 = vld [vmem:[%s2019_s0 + $0x2c0] sm:$0xff] }
  0x5e   :  { %1064 = vmatprep.subr.bf16.mxu1 %v1176_v0 }
  0x5f   :  { %362 = vmatmul.mubr.f32.gmra.mrb[14].mxu1 %v49_v25  ;;  %v101_v25 = vld [vmem:[%s2019_s0 + $0x2b8] sm:$0xff] }
  0x60   :  { %532 = vmatmul.mubr.f32.gmra.mrb[14].mxu0 %v51_v26  ;;  %366 = vmatprep.mubr.f32.mxu1 %v55_v36  ;;  %v98_v26 = vld [vmem:[%s2019_s0 + $0x2a0] sm:$0xff]  ;;  %v107_v36 = vld [vmem:[%s2019_s0 + $0x2e8] sm:$0xff] }
  0x61   :  { %536 = vmatprep.mubr.f32.mxu0 %v57_v28  ;;  %1080 = vmatpush1.bf16.msra.mxu1 %v1337_v50  ;;  %v65_v50 = vld [vmem:[%s2019_s0 + $0x198] sm:$0xff]  ;;  %v106_v28 = vld [vmem:[%s2019_s0 + $0x2e0] sm:$0xff] }
  0x62   :  { %1065 = vmatprep.subr.bf16.mxu1 %v1176_v0 }
  0x63   :  { %367 = vmatmul.mubr.f32.gmra.mrb[16].mxu1 %v54_v29  ;;  %v103_v29 = vld [vmem:[%s2019_s0 + $0x2c8] sm:$0xff] }
  0x64   :  { %537 = vmatmul.mubr.f32.gmra.mrb[16].mxu0 %v56_v31  ;;  %371 = vmatprep.mubr.f32.mxu1 %v60_v44  ;;  %v112_v31 = vld [vmem:[%s2019_s0 + $0x310] sm:$0xff]  ;;  %v111_v44 = vld [vmem:[%s2019_s0 + $0x308] sm:$0xff] }
  0x65   :  { %541 = vmatprep.mubr.f32.mxu0 %v62_v32  ;;  %1081 = vmatpush1.bf16.msra.mxu1 %v1354_v56  ;;  %v70_v56 = vld [vmem:[%s2019_s0 + $0x1c0] sm:$0xff]  ;;  %v108_v32 = vld [vmem:[%s2019_s0 + $0x2f0] sm:$0xff] }
  0x66   :  { %1066 = vmatprep.subr.bf16.mxu1 %v1176_v0 }
  0x67   :  { %372 = vmatmul.mubr.f32.gmra.mrb[18].mxu1 %v59_v33  ;;  %v117_v33 = vld [vmem:[%s2019_s0 + $0x338] sm:$0x3] }
  0x68   :  { %542 = vmatmul.mubr.f32.gmra.mrb[18].mxu0 %v61_v35  ;;  %376 = vmatprep.mubr.f32.mxu1 %v65_v50  ;;  %v116_v35 = vld [vmem:[%s2019_s0 + $0x330] sm:$0x3]  ;;  %v113_v50 = vld [vmem:[%s2019_s0 + $0x318] sm:$0xff] }
  0x69   :  { %546 = vmatprep.mubr.f32.mxu0 %v67_v37  ;;  %1082 = vmatpush1.bf16.msra.mxu1 %v1371_v62  ;;  %v75_v62 = vld [vmem:[%s2019_s0 + $0x1e8] sm:$0xff]  ;;  %v118_v37 = vld [vmem:[%s2019_s0 + $0x340] sm:$0x3] }
  0x6a   :  { %1067 = vmatprep.subr.bf16.mxu1 %v1176_v0 }
  0x6b   :  { %377 = vmatmul.mubr.f32.gmra.mrb[20].mxu1 %v64_v38 }
  0x6c   :  { %547 = vmatmul.mubr.f32.gmra.mrb[20].mxu0 %v66_v39  ;;  %381 = vmatprep.mubr.f32.mxu1 %v70_v56 }
  0x6d   :  { %886 = vmatprep.mubr.msk.f32.mxu0 %vm1177_vm0, %v1178_v42  ;;  %1083 = vmatpush1.bf16.msra.mxu1 %v1388_v5  ;;  %v80_v5 = vld [vmem:[%s2019_s0 + $0x210] sm:$0xff] }
  0x6e   :  { %1068 = vmatprep.subr.bf16.mxu1 %v1176_v0 }
  0x6f   :  { %382 = vmatmul.mubr.f32.gmra.mrb[22].mxu1 %v69_v40 }
  0x70   :  { %887 = vmatmul.mubr.msk.f32.vlgmr.msra.gmra.mrb[0].mxu0 %vm198_vm1, %v18_v43  ;;  %386 = vmatprep.mubr.f32.mxu1 %v75_v62 }
  0x71   :  { %889 = vmatprep.mubr.msk.f32.mxu0 %vm1177_vm0, %v1178_v42  ;;  %1084 = vmatpush1.bf16.msra.mxu1 %v1405_v13  ;;  %v85_v13 = vld [vmem:[%s2019_s0 + $0x238] sm:$0xff] }
  0x72   :  { %1069 = vmatprep.subr.bf16.mxu1 %v1176_v0 }
  0x73   :  { %387 = vmatmul.mubr.f32.gmra.mrb[24].mxu1 %v74_v45 }
  0x74   :  { %890 = vmatmul.mubr.msk.f32.gmra.mrb[2].mxu0 %vm198_vm1, %v23_v46  ;;  %391 = vmatprep.mubr.f32.mxu1 %v80_v5 }
  0x75   :  { %892 = vmatprep.mubr.msk.f32.mxu0 %vm1177_vm0, %v1178_v42  ;;  %1085 = vmatpush1.bf16.msra.mxu1 %v1422_v20  ;;  %v90_v20 = vld [vmem:[%s2019_s0 + $0x260] sm:$0xff] }
  0x76   :  { %1070 = vmatprep.subr.bf16.mxu1 %v1176_v0 }
  0x77   :  { %392 = vmatmul.mubr.f32.gmra.mrb[26].mxu1 %v79_v47 }
  0x78   :  { %893 = vmatmul.mubr.msk.f32.gmra.mrb[4].mxu0 %vm198_vm1, %v28_v48  ;;  %396 = vmatprep.mubr.f32.mxu1 %v85_v13 }
  0x79   :  { %895 = vmatprep.mubr.msk.f32.mxu0 %vm1177_vm0, %v1178_v42  ;;  %1086 = vmatpush1.bf16.msra.mxu1 %v1439_v27  ;;  %v95_v27 = vld [vmem:[%s2019_s0 + $0x288] sm:$0xff] }
  0x7a   :  { %1071 = vmatprep.subr.bf16.mxu1 %v1176_v0 }
  0x7b   :  { %397 = vmatmul.mubr.f32.gmra.mrb[28].mxu1 %v84_v49 }
  0x7c   :  { %896 = vmatmul.mubr.msk.f32.gmra.mrb[6].mxu0 %vm198_vm1, %v33_v51  ;;  %401 = vmatprep.mubr.f32.mxu1 %v90_v20 }
  0x7d   :  { %898 = vmatprep.mubr.msk.f32.mxu0 %vm1177_vm0, %v1178_v42  ;;  %1087 = vmatpush1.bf16.msra.mxu1 %v1456_v34  ;;  %v100_v34 = vld [vmem:[%s2019_s0 + $0x2b0] sm:$0xff] }
  0x7e   :  { %1072 = vmatprep.subr.bf16.mxu1 %v1176_v0  ;;  %v99_v0 = vld [vmem:[%s2019_s0 + $0x2a8] sm:$0xff] }
  0x7f   :  { %402 = vmatmul.mubr.f32.gmra.mrb[30].mxu1 %v89_v52 }
  0x80   :  { %899 = vmatmul.mubr.msk.f32.gmra.mrb[8].mxu0 %vm198_vm1, %v38_v53  ;;  %406 = vmatprep.mubr.f32.mxu1 %v95_v27 }
  0x81   :  { %901 = vmatprep.mubr.msk.f32.mxu0 %vm1177_vm0, %v1178_v42  ;;  %1088 = vmatpush1.bf16.msra.mxu1 %v1473_v41  ;;  %v104_v41 = vld [vmem:[%s2019_s0 + $0x2d0] sm:$0xff] }
  0x83   :  { %407 = vmatmul.mubr.f32.gmra.mrb[32].mxu1 %v94_v54 }
  0x84   :  { %902 = vmatmul.mubr.msk.f32.gmra.mrb[10].mxu0 %vm198_vm1, %v43_v55  ;;  %411 = vmatprep.mubr.f32.mxu1 %v100_v34  ;;  %v1912_v34 = vld [vmem:[%s2020_s2] ss:$0 sm:$0xff] }
  0x85   :  { %904 = vmatprep.mubr.msk.f32.mxu0 %vm1177_vm0, %v1178_v42 }
  0x87   :  { %412 = vmatmul.mubr.f32.gmra.mrb[34].mxu1 %v99_v0 }
  0x88   :  { %905 = vmatmul.mubr.msk.f32.gmra.mrb[12].mxu0 %vm198_vm1, %v48_v57  ;;  %416 = vmatprep.mubr.f32.mxu1 %v105_v58 }
  0x89   :  { %907 = vmatprep.mubr.msk.f32.mxu0 %vm1177_vm0, %v1178_v42 }
  0x8b   :  { %417 = vmatmul.mubr.f32.gmra.mrb[36].mxu1 %v104_v41 }
  0x8c   :  { %908 = vmatmul.mubr.msk.f32.gmra.mrb[14].mxu0 %vm198_vm1, %v53_v8  ;;  %421 = vmatprep.mubr.f32.mxu1 %v110_v59 }
  0x8d   :  { %910 = vmatprep.mubr.msk.f32.mxu0 %vm1177_vm0, %v1178_v42 }
  0x8f   :  { %422 = vmatmul.mubr.f32.gmra.mrb[38].mxu1 %v109_v60 }
  0x90   :  { %911 = vmatmul.mubr.msk.f32.gmra.mrb[16].mxu0 %vm198_vm1, %v58_v61  ;;  %426 = vmatprep.mubr.f32.mxu1 %v115_v63 }
  0x91   :  { %913 = vmatprep.mubr.msk.f32.mxu0 %vm1177_vm0, %v1178_v42 }
  0x93   :  { %427 = vmatmul.mubr.f32.gmra.mrb[40].mxu1 %v114_v1 }
  0x94   :  { %914 = vmatmul.mubr.msk.f32.gmra.mrb[18].mxu0 %vm198_vm1, %v63_v2  ;;  %551 = vmatprep.mubr.f32.mxu1 %v72_v3 }
  0x95   :  { %916 = vmatprep.mubr.msk.f32.mxu0 %vm1177_vm0, %v1178_v42 }
  0x97   :  { %552 = vmatmul.mubr.f32.vlgmr.msra.gmra.mrb[22].mxu1 %v71_v12 }
  0x98   :  { %917 = vmatmul.mubr.msk.f32.gmra.mrb[20].mxu0 %vm198_vm1, %v68_v4  ;;  %556 = vmatprep.mubr.f32.mxu1 %v77_v6 }
  0x99   :  { %919 = vmatprep.mubr.msk.f32.mxu0 %vm1177_vm0, %v1178_v42 }
  0x9b   :  { %557 = vmatmul.mubr.f32.gmra.mrb[24].mxu1 %v76_v7 }
  0x9c   :  { %920 = vmatmul.mubr.msk.f32.gmra.mrb[22].mxu0 %vm198_vm1, %v73_v9  ;;  %561 = vmatprep.mubr.f32.mxu1 %v82_v10 }
  0x9d   :  { %922 = vmatprep.mubr.msk.f32.mxu0 %vm1177_vm0, %v1178_v42 }
  0x9f   :  { %562 = vmatmul.mubr.f32.gmra.mrb[26].mxu1 %v81_v18 }
  0xa0   :  { %923 = vmatmul.mubr.msk.f32.gmra.mrb[24].mxu0 %vm198_vm1, %v78_v11  ;;  %566 = vmatprep.mubr.f32.mxu1 %v87_v14 }
  0xa1   :  { %925 = vmatprep.mubr.msk.f32.mxu0 %vm1177_vm0, %v1178_v42 }
  0xa3   :  { %567 = vmatmul.mubr.f32.gmra.mrb[28].mxu1 %v86_v15 }
  0xa4   :  { %926 = vmatmul.mubr.msk.f32.gmra.mrb[26].mxu0 %vm198_vm1, %v83_v16  ;;  %571 = vmatprep.mubr.f32.mxu1 %v92_v17 }
  0xa5   :  { %928 = vmatprep.mubr.msk.f32.mxu0 %vm1177_vm0, %v1178_v42 }
  0xa7   :  { %572 = vmatmul.mubr.f32.gmra.mrb[30].mxu1 %v91_v24 }
  0xa8   :  { %929 = vmatmul.mubr.msk.f32.gmra.mrb[28].mxu0 %vm198_vm1, %v88_v19  ;;  %576 = vmatprep.mubr.f32.mxu1 %v97_v21 }
  0xa9   :  { %931 = vmatprep.mubr.msk.f32.mxu0 %vm1177_vm0, %v1178_v42 }
  0xab   :  { %577 = vmatmul.mubr.f32.gmra.mrb[32].mxu1 %v96_v22 }
  0xac   :  { %932 = vmatmul.mubr.msk.f32.gmra.mrb[30].mxu0 %vm198_vm1, %v93_v30  ;;  %581 = vmatprep.mubr.f32.mxu1 %v102_v23 }
  0xad   :  { %934 = vmatprep.mubr.msk.f32.mxu0 %vm1177_vm0, %v1178_v42 }
  0xaf   :  { %582 = vmatmul.mubr.f32.gmra.mrb[34].mxu1 %v101_v25 }
  0xb0   :  { %935 = vmatmul.mubr.msk.f32.gmra.mrb[32].mxu0 %vm198_vm1, %v98_v26  ;;  %586 = vmatprep.mubr.f32.mxu1 %v107_v36 }
  0xb1   :  { %937 = vmatprep.mubr.msk.f32.mxu0 %vm1177_vm0, %v1178_v42 }
  0xb3   :  { %587 = vmatmul.mubr.f32.gmra.mrb[36].mxu1 %v106_v28 }
  0xb4   :  { %938 = vmatmul.mubr.msk.f32.gmra.mrb[34].mxu0 %vm198_vm1, %v103_v29  ;;  %591 = vmatprep.mubr.f32.mxu1 %v112_v31 }
  0xb5   :  { %940 = vmatprep.mubr.msk.f32.mxu0 %vm1177_vm0, %v1178_v42 }
  0xb7   :  { %592 = vmatmul.mubr.f32.gmra.mrb[38].mxu1 %v111_v44 }
  0xb8   :  { %941 = vmatmul.mubr.msk.f32.gmra.mrb[36].mxu0 %vm198_vm1, %v108_v32  ;;  %596 = vmatprep.mubr.f32.mxu1 %v117_v33 }
  0xb9   :  { %943 = vmatprep.mubr.msk.f32.mxu0 %vm1177_vm0, %v1178_v42 }
  0xbb   :  { %597 = vmatmul.mubr.f32.gmra.mrb[40].mxu1 %v116_v35 }
  0xbc   :  { %944 = vmatmul.mubr.msk.f32.gmra.mrb[38].mxu0 %vm198_vm1, %v113_v50 }
  0xbd   :  { %946 = vmatprep.mubr.msk.f32.mxu0 %vm1177_vm0, %v1178_v42 }
  0xc0   :  { %947 = vmatmul.mubr.msk.f32.gmra.mrb[40].mxu0 %vm198_vm1, %v118_v37 }
 0x116   :  { %v328_v38 = vpop.f32.mrb[0].mxu1 }
 0x117   :  { %v330_v39 = vpop.f32.mrb[1].mxu1  ;;  %v329_v57 = vadd.f32 %v1912_v34, %v328_v38 }
 0x11a   :  { %v333_v56 = vpop.f32.mrb[2].mxu1 }
 0x11b   :  { %v335_v40 = vpop.f32.mrb[3].mxu1  ;;  %v334_v59 = vadd.f32 %v1912_v34, %v333_v56 }
 0x11e   :  { %v338_v43 = vpop.f32.mrb[4].mxu1 }
 0x11f   :  { %v340_v62 = vpop.f32.mrb[5].mxu1  ;;  %v339_v2 = vadd.f32 %v1912_v34, %v338_v43 }
 0x122   :  { %v343_v45 = vpop.f32.mrb[6].mxu1 }
 0x123   :  { %v345_v46 = vpop.f32.mrb[7].mxu1  ;;  %v344_v7 = vadd.f32 %v1912_v34, %v343_v45 }
 0x126   :  { %v348_v5 = vpop.f32.mrb[8].mxu1 }
 0x127   :  { %v350_v47 = vpop.f32.mrb[9].mxu1  ;;  %v349_v14 = vadd.f32 %v1912_v34, %v348_v5 }
 0x12a   :  { %v353_v48 = vpop.f32.mrb[10].mxu1 }
 0x12b   :  { %v355_v13 = vpop.f32.mrb[11].mxu1  ;;  %v354_v19 = vadd.f32 %v1912_v34, %v353_v48 }
 0x12e   :  { %v358_v49 = vpop.f32.mrb[12].mxu1 }
 0x12f   :  { %v360_v42 = vpop.f32.mrb[13].mxu1  ;;  %v359_v25 = vadd.f32 %v1912_v34, %v358_v49 }
 0x132   :  { %v363_v51 = vpop.f32.mrb[14].mxu1 }
 0x133   :  { %v365_v20 = vpop.f32.mrb[15].mxu1  ;;  %v364_v31 = vadd.f32 %v1912_v34, %v363_v51 }
 0x136   :  { %v368_v52 = vpop.f32.mrb[16].mxu1 }
 0x137   :  { %v370_v53 = vpop.f32.mrb[17].mxu1  ;;  %v369_v50 = vadd.f32 %v1912_v34, %v368_v52 }
 0x13a   :  { %v373_v27 = vpop.f32.mrb[18].mxu1 }
 0x13b   :  { %v375_v54 = vpop.f32.mrb[19].mxu1  ;;  %v374_v40 = vadd.f32 %v1912_v34, %v373_v27 }
 0x13e   :  { %v378_v55 = vpop.f32.mrb[20].mxu1 }
 0x13f   :  { %v380_v0 = vpop.f32.mrb[21].mxu1  ;;  %v379_v5 = vadd.f32 %v1912_v34, %v378_v55 }
 0x143   :  { %v668_v58 = vpop.f32.mrb[0].mxu0 }
 0x144   :  { %v1090_v41 = vadd.f32 %v668_v58, %v329_v57  ;;  %v888_v8 = vpop.f32.mrb[1].mxu0 }
 0x146   :  { %v772_v60 = vmax.f32 %v1090_v41, 0.0 }
 0x147   :  { %v673_v61 = vpop.f32.mrb[2].mxu0 }
 0x148   :  { %793 = vst.msk [vmem:[%s2021_s3] sm:$0xff] %vm198_vm1, %v772_v60  ;;  %v1092_v63 = vadd.f32 %v673_v61, %v334_v59  ;;  %v891_v1 = vpop.f32.mrb[3].mxu0 }
 0x14a   :  { %v773_v3 = vmax.f32 %v1092_v63, 0.0 }
 0x14b   :  { %v678_v12 = vpop.f32.mrb[4].mxu0 }
 0x14c   :  { %794 = vst.msk [vmem:[%s2021_s3 + $0x8] sm:$0xff] %vm198_vm1, %v773_v3  ;;  %v1094_v4 = vadd.f32 %v678_v12, %v339_v2  ;;  %v894_v6 = vpop.f32.mrb[5].mxu0 }
 0x14e   :  { %v774_v9 = vmax.f32 %v1094_v4, 0.0 }
 0x14f   :  { %v683_v10 = vpop.f32.mrb[6].mxu0 }
 0x150   :  { %795 = vst.msk [vmem:[%s2021_s3 + $0x10] sm:$0xff] %vm198_vm1, %v774_v9  ;;  %v1096_v18 = vadd.f32 %v683_v10, %v344_v7  ;;  %v897_v11 = vpop.f32.mrb[7].mxu0 }
 0x152   :  { %v775_v15 = vmax.f32 %v1096_v18, 0.0 }
 0x153   :  { %v688_v16 = vpop.f32.mrb[8].mxu0 }
 0x154   :  { %796 = vst.msk [vmem:[%s2021_s3 + $0x18] sm:$0xff] %vm198_vm1, %v775_v15  ;;  %v1098_v17 = vadd.f32 %v688_v16, %v349_v14  ;;  %v900_v24 = vpop.f32.mrb[9].mxu0 }
 0x156   :  { %v776_v21 = vmax.f32 %v1098_v17, 0.0 }
 0x157   :  { %v693_v22 = vpop.f32.mrb[10].mxu0 }
 0x158   :  { %797 = vst.msk [vmem:[%s2021_s3 + $0x20] sm:$0xff] %vm198_vm1, %v776_v21  ;;  %v1100_v30 = vadd.f32 %v693_v22, %v354_v19  ;;  %v903_v23 = vpop.f32.mrb[11].mxu0 }
 0x15a   :  { %v777_v26 = vmax.f32 %v1100_v30, 0.0 }
 0x15b   :  { %v698_v36 = vpop.f32.mrb[12].mxu0 }
 0x15c   :  { %798 = vst.msk [vmem:[%s2021_s3 + $0x28] sm:$0xff] %vm198_vm1, %v777_v26  ;;  %v1102_v28 = vadd.f32 %v698_v36, %v359_v25  ;;  %v906_v29 = vpop.f32.mrb[13].mxu0 }
 0x15e   :  { %v778_v44 = vmax.f32 %v1102_v28, 0.0 }
 0x15f   :  { %v703_v32 = vpop.f32.mrb[14].mxu0 }
 0x160   :  { %799 = vst.msk [vmem:[%s2021_s3 + $0x30] sm:$0xff] %vm198_vm1, %v778_v44  ;;  %v1104_v33 = vadd.f32 %v703_v32, %v364_v31  ;;  %v909_v35 = vpop.f32.mrb[15].mxu0 }
 0x162   :  { %v779_v37 = vmax.f32 %v1104_v33, 0.0 }
 0x163   :  { %v708_v38 = vpop.f32.mrb[16].mxu0 }
 0x164   :  { %800 = vst.msk [vmem:[%s2021_s3 + $0x38] sm:$0xff] %vm198_vm1, %v779_v37  ;;  %v1106_v39 = vadd.f32 %v708_v38, %v369_v50  ;;  %v912_v56 = vpop.f32.mrb[17].mxu0 }
 0x166   :  { %v780_v43 = vmax.f32 %v1106_v39, 0.0 }
 0x167   :  { %v713_v62 = vpop.f32.mrb[18].mxu0 }
 0x168   :  { %801 = vst.msk [vmem:[%s2021_s3 + $0x40] sm:$0xff] %vm198_vm1, %v780_v43  ;;  %v1108_v45 = vadd.f32 %v713_v62, %v374_v40  ;;  %v915_v46 = vpop.f32.mrb[19].mxu0 }
 0x16a   :  { %v781_v47 = vmax.f32 %v1108_v45, 0.0  ;;  %v553_v48 = vpop.f32.mrb[22].mxu1 }
 0x16b   :  { %v718_v13 = vpop.f32.mrb[20].mxu0  ;;  %v555_v49 = vpop.f32.mrb[23].mxu1  ;;  %v1111_v20 = vadd.f32 %v1912_v34, %v553_v48 }
 0x16c   :  { %802 = vst.msk [vmem:[%s2021_s3 + $0x48] sm:$0xff] %vm198_vm1, %v781_v47  ;;  %v1110_v42 = vadd.f32 %v718_v13, %v379_v5  ;;  %v918_v51 = vpop.f32.mrb[21].mxu0 }
 0x16e   :  { %v782_v52 = vmax.f32 %v1110_v42, 0.0  ;;  %v558_v53 = vpop.f32.mrb[24].mxu1 }
 0x16f   :  { %v723_v27 = vpop.f32.mrb[22].mxu0  ;;  %v560_v54 = vpop.f32.mrb[25].mxu1  ;;  %v1113_v57 = vadd.f32 %v1912_v34, %v558_v53 }
 0x170   :  { %803 = vst.msk [vmem:[%s2021_s3 + $0x50] sm:$0xff] %vm198_vm1, %v782_v52  ;;  %v1112_v55 = vadd.f32 %v1111_v20, %v723_v27  ;;  %v921_v0 = vpop.f32.mrb[23].mxu0 }
 0x172   :  { %v783_v58 = vmax.f32 %v1112_v55, 0.0  ;;  %v563_v41 = vpop.f32.mrb[26].mxu1 }
 0x173   :  { %v728_v8 = vpop.f32.mrb[24].mxu0  ;;  %v565_v59 = vpop.f32.mrb[27].mxu1  ;;  %v1115_v63 = vadd.f32 %v1912_v34, %v563_v41 }
 0x174   :  { %804 = vst.msk [vmem:[%s2021_s3 + $0x58] sm:$0xff] %vm198_vm1, %v783_v58  ;;  %v1114_v60 = vadd.f32 %v1113_v57, %v728_v8  ;;  %v924_v61 = vpop.f32.mrb[25].mxu0 }
 0x176   :  { %v784_v1 = vmax.f32 %v1114_v60, 0.0  ;;  %v568_v2 = vpop.f32.mrb[28].mxu1 }
 0x177   :  { %v733_v3 = vpop.f32.mrb[26].mxu0  ;;  %v570_v12 = vpop.f32.mrb[29].mxu1  ;;  %v1117_v7 = vadd.f32 %v1912_v34, %v568_v2 }
 0x178   :  { %805 = vst.msk [vmem:[%s2021_s3 + $0x60] sm:$0xff] %vm198_vm1, %v784_v1  ;;  %v1116_v4 = vadd.f32 %v1115_v63, %v733_v3  ;;  %v927_v6 = vpop.f32.mrb[27].mxu0 }
 0x17a   :  { %v785_v9 = vmax.f32 %v1116_v4, 0.0  ;;  %v573_v10 = vpop.f32.mrb[30].mxu1 }
 0x17b   :  { %v738_v18 = vpop.f32.mrb[28].mxu0  ;;  %v575_v11 = vpop.f32.mrb[31].mxu1  ;;  %v1119_v16 = vadd.f32 %v1912_v34, %v573_v10 }
 0x17c   :  { %806 = vst.msk [vmem:[%s2021_s3 + $0x68] sm:$0xff] %vm198_vm1, %v785_v9  ;;  %v1118_v14 = vadd.f32 %v1117_v7, %v738_v18  ;;  %v930_v15 = vpop.f32.mrb[29].mxu0 }
 0x17e   :  { %v786_v17 = vmax.f32 %v1118_v14, 0.0  ;;  %v578_v24 = vpop.f32.mrb[32].mxu1 }
 0x17f   :  { %v743_v19 = vpop.f32.mrb[30].mxu0  ;;  %v580_v21 = vpop.f32.mrb[33].mxu1  ;;  %v1121_v23 = vadd.f32 %v1912_v34, %v578_v24 }
 0x180   :  { %807 = vst.msk [vmem:[%s2021_s3 + $0x70] sm:$0xff] %vm198_vm1, %v786_v17  ;;  %v1120_v22 = vadd.f32 %v1119_v16, %v743_v19  ;;  %v933_v30 = vpop.f32.mrb[31].mxu0 }
 0x182   :  { %v787_v25 = vmax.f32 %v1120_v22, 0.0  ;;  %v583_v26 = vpop.f32.mrb[34].mxu1 }
 0x183   :  { %v748_v36 = vpop.f32.mrb[32].mxu0  ;;  %v585_v28 = vpop.f32.mrb[35].mxu1  ;;  %v1123_v44 = vadd.f32 %v1912_v34, %v583_v26 }
 0x184   :  { %808 = vst.msk [vmem:[%s2021_s3 + $0x78] sm:$0xff] %vm198_vm1, %v787_v25  ;;  %v1122_v29 = vadd.f32 %v1121_v23, %v748_v36  ;;  %v936_v31 = vpop.f32.mrb[33].mxu0 }
 0x186   :  { %v788_v32 = vmax.f32 %v1122_v29, 0.0  ;;  %v588_v33 = vpop.f32.mrb[36].mxu1 }
 0x187   :  { %v753_v35 = vpop.f32.mrb[34].mxu0  ;;  %v590_v50 = vpop.f32.mrb[37].mxu1  ;;  %v1125_v39 = vadd.f32 %v1912_v34, %v588_v33 }
 0x188   :  { %809 = vst.msk [vmem:[%s2021_s3 + $0x80] sm:$0xff] %vm198_vm1, %v788_v32  ;;  %v1124_v37 = vadd.f32 %v1123_v44, %v753_v35  ;;  %v939_v38 = vpop.f32.mrb[35].mxu0 }
 0x18a   :  { %v789_v56 = vmax.f32 %v1124_v37, 0.0  ;;  %v593_v40 = vpop.f32.mrb[38].mxu1 }
 0x18b   :  { %v758_v43 = vpop.f32.mrb[36].mxu0  ;;  %v595_v62 = vpop.f32.mrb[39].mxu1  ;;  %v1127_v5 = vadd.f32 %v1912_v34, %v593_v40 }
 0x18c   :  { %810 = vst.msk [vmem:[%s2021_s3 + $0x88] sm:$0xff] %vm198_vm1, %v789_v56  ;;  %v1126_v45 = vadd.f32 %v1125_v39, %v758_v43  ;;  %v942_v46 = vpop.f32.mrb[37].mxu0 }
 0x18e   :  { %v790_v47 = vmax.f32 %v1126_v45, 0.0  ;;  %v598_v48 = vpop.f32.mrb[40].mxu1 }
 0x18f   :  { %v763_v13 = vpop.f32.mrb[38].mxu0  ;;  %v600_v49 = vpop.f32.mrb[41].mxu1  ;;  %v1129_v20 = vadd.f32 %v1912_v34, %v598_v48 }
 0x190   :  { %811 = vst.msk [vmem:[%s2021_s3 + $0x90] sm:$0xff] %vm198_vm1, %v790_v47  ;;  %v1128_v42 = vadd.f32 %v1127_v5, %v763_v13  ;;  %v945_v51 = vpop.f32.mrb[39].mxu0 }
 0x192   :  { %v791_v52 = vmax.f32 %v1128_v42, 0.0 }
 0x193   :  { %v768_v53 = vpop.f32.mrb[40].mxu0 }
 0x194   :  { %812 = vst.msk [vmem:[%s2021_s3 + $0x98] sm:$0xff] %vm198_vm1, %v791_v52  ;;  %v1130_v27 = vadd.f32 %v1129_v20, %v768_v53  ;;  %v948_v54 = vpop.f32.mrb[41].mxu0 }
 0x196   :  { %v792_v55 = vmax.f32 %v1130_v27, 0.0 }
 0x198   :  { %814 = vst.msk [vmem:[%s2021_s3 + $0xa0] sm:$0x3] %vm813_vm2, %v792_v55 }

// kernel: cvae_model_forward.8
= control target key start
LH: loop header
LB: loop body
LE: loop exit
PB: predicated region body
PF: predicated region fallthrough
CT: control target
= control target key end

     0   :  { %vm1561_vm0 = vcmask 523264   ;;  %s8552_s1 = inlined_call_operand.vmem [shape: f32[5184,256], index: 1, kind: input, shape index: {}]   ;;  %s8553_s0 = inlined_call_operand.vmem [shape: f32[2,5184], index: 0, kind: input, shape index: {}]   ;;  %s8554_s2 = inlined_call_operand.vmem [shape: f32[1,256], index: 2, kind: input, shape index: {}]   ;;  %s8555_s3 = inlined_call_operand.vmem [shape: f32[2,256], index: 3, kind: output, shape index: {}]  }
   0x1   :  { %v26_v0 = vld [vmem:[%s8552_s1 + $0x8] sm:$0xff]  ;;  %v28_v1 = vld [vmem:[%s8552_s1 + $0x18] sm:$0xff]  ;;  %v25_v5 = vld [vmem:[%s8552_s1] sm:$0xff] }
   0x2   :  { %v666_v2 = vld [vmem:[%s8552_s1 + $0x1408] sm:$0xff]  ;;  %v3076_v3 = vpack.c.bf16 %v28_v1, %v26_v0  ;;  %v668_v4 = vld [vmem:[%s8552_s1 + $0x1418] sm:$0xff]  ;;  %v27_v6 = vld [vmem:[%s8552_s1 + $0x10] sm:$0xff] }
   0x3   :  { %v3716_v7 = vpack.c.bf16 %v668_v4, %v666_v2  ;;  %v3078_v8 = vpack.c.bf16 %v27_v6, %v25_v5  ;;  %v665_v9 = vld [vmem:[%s8552_s1 + $0x1400] sm:$0xff]  ;;  %v667_v10 = vld [vmem:[%s8552_s1 + $0x1410] sm:$0xff]  ;;  %v30_v11 = vld [vmem:[%s8552_s1 + $0x28] sm:$0xff] }
   0x4   :  { %3077 = vmatprep.subr.bf16.mxu1 %v3076_v3  ;;  %v3718_v12 = vpack.c.bf16 %v667_v10, %v665_v9  ;;  %v32_v13 = vld [vmem:[%s8552_s1 + $0x38] sm:$0xff]  ;;  %v670_v14 = vld [vmem:[%s8552_s1 + $0x1428] sm:$0xff]  ;;  %v29_v18 = vld [vmem:[%s8552_s1 + $0x20] sm:$0xff] }
   0x5   :  { %v672_v15 = vld [vmem:[%s8552_s1 + $0x1438] sm:$0xff]  ;;  %3717 = vmatprep.subr.bf16.mxu0 %v3716_v7  ;;  %3079 = vmatpush1.bf16.msra.mxu1 %v3078_v8  ;;  %v3080_v16 = vpack.c.bf16 %v32_v13, %v30_v11  ;;  %v31_v19 = vld [vmem:[%s8552_s1 + $0x30] sm:$0xff]  ;;  %v669_v20 = vld [vmem:[%s8552_s1 + $0x1420] sm:$0xff] }
   0x6   :  { %v3720_v17 = vpack.c.bf16 %v672_v15, %v670_v14  ;;  %3719 = vmatpush1.bf16.msra.mxu0 %v3718_v12  ;;  %v3082_v21 = vpack.c.bf16 %v31_v19, %v29_v18  ;;  %v671_v22 = vld [vmem:[%s8552_s1 + $0x1430] sm:$0xff]  ;;  %v34_v23 = vld [vmem:[%s8552_s1 + $0x48] sm:$0xff]  ;;  %v36_v24 = vld [vmem:[%s8552_s1 + $0x58] sm:$0xff] }
   0x7   :  { %3081 = vmatprep.subr.bf16.mxu1 %v3080_v16  ;;  %v3722_v25 = vpack.c.bf16 %v671_v22, %v669_v20  ;;  %v3084_v26 = vpack.c.bf16 %v36_v24, %v34_v23  ;;  %v674_v27 = vld [vmem:[%s8552_s1 + $0x1448] sm:$0xff]  ;;  %v676_v28 = vld [vmem:[%s8552_s1 + $0x1458] sm:$0xff]  ;;  %v33_v29 = vld [vmem:[%s8552_s1 + $0x40] sm:$0xff] }
   0x8   :  { %3721 = vmatprep.subr.bf16.mxu0 %v3720_v17  ;;  %v3724_v30 = vpack.c.bf16 %v676_v28, %v674_v27  ;;  %v35_v31 = vld [vmem:[%s8552_s1 + $0x50] sm:$0xff]  ;;  %v673_v32 = vld [vmem:[%s8552_s1 + $0x1440] sm:$0xff]  ;;  %v38_v35 = vld [vmem:[%s8552_s1 + $0x68] sm:$0xff] }
   0x9   :  { %v675_v33 = vld [vmem:[%s8552_s1 + $0x1450] sm:$0xff]  ;;  %3083 = vmatpush1.bf16.msra.mxu1 %v3082_v21  ;;  %v3086_v34 = vpack.c.bf16 %v35_v31, %v33_v29  ;;  %v40_v36 = vld [vmem:[%s8552_s1 + $0x78] sm:$0xff]  ;;  %v678_v37 = vld [vmem:[%s8552_s1 + $0x1468] sm:$0xff] }
   0xa   :  { %3723 = vmatpush1.bf16.msra.mxu0 %v3722_v25  ;;  %3085 = vmatprep.subr.bf16.mxu1 %v3084_v26  ;;  %v3726_v38 = vpack.c.bf16 %v675_v33, %v673_v32  ;;  %v3088_v39 = vpack.c.bf16 %v40_v36, %v38_v35  ;;  %v680_v40 = vld [vmem:[%s8552_s1 + $0x1478] sm:$0xff]  ;;  %v37_v41 = vld [vmem:[%s8552_s1 + $0x60] sm:$0xff]  ;;  %v39_v42 = vld [vmem:[%s8552_s1 + $0x70] sm:$0xff] }
   0xb   :  { %3725 = vmatprep.subr.bf16.mxu0 %v3724_v30  ;;  %v3728_v43 = vpack.c.bf16 %v680_v40, %v678_v37  ;;  %v677_v44 = vld [vmem:[%s8552_s1 + $0x1460] sm:$0xff]  ;;  %v679_v45 = vld [vmem:[%s8552_s1 + $0x1470] sm:$0xff]  ;;  %v42_v46 = vld [vmem:[%s8552_s1 + $0x88] sm:$0xff]  ;;  %v3090_v50 = vpack.c.bf16 %v39_v42, %v37_v41 }
   0xc   :  { %v44_v47 = vld [vmem:[%s8552_s1 + $0x98] sm:$0xff]  ;;  %v682_v48 = vld [vmem:[%s8552_s1 + $0x1488] sm:$0xff]  ;;  %v3730_v51 = vpack.c.bf16 %v679_v45, %v677_v44  ;;  %v41_v53 = vld [vmem:[%s8552_s1 + $0x80] sm:$0xff] }
   0xd   :  { %v684_v49 = vld [vmem:[%s8552_s1 + $0x1498] sm:$0xff]  ;;  %3087 = vmatpush1.bf16.msra.mxu1 %v3086_v34  ;;  %v3092_v52 = vpack.c.bf16 %v44_v47, %v42_v46  ;;  %v43_v54 = vld [vmem:[%s8552_s1 + $0x90] sm:$0xff]  ;;  %v681_v55 = vld [vmem:[%s8552_s1 + $0x1480] sm:$0xff]  ;;  %v1323_v46 = vlaneseq  ;;  %v4426_v47 = vmov 1983009808  }
   0xe   :  { %3727 = vmatpush1.bf16.msra.mxu0 %v3726_v38  ;;  %3089 = vmatprep.subr.bf16.mxu1 %v3088_v39  ;;  %v3732_v56 = vpack.c.bf16 %v684_v49, %v682_v48  ;;  %v683_v57 = vld [vmem:[%s8552_s1 + $0x1490] sm:$0xff]  ;;  %v46_v58 = vld [vmem:[%s8552_s1 + $0xa8] sm:$0xff]  ;;  %v48_v59 = vld [vmem:[%s8552_s1 + $0xb8] sm:$0xff]  ;;  %v3094_v62 = vpack.c.bf16 %v43_v54, %v41_v53  ;;  %v1346_v48 = vunpack.c.l.s4 %v4426_v47 }
   0xf   :  { %3729 = vmatprep.subr.bf16.mxu0 %v3728_v43  ;;  %v686_v60 = vld [vmem:[%s8552_s1 + $0x14a8] sm:$0xff]  ;;  %v688_v61 = vld [vmem:[%s8552_s1 + $0x14b8] sm:$0xff]  ;;  %v3734_v63 = vpack.c.bf16 %v683_v57, %v681_v55  ;;  %v3096_v0 = vpack.c.bf16 %v48_v59, %v46_v58  ;;  %v45_v1 = vld [vmem:[%s8552_s1 + $0xa0] sm:$0xff] }
  0x10   :  { %v47_v2 = vld [vmem:[%s8552_s1 + $0xb0] sm:$0xff]  ;;  %v685_v3 = vld [vmem:[%s8552_s1 + $0x14a0] sm:$0xff]  ;;  %v3736_v4 = vpack.c.bf16 %v688_v61, %v686_v60  ;;  %v50_v6 = vld [vmem:[%s8552_s1 + $0xc8] sm:$0xff]  ;;  %v4700_v61 = vshrl.u32 %v1323_v46, 7 }
  0x11   :  { %3091 = vmatpush1.bf16.msra.mxu1 %v3090_v50  ;;  %v687_v5 = vld [vmem:[%s8552_s1 + $0x14b0] sm:$0xff]  ;;  %v52_v7 = vld [vmem:[%s8552_s1 + $0xd8] sm:$0xff]  ;;  %v690_v8 = vld [vmem:[%s8552_s1 + $0x14c8] sm:$0xff]  ;;  %v3098_v10 = vpack.c.bf16 %v47_v2, %v45_v1 }
  0x12   :  { %3731 = vmatpush1.bf16.msra.mxu0 %v3730_v51  ;;  %3093 = vmatprep.subr.bf16.mxu1 %v3092_v52  ;;  %v692_v9 = vld [vmem:[%s8552_s1 + $0x14d8] sm:$0xff]  ;;  %v3738_v11 = vpack.c.bf16 %v687_v5, %v685_v3  ;;  %v3100_v12 = vpack.c.bf16 %v52_v7, %v50_v6  ;;  %v49_v13 = vld [vmem:[%s8552_s1 + $0xc0] sm:$0xff]  ;;  %v51_v14 = vld [vmem:[%s8552_s1 + $0xd0] sm:$0xff] }
  0x13   :  { %3733 = vmatprep.subr.bf16.mxu0 %v3732_v56  ;;  %v689_v15 = vld [vmem:[%s8552_s1 + $0x14c0] sm:$0xff]  ;;  %v3740_v16 = vpack.c.bf16 %v692_v9, %v690_v8  ;;  %v691_v17 = vld [vmem:[%s8552_s1 + $0x14d0] sm:$0xff]  ;;  %v54_v18 = vld [vmem:[%s8552_s1 + $0xe8] sm:$0xff]  ;;  %v3102_v22 = vpack.c.bf16 %v51_v14, %v49_v13 }
  0x14   :  { %v56_v19 = vld [vmem:[%s8552_s1 + $0xf8] sm:$0xff]  ;;  %v694_v20 = vld [vmem:[%s8552_s1 + $0x14e8] sm:$0xff]  ;;  %v3742_v23 = vpack.c.bf16 %v691_v17, %v689_v15  ;;  %v53_v25 = vld [vmem:[%s8552_s1 + $0xe0] sm:$0xff] }
  0x15   :  { %3095 = vmatpush1.bf16.msra.mxu1 %v3094_v62  ;;  %v696_v21 = vld [vmem:[%s8552_s1 + $0x14f8] sm:$0xff]  ;;  %v3104_v24 = vpack.c.bf16 %v56_v19, %v54_v18  ;;  %v55_v26 = vld [vmem:[%s8552_s1 + $0xf0] sm:$0xff]  ;;  %v693_v27 = vld [vmem:[%s8552_s1 + $0x14e0] sm:$0xff]  ;;  %v1347_v62 = vunpack.c.0.s8 %v1346_v48 }
  0x16   :  { %3735 = vmatpush1.bf16.msra.mxu0 %v3734_v63  ;;  %3097 = vmatprep.subr.bf16.mxu1 %v3096_v0  ;;  %v3744_v28 = vpack.c.bf16 %v696_v21, %v694_v20  ;;  %v695_v29 = vld [vmem:[%s8552_s1 + $0x14f0] sm:$0xff]  ;;  %v58_v30 = vld [vmem:[%s8552_s1 + $0x108] sm:$0xff]  ;;  %v60_v31 = vld [vmem:[%s8552_s1 + $0x118] sm:$0xff]  ;;  %v3106_v34 = vpack.c.bf16 %v55_v26, %v53_v25 }
  0x17   :  { %3737 = vmatprep.subr.bf16.mxu0 %v3736_v4  ;;  %v698_v32 = vld [vmem:[%s8552_s1 + $0x1508] sm:$0xff]  ;;  %v700_v33 = vld [vmem:[%s8552_s1 + $0x1518] sm:$0xff]  ;;  %v3746_v35 = vpack.c.bf16 %v695_v29, %v693_v27  ;;  %v3108_v36 = vpack.c.bf16 %v60_v31, %v58_v30  ;;  %v57_v37 = vld [vmem:[%s8552_s1 + $0x100] sm:$0xff] }
  0x18   :  { %v59_v38 = vld [vmem:[%s8552_s1 + $0x110] sm:$0xff]  ;;  %v697_v39 = vld [vmem:[%s8552_s1 + $0x1500] sm:$0xff]  ;;  %v3748_v40 = vpack.c.bf16 %v700_v33, %v698_v32  ;;  %v62_v42 = vld [vmem:[%s8552_s1 + $0x128] sm:$0xff] }
  0x19   :  { %3099 = vmatpush1.bf16.msra.mxu1 %v3098_v10  ;;  %v699_v41 = vld [vmem:[%s8552_s1 + $0x1510] sm:$0xff]  ;;  %v64_v43 = vld [vmem:[%s8552_s1 + $0x138] sm:$0xff]  ;;  %v702_v44 = vld [vmem:[%s8552_s1 + $0x1528] sm:$0xff]  ;;  %v3110_v49 = vpack.c.bf16 %v59_v38, %v57_v37 }
  0x1a   :  { %3739 = vmatpush1.bf16.msra.mxu0 %v3738_v11  ;;  %3101 = vmatprep.subr.bf16.mxu1 %v3100_v12  ;;  %v704_v45 = vld [vmem:[%s8552_s1 + $0x1538] sm:$0xff]  ;;  %v3750_v50 = vpack.c.bf16 %v699_v41, %v697_v39  ;;  %v3112_v51 = vpack.c.bf16 %v64_v43, %v62_v42  ;;  %v61_v52 = vld [vmem:[%s8552_s1 + $0x120] sm:$0xff]  ;;  %v63_v53 = vld [vmem:[%s8552_s1 + $0x130] sm:$0xff]  ;;  %v4727_v11 = vsub.s32 %v1347_v62, %v4700_v61 }
  0x1b   :  { %3741 = vmatprep.subr.bf16.mxu0 %v3740_v16  ;;  %v701_v54 = vld [vmem:[%s8552_s1 + $0x1520] sm:$0xff]  ;;  %v3752_v55 = vpack.c.bf16 %v704_v45, %v702_v44  ;;  %v703_v56 = vld [vmem:[%s8552_s1 + $0x1530] sm:$0xff]  ;;  %v66_v57 = vld [vmem:[%s8552_s1 + $0x148] sm:$0xff]  ;;  %v3114_v63 = vpack.c.bf16 %v63_v53, %v61_v52 }
  0x1c   :  { %v68_v58 = vld [vmem:[%s8552_s1 + $0x158] sm:$0xff]  ;;  %v706_v59 = vld [vmem:[%s8552_s1 + $0x1548] sm:$0xff]  ;;  %v3754_v0 = vpack.c.bf16 %v703_v56, %v701_v54  ;;  %v65_v2 = vld [vmem:[%s8552_s1 + $0x140] sm:$0xff] }
  0x1d   :  { %3103 = vmatpush1.bf16.msra.mxu1 %v3102_v22  ;;  %v708_v60 = vld [vmem:[%s8552_s1 + $0x1558] sm:$0xff]  ;;  %v3116_v1 = vpack.c.bf16 %v68_v58, %v66_v57  ;;  %v67_v3 = vld [vmem:[%s8552_s1 + $0x150] sm:$0xff]  ;;  %v705_v4 = vld [vmem:[%s8552_s1 + $0x1540] sm:$0xff] }
  0x1e   :  { %3743 = vmatpush1.bf16.msra.mxu0 %v3742_v23  ;;  %3105 = vmatprep.subr.bf16.mxu1 %v3104_v24  ;;  %v3756_v5 = vpack.c.bf16 %v708_v60, %v706_v59  ;;  %v707_v6 = vld [vmem:[%s8552_s1 + $0x1550] sm:$0xff]  ;;  %v70_v7 = vld [vmem:[%s8552_s1 + $0x168] sm:$0xff]  ;;  %v72_v8 = vld [vmem:[%s8552_s1 + $0x178] sm:$0xff]  ;;  %v3118_v12 = vpack.c.bf16 %v67_v3, %v65_v2 }
  0x1f   :  { %3745 = vmatprep.subr.bf16.mxu0 %v3744_v28  ;;  %v710_v9 = vld [vmem:[%s8552_s1 + $0x1568] sm:$0xff]  ;;  %v712_v10 = vld [vmem:[%s8552_s1 + $0x1578] sm:$0xff]  ;;  %v69_v13 = vld [vmem:[%s8552_s1 + $0x160] sm:$0xff]  ;;  %v3758_v14 = vpack.c.bf16 %v707_v6, %v705_v4  ;;  %v3120_v15 = vpack.c.bf16 %v72_v8, %v70_v7 }
  0x20   :  { %v71_v16 = vld [vmem:[%s8552_s1 + $0x170] sm:$0xff]  ;;  %v709_v17 = vld [vmem:[%s8552_s1 + $0x1560] sm:$0xff]  ;;  %v3760_v19 = vpack.c.bf16 %v712_v10, %v710_v9  ;;  %v74_v20 = vld [vmem:[%s8552_s1 + $0x188] sm:$0xff] }
  0x21   :  { %3107 = vmatpush1.bf16.msra.mxu1 %v3106_v34  ;;  %v711_v18 = vld [vmem:[%s8552_s1 + $0x1570] sm:$0xff]  ;;  %v76_v21 = vld [vmem:[%s8552_s1 + $0x198] sm:$0xff]  ;;  %v4750_v22 = vld [vmem:[%s8553_s0] sm:$0xff]  ;;  %v3122_v27 = vpack.c.bf16 %v71_v16, %v69_v13 }
  0x22   :  { %3747 = vmatpush1.bf16.msra.mxu0 %v3746_v35  ;;  %3109 = vmatprep.subr.bf16.mxu1 %v3108_v36  ;;  %v714_v23 = vld [vmem:[%s8552_s1 + $0x1588] sm:$0xff]  ;;  %v716_v24 = vld [vmem:[%s8552_s1 + $0x1598] sm:$0xff]  ;;  %v4760_v25 = vrot.slane %v4750_v22, %v4727_v11  ;;  %v3762_v29 = vpack.c.bf16 %v711_v18, %v709_v17  ;;  %v3124_v30 = vpack.c.bf16 %v76_v21, %v74_v20  ;;  %v73_v31 = vld [vmem:[%s8552_s1 + $0x180] sm:$0xff] }
  0x23   :  { %3749 = vmatprep.subr.bf16.mxu0 %v3748_v40  ;;  %v4765_v26 = vld [vmem:[%s8553_s0 + $0x28] sm:$0xff]  ;;  %v75_v32 = vld [vmem:[%s8552_s1 + $0x190] sm:$0xff]  ;;  %v713_v33 = vld [vmem:[%s8552_s1 + $0x1580] sm:$0xff]  ;;  %v3764_v35 = vpack.c.bf16 %v716_v24, %v714_v23 }
  0x24   :  { %v4769_v28 = vrot.slane %v4765_v26, %v4727_v11  ;;  %v1359_v34 = vcombine.high %v4760_v25, %v4760_v25  ;;  %v715_v36 = vld [vmem:[%s8552_s1 + $0x1590] sm:$0xff]  ;;  %v78_v37 = vld [vmem:[%s8552_s1 + $0x1a8] sm:$0xff]  ;;  %v80_v38 = vld [vmem:[%s8552_s1 + $0x1b8] sm:$0xff]  ;;  %v3126_v42 = vpack.c.bf16 %v75_v32, %v73_v31 }
  0x25   :  { %3111 = vmatpush1.bf16.msra.mxu1 %v3110_v49  ;;  %v718_v40 = vld [vmem:[%s8552_s1 + $0x15a8] sm:$0xff]  ;;  %v720_v41 = vld [vmem:[%s8552_s1 + $0x15b8] sm:$0xff]  ;;  %v3766_v43 = vpack.c.bf16 %v715_v36, %v713_v33  ;;  %v3128_v44 = vpack.c.bf16 %v80_v38, %v78_v37  ;;  %v77_v45 = vld [vmem:[%s8552_s1 + $0x1a0] sm:$0xff] }
  0x26   :  { %3751 = vmatpush1.bf16.msra.mxu0 %v3750_v50  ;;  %3113 = vmatprep.subr.bf16.mxu1 %v3112_v51  ;;  %v1444_v39 = vcombine.high %v4769_v28, %v4769_v28  ;;  %v79_v46 = vld [vmem:[%s8552_s1 + $0x1b0] sm:$0xff]  ;;  %v717_v47 = vld [vmem:[%s8552_s1 + $0x15a0] sm:$0xff]  ;;  %v3768_v48 = vpack.c.bf16 %v720_v41, %v718_v40  ;;  %v82_v50 = vld [vmem:[%s8552_s1 + $0x1c8] sm:$0xff] }
  0x27   :  { %3753 = vmatprep.subr.bf16.mxu0 %v3752_v55  ;;  %1628 = vmatprep.mubr.f32.mxu1 %v1359_v34  ;;  %v719_v49 = vld [vmem:[%s8552_s1 + $0x15b0] sm:$0xff]  ;;  %v84_v51 = vld [vmem:[%s8552_s1 + $0x1d8] sm:$0xff]  ;;  %v722_v52 = vld [vmem:[%s8552_s1 + $0x15c8] sm:$0xff]  ;;  %v3130_v54 = vpack.c.bf16 %v79_v46, %v77_v45 }
  0x28   :  { %2338 = vmatprep.mubr.f32.mxu0 %v1444_v39  ;;  %v724_v53 = vld [vmem:[%s8552_s1 + $0x15d8] sm:$0xff]  ;;  %v3770_v55 = vpack.c.bf16 %v719_v49, %v717_v47  ;;  %v3132_v56 = vpack.c.bf16 %v84_v51, %v82_v50  ;;  %v81_v57 = vld [vmem:[%s8552_s1 + $0x1c0] sm:$0xff]  ;;  %v83_v58 = vld [vmem:[%s8552_s1 + $0x1d0] sm:$0xff] }
  0x29   :  { %3115 = vmatpush1.bf16.msra.mxu1 %v3114_v63  ;;  %v721_v59 = vld [vmem:[%s8552_s1 + $0x15c0] sm:$0xff]  ;;  %v3772_v60 = vpack.c.bf16 %v724_v53, %v722_v52  ;;  %v723_v62 = vld [vmem:[%s8552_s1 + $0x15d0] sm:$0xff]  ;;  %v86_v63 = vld [vmem:[%s8552_s1 + $0x1e8] sm:$0xff]  ;;  %v3134_v3 = vpack.c.bf16 %v83_v58, %v81_v57 }
  0x2a   :  { %3755 = vmatpush1.bf16.msra.mxu0 %v3754_v0  ;;  %3117 = vmatprep.subr.bf16.mxu1 %v3116_v1  ;;  %v88_v0 = vld [vmem:[%s8552_s1 + $0x1f8] sm:$0xff]  ;;  %v726_v1 = vld [vmem:[%s8552_s1 + $0x15e8] sm:$0xff]  ;;  %v3774_v4 = vpack.c.bf16 %v723_v62, %v721_v59  ;;  %v85_v6 = vld [vmem:[%s8552_s1 + $0x1e0] sm:$0xff] }
  0x2b   :  { %3757 = vmatprep.subr.bf16.mxu0 %v3756_v5  ;;  %v728_v2 = vld [vmem:[%s8552_s1 + $0x15f8] sm:$0xff]  ;;  %v3136_v5 = vpack.c.bf16 %v88_v0, %v86_v63  ;;  %v87_v7 = vld [vmem:[%s8552_s1 + $0x1f0] sm:$0xff]  ;;  %v725_v8 = vld [vmem:[%s8552_s1 + $0x15e0] sm:$0xff] }
  0x2c   :  { %v3776_v9 = vpack.c.bf16 %v728_v2, %v726_v1  ;;  %v727_v10 = vld [vmem:[%s8552_s1 + $0x15f0] sm:$0xff]  ;;  %v90_v13 = vld [vmem:[%s8552_s1 + $0x208] sm:$0xff]  ;;  %v732_v17 = vld [vmem:[%s8552_s1 + $0x1618] sm:$0xff]  ;;  %v3138_v18 = vpack.c.bf16 %v87_v7, %v85_v6 }
  0x2d   :  { %3119 = vmatpush1.bf16.msra.mxu1 %v3118_v12  ;;  %v1344_v12 = vcombine.high %v4750_v22, %v4750_v22  ;;  %v730_v16 = vld [vmem:[%s8552_s1 + $0x1608] sm:$0xff]  ;;  %v89_v21 = vld [vmem:[%s8552_s1 + $0x200] sm:$0xff]  ;;  %v91_v22 = vld [vmem:[%s8552_s1 + $0x210] sm:$0xff] }
  0x2e   :  { %3759 = vmatpush1.bf16.msra.mxu0 %v3758_v14  ;;  %3121 = vmatprep.subr.bf16.mxu1 %v3120_v15  ;;  %v92_v14 = vld [vmem:[%s8552_s1 + $0x218] sm:$0xff]  ;;  %v1429_v15 = vcombine.high %v4765_v26, %v4765_v26  ;;  %v729_v23 = vld [vmem:[%s8552_s1 + $0x1600] sm:$0xff]  ;;  %v3780_v24 = vpack.c.bf16 %v732_v17, %v730_v16  ;;  %v731_v26 = vld [vmem:[%s8552_s1 + $0x1610] sm:$0xff]  ;;  %v3142_v34 = vpack.c.bf16 %v91_v22, %v89_v21 }
  0x2f   :  { %3761 = vmatprep.subr.bf16.mxu0 %v3760_v19  ;;  %v3778_v19 = vpack.c.bf16 %v727_v10, %v725_v8  ;;  %v3140_v20 = vpack.c.bf16 %v92_v14, %v90_v13  ;;  %v734_v31 = vld [vmem:[%s8552_s1 + $0x1628] sm:$0xff]  ;;  %v736_v32 = vld [vmem:[%s8552_s1 + $0x1638] sm:$0xff]  ;;  %v93_v37 = vld [vmem:[%s8552_s1 + $0x220] sm:$0xff] }
  0x30   :  { %v4903_v33 = vrot.slane %v1429_v15, %v4727_v11  ;;  %v95_v38 = vld [vmem:[%s8552_s1 + $0x230] sm:$0xff]  ;;  %v733_v39 = vld [vmem:[%s8552_s1 + $0x1620] sm:$0xff]  ;;  %v3784_v40 = vpack.c.bf16 %v736_v32, %v734_v31  ;;  %v738_v45 = vld [vmem:[%s8552_s1 + $0x1648] sm:$0xff] }
  0x31   :  { %3123 = vmatpush1.bf16.msra.mxu1 %v3122_v27  ;;  %v94_v27 = vld [vmem:[%s8552_s1 + $0x228] sm:$0xff]  ;;  %v735_v41 = vld [vmem:[%s8552_s1 + $0x1630] sm:$0xff]  ;;  %v740_v46 = vld [vmem:[%s8552_s1 + $0x1658] sm:$0xff] }
  0x32   :  { %3763 = vmatpush1.bf16.msra.mxu0 %v3762_v29  ;;  %3125 = vmatprep.subr.bf16.mxu1 %v3124_v30  ;;  %v96_v29 = vld [vmem:[%s8552_s1 + $0x238] sm:$0xff]  ;;  %v4894_v30 = vrot.slane %v1344_v12, %v4727_v11  ;;  %v1445_v47 = vcombine.high %v4903_v33, %v4903_v33  ;;  %v3786_v49 = vpack.c.bf16 %v735_v41, %v733_v39  ;;  %v99_v51 = vld [vmem:[%s8552_s1 + $0x250] sm:$0xff]  ;;  %v737_v52 = vld [vmem:[%s8552_s1 + $0x1640] sm:$0xff] }
  0x33   :  { %3765 = vmatprep.subr.bf16.mxu0 %v3764_v35  ;;  %v3782_v35 = vpack.c.bf16 %v731_v26, %v729_v23  ;;  %v3144_v36 = vpack.c.bf16 %v96_v29, %v94_v27  ;;  %v3788_v53 = vpack.c.bf16 %v740_v46, %v738_v45  ;;  %v744_v57 = vld [vmem:[%s8552_s1 + $0x1678] sm:$0xff]  ;;  %v101_v62 = vld [vmem:[%s8552_s1 + $0x260] sm:$0xff]  ;;  %v103_v63 = vld [vmem:[%s8552_s1 + $0x270] sm:$0xff] }
  0x34   :  { %v741_v0 = vld [vmem:[%s8552_s1 + $0x1660] sm:$0xff]  ;;  %v743_v2 = vld [vmem:[%s8552_s1 + $0x1670] sm:$0xff]  ;;  %v748_v6 = vld [vmem:[%s8552_s1 + $0x1698] sm:$0xff]  ;;  %v3154_v7 = vpack.c.bf16 %v103_v63, %v101_v62 }
  0x35   :  { %3127 = vmatpush1.bf16.msra.mxu1 %v3126_v42  ;;  %v98_v42 = vld [vmem:[%s8552_s1 + $0x248] sm:$0xff]  ;;  %v3794_v8 = vpack.c.bf16 %v743_v2, %v741_v0  ;;  %v105_v10 = vld [vmem:[%s8552_s1 + $0x280] sm:$0xff]  ;;  %v107_v12 = vld [vmem:[%s8552_s1 + $0x290] sm:$0xff] }
  0x36   :  { %3767 = vmatpush1.bf16.msra.mxu0 %v3766_v43  ;;  %3129 = vmatprep.subr.bf16.mxu1 %v3128_v44  ;;  %v100_v43 = vld [vmem:[%s8552_s1 + $0x258] sm:$0xff]  ;;  %v1360_v44 = vcombine.high %v4894_v30, %v4894_v30  ;;  %v745_v13 = vld [vmem:[%s8552_s1 + $0x1680] sm:$0xff]  ;;  %v747_v15 = vld [vmem:[%s8552_s1 + $0x1690] sm:$0xff] }
  0x37   :  { %3769 = vmatprep.subr.bf16.mxu0 %v3768_v48  ;;  %v3146_v48 = vpack.c.bf16 %v95_v38, %v93_v37  ;;  %v3148_v50 = vpack.c.bf16 %v100_v43, %v98_v42  ;;  %v110_v16 = vld [vmem:[%s8552_s1 + $0x2a8] sm:$0xff]  ;;  %v112_v17 = vld [vmem:[%s8552_s1 + $0x2b8] sm:$0xff]  ;;  %v3798_v21 = vpack.c.bf16 %v747_v15, %v745_v13  ;;  %v109_v23 = vld [vmem:[%s8552_s1 + $0x2a0] sm:$0xff] }
  0x38   :  { %v3160_v22 = vpack.c.bf16 %v112_v17, %v110_v16  ;;  %v749_v26 = vld [vmem:[%s8552_s1 + $0x16a0] sm:$0xff]  ;;  %v751_v29 = vld [vmem:[%s8552_s1 + $0x16b0] sm:$0xff]  ;;  %v114_v31 = vld [vmem:[%s8552_s1 + $0x2c8] sm:$0xff] }
  0x39   :  { %3131 = vmatpush1.bf16.msra.mxu1 %v3130_v54  ;;  %v102_v54 = vld [vmem:[%s8552_s1 + $0x268] sm:$0xff]  ;;  %v116_v32 = vld [vmem:[%s8552_s1 + $0x2d8] sm:$0xff]  ;;  %v3802_v37 = vpack.c.bf16 %v751_v29, %v749_v26  ;;  %v113_v39 = vld [vmem:[%s8552_s1 + $0x2c0] sm:$0xff] }
  0x3a   :  { %3771 = vmatpush1.bf16.msra.mxu0 %v3770_v55  ;;  %3133 = vmatprep.subr.bf16.mxu1 %v3132_v56  ;;  %v104_v55 = vld [vmem:[%s8552_s1 + $0x278] sm:$0xff]  ;;  %v742_v56 = vld [vmem:[%s8552_s1 + $0x1668] sm:$0xff]  ;;  %v3164_v38 = vpack.c.bf16 %v116_v32, %v114_v31  ;;  %v753_v41 = vld [vmem:[%s8552_s1 + $0x16c0] sm:$0xff] }
  0x3b   :  { %3773 = vmatprep.subr.bf16.mxu0 %v3772_v60  ;;  %v3152_v60 = vpack.c.bf16 %v104_v55, %v102_v54  ;;  %v3792_v1 = vpack.c.bf16 %v744_v57, %v742_v56  ;;  %v755_v43 = vld [vmem:[%s8552_s1 + $0x16d0] sm:$0xff]  ;;  %v120_v45 = vld [vmem:[%s8552_s1 + $0x2f8] sm:$0xff]  ;;  %v758_v46 = vld [vmem:[%s8552_s1 + $0x16e8] sm:$0xff] }
  0x3c   :  { %v122_v54 = vld [vmem:[%s8552_s1 + $0x308] sm:$0xff]  ;;  %v124_v55 = vld [vmem:[%s8552_s1 + $0x318] sm:$0xff]  ;;  %v121_v62 = vld [vmem:[%s8552_s1 + $0x300] sm:$0xff] }
  0x3d   :  { %3135 = vmatpush1.bf16.msra.mxu1 %v3134_v3  ;;  %v106_v3 = vld [vmem:[%s8552_s1 + $0x288] sm:$0xff]  ;;  %v764_v57 = vld [vmem:[%s8552_s1 + $0x1718] sm:$0xff]  ;;  %v123_v63 = vld [vmem:[%s8552_s1 + $0x310] sm:$0xff] }
  0x3e   :  { %3775 = vmatpush1.bf16.msra.mxu0 %v3774_v4  ;;  %3137 = vmatprep.subr.bf16.mxu1 %v3136_v5  ;;  %v108_v4 = vld [vmem:[%s8552_s1 + $0x298] sm:$0xff]  ;;  %v746_v5 = vld [vmem:[%s8552_s1 + $0x1688] sm:$0xff]  ;;  %v761_v0 = vld [vmem:[%s8552_s1 + $0x1700] sm:$0xff] }
  0x3f   :  { %3777 = vmatprep.subr.bf16.mxu0 %v3776_v9  ;;  %v3156_v9 = vpack.c.bf16 %v108_v4, %v106_v3  ;;  %v3796_v14 = vpack.c.bf16 %v748_v6, %v746_v5  ;;  %v762_v56 = vld [vmem:[%s8552_s1 + $0x1708] sm:$0xff]  ;;  %v763_v2 = vld [vmem:[%s8552_s1 + $0x1710] sm:$0xff]  ;;  %v128_v4 = vld [vmem:[%s8552_s1 + $0x338] sm:$0xff] }
  0x40   :  { %v126_v3 = vld [vmem:[%s8552_s1 + $0x328] sm:$0xff]  ;;  %v768_v6 = vld [vmem:[%s8552_s1 + $0x1738] sm:$0xff]  ;;  %v765_v13 = vld [vmem:[%s8552_s1 + $0x1720] sm:$0xff] }
  0x41   :  { %3139 = vmatpush1.bf16.msra.mxu1 %v3138_v18  ;;  %v750_v18 = vld [vmem:[%s8552_s1 + $0x16a8] sm:$0xff]  ;;  %v767_v15 = vld [vmem:[%s8552_s1 + $0x1730] sm:$0xff]  ;;  %v132_v17 = vld [vmem:[%s8552_s1 + $0x358] sm:$0xff] }
  0x42   :  { %3779 = vmatpush1.bf16.msra.mxu0 %v3778_v19  ;;  %3141 = vmatprep.subr.bf16.mxu1 %v3140_v20  ;;  %v752_v19 = vld [vmem:[%s8552_s1 + $0x16b8] sm:$0xff]  ;;  %v3158_v20 = vpack.c.bf16 %v107_v12, %v105_v10  ;;  %v766_v5 = vld [vmem:[%s8552_s1 + $0x1728] sm:$0xff]  ;;  %v125_v10 = vld [vmem:[%s8552_s1 + $0x320] sm:$0xff] }
  0x43   :  { %3781 = vmatprep.subr.bf16.mxu0 %v3780_v24  ;;  %v111_v24 = vld [vmem:[%s8552_s1 + $0x2b0] sm:$0xff]  ;;  %v3800_v27 = vpack.c.bf16 %v752_v19, %v750_v18  ;;  %v130_v16 = vld [vmem:[%s8552_s1 + $0x348] sm:$0xff]  ;;  %v772_v19 = vld [vmem:[%s8552_s1 + $0x1758] sm:$0xff] }
  0x44   :  { %1629 = vmatmul.mubr.f32.vlgmr.msra.gmra.mrb[0].mxu1 %v4760_v25  ;;  %v97_v25 = vld [vmem:[%s8552_s1 + $0x240] sm:$0xff]  ;;  %v127_v12 = vld [vmem:[%s8552_s1 + $0x330] sm:$0xff]  ;;  %v770_v18 = vld [vmem:[%s8552_s1 + $0x1748] sm:$0xff] }
  0x45   :  { %3143 = vmatpush1.bf16.msra.mxu1 %v3142_v34  ;;  %2339 = vmatmul.mubr.f32.vlgmr.msra.gmra.mrb[0].mxu0 %v4769_v28  ;;  %v739_v28 = vld [vmem:[%s8552_s1 + $0x1650] sm:$0xff]  ;;  %v3150_v58 = vpack.c.bf16 %v99_v51, %v97_v25  ;;  %v754_v34 = vld [vmem:[%s8552_s1 + $0x16c8] sm:$0xff]  ;;  %v117_v25 = vld [vmem:[%s8552_s1 + $0x2e0] sm:$0xff] }
  0x46   :  { %3783 = vmatpush1.bf16.msra.mxu0 %v3782_v35  ;;  %3145 = vmatprep.subr.bf16.mxu1 %v3144_v36  ;;  %v3790_v59 = vpack.c.bf16 %v739_v28, %v737_v52  ;;  %v756_v35 = vld [vmem:[%s8552_s1 + $0x16d8] sm:$0xff]  ;;  %v3162_v36 = vpack.c.bf16 %v111_v24, %v109_v23  ;;  %v119_v51 = vld [vmem:[%s8552_s1 + $0x2f0] sm:$0xff]  ;;  %v757_v52 = vld [vmem:[%s8552_s1 + $0x16e0] sm:$0xff] }
  0x47   :  { %3785 = vmatprep.subr.bf16.mxu0 %v3784_v40  ;;  %1699 = vmatprep.mubr.f32.mxu1 %v1360_v44  ;;  %v115_v40 = vld [vmem:[%s8552_s1 + $0x2d0] sm:$0xff]  ;;  %v3804_v42 = vpack.c.bf16 %v756_v35, %v754_v34  ;;  %v118_v44 = vld [vmem:[%s8552_s1 + $0x2e8] sm:$0xff]  ;;  %v129_v23 = vld [vmem:[%s8552_s1 + $0x340] sm:$0xff] }
  0x48   :  { %2409 = vmatprep.mubr.f32.mxu0 %v1445_v47  ;;  %v760_v47 = vld [vmem:[%s8552_s1 + $0x16f8] sm:$0xff]  ;;  %v759_v28 = vld [vmem:[%s8552_s1 + $0x16f0] sm:$0xff]  ;;  %v769_v26 = vld [vmem:[%s8552_s1 + $0x1740] sm:$0xff] }
  0x49   :  { %3147 = vmatpush1.bf16.msra.mxu1 %v3146_v48  ;;  %v3166_v48 = vpack.c.bf16 %v115_v40, %v113_v39  ;;  %v131_v24 = vld [vmem:[%s8552_s1 + $0x350] sm:$0xff]  ;;  %v134_v31 = vld [vmem:[%s8552_s1 + $0x368] sm:$0xff]  ;;  %v136_v32 = vld [vmem:[%s8552_s1 + $0x378] sm:$0xff] }
  0x4a   :  { %3787 = vmatpush1.bf16.msra.mxu0 %v3786_v49  ;;  %3149 = vmatprep.subr.bf16.mxu1 %v3148_v50  ;;  %v3806_v49 = vpack.c.bf16 %v755_v43, %v753_v41  ;;  %v3168_v50 = vpack.c.bf16 %v120_v45, %v118_v44  ;;  %v771_v29 = vld [vmem:[%s8552_s1 + $0x1750] sm:$0xff]  ;;  %v774_v34 = vld [vmem:[%s8552_s1 + $0x1768] sm:$0xff]  ;;  %v776_v35 = vld [vmem:[%s8552_s1 + $0x1778] sm:$0xff] }
  0x4b   :  { %3789 = vmatprep.subr.bf16.mxu0 %v3788_v53  ;;  %v3808_v53 = vpack.c.bf16 %v760_v47, %v758_v46  ;;  %v133_v39 = vld [vmem:[%s8552_s1 + $0x360] sm:$0xff]  ;;  %v135_v40 = vld [vmem:[%s8552_s1 + $0x370] sm:$0xff]  ;;  %v138_v44 = vld [vmem:[%s8552_s1 + $0x388] sm:$0xff] }
  0x4c   :  { %v773_v41 = vld [vmem:[%s8552_s1 + $0x1760] sm:$0xff]  ;;  %v775_v43 = vld [vmem:[%s8552_s1 + $0x1770] sm:$0xff]  ;;  %v140_v45 = vld [vmem:[%s8552_s1 + $0x398] sm:$0xff] }
  0x4d   :  { %3151 = vmatpush1.bf16.msra.mxu1 %v3150_v58  ;;  %v3170_v58 = vpack.c.bf16 %v119_v51, %v117_v25  ;;  %v778_v46 = vld [vmem:[%s8552_s1 + $0x1788] sm:$0xff]  ;;  %v780_v47 = vld [vmem:[%s8552_s1 + $0x1798] sm:$0xff]  ;;  %v137_v25 = vld [vmem:[%s8552_s1 + $0x380] sm:$0xff] }
  0x4e   :  { %3791 = vmatpush1.bf16.msra.mxu0 %v3790_v59  ;;  %3153 = vmatprep.subr.bf16.mxu1 %v3152_v60  ;;  %v3810_v59 = vpack.c.bf16 %v759_v28, %v757_v52  ;;  %v3172_v60 = vpack.c.bf16 %v124_v55, %v122_v54  ;;  %v139_v51 = vld [vmem:[%s8552_s1 + $0x390] sm:$0xff]  ;;  %v777_v52 = vld [vmem:[%s8552_s1 + $0x1780] sm:$0xff]  ;;  %v142_v54 = vld [vmem:[%s8552_s1 + $0x3a8] sm:$0xff] }
  0x4f   :  { %3793 = vmatprep.subr.bf16.mxu0 %v3792_v1  ;;  %v3812_v1 = vpack.c.bf16 %v764_v57, %v762_v56  ;;  %v779_v28 = vld [vmem:[%s8552_s1 + $0x1790] sm:$0xff]  ;;  %v144_v55 = vld [vmem:[%s8552_s1 + $0x3b8] sm:$0xff]  ;;  %v782_v56 = vld [vmem:[%s8552_s1 + $0x17a8] sm:$0xff] }
  0x50   :  { %v784_v57 = vld [vmem:[%s8552_s1 + $0x17b8] sm:$0xff] }
  0x51   :  { %3155 = vmatpush1.bf16.msra.mxu1 %v3154_v7  ;;  %v3174_v7 = vpack.c.bf16 %v123_v63, %v121_v62  ;;  %v141_v62 = vld [vmem:[%s8552_s1 + $0x3a0] sm:$0xff]  ;;  %v143_v63 = vld [vmem:[%s8552_s1 + $0x3b0] sm:$0xff] }
  0x52   :  { %3795 = vmatpush1.bf16.msra.mxu0 %v3794_v8  ;;  %3157 = vmatprep.subr.bf16.mxu1 %v3156_v9  ;;  %v3814_v8 = vpack.c.bf16 %v763_v2, %v761_v0  ;;  %v3176_v9 = vpack.c.bf16 %v128_v4, %v126_v3  ;;  %v781_v0 = vld [vmem:[%s8552_s1 + $0x17a0] sm:$0xff]  ;;  %v783_v2 = vld [vmem:[%s8552_s1 + $0x17b0] sm:$0xff]  ;;  %v146_v3 = vld [vmem:[%s8552_s1 + $0x3c8] sm:$0xff] }
  0x53   :  { %3797 = vmatprep.subr.bf16.mxu0 %v3796_v14  ;;  %v3816_v14 = vpack.c.bf16 %v768_v6, %v766_v5  ;;  %v148_v4 = vld [vmem:[%s8552_s1 + $0x3d8] sm:$0xff]  ;;  %v786_v5 = vld [vmem:[%s8552_s1 + $0x17c8] sm:$0xff] }
  0x54   :  { %v788_v6 = vld [vmem:[%s8552_s1 + $0x17d8] sm:$0xff] }
  0x55   :  { %3159 = vmatpush1.bf16.msra.mxu1 %v3158_v20  ;;  %v3178_v20 = vpack.c.bf16 %v127_v12, %v125_v10  ;;  %v145_v10 = vld [vmem:[%s8552_s1 + $0x3c0] sm:$0xff]  ;;  %v147_v12 = vld [vmem:[%s8552_s1 + $0x3d0] sm:$0xff] }
  0x56   :  { %3799 = vmatpush1.bf16.msra.mxu0 %v3798_v21  ;;  %3161 = vmatprep.subr.bf16.mxu1 %v3160_v22  ;;  %v3818_v21 = vpack.c.bf16 %v767_v15, %v765_v13  ;;  %v3180_v22 = vpack.c.bf16 %v132_v17, %v130_v16  ;;  %v785_v13 = vld [vmem:[%s8552_s1 + $0x17c0] sm:$0xff]  ;;  %v787_v15 = vld [vmem:[%s8552_s1 + $0x17d0] sm:$0xff]  ;;  %v150_v16 = vld [vmem:[%s8552_s1 + $0x3e8] sm:$0xff] }
  0x57   :  { %3801 = vmatprep.subr.bf16.mxu0 %v3800_v27  ;;  %v3820_v27 = vpack.c.bf16 %v772_v19, %v770_v18  ;;  %v152_v17 = vld [vmem:[%s8552_s1 + $0x3f8] sm:$0xff]  ;;  %v790_v18 = vld [vmem:[%s8552_s1 + $0x17e8] sm:$0xff] }
  0x58   :  { %v792_v19 = vld [vmem:[%s8552_s1 + $0x17f8] sm:$0xff] }
  0x59   :  { %3163 = vmatpush1.bf16.msra.mxu1 %v3162_v36  ;;  %v3182_v36 = vpack.c.bf16 %v131_v24, %v129_v23  ;;  %v149_v23 = vld [vmem:[%s8552_s1 + $0x3e0] sm:$0xff]  ;;  %v151_v24 = vld [vmem:[%s8552_s1 + $0x3f0] sm:$0xff] }
  0x5a   :  { %3803 = vmatpush1.bf16.msra.mxu0 %v3802_v37  ;;  %3165 = vmatprep.subr.bf16.mxu1 %v3164_v38  ;;  %v3822_v37 = vpack.c.bf16 %v771_v29, %v769_v26  ;;  %v3184_v38 = vpack.c.bf16 %v136_v32, %v134_v31  ;;  %v789_v26 = vld [vmem:[%s8552_s1 + $0x17e0] sm:$0xff]  ;;  %v791_v29 = vld [vmem:[%s8552_s1 + $0x17f0] sm:$0xff]  ;;  %v154_v31 = vld [vmem:[%s8552_s1 + $0x408] sm:$0xff] }
  0x5b   :  { %3805 = vmatprep.subr.bf16.mxu0 %v3804_v42  ;;  %v3824_v42 = vpack.c.bf16 %v776_v35, %v774_v34  ;;  %v156_v32 = vld [vmem:[%s8552_s1 + $0x418] sm:$0xff]  ;;  %v794_v34 = vld [vmem:[%s8552_s1 + $0x1808] sm:$0xff] }
  0x5c   :  { %v796_v35 = vld [vmem:[%s8552_s1 + $0x1818] sm:$0xff] }
  0x5d   :  { %3167 = vmatpush1.bf16.msra.mxu1 %v3166_v48  ;;  %v3186_v48 = vpack.c.bf16 %v135_v40, %v133_v39  ;;  %v153_v39 = vld [vmem:[%s8552_s1 + $0x400] sm:$0xff]  ;;  %v155_v40 = vld [vmem:[%s8552_s1 + $0x410] sm:$0xff] }
  0x5e   :  { %3807 = vmatpush1.bf16.msra.mxu0 %v3806_v49  ;;  %3169 = vmatprep.subr.bf16.mxu1 %v3168_v50  ;;  %v3826_v49 = vpack.c.bf16 %v775_v43, %v773_v41  ;;  %v3188_v50 = vpack.c.bf16 %v140_v45, %v138_v44  ;;  %v793_v41 = vld [vmem:[%s8552_s1 + $0x1800] sm:$0xff]  ;;  %v795_v43 = vld [vmem:[%s8552_s1 + $0x1810] sm:$0xff]  ;;  %v158_v44 = vld [vmem:[%s8552_s1 + $0x428] sm:$0xff] }
  0x5f   :  { %3809 = vmatprep.subr.bf16.mxu0 %v3808_v53  ;;  %v3828_v53 = vpack.c.bf16 %v780_v47, %v778_v46  ;;  %v160_v45 = vld [vmem:[%s8552_s1 + $0x438] sm:$0xff]  ;;  %v798_v46 = vld [vmem:[%s8552_s1 + $0x1828] sm:$0xff] }
  0x60   :  { %v800_v47 = vld [vmem:[%s8552_s1 + $0x1838] sm:$0xff] }
  0x61   :  { %3171 = vmatpush1.bf16.msra.mxu1 %v3170_v58  ;;  %v3190_v58 = vpack.c.bf16 %v139_v51, %v137_v25  ;;  %v3846_v25 = vpack.c.bf16 %v795_v43, %v793_v41  ;;  %v3208_v51 = vpack.c.bf16 %v160_v45, %v158_v44  ;;  %v173_v43 = vld [vmem:[%s8552_s1 + $0x4a0] sm:$0xff]  ;;  %v175_v44 = vld [vmem:[%s8552_s1 + $0x4b0] sm:$0xff] }
  0x62   :  { %3811 = vmatpush1.bf16.msra.mxu0 %v3810_v59  ;;  %3173 = vmatprep.subr.bf16.mxu1 %v3172_v60  ;;  %v3830_v59 = vpack.c.bf16 %v779_v28, %v777_v52  ;;  %v3192_v60 = vpack.c.bf16 %v144_v55, %v142_v54  ;;  %v159_v52 = vld [vmem:[%s8552_s1 + $0x430] sm:$0xff]  ;;  %v3848_v55 = vpack.c.bf16 %v800_v47, %v798_v46  ;;  %v813_v45 = vld [vmem:[%s8552_s1 + $0x18a0] sm:$0xff] }
  0x63   :  { %3813 = vmatprep.subr.bf16.mxu0 %v3812_v1  ;;  %v3832_v1 = vpack.c.bf16 %v784_v57, %v782_v56  ;;  %v5316_v54 = vld [vmem:[%s8553_s0 + $0x30] sm:$0xff]  ;;  %v162_v57 = vld [vmem:[%s8552_s1 + $0x448] sm:$0xff] }
  0x64   :  { %v799_v56 = vld [vmem:[%s8552_s1 + $0x1830] sm:$0xff] }
  0x65   :  { %3175 = vmatpush1.bf16.msra.mxu1 %v3174_v7  ;;  %v3194_v7 = vpack.c.bf16 %v143_v63, %v141_v62  ;;  %v804_v62 = vld [vmem:[%s8552_s1 + $0x1858] sm:$0xff]  ;;  %v815_v47 = vld [vmem:[%s8552_s1 + $0x18b0] sm:$0xff] }
  0x66   :  { %3815 = vmatpush1.bf16.msra.mxu0 %v3814_v8  ;;  %3177 = vmatprep.subr.bf16.mxu1 %v3176_v9  ;;  %v3834_v8 = vpack.c.bf16 %v783_v2, %v781_v0  ;;  %v3196_v9 = vpack.c.bf16 %v148_v4, %v146_v3  ;;  %v161_v3 = vld [vmem:[%s8552_s1 + $0x440] sm:$0xff]  ;;  %v163_v4 = vld [vmem:[%s8552_s1 + $0x450] sm:$0xff] }
  0x67   :  { %3817 = vmatprep.subr.bf16.mxu0 %v3816_v14  ;;  %v3836_v14 = vpack.c.bf16 %v788_v6, %v786_v5  ;;  %v803_v6 = vld [vmem:[%s8552_s1 + $0x1850] sm:$0xff] }
  0x69   :  { %3179 = vmatpush1.bf16.msra.mxu1 %v3178_v20  ;;  %v3198_v20 = vpack.c.bf16 %v147_v12, %v145_v10  ;;  %v808_v10 = vld [vmem:[%s8552_s1 + $0x1878] sm:$0xff]  ;;  %v3214_v12 = vpack.c.bf16 %v163_v4, %v161_v3 }
  0x6a   :  { %3819 = vmatpush1.bf16.msra.mxu0 %v3818_v21  ;;  %3181 = vmatprep.subr.bf16.mxu1 %v3180_v22  ;;  %v3838_v21 = vpack.c.bf16 %v787_v15, %v785_v13  ;;  %v3200_v22 = vpack.c.bf16 %v152_v17, %v150_v16  ;;  %v165_v15 = vld [vmem:[%s8552_s1 + $0x460] sm:$0xff]  ;;  %v167_v16 = vld [vmem:[%s8552_s1 + $0x470] sm:$0xff] }
  0x6b   :  { %3821 = vmatprep.subr.bf16.mxu0 %v3820_v27  ;;  %v3840_v27 = vpack.c.bf16 %v792_v19, %v790_v18  ;;  %v805_v17 = vld [vmem:[%s8552_s1 + $0x1860] sm:$0xff]  ;;  %v807_v19 = vld [vmem:[%s8552_s1 + $0x1870] sm:$0xff] }
  0x6d   :  { %3183 = vmatpush1.bf16.msra.mxu1 %v3182_v36  ;;  %v3202_v36 = vpack.c.bf16 %v151_v24, %v149_v23  ;;  %v812_v23 = vld [vmem:[%s8552_s1 + $0x1898] sm:$0xff]  ;;  %v3218_v24 = vpack.c.bf16 %v167_v16, %v165_v15 }
  0x6e   :  { %3823 = vmatpush1.bf16.msra.mxu0 %v3822_v37  ;;  %3185 = vmatprep.subr.bf16.mxu1 %v3184_v38  ;;  %v3842_v37 = vpack.c.bf16 %v791_v29, %v789_v26  ;;  %v3204_v38 = vpack.c.bf16 %v156_v32, %v154_v31  ;;  %v3858_v26 = vpack.c.bf16 %v807_v19, %v805_v17  ;;  %v169_v29 = vld [vmem:[%s8552_s1 + $0x480] sm:$0xff]  ;;  %v171_v31 = vld [vmem:[%s8552_s1 + $0x490] sm:$0xff] }
  0x6f   :  { %3825 = vmatprep.subr.bf16.mxu0 %v3824_v42  ;;  %v3844_v42 = vpack.c.bf16 %v796_v35, %v794_v34  ;;  %v809_v32 = vld [vmem:[%s8552_s1 + $0x1880] sm:$0xff]  ;;  %v811_v35 = vld [vmem:[%s8552_s1 + $0x1890] sm:$0xff] }
  0x70   :  { %v3862_v41 = vpack.c.bf16 %v811_v35, %v809_v32  ;;  %v185_v17 = vld [vmem:[%s8552_s1 + $0x500] sm:$0xff] }
  0x71   :  { %3187 = vmatpush1.bf16.msra.mxu1 %v3186_v48  ;;  %v3206_v48 = vpack.c.bf16 %v155_v40, %v153_v39  ;;  %v816_v39 = vld [vmem:[%s8552_s1 + $0x18b8] sm:$0xff]  ;;  %v3222_v40 = vpack.c.bf16 %v171_v31, %v169_v29  ;;  %v825_v19 = vld [vmem:[%s8552_s1 + $0x1900] sm:$0xff] }
  0x72   :  { %3827 = vmatpush1.bf16.msra.mxu0 %v3826_v49  ;;  %3189 = vmatprep.subr.bf16.mxu1 %v3188_v50  ;;  %v157_v49 = vld [vmem:[%s8552_s1 + $0x420] sm:$0xff]  ;;  %v5301_v50 = vld [vmem:[%s8553_s0 + $0x8] sm:$0xff] }
  0x73   :  { %3829 = vmatprep.subr.bf16.mxu0 %v3828_v53  ;;  %v797_v53 = vld [vmem:[%s8552_s1 + $0x1820] sm:$0xff]  ;;  %v5311_v28 = vrot.slane %v5301_v50, %v4727_v11  ;;  %v3210_v0 = vpack.c.bf16 %v159_v52, %v157_v49  ;;  %v180_v49 = vld [vmem:[%s8552_s1 + $0x4d8] sm:$0xff]  ;;  %v3226_v52 = vpack.c.bf16 %v175_v44, %v173_v43 }
  0x74   :  { %v189_v32 = vld [vmem:[%s8552_s1 + $0x520] sm:$0xff] }
  0x75   :  { %3191 = vmatpush1.bf16.msra.mxu1 %v3190_v58  ;;  %v164_v58 = vld [vmem:[%s8552_s1 + $0x458] sm:$0xff]  ;;  %v1376_v63 = vcombine.high %v5311_v28, %v5311_v28  ;;  %v829_v35 = vld [vmem:[%s8552_s1 + $0x1920] sm:$0xff] }
  0x76   :  { %3831 = vmatpush1.bf16.msra.mxu0 %v3830_v59  ;;  %3193 = vmatprep.subr.bf16.mxu1 %v3192_v60  ;;  %v5329_v59 = vrot.slane %v5316_v54, %v4727_v11  ;;  %v802_v60 = vld [vmem:[%s8552_s1 + $0x1848] sm:$0xff]  ;;  %v3212_v2 = vpack.c.bf16 %v164_v58, %v162_v57  ;;  %v179_v57 = vld [vmem:[%s8552_s1 + $0x4d0] sm:$0xff]  ;;  %v817_v58 = vld [vmem:[%s8552_s1 + $0x18c0] sm:$0xff] }
  0x77   :  { %3833 = vmatprep.subr.bf16.mxu0 %v3832_v1  ;;  %v3852_v5 = vpack.c.bf16 %v804_v62, %v802_v60  ;;  %v819_v62 = vld [vmem:[%s8552_s1 + $0x18d0] sm:$0xff] }
  0x78   :  { %v1461_v1 = vcombine.high %v5329_v59, %v5329_v59  ;;  %v3870_v3 = vpack.c.bf16 %v819_v62, %v817_v58  ;;  %v197_v58 = vld [vmem:[%s8552_s1 + $0x560] sm:$0xff] }
  0x79   :  { %3195 = vmatpush1.bf16.msra.mxu1 %v3194_v7  ;;  %v166_v7 = vld [vmem:[%s8552_s1 + $0x468] sm:$0xff]  ;;  %v837_v62 = vld [vmem:[%s8552_s1 + $0x1960] sm:$0xff] }
  0x7a   :  { %3835 = vmatpush1.bf16.msra.mxu0 %v3834_v8  ;;  %3197 = vmatprep.subr.bf16.mxu1 %v3196_v9  ;;  %v168_v8 = vld [vmem:[%s8552_s1 + $0x478] sm:$0xff]  ;;  %v806_v9 = vld [vmem:[%s8552_s1 + $0x1868] sm:$0xff] }
  0x7b   :  { %3837 = vmatprep.subr.bf16.mxu0 %v3836_v14  ;;  %v3216_v14 = vpack.c.bf16 %v168_v8, %v166_v7  ;;  %v3856_v18 = vpack.c.bf16 %v808_v10, %v806_v9  ;;  %v823_v8 = vld [vmem:[%s8552_s1 + $0x18f0] sm:$0xff]  ;;  %v186_v9 = vld [vmem:[%s8552_s1 + $0x508] sm:$0xff]  ;;  %v188_v10 = vld [vmem:[%s8552_s1 + $0x518] sm:$0xff] }
  0x7c   :  { %v3236_v16 = vpack.c.bf16 %v188_v10, %v186_v9  ;;  %v843_v10 = vld [vmem:[%s8552_s1 + $0x1990] sm:$0xff] }
  0x7d   :  { %3199 = vmatpush1.bf16.msra.mxu1 %v3198_v20  ;;  %v170_v20 = vld [vmem:[%s8552_s1 + $0x488] sm:$0xff] }
  0x7e   :  { %3839 = vmatpush1.bf16.msra.mxu0 %v3838_v21  ;;  %3201 = vmatprep.subr.bf16.mxu1 %v3200_v22  ;;  %v172_v21 = vld [vmem:[%s8552_s1 + $0x498] sm:$0xff]  ;;  %v810_v22 = vld [vmem:[%s8552_s1 + $0x1888] sm:$0xff] }
  0x7f   :  { %3841 = vmatprep.subr.bf16.mxu0 %v3840_v27  ;;  %v3220_v27 = vpack.c.bf16 %v172_v21, %v170_v20  ;;  %v3860_v34 = vpack.c.bf16 %v812_v23, %v810_v22  ;;  %v827_v21 = vld [vmem:[%s8552_s1 + $0x1910] sm:$0xff]  ;;  %v190_v22 = vld [vmem:[%s8552_s1 + $0x528] sm:$0xff]  ;;  %v192_v23 = vld [vmem:[%s8552_s1 + $0x538] sm:$0xff] }
  0x80   :  { %v3878_v29 = vpack.c.bf16 %v827_v21, %v825_v19  ;;  %v3240_v31 = vpack.c.bf16 %v192_v23, %v190_v22  ;;  %v205_v19 = vld [vmem:[%s8552_s1 + $0x5a0] sm:$0xff]  ;;  %v847_v23 = vld [vmem:[%s8552_s1 + $0x19b0] sm:$0xff] }
  0x81   :  { %3203 = vmatpush1.bf16.msra.mxu1 %v3202_v36  ;;  %v174_v36 = vld [vmem:[%s8552_s1 + $0x4a8] sm:$0xff]  ;;  %v845_v21 = vld [vmem:[%s8552_s1 + $0x19a0] sm:$0xff] }
  0x82   :  { %3843 = vmatpush1.bf16.msra.mxu0 %v3842_v37  ;;  %3205 = vmatprep.subr.bf16.mxu1 %v3204_v38  ;;  %v176_v37 = vld [vmem:[%s8552_s1 + $0x4b8] sm:$0xff]  ;;  %v814_v38 = vld [vmem:[%s8552_s1 + $0x18a8] sm:$0xff] }
  0x83   :  { %3845 = vmatprep.subr.bf16.mxu0 %v3844_v42  ;;  %v3224_v42 = vpack.c.bf16 %v176_v37, %v174_v36  ;;  %v3864_v46 = vpack.c.bf16 %v816_v39, %v814_v38  ;;  %v831_v37 = vld [vmem:[%s8552_s1 + $0x1930] sm:$0xff]  ;;  %v194_v38 = vld [vmem:[%s8552_s1 + $0x548] sm:$0xff]  ;;  %v196_v39 = vld [vmem:[%s8552_s1 + $0x558] sm:$0xff] }
  0x84   :  { %1700 = vmatmul.mubr.f32.vlgmr.msra.gmra.mrb[0].mxu1 %v4894_v30  ;;  %v3850_v30 = vpack.c.bf16 %v799_v56, %v797_v53  ;;  %v3866_v53 = vpack.c.bf16 %v815_v47, %v813_v45  ;;  %v177_v56 = vld [vmem:[%s8552_s1 + $0x4c0] sm:$0xff]  ;;  %v3882_v43 = vpack.c.bf16 %v831_v37, %v829_v35  ;;  %v3244_v44 = vpack.c.bf16 %v196_v39, %v194_v38  ;;  %v851_v39 = vld [vmem:[%s8552_s1 + $0x19d0] sm:$0xff] }
  0x85   :  { %3207 = vmatpush1.bf16.msra.mxu1 %v3206_v48  ;;  %2410 = vmatmul.mubr.f32.vlgmr.msra.gmra.mrb[0].mxu0 %v4903_v33  ;;  %v801_v33 = vld [vmem:[%s8552_s1 + $0x1840] sm:$0xff]  ;;  %v178_v48 = vld [vmem:[%s8552_s1 + $0x4c8] sm:$0xff] }
  0x86   :  { %3847 = vmatpush1.bf16.msra.mxu0 %v3846_v25  ;;  %3209 = vmatprep.subr.bf16.mxu1 %v3208_v51  ;;  %v3854_v13 = vpack.c.bf16 %v803_v6, %v801_v33  ;;  %v818_v25 = vld [vmem:[%s8552_s1 + $0x18c8] sm:$0xff]  ;;  %v820_v51 = vld [vmem:[%s8552_s1 + $0x18d8] sm:$0xff]  ;;  %v181_v33 = vld [vmem:[%s8552_s1 + $0x4e0] sm:$0xff] }
  0x87   :  { %3849 = vmatprep.subr.bf16.mxu0 %v3848_v55  ;;  %1770 = vmatprep.mubr.f32.mxu1 %v1376_v63  ;;  %v3228_v55 = vpack.c.bf16 %v180_v49, %v178_v48  ;;  %v3868_v60 = vpack.c.bf16 %v820_v51, %v818_v25  ;;  %v182_v63 = vld [vmem:[%s8552_s1 + $0x4e8] sm:$0xff]  ;;  %v821_v6 = vld [vmem:[%s8552_s1 + $0x18e0] sm:$0xff]  ;;  %v835_v49 = vld [vmem:[%s8552_s1 + $0x1950] sm:$0xff] }
  0x88   :  { %2480 = vmatprep.mubr.f32.mxu0 %v1461_v1  ;;  %v822_v1 = vld [vmem:[%s8552_s1 + $0x18e8] sm:$0xff]  ;;  %v3874_v15 = vpack.c.bf16 %v823_v8, %v821_v6  ;;  %v193_v45 = vld [vmem:[%s8552_s1 + $0x540] sm:$0xff]  ;;  %v200_v51 = vld [vmem:[%s8552_s1 + $0x578] sm:$0xff] }
  0x89   :  { %3211 = vmatpush1.bf16.msra.mxu1 %v3210_v0  ;;  %v184_v0 = vld [vmem:[%s8552_s1 + $0x4f8] sm:$0xff]  ;;  %v833_v47 = vld [vmem:[%s8552_s1 + $0x1940] sm:$0xff]  ;;  %v198_v25 = vld [vmem:[%s8552_s1 + $0x568] sm:$0xff] }
  0x8a   :  { %3851 = vmatpush1.bf16.msra.mxu0 %v3850_v30  ;;  %3213 = vmatprep.subr.bf16.mxu1 %v3212_v2  ;;  %v824_v30 = vld [vmem:[%s8552_s1 + $0x18f8] sm:$0xff]  ;;  %v3230_v2 = vpack.c.bf16 %v179_v57, %v177_v56  ;;  %v3232_v4 = vpack.c.bf16 %v184_v0, %v182_v63  ;;  %v3886_v56 = vpack.c.bf16 %v835_v49, %v833_v47  ;;  %v839_v0 = vld [vmem:[%s8552_s1 + $0x1970] sm:$0xff]  ;;  %v201_v6 = vld [vmem:[%s8552_s1 + $0x580] sm:$0xff] }
  0x8b   :  { %3853 = vmatprep.subr.bf16.mxu0 %v3852_v5  ;;  %v183_v5 = vld [vmem:[%s8552_s1 + $0x4f0] sm:$0xff]  ;;  %v3872_v7 = vpack.c.bf16 %v824_v30, %v822_v1  ;;  %v3248_v57 = vpack.c.bf16 %v200_v51, %v198_v25  ;;  %v202_v1 = vld [vmem:[%s8552_s1 + $0x588] sm:$0xff]  ;;  %v204_v30 = vld [vmem:[%s8552_s1 + $0x598] sm:$0xff] }
  0x8c   :  { %v841_v8 = vld [vmem:[%s8552_s1 + $0x1980] sm:$0xff]  ;;  %v855_v51 = vld [vmem:[%s8552_s1 + $0x19f0] sm:$0xff] }
  0x8d   :  { %3215 = vmatpush1.bf16.msra.mxu1 %v3214_v12  ;;  %v826_v12 = vld [vmem:[%s8552_s1 + $0x1908] sm:$0xff]  ;;  %v209_v35 = vld [vmem:[%s8552_s1 + $0x5c0] sm:$0xff] }
  0x8e   :  { %3855 = vmatpush1.bf16.msra.mxu0 %v3854_v13  ;;  %3217 = vmatprep.subr.bf16.mxu1 %v3216_v14  ;;  %v828_v13 = vld [vmem:[%s8552_s1 + $0x1918] sm:$0xff]  ;;  %v3234_v14 = vpack.c.bf16 %v183_v5, %v181_v33  ;;  %v3890_v33 = vpack.c.bf16 %v839_v0, %v837_v62  ;;  %v3252_v5 = vpack.c.bf16 %v204_v30, %v202_v1  ;;  %v849_v37 = vld [vmem:[%s8552_s1 + $0x19c0] sm:$0xff]  ;;  %v219_v0 = vld [vmem:[%s8552_s1 + $0x610] sm:$0xff] }
  0x8f   :  { %3857 = vmatprep.subr.bf16.mxu0 %v3856_v18  ;;  %v187_v18 = vld [vmem:[%s8552_s1 + $0x510] sm:$0xff]  ;;  %v3876_v20 = vpack.c.bf16 %v828_v13, %v826_v12  ;;  %v206_v12 = vld [vmem:[%s8552_s1 + $0x5a8] sm:$0xff]  ;;  %v208_v13 = vld [vmem:[%s8552_s1 + $0x5b8] sm:$0xff] }
  0x90   :  { %v213_v47 = vld [vmem:[%s8552_s1 + $0x5e0] sm:$0xff]  ;;  %v859_v30 = vld [vmem:[%s8552_s1 + $0x1a10] sm:$0xff] }
  0x91   :  { %3219 = vmatpush1.bf16.msra.mxu1 %v3218_v24  ;;  %v830_v24 = vld [vmem:[%s8552_s1 + $0x1928] sm:$0xff]  ;;  %v853_v49 = vld [vmem:[%s8552_s1 + $0x19e0] sm:$0xff] }
  0x92   :  { %3859 = vmatpush1.bf16.msra.mxu0 %v3858_v26  ;;  %3221 = vmatprep.subr.bf16.mxu1 %v3220_v27  ;;  %v832_v26 = vld [vmem:[%s8552_s1 + $0x1938] sm:$0xff]  ;;  %v3238_v27 = vpack.c.bf16 %v187_v18, %v185_v17  ;;  %v3894_v17 = vpack.c.bf16 %v843_v10, %v841_v8  ;;  %v3256_v18 = vpack.c.bf16 %v208_v13, %v206_v12  ;;  %v857_v1 = vld [vmem:[%s8552_s1 + $0x1a00] sm:$0xff]  ;;  %v223_v12 = vld [vmem:[%s8552_s1 + $0x630] sm:$0xff] }
  0x93   :  { %3861 = vmatprep.subr.bf16.mxu0 %v3860_v34  ;;  %v191_v34 = vld [vmem:[%s8552_s1 + $0x530] sm:$0xff]  ;;  %v3880_v36 = vpack.c.bf16 %v832_v26, %v830_v24  ;;  %v210_v24 = vld [vmem:[%s8552_s1 + $0x5c8] sm:$0xff]  ;;  %v212_v26 = vld [vmem:[%s8552_s1 + $0x5d8] sm:$0xff]  ;;  %v3906_v62 = vpack.c.bf16 %v855_v51, %v853_v49  ;;  %v3910_v8 = vpack.c.bf16 %v859_v30, %v857_v1 }
  0x94   :  { %v221_v10 = vld [vmem:[%s8552_s1 + $0x620] sm:$0xff] }
  0x95   :  { %3223 = vmatpush1.bf16.msra.mxu1 %v3222_v40  ;;  %v834_v40 = vld [vmem:[%s8552_s1 + $0x1948] sm:$0xff]  ;;  %v861_v13 = vld [vmem:[%s8552_s1 + $0x1a20] sm:$0xff] }
  0x96   :  { %3863 = vmatpush1.bf16.msra.mxu0 %v3862_v41  ;;  %3225 = vmatprep.subr.bf16.mxu1 %v3224_v42  ;;  %v836_v41 = vld [vmem:[%s8552_s1 + $0x1958] sm:$0xff]  ;;  %v3242_v42 = vpack.c.bf16 %v191_v34, %v189_v32  ;;  %v3898_v32 = vpack.c.bf16 %v847_v23, %v845_v21  ;;  %v3260_v34 = vpack.c.bf16 %v212_v26, %v210_v24  ;;  %v227_v26 = vld [vmem:[%s8552_s1 + $0x650] sm:$0xff]  ;;  %v233_v51 = vld [vmem:[%s8552_s1 + $0x680] sm:$0xff] }
  0x97   :  { %3865 = vmatprep.subr.bf16.mxu0 %v3864_v46  ;;  %v195_v46 = vld [vmem:[%s8552_s1 + $0x550] sm:$0xff]  ;;  %v3884_v48 = vpack.c.bf16 %v836_v41, %v834_v40  ;;  %v214_v40 = vld [vmem:[%s8552_s1 + $0x5e8] sm:$0xff]  ;;  %v216_v41 = vld [vmem:[%s8552_s1 + $0x5f8] sm:$0xff] }
  0x98   :  { %v237_v1 = vld [vmem:[%s8552_s1 + $0x6a0] sm:$0xff] }
  0x99   :  { %3227 = vmatpush1.bf16.msra.mxu1 %v3226_v52  ;;  %v838_v52 = vld [vmem:[%s8552_s1 + $0x1968] sm:$0xff]  ;;  %v877_v30 = vld [vmem:[%s8552_s1 + $0x1aa0] sm:$0xff] }
  0x9a   :  { %3867 = vmatpush1.bf16.msra.mxu0 %v3866_v53  ;;  %3229 = vmatprep.subr.bf16.mxu1 %v3228_v55  ;;  %v840_v53 = vld [vmem:[%s8552_s1 + $0x1978] sm:$0xff]  ;;  %v3246_v55 = vpack.c.bf16 %v195_v46, %v193_v45  ;;  %v3902_v45 = vpack.c.bf16 %v851_v39, %v849_v37  ;;  %v3264_v46 = vpack.c.bf16 %v216_v41, %v214_v40  ;;  %v229_v39 = vld [vmem:[%s8552_s1 + $0x660] sm:$0xff]  ;;  %v231_v40 = vld [vmem:[%s8552_s1 + $0x670] sm:$0xff] }
  0x9b   :  { %3869 = vmatprep.subr.bf16.mxu0 %v3868_v60  ;;  %v199_v60 = vld [vmem:[%s8552_s1 + $0x570] sm:$0xff]  ;;  %v3888_v63 = vpack.c.bf16 %v840_v53, %v838_v52  ;;  %v218_v52 = vld [vmem:[%s8552_s1 + $0x608] sm:$0xff]  ;;  %v220_v53 = vld [vmem:[%s8552_s1 + $0x618] sm:$0xff] }
  0x9c   :  { %v869_v41 = vld [vmem:[%s8552_s1 + $0x1a60] sm:$0xff] }
  0x9d   :  { %3231 = vmatpush1.bf16.msra.mxu1 %v3230_v2  ;;  %v842_v2 = vld [vmem:[%s8552_s1 + $0x1988] sm:$0xff] }
  0x9e   :  { %3871 = vmatpush1.bf16.msra.mxu0 %v3870_v3  ;;  %3233 = vmatprep.subr.bf16.mxu1 %v3232_v4  ;;  %v844_v3 = vld [vmem:[%s8552_s1 + $0x1998] sm:$0xff]  ;;  %v3250_v4 = vpack.c.bf16 %v199_v60, %v197_v58  ;;  %v1446_v58 = vcombine.high %v5316_v54, %v5316_v54 }
  0x9f   :  { %3873 = vmatprep.subr.bf16.mxu0 %v3872_v7  ;;  %v203_v7 = vld [vmem:[%s8552_s1 + $0x590] sm:$0xff]  ;;  %v3892_v9 = vpack.c.bf16 %v844_v3, %v842_v2  ;;  %v222_v2 = vld [vmem:[%s8552_s1 + $0x628] sm:$0xff]  ;;  %v224_v3 = vld [vmem:[%s8552_s1 + $0x638] sm:$0xff] }
  0xa1   :  { %3235 = vmatpush1.bf16.msra.mxu1 %v3234_v14  ;;  %v846_v14 = vld [vmem:[%s8552_s1 + $0x19a8] sm:$0xff] }
  0xa2   :  { %3875 = vmatpush1.bf16.msra.mxu0 %v3874_v15  ;;  %3237 = vmatprep.subr.bf16.mxu1 %v3236_v16  ;;  %v848_v15 = vld [vmem:[%s8552_s1 + $0x19b8] sm:$0xff]  ;;  %v3254_v16 = vpack.c.bf16 %v203_v7, %v201_v6  ;;  %v5711_v6 = vrot.slane %v1446_v58, %v4727_v11 }
  0xa3   :  { %3877 = vmatprep.subr.bf16.mxu0 %v3876_v20  ;;  %v207_v20 = vld [vmem:[%s8552_s1 + $0x5b0] sm:$0xff]  ;;  %v3896_v22 = vpack.c.bf16 %v848_v15, %v846_v14  ;;  %v240_v58 = vld [vmem:[%s8552_s1 + $0x6b8] sm:$0xff] }
  0xa4   :  { %v863_v15 = vld [vmem:[%s8552_s1 + $0x1a30] sm:$0xff]  ;;  %v1462_v21 = vcombine.high %v5711_v6, %v5711_v6 }
  0xa5   :  { %3239 = vmatpush1.bf16.msra.mxu1 %v3238_v27  ;;  %v850_v27 = vld [vmem:[%s8552_s1 + $0x19c8] sm:$0xff]  ;;  %v3914_v23 = vpack.c.bf16 %v863_v15, %v861_v13  ;;  %v241_v13 = vld [vmem:[%s8552_s1 + $0x6c0] sm:$0xff] }
  0xa6   :  { %3879 = vmatpush1.bf16.msra.mxu0 %v3878_v29  ;;  %3241 = vmatprep.subr.bf16.mxu1 %v3240_v31  ;;  %v852_v29 = vld [vmem:[%s8552_s1 + $0x19d8] sm:$0xff]  ;;  %v3258_v31 = vpack.c.bf16 %v207_v20, %v205_v19  ;;  %v866_v19 = vld [vmem:[%s8552_s1 + $0x1a48] sm:$0xff]  ;;  %v881_v15 = vld [vmem:[%s8552_s1 + $0x1ac0] sm:$0xff] }
  0xa7   :  { %3881 = vmatprep.subr.bf16.mxu0 %v3880_v36  ;;  %v211_v36 = vld [vmem:[%s8552_s1 + $0x5d0] sm:$0xff]  ;;  %v3900_v38 = vpack.c.bf16 %v852_v29, %v850_v27  ;;  %v868_v20 = vld [vmem:[%s8552_s1 + $0x1a58] sm:$0xff]  ;;  %v865_v27 = vld [vmem:[%s8552_s1 + $0x1a40] sm:$0xff] }
  0xa8   :  { %v3916_v29 = vpack.c.bf16 %v868_v20, %v866_v19  ;;  %v248_v19 = vld [vmem:[%s8552_s1 + $0x6f8] sm:$0xff]  ;;  %v886_v20 = vld [vmem:[%s8552_s1 + $0x1ae8] sm:$0xff] }
  0xa9   :  { %3243 = vmatpush1.bf16.msra.mxu1 %v3242_v42  ;;  %v854_v42 = vld [vmem:[%s8552_s1 + $0x19e8] sm:$0xff] }
  0xaa   :  { %3883 = vmatpush1.bf16.msra.mxu0 %v3882_v43  ;;  %3245 = vmatprep.subr.bf16.mxu1 %v3244_v44  ;;  %v856_v43 = vld [vmem:[%s8552_s1 + $0x19f8] sm:$0xff]  ;;  %v3262_v44 = vpack.c.bf16 %v211_v36, %v209_v35 }
  0xab   :  { %3885 = vmatprep.subr.bf16.mxu0 %v3884_v48  ;;  %v215_v48 = vld [vmem:[%s8552_s1 + $0x5f0] sm:$0xff]  ;;  %v3904_v25 = vpack.c.bf16 %v856_v43, %v854_v42  ;;  %v872_v35 = vld [vmem:[%s8552_s1 + $0x1a78] sm:$0xff] }
  0xac   :  { %v3266_v60 = vpack.c.bf16 %v215_v48, %v213_v47  ;;  %v871_v43 = vld [vmem:[%s8552_s1 + $0x1a70] sm:$0xff]  ;;  %v876_v47 = vld [vmem:[%s8552_s1 + $0x1a98] sm:$0xff]  ;;  %v3282_v48 = vpack.c.bf16 %v231_v40, %v229_v39  ;;  %v249_v39 = vld [vmem:[%s8552_s1 + $0x700] sm:$0xff] }
  0xad   :  { %3247 = vmatpush1.bf16.msra.mxu1 %v3246_v55  ;;  %v1361_v55 = vcombine.high %v5301_v50, %v5301_v50  ;;  %v217_v50 = vld [vmem:[%s8552_s1 + $0x600] sm:$0xff]  ;;  %v3922_v49 = vpack.c.bf16 %v871_v43, %v869_v41  ;;  %v251_v40 = vld [vmem:[%s8552_s1 + $0x710] sm:$0xff] }
  0xae   :  { %3887 = vmatpush1.bf16.msra.mxu0 %v3886_v56  ;;  %3249 = vmatprep.subr.bf16.mxu1 %v3248_v57  ;;  %v858_v56 = vld [vmem:[%s8552_s1 + $0x1a08] sm:$0xff]  ;;  %v860_v57 = vld [vmem:[%s8552_s1 + $0x1a18] sm:$0xff]  ;;  %v3270_v7 = vpack.c.bf16 %v219_v0, %v217_v50  ;;  %v889_v41 = vld [vmem:[%s8552_s1 + $0x1b00] sm:$0xff] }
  0xaf   :  { %3889 = vmatprep.subr.bf16.mxu0 %v3888_v63  ;;  %v3268_v63 = vpack.c.bf16 %v220_v53, %v218_v52  ;;  %v3908_v54 = vpack.c.bf16 %v860_v57, %v858_v56  ;;  %v235_v52 = vld [vmem:[%s8552_s1 + $0x690] sm:$0xff]  ;;  %v873_v53 = vld [vmem:[%s8552_s1 + $0x1a80] sm:$0xff]  ;;  %v238_v57 = vld [vmem:[%s8552_s1 + $0x6a8] sm:$0xff] }
  0xb0   :  { %v875_v56 = vld [vmem:[%s8552_s1 + $0x1a90] sm:$0xff]  ;;  %v3288_v0 = vpack.c.bf16 %v240_v58, %v238_v57  ;;  %v258_v57 = vld [vmem:[%s8552_s1 + $0x748] sm:$0xff]  ;;  %v260_v58 = vld [vmem:[%s8552_s1 + $0x758] sm:$0xff] }
  0xb1   :  { %3251 = vmatpush1.bf16.msra.mxu1 %v3250_v4  ;;  %v5702_v4 = vrot.slane %v1361_v55, %v4727_v11  ;;  %v3926_v50 = vpack.c.bf16 %v875_v56, %v873_v53  ;;  %v891_v43 = vld [vmem:[%s8552_s1 + $0x1b10] sm:$0xff]  ;;  %v893_v53 = vld [vmem:[%s8552_s1 + $0x1b20] sm:$0xff] }
  0xb2   :  { %3891 = vmatpush1.bf16.msra.mxu0 %v3890_v33  ;;  %3253 = vmatprep.subr.bf16.mxu1 %v3252_v5  ;;  %v862_v33 = vld [vmem:[%s8552_s1 + $0x1a28] sm:$0xff]  ;;  %v864_v5 = vld [vmem:[%s8552_s1 + $0x1a38] sm:$0xff]  ;;  %v895_v56 = vld [vmem:[%s8552_s1 + $0x1b30] sm:$0xff] }
  0xb3   :  { %3893 = vmatprep.subr.bf16.mxu0 %v3892_v9  ;;  %v3272_v9 = vpack.c.bf16 %v224_v3, %v222_v2  ;;  %v3912_v14 = vpack.c.bf16 %v864_v5, %v862_v33  ;;  %v879_v3 = vld [vmem:[%s8552_s1 + $0x1ab0] sm:$0xff]  ;;  %v242_v33 = vld [vmem:[%s8552_s1 + $0x6c8] sm:$0xff]  ;;  %v244_v5 = vld [vmem:[%s8552_s1 + $0x6d8] sm:$0xff] }
  0xb5   :  { %3255 = vmatpush1.bf16.msra.mxu1 %v3254_v16  ;;  %v226_v16 = vld [vmem:[%s8552_s1 + $0x648] sm:$0xff] }
  0xb6   :  { %3895 = vmatpush1.bf16.msra.mxu0 %v3894_v17  ;;  %3257 = vmatprep.subr.bf16.mxu1 %v3256_v18  ;;  %v228_v17 = vld [vmem:[%s8552_s1 + $0x658] sm:$0xff]  ;;  %v1377_v18 = vcombine.high %v5702_v4, %v5702_v4 }
  0xb7   :  { %3897 = vmatprep.subr.bf16.mxu0 %v3896_v22  ;;  %v3274_v22 = vpack.c.bf16 %v223_v12, %v221_v10  ;;  %v3276_v24 = vpack.c.bf16 %v228_v17, %v226_v16  ;;  %v3930_v10 = vpack.c.bf16 %v879_v3, %v877_v30  ;;  %v3292_v12 = vpack.c.bf16 %v244_v5, %v242_v33  ;;  %v883_v17 = vld [vmem:[%s8552_s1 + $0x1ad0] sm:$0xff]  ;;  %v897_v30 = vld [vmem:[%s8552_s1 + $0x1b40] sm:$0xff]  ;;  %v262_v33 = vld [vmem:[%s8552_s1 + $0x768] sm:$0xff] }
  0xb8   :  { %v899_v3 = vld [vmem:[%s8552_s1 + $0x1b50] sm:$0xff]  ;;  %v264_v5 = vld [vmem:[%s8552_s1 + $0x778] sm:$0xff] }
  0xb9   :  { %3259 = vmatpush1.bf16.msra.mxu1 %v3258_v31  ;;  %v230_v31 = vld [vmem:[%s8552_s1 + $0x668] sm:$0xff] }
  0xba   :  { %3899 = vmatpush1.bf16.msra.mxu0 %v3898_v32  ;;  %3261 = vmatprep.subr.bf16.mxu1 %v3260_v34  ;;  %v232_v32 = vld [vmem:[%s8552_s1 + $0x678] sm:$0xff]  ;;  %v870_v34 = vld [vmem:[%s8552_s1 + $0x1a68] sm:$0xff] }
  0xbb   :  { %3901 = vmatprep.subr.bf16.mxu0 %v3900_v38  ;;  %v3280_v38 = vpack.c.bf16 %v232_v32, %v230_v31  ;;  %v3920_v42 = vpack.c.bf16 %v872_v35, %v870_v34  ;;  %v250_v31 = vld [vmem:[%s8552_s1 + $0x708] sm:$0xff]  ;;  %v252_v32 = vld [vmem:[%s8552_s1 + $0x718] sm:$0xff] }
  0xbc   :  { %v890_v34 = vld [vmem:[%s8552_s1 + $0x1b08] sm:$0xff]  ;;  %v892_v35 = vld [vmem:[%s8552_s1 + $0x1b18] sm:$0xff] }
  0xbd   :  { %3263 = vmatpush1.bf16.msra.mxu1 %v3262_v44  ;;  %v234_v44 = vld [vmem:[%s8552_s1 + $0x688] sm:$0xff] }
  0xbe   :  { %3903 = vmatpush1.bf16.msra.mxu0 %v3902_v45  ;;  %3265 = vmatprep.subr.bf16.mxu1 %v3264_v46  ;;  %v236_v45 = vld [vmem:[%s8552_s1 + $0x698] sm:$0xff]  ;;  %v874_v46 = vld [vmem:[%s8552_s1 + $0x1a88] sm:$0xff] }
  0xbf   :  { %3905 = vmatprep.subr.bf16.mxu0 %v3904_v25  ;;  %v3284_v25 = vpack.c.bf16 %v236_v45, %v234_v44  ;;  %v3924_v55 = vpack.c.bf16 %v876_v47, %v874_v46  ;;  %v254_v44 = vld [vmem:[%s8552_s1 + $0x728] sm:$0xff]  ;;  %v256_v45 = vld [vmem:[%s8552_s1 + $0x738] sm:$0xff] }
  0xc0   :  { %v894_v46 = vld [vmem:[%s8552_s1 + $0x1b28] sm:$0xff]  ;;  %v896_v47 = vld [vmem:[%s8552_s1 + $0x1b38] sm:$0xff] }
  0xc1   :  { %3267 = vmatpush1.bf16.msra.mxu1 %v3266_v60  ;;  %v878_v60 = vld [vmem:[%s8552_s1 + $0x1aa8] sm:$0xff] }
  0xc2   :  { %3907 = vmatpush1.bf16.msra.mxu0 %v3906_v62  ;;  %3269 = vmatprep.subr.bf16.mxu1 %v3268_v63  ;;  %v880_v62 = vld [vmem:[%s8552_s1 + $0x1ab8] sm:$0xff]  ;;  %v3286_v63 = vpack.c.bf16 %v235_v52, %v233_v51  ;;  %v253_v51 = vld [vmem:[%s8552_s1 + $0x720] sm:$0xff]  ;;  %v255_v52 = vld [vmem:[%s8552_s1 + $0x730] sm:$0xff] }
  0xc3   :  { %3909 = vmatprep.subr.bf16.mxu0 %v3908_v54  ;;  %v239_v54 = vld [vmem:[%s8552_s1 + $0x6b0] sm:$0xff]  ;;  %v3928_v2 = vpack.c.bf16 %v880_v62, %v878_v60  ;;  %v898_v60 = vld [vmem:[%s8552_s1 + $0x1b48] sm:$0xff]  ;;  %v900_v62 = vld [vmem:[%s8552_s1 + $0x1b58] sm:$0xff] }
  0xc4   :  { %1771 = vmatmul.mubr.f32.vlgmr.msra.gmra.mrb[0].mxu1 %v5311_v28  ;;  %v225_v28 = vld [vmem:[%s8552_s1 + $0x640] sm:$0xff] }
  0xc5   :  { %3271 = vmatpush1.bf16.msra.mxu1 %v3270_v7  ;;  %2481 = vmatmul.mubr.f32.vlgmr.msra.gmra.mrb[0].mxu0 %v5329_v59  ;;  %v867_v59 = vld [vmem:[%s8552_s1 + $0x1a50] sm:$0xff]  ;;  %v3278_v36 = vpack.c.bf16 %v227_v26, %v225_v28  ;;  %v882_v7 = vld [vmem:[%s8552_s1 + $0x1ac8] sm:$0xff]  ;;  %v245_v28 = vld [vmem:[%s8552_s1 + $0x6e0] sm:$0xff] }
  0xc6   :  { %3911 = vmatpush1.bf16.msra.mxu0 %v3910_v8  ;;  %3273 = vmatprep.subr.bf16.mxu1 %v3272_v9  ;;  %v3918_v37 = vpack.c.bf16 %v867_v59, %v865_v27  ;;  %v884_v8 = vld [vmem:[%s8552_s1 + $0x1ad8] sm:$0xff]  ;;  %v3290_v9 = vpack.c.bf16 %v239_v54, %v237_v1  ;;  %v247_v26 = vld [vmem:[%s8552_s1 + $0x6f0] sm:$0xff]  ;;  %v885_v27 = vld [vmem:[%s8552_s1 + $0x1ae0] sm:$0xff] }
  0xc7   :  { %3913 = vmatprep.subr.bf16.mxu0 %v3912_v14  ;;  %1841 = vmatprep.mubr.f32.mxu1 %v1377_v18  ;;  %v243_v14 = vld [vmem:[%s8552_s1 + $0x6d0] sm:$0xff]  ;;  %v3932_v16 = vpack.c.bf16 %v884_v8, %v882_v7  ;;  %v246_v18 = vld [vmem:[%s8552_s1 + $0x6e8] sm:$0xff]  ;;  %v257_v1 = vld [vmem:[%s8552_s1 + $0x740] sm:$0xff] }
  0xc8   :  { %2551 = vmatprep.mubr.f32.mxu0 %v1462_v21  ;;  %v888_v21 = vld [vmem:[%s8552_s1 + $0x1af8] sm:$0xff]  ;;  %v887_v59 = vld [vmem:[%s8552_s1 + $0x1af0] sm:$0xff]  ;;  %v902_v7 = vld [vmem:[%s8552_s1 + $0x1b68] sm:$0xff] }
  0xc9   :  { %3275 = vmatpush1.bf16.msra.mxu1 %v3274_v22  ;;  %v3294_v22 = vpack.c.bf16 %v243_v14, %v241_v13  ;;  %v259_v54 = vld [vmem:[%s8552_s1 + $0x750] sm:$0xff]  ;;  %v904_v8 = vld [vmem:[%s8552_s1 + $0x1b78] sm:$0xff]  ;;  %v261_v13 = vld [vmem:[%s8552_s1 + $0x760] sm:$0xff] }
  0xca   :  { %3915 = vmatpush1.bf16.msra.mxu0 %v3914_v23  ;;  %3277 = vmatprep.subr.bf16.mxu1 %v3276_v24  ;;  %v3934_v23 = vpack.c.bf16 %v883_v17, %v881_v15  ;;  %v3296_v24 = vpack.c.bf16 %v248_v19, %v246_v18  ;;  %v263_v14 = vld [vmem:[%s8552_s1 + $0x770] sm:$0xff]  ;;  %v901_v15 = vld [vmem:[%s8552_s1 + $0x1b60] sm:$0xff]  ;;  %v266_v18 = vld [vmem:[%s8552_s1 + $0x788] sm:$0xff] }
  0xcb   :  { %3917 = vmatprep.subr.bf16.mxu0 %v3916_v29  ;;  %v3936_v29 = vpack.c.bf16 %v888_v21, %v886_v20  ;;  %v903_v17 = vld [vmem:[%s8552_s1 + $0x1b70] sm:$0xff]  ;;  %v268_v19 = vld [vmem:[%s8552_s1 + $0x798] sm:$0xff]  ;;  %v906_v20 = vld [vmem:[%s8552_s1 + $0x1b88] sm:$0xff] }
  0xcc   :  { %v908_v21 = vld [vmem:[%s8552_s1 + $0x1b98] sm:$0xff] }
  0xcd   :  { %3279 = vmatpush1.bf16.msra.mxu1 %v3278_v36  ;;  %v3298_v36 = vpack.c.bf16 %v247_v26, %v245_v28  ;;  %v265_v28 = vld [vmem:[%s8552_s1 + $0x780] sm:$0xff]  ;;  %v267_v26 = vld [vmem:[%s8552_s1 + $0x790] sm:$0xff] }
  0xce   :  { %3919 = vmatpush1.bf16.msra.mxu0 %v3918_v37  ;;  %3281 = vmatprep.subr.bf16.mxu1 %v3280_v38  ;;  %v3938_v37 = vpack.c.bf16 %v887_v59, %v885_v27  ;;  %v3300_v38 = vpack.c.bf16 %v252_v32, %v250_v31  ;;  %v905_v27 = vld [vmem:[%s8552_s1 + $0x1b80] sm:$0xff]  ;;  %v907_v59 = vld [vmem:[%s8552_s1 + $0x1b90] sm:$0xff]  ;;  %v270_v31 = vld [vmem:[%s8552_s1 + $0x7a8] sm:$0xff] }
  0xcf   :  { %3921 = vmatprep.subr.bf16.mxu0 %v3920_v42  ;;  %v3940_v42 = vpack.c.bf16 %v892_v35, %v890_v34  ;;  %v272_v32 = vld [vmem:[%s8552_s1 + $0x7b8] sm:$0xff]  ;;  %v910_v34 = vld [vmem:[%s8552_s1 + $0x1ba8] sm:$0xff] }
  0xd0   :  { %v912_v35 = vld [vmem:[%s8552_s1 + $0x1bb8] sm:$0xff] }
  0xd1   :  { %3283 = vmatpush1.bf16.msra.mxu1 %v3282_v48  ;;  %v3302_v48 = vpack.c.bf16 %v251_v40, %v249_v39  ;;  %v269_v39 = vld [vmem:[%s8552_s1 + $0x7a0] sm:$0xff]  ;;  %v271_v40 = vld [vmem:[%s8552_s1 + $0x7b0] sm:$0xff] }
  0xd2   :  { %3923 = vmatpush1.bf16.msra.mxu0 %v3922_v49  ;;  %3285 = vmatprep.subr.bf16.mxu1 %v3284_v25  ;;  %v3942_v49 = vpack.c.bf16 %v891_v43, %v889_v41  ;;  %v3304_v25 = vpack.c.bf16 %v256_v45, %v254_v44  ;;  %v909_v41 = vld [vmem:[%s8552_s1 + $0x1ba0] sm:$0xff]  ;;  %v911_v43 = vld [vmem:[%s8552_s1 + $0x1bb0] sm:$0xff]  ;;  %v274_v44 = vld [vmem:[%s8552_s1 + $0x7c8] sm:$0xff] }
  0xd3   :  { %3925 = vmatprep.subr.bf16.mxu0 %v3924_v55  ;;  %v3944_v55 = vpack.c.bf16 %v896_v47, %v894_v46  ;;  %v276_v45 = vld [vmem:[%s8552_s1 + $0x7d8] sm:$0xff]  ;;  %v914_v46 = vld [vmem:[%s8552_s1 + $0x1bc8] sm:$0xff] }
  0xd4   :  { %v916_v47 = vld [vmem:[%s8552_s1 + $0x1bd8] sm:$0xff] }
  0xd5   :  { %3287 = vmatpush1.bf16.msra.mxu1 %v3286_v63  ;;  %v3306_v63 = vpack.c.bf16 %v255_v52, %v253_v51  ;;  %v273_v51 = vld [vmem:[%s8552_s1 + $0x7c0] sm:$0xff]  ;;  %v275_v52 = vld [vmem:[%s8552_s1 + $0x7d0] sm:$0xff] }
  0xd6   :  { %3927 = vmatpush1.bf16.msra.mxu0 %v3926_v50  ;;  %3289 = vmatprep.subr.bf16.mxu1 %v3288_v0  ;;  %v3946_v50 = vpack.c.bf16 %v895_v56, %v893_v53  ;;  %v3308_v0 = vpack.c.bf16 %v260_v58, %v258_v57  ;;  %v913_v53 = vld [vmem:[%s8552_s1 + $0x1bc0] sm:$0xff]  ;;  %v915_v56 = vld [vmem:[%s8552_s1 + $0x1bd0] sm:$0xff]  ;;  %v278_v57 = vld [vmem:[%s8552_s1 + $0x7e8] sm:$0xff] }
  0xd7   :  { %3929 = vmatprep.subr.bf16.mxu0 %v3928_v2  ;;  %v3948_v2 = vpack.c.bf16 %v900_v62, %v898_v60  ;;  %v280_v58 = vld [vmem:[%s8552_s1 + $0x7f8] sm:$0xff]  ;;  %v918_v60 = vld [vmem:[%s8552_s1 + $0x1be8] sm:$0xff] }
  0xd8   :  { %v920_v62 = vld [vmem:[%s8552_s1 + $0x1bf8] sm:$0xff] }
  0xd9   :  { %3291 = vmatpush1.bf16.msra.mxu1 %v3290_v9  ;;  %v3310_v9 = vpack.c.bf16 %v259_v54, %v257_v1  ;;  %v277_v1 = vld [vmem:[%s8552_s1 + $0x7e0] sm:$0xff]  ;;  %v279_v54 = vld [vmem:[%s8552_s1 + $0x7f0] sm:$0xff] }
  0xda   :  { %3931 = vmatpush1.bf16.msra.mxu0 %v3930_v10  ;;  %3293 = vmatprep.subr.bf16.mxu1 %v3292_v12  ;;  %v3950_v10 = vpack.c.bf16 %v899_v3, %v897_v30  ;;  %v3312_v12 = vpack.c.bf16 %v264_v5, %v262_v33  ;;  %v917_v30 = vld [vmem:[%s8552_s1 + $0x1be0] sm:$0xff]  ;;  %v919_v3 = vld [vmem:[%s8552_s1 + $0x1bf0] sm:$0xff]  ;;  %v282_v33 = vld [vmem:[%s8552_s1 + $0x808] sm:$0xff] }
  0xdb   :  { %3933 = vmatprep.subr.bf16.mxu0 %v3932_v16  ;;  %v3952_v16 = vpack.c.bf16 %v904_v8, %v902_v7  ;;  %v284_v5 = vld [vmem:[%s8552_s1 + $0x818] sm:$0xff]  ;;  %v922_v7 = vld [vmem:[%s8552_s1 + $0x1c08] sm:$0xff] }
  0xdc   :  { %v924_v8 = vld [vmem:[%s8552_s1 + $0x1c18] sm:$0xff] }
  0xdd   :  { %3295 = vmatpush1.bf16.msra.mxu1 %v3294_v22  ;;  %v3314_v22 = vpack.c.bf16 %v263_v14, %v261_v13  ;;  %v3970_v13 = vpack.c.bf16 %v919_v3, %v917_v30  ;;  %v3332_v14 = vpack.c.bf16 %v284_v5, %v282_v33  ;;  %v297_v3 = vld [vmem:[%s8552_s1 + $0x880] sm:$0xff]  ;;  %v299_v33 = vld [vmem:[%s8552_s1 + $0x890] sm:$0xff] }
  0xde   :  { %3935 = vmatpush1.bf16.msra.mxu0 %v3934_v23  ;;  %3297 = vmatprep.subr.bf16.mxu1 %v3296_v24  ;;  %v3954_v23 = vpack.c.bf16 %v903_v17, %v901_v15  ;;  %v3316_v24 = vpack.c.bf16 %v268_v19, %v266_v18  ;;  %v281_v15 = vld [vmem:[%s8552_s1 + $0x800] sm:$0xff]  ;;  %v3972_v18 = vpack.c.bf16 %v924_v8, %v922_v7  ;;  %v923_v19 = vld [vmem:[%s8552_s1 + $0x1c10] sm:$0xff] }
  0xdf   :  { %3937 = vmatprep.subr.bf16.mxu0 %v3936_v29  ;;  %v3956_v29 = vpack.c.bf16 %v908_v21, %v906_v20  ;;  %v921_v17 = vld [vmem:[%s8552_s1 + $0x1c00] sm:$0xff]  ;;  %v286_v20 = vld [vmem:[%s8552_s1 + $0x828] sm:$0xff]  ;;  %v288_v21 = vld [vmem:[%s8552_s1 + $0x838] sm:$0xff] }
  0xe0   :  { %v937_v5 = vld [vmem:[%s8552_s1 + $0x1c80] sm:$0xff]  ;;  %v939_v8 = vld [vmem:[%s8552_s1 + $0x1c90] sm:$0xff] }
  0xe1   :  { %3299 = vmatpush1.bf16.msra.mxu1 %v3298_v36  ;;  %v3318_v36 = vpack.c.bf16 %v267_v26, %v265_v28 }
  0xe2   :  { %3939 = vmatpush1.bf16.msra.mxu0 %v3938_v37  ;;  %3301 = vmatprep.subr.bf16.mxu1 %v3300_v38  ;;  %v3958_v37 = vpack.c.bf16 %v907_v59, %v905_v27  ;;  %v3320_v38 = vpack.c.bf16 %v272_v32, %v270_v31  ;;  %v3974_v27 = vpack.c.bf16 %v923_v19, %v921_v17  ;;  %v285_v59 = vld [vmem:[%s8552_s1 + $0x820] sm:$0xff]  ;;  %v287_v31 = vld [vmem:[%s8552_s1 + $0x830] sm:$0xff] }
  0xe3   :  { %3941 = vmatprep.subr.bf16.mxu0 %v3940_v42  ;;  %v3960_v42 = vpack.c.bf16 %v912_v35, %v910_v34  ;;  %v925_v32 = vld [vmem:[%s8552_s1 + $0x1c20] sm:$0xff]  ;;  %v927_v35 = vld [vmem:[%s8552_s1 + $0x1c30] sm:$0xff]  ;;  %v3990_v17 = vpack.c.bf16 %v939_v8, %v937_v5 }
  0xe4   :  { %v301_v19 = vld [vmem:[%s8552_s1 + $0x8a0] sm:$0xff] }
  0xe5   :  { %3303 = vmatpush1.bf16.msra.mxu1 %v3302_v48  ;;  %v3322_v48 = vpack.c.bf16 %v271_v40, %v269_v39  ;;  %v930_v39 = vld [vmem:[%s8552_s1 + $0x1c48] sm:$0xff]  ;;  %v932_v40 = vld [vmem:[%s8552_s1 + $0x1c58] sm:$0xff]  ;;  %v317_v5 = vld [vmem:[%s8552_s1 + $0x920] sm:$0xff] }
  0xe6   :  { %3943 = vmatpush1.bf16.msra.mxu0 %v3942_v49  ;;  %3305 = vmatprep.subr.bf16.mxu1 %v3304_v25  ;;  %v3962_v49 = vpack.c.bf16 %v911_v43, %v909_v41  ;;  %v3324_v25 = vpack.c.bf16 %v276_v45, %v274_v44  ;;  %v3978_v43 = vpack.c.bf16 %v927_v35, %v925_v32  ;;  %v291_v45 = vld [vmem:[%s8552_s1 + $0x850] sm:$0xff]  ;;  %v305_v35 = vld [vmem:[%s8552_s1 + $0x8c0] sm:$0xff] }
  0xe7   :  { %3945 = vmatprep.subr.bf16.mxu0 %v3944_v55  ;;  %v3964_v55 = vpack.c.bf16 %v916_v47, %v914_v46  ;;  %v929_v46 = vld [vmem:[%s8552_s1 + $0x1c40] sm:$0xff]  ;;  %v3980_v47 = vpack.c.bf16 %v932_v40, %v930_v39  ;;  %v947_v39 = vld [vmem:[%s8552_s1 + $0x1cd0] sm:$0xff]  ;;  %v310_v40 = vld [vmem:[%s8552_s1 + $0x8e8] sm:$0xff] }
  0xe8   :  { %v957_v8 = vld [vmem:[%s8552_s1 + $0x1d20] sm:$0xff] }
  0xe9   :  { %3307 = vmatpush1.bf16.msra.mxu1 %v3306_v63  ;;  %v3326_v63 = vpack.c.bf16 %v275_v52, %v273_v51  ;;  %v936_v51 = vld [vmem:[%s8552_s1 + $0x1c78] sm:$0xff] }
  0xea   :  { %3947 = vmatpush1.bf16.msra.mxu0 %v3946_v50  ;;  %3309 = vmatprep.subr.bf16.mxu1 %v3308_v0  ;;  %v3966_v50 = vpack.c.bf16 %v915_v56, %v913_v53  ;;  %v3328_v0 = vpack.c.bf16 %v280_v58, %v278_v57  ;;  %v293_v56 = vld [vmem:[%s8552_s1 + $0x860] sm:$0xff]  ;;  %v295_v57 = vld [vmem:[%s8552_s1 + $0x870] sm:$0xff] }
  0xeb   :  { %3949 = vmatprep.subr.bf16.mxu0 %v3948_v2  ;;  %v3968_v2 = vpack.c.bf16 %v920_v62, %v918_v60  ;;  %v933_v58 = vld [vmem:[%s8552_s1 + $0x1c60] sm:$0xff]  ;;  %v935_v62 = vld [vmem:[%s8552_s1 + $0x1c70] sm:$0xff] }
  0xec   :  { %v3986_v30 = vpack.c.bf16 %v935_v62, %v933_v58  ;;  %v313_v58 = vld [vmem:[%s8552_s1 + $0x900] sm:$0xff] }
  0xed   :  { %3311 = vmatpush1.bf16.msra.mxu1 %v3310_v9  ;;  %v6082_v9 = vld [vmem:[%s8553_s0 + $0x10] sm:$0xff]  ;;  %v953_v62 = vld [vmem:[%s8552_s1 + $0x1d00] sm:$0xff] }
  0xee   :  { %3951 = vmatpush1.bf16.msra.mxu0 %v3950_v10  ;;  %3313 = vmatprep.subr.bf16.mxu1 %v3312_v12  ;;  %v3330_v10 = vpack.c.bf16 %v279_v54, %v277_v1  ;;  %v6087_v12 = vld [vmem:[%s8553_s0 + $0x38] sm:$0xff]  ;;  %v3346_v54 = vpack.c.bf16 %v295_v57, %v293_v56 }
  0xef   :  { %3953 = vmatprep.subr.bf16.mxu0 %v3952_v16  ;;  %v283_v16 = vld [vmem:[%s8552_s1 + $0x810] sm:$0xff]  ;;  %v6119_v28 = vrot.slane %v6087_v12, %v4727_v11  ;;  %v940_v1 = vld [vmem:[%s8552_s1 + $0x1c98] sm:$0xff] }
  0xf0   :  { %v3334_v26 = vpack.c.bf16 %v283_v16, %v281_v15  ;;  %v944_v15 = vld [vmem:[%s8552_s1 + $0x1cb8] sm:$0xff]  ;;  %v3350_v16 = vpack.c.bf16 %v299_v33, %v297_v3 }
  0xf1   :  { %3315 = vmatpush1.bf16.msra.mxu1 %v3314_v22  ;;  %v6109_v22 = vrot.slane %v6082_v9, %v4727_v11  ;;  %v1478_v41 = vcombine.high %v6119_v28, %v6119_v28 }
  0xf2   :  { %3955 = vmatpush1.bf16.msra.mxu0 %v3954_v23  ;;  %3317 = vmatprep.subr.bf16.mxu1 %v3316_v24  ;;  %v926_v23 = vld [vmem:[%s8552_s1 + $0x1c28] sm:$0xff]  ;;  %v928_v24 = vld [vmem:[%s8552_s1 + $0x1c38] sm:$0xff] }
  0xf3   :  { %3957 = vmatprep.subr.bf16.mxu0 %v3956_v29  ;;  %v3336_v29 = vpack.c.bf16 %v288_v21, %v286_v20  ;;  %v3976_v34 = vpack.c.bf16 %v928_v24, %v926_v23  ;;  %v303_v20 = vld [vmem:[%s8552_s1 + $0x8b0] sm:$0xff]  ;;  %v941_v21 = vld [vmem:[%s8552_s1 + $0x1ca0] sm:$0xff] }
  0xf4   :  { %v943_v24 = vld [vmem:[%s8552_s1 + $0x1cb0] sm:$0xff] }
  0xf5   :  { %3319 = vmatpush1.bf16.msra.mxu1 %v3318_v36  ;;  %v290_v36 = vld [vmem:[%s8552_s1 + $0x848] sm:$0xff]  ;;  %v3994_v32 = vpack.c.bf16 %v943_v24, %v941_v21  ;;  %v321_v21 = vld [vmem:[%s8552_s1 + $0x940] sm:$0xff] }
  0xf6   :  { %3959 = vmatpush1.bf16.msra.mxu0 %v3958_v37  ;;  %3321 = vmatprep.subr.bf16.mxu1 %v3320_v38  ;;  %v292_v37 = vld [vmem:[%s8552_s1 + $0x858] sm:$0xff]  ;;  %v1393_v38 = vcombine.high %v6109_v22, %v6109_v22  ;;  %v961_v24 = vld [vmem:[%s8552_s1 + $0x1d40] sm:$0xff] }
  0xf7   :  { %3961 = vmatprep.subr.bf16.mxu0 %v3960_v42  ;;  %v3338_v42 = vpack.c.bf16 %v287_v31, %v285_v59  ;;  %v3340_v44 = vpack.c.bf16 %v292_v37, %v290_v36  ;;  %v948_v59 = vld [vmem:[%s8552_s1 + $0x1cd8] sm:$0xff]  ;;  %v3354_v31 = vpack.c.bf16 %v303_v20, %v301_v19  ;;  %v307_v36 = vld [vmem:[%s8552_s1 + $0x8d0] sm:$0xff]  ;;  %v945_v37 = vld [vmem:[%s8552_s1 + $0x1cc0] sm:$0xff] }
  0xf9   :  { %3323 = vmatpush1.bf16.msra.mxu1 %v3322_v48  ;;  %v294_v48 = vld [vmem:[%s8552_s1 + $0x868] sm:$0xff] }
  0xfa   :  { %3963 = vmatpush1.bf16.msra.mxu0 %v3962_v49  ;;  %3325 = vmatprep.subr.bf16.mxu1 %v3324_v25  ;;  %v296_v49 = vld [vmem:[%s8552_s1 + $0x878] sm:$0xff]  ;;  %v934_v25 = vld [vmem:[%s8552_s1 + $0x1c68] sm:$0xff] }
  0xfb   :  { %3965 = vmatprep.subr.bf16.mxu0 %v3964_v55  ;;  %v3344_v55 = vpack.c.bf16 %v296_v49, %v294_v48  ;;  %v3984_v60 = vpack.c.bf16 %v936_v51, %v934_v25  ;;  %v951_v49 = vld [vmem:[%s8552_s1 + $0x1cf0] sm:$0xff]  ;;  %v314_v25 = vld [vmem:[%s8552_s1 + $0x908] sm:$0xff]  ;;  %v316_v51 = vld [vmem:[%s8552_s1 + $0x918] sm:$0xff] }
  0xfc   :  { %v3364_v57 = vpack.c.bf16 %v316_v51, %v314_v25  ;;  %v971_v51 = vld [vmem:[%s8552_s1 + $0x1d90] sm:$0xff] }
  0xfd   :  { %3327 = vmatpush1.bf16.msra.mxu1 %v3326_v63  ;;  %v298_v63 = vld [vmem:[%s8552_s1 + $0x888] sm:$0xff] }
  0xfe   :  { %3967 = vmatpush1.bf16.msra.mxu0 %v3966_v50  ;;  %3329 = vmatprep.subr.bf16.mxu1 %v3328_v0  ;;  %v300_v50 = vld [vmem:[%s8552_s1 + $0x898] sm:$0xff]  ;;  %v938_v0 = vld [vmem:[%s8552_s1 + $0x1c88] sm:$0xff] }
  0xff   :  { %3969 = vmatprep.subr.bf16.mxu0 %v3968_v2  ;;  %v3348_v2 = vpack.c.bf16 %v300_v50, %v298_v63  ;;  %v3988_v7 = vpack.c.bf16 %v940_v1, %v938_v0  ;;  %v955_v50 = vld [vmem:[%s8552_s1 + $0x1d10] sm:$0xff]  ;;  %v318_v0 = vld [vmem:[%s8552_s1 + $0x928] sm:$0xff]  ;;  %v320_v1 = vld [vmem:[%s8552_s1 + $0x938] sm:$0xff] }
 0x100   :  { %v4006_v3 = vpack.c.bf16 %v955_v50, %v953_v62  ;;  %v3368_v33 = vpack.c.bf16 %v320_v1, %v318_v0  ;;  %v333_v62 = vld [vmem:[%s8552_s1 + $0x9a0] sm:$0xff]  ;;  %v975_v1 = vld [vmem:[%s8552_s1 + $0x1db0] sm:$0xff] }
 0x101   :  { %3331 = vmatpush1.bf16.msra.mxu1 %v3330_v10  ;;  %v302_v10 = vld [vmem:[%s8552_s1 + $0x8a8] sm:$0xff]  ;;  %v973_v50 = vld [vmem:[%s8552_s1 + $0x1da0] sm:$0xff] }
 0x102   :  { %3971 = vmatpush1.bf16.msra.mxu0 %v3970_v13  ;;  %3333 = vmatprep.subr.bf16.mxu1 %v3332_v14  ;;  %v304_v13 = vld [vmem:[%s8552_s1 + $0x8b8] sm:$0xff]  ;;  %v942_v14 = vld [vmem:[%s8552_s1 + $0x1ca8] sm:$0xff] }
 0x103   :  { %3973 = vmatprep.subr.bf16.mxu0 %v3972_v18  ;;  %v3352_v18 = vpack.c.bf16 %v304_v13, %v302_v10  ;;  %v3992_v23 = vpack.c.bf16 %v944_v15, %v942_v14  ;;  %v959_v13 = vld [vmem:[%s8552_s1 + $0x1d30] sm:$0xff]  ;;  %v322_v14 = vld [vmem:[%s8552_s1 + $0x948] sm:$0xff]  ;;  %v324_v15 = vld [vmem:[%s8552_s1 + $0x958] sm:$0xff] }
 0x104   :  { %1842 = vmatmul.mubr.f32.vlgmr.msra.gmra.mrb[0].mxu1 %v5702_v4  ;;  %v289_v4 = vld [vmem:[%s8552_s1 + $0x840] sm:$0xff]  ;;  %v4010_v19 = vpack.c.bf16 %v959_v13, %v957_v8  ;;  %v3372_v20 = vpack.c.bf16 %v324_v15, %v322_v14  ;;  %v979_v15 = vld [vmem:[%s8552_s1 + $0x1dd0] sm:$0xff] }
 0x105   :  { %3335 = vmatpush1.bf16.msra.mxu1 %v3334_v26  ;;  %2552 = vmatmul.mubr.f32.vlgmr.msra.gmra.mrb[0].mxu0 %v5711_v6  ;;  %v931_v6 = vld [vmem:[%s8552_s1 + $0x1c50] sm:$0xff]  ;;  %v3342_v52 = vpack.c.bf16 %v291_v45, %v289_v4  ;;  %v306_v26 = vld [vmem:[%s8552_s1 + $0x8c8] sm:$0xff]  ;;  %v3998_v4 = vpack.c.bf16 %v947_v39, %v945_v37  ;;  %v325_v37 = vld [vmem:[%s8552_s1 + $0x960] sm:$0xff] }
 0x106   :  { %3975 = vmatpush1.bf16.msra.mxu0 %v3974_v27  ;;  %3337 = vmatprep.subr.bf16.mxu1 %v3336_v29  ;;  %v3982_v53 = vpack.c.bf16 %v931_v6, %v929_v46  ;;  %v308_v27 = vld [vmem:[%s8552_s1 + $0x8d8] sm:$0xff]  ;;  %v946_v29 = vld [vmem:[%s8552_s1 + $0x1cc8] sm:$0xff]  ;;  %v309_v46 = vld [vmem:[%s8552_s1 + $0x8e0] sm:$0xff] }
 0x107   :  { %3977 = vmatprep.subr.bf16.mxu0 %v3976_v34  ;;  %1912 = vmatprep.mubr.f32.mxu1 %v1393_v38  ;;  %v3356_v34 = vpack.c.bf16 %v308_v27, %v306_v26  ;;  %v3996_v38 = vpack.c.bf16 %v948_v59, %v946_v29  ;;  %v949_v6 = vld [vmem:[%s8552_s1 + $0x1ce0] sm:$0xff]  ;;  %v963_v27 = vld [vmem:[%s8552_s1 + $0x1d50] sm:$0xff]  ;;  %v326_v29 = vld [vmem:[%s8552_s1 + $0x968] sm:$0xff] }
 0x108   :  { %2622 = vmatprep.mubr.f32.mxu0 %v1478_v41  ;;  %v312_v41 = vld [vmem:[%s8552_s1 + $0x8f8] sm:$0xff]  ;;  %v4002_v56 = vpack.c.bf16 %v951_v49, %v949_v6  ;;  %v965_v39 = vld [vmem:[%s8552_s1 + $0x1d60] sm:$0xff] }
 0x109   :  { %3339 = vmatpush1.bf16.msra.mxu1 %v3338_v42  ;;  %v950_v42 = vld [vmem:[%s8552_s1 + $0x1ce8] sm:$0xff]  ;;  %v3360_v45 = vpack.c.bf16 %v312_v41, %v310_v40  ;;  %v328_v59 = vld [vmem:[%s8552_s1 + $0x978] sm:$0xff]  ;;  %v967_v41 = vld [vmem:[%s8552_s1 + $0x1d70] sm:$0xff] }
 0x10a   :  { %3979 = vmatpush1.bf16.msra.mxu0 %v3978_v43  ;;  %3341 = vmatprep.subr.bf16.mxu1 %v3340_v44  ;;  %v952_v43 = vld [vmem:[%s8552_s1 + $0x1cf8] sm:$0xff]  ;;  %v3358_v44 = vpack.c.bf16 %v307_v36, %v305_v35  ;;  %v4014_v35 = vpack.c.bf16 %v963_v27, %v961_v24  ;;  %v3376_v36 = vpack.c.bf16 %v328_v59, %v326_v29  ;;  %v329_v6 = vld [vmem:[%s8552_s1 + $0x980] sm:$0xff]  ;;  %v983_v59 = vld [vmem:[%s8552_s1 + $0x1df0] sm:$0xff] }
 0x10b   :  { %3981 = vmatprep.subr.bf16.mxu0 %v3980_v47  ;;  %v311_v47 = vld [vmem:[%s8552_s1 + $0x8f0] sm:$0xff]  ;;  %v4000_v48 = vpack.c.bf16 %v952_v43, %v950_v42  ;;  %v330_v42 = vld [vmem:[%s8552_s1 + $0x988] sm:$0xff]  ;;  %v332_v43 = vld [vmem:[%s8552_s1 + $0x998] sm:$0xff] }
 0x10c   :  { %v969_v49 = vld [vmem:[%s8552_s1 + $0x1d80] sm:$0xff] }
 0x10d   :  { %3343 = vmatpush1.bf16.msra.mxu1 %v3342_v52  ;;  %v954_v52 = vld [vmem:[%s8552_s1 + $0x1d08] sm:$0xff]  ;;  %v337_v8 = vld [vmem:[%s8552_s1 + $0x9c0] sm:$0xff] }
 0x10e   :  { %3983 = vmatpush1.bf16.msra.mxu0 %v3982_v53  ;;  %3345 = vmatprep.subr.bf16.mxu1 %v3344_v55  ;;  %v956_v53 = vld [vmem:[%s8552_s1 + $0x1d18] sm:$0xff]  ;;  %v3362_v55 = vpack.c.bf16 %v311_v47, %v309_v46  ;;  %v4018_v46 = vpack.c.bf16 %v967_v41, %v965_v39  ;;  %v3380_v47 = vpack.c.bf16 %v332_v43, %v330_v42  ;;  %v977_v13 = vld [vmem:[%s8552_s1 + $0x1dc0] sm:$0xff]  ;;  %v347_v41 = vld [vmem:[%s8552_s1 + $0xa10] sm:$0xff] }
 0x10f   :  { %3985 = vmatprep.subr.bf16.mxu0 %v3984_v60  ;;  %v315_v60 = vld [vmem:[%s8552_s1 + $0x910] sm:$0xff]  ;;  %v4004_v63 = vpack.c.bf16 %v956_v53, %v954_v52  ;;  %v334_v52 = vld [vmem:[%s8552_s1 + $0x9a8] sm:$0xff]  ;;  %v336_v53 = vld [vmem:[%s8552_s1 + $0x9b8] sm:$0xff] }
 0x110   :  { %v341_v24 = vld [vmem:[%s8552_s1 + $0x9e0] sm:$0xff]  ;;  %v987_v43 = vld [vmem:[%s8552_s1 + $0x1e10] sm:$0xff] }
 0x111   :  { %3347 = vmatpush1.bf16.msra.mxu1 %v3346_v54  ;;  %v958_v54 = vld [vmem:[%s8552_s1 + $0x1d28] sm:$0xff]  ;;  %v981_v27 = vld [vmem:[%s8552_s1 + $0x1de0] sm:$0xff] }
 0x112   :  { %3987 = vmatpush1.bf16.msra.mxu0 %v3986_v30  ;;  %3349 = vmatprep.subr.bf16.mxu1 %v3348_v2  ;;  %v960_v30 = vld [vmem:[%s8552_s1 + $0x1d38] sm:$0xff]  ;;  %v3366_v2 = vpack.c.bf16 %v315_v60, %v313_v58  ;;  %v4022_v58 = vpack.c.bf16 %v971_v51, %v969_v49  ;;  %v3384_v60 = vpack.c.bf16 %v336_v53, %v334_v52  ;;  %v985_v42 = vld [vmem:[%s8552_s1 + $0x1e00] sm:$0xff]  ;;  %v351_v52 = vld [vmem:[%s8552_s1 + $0xa30] sm:$0xff] }
 0x113   :  { %3989 = vmatprep.subr.bf16.mxu0 %v3988_v7  ;;  %v319_v7 = vld [vmem:[%s8552_s1 + $0x930] sm:$0xff]  ;;  %v4008_v10 = vpack.c.bf16 %v960_v30, %v958_v54  ;;  %v338_v54 = vld [vmem:[%s8552_s1 + $0x9c8] sm:$0xff]  ;;  %v340_v30 = vld [vmem:[%s8552_s1 + $0x9d8] sm:$0xff]  ;;  %v4034_v39 = vpack.c.bf16 %v983_v59, %v981_v27  ;;  %v4038_v49 = vpack.c.bf16 %v987_v43, %v985_v42 }
 0x114   :  { %v349_v51 = vld [vmem:[%s8552_s1 + $0xa20] sm:$0xff] }
 0x115   :  { %3351 = vmatpush1.bf16.msra.mxu1 %v3350_v16  ;;  %v962_v16 = vld [vmem:[%s8552_s1 + $0x1d48] sm:$0xff]  ;;  %v989_v53 = vld [vmem:[%s8552_s1 + $0x1e20] sm:$0xff] }
 0x116   :  { %3991 = vmatpush1.bf16.msra.mxu0 %v3990_v17  ;;  %3353 = vmatprep.subr.bf16.mxu1 %v3352_v18  ;;  %v964_v17 = vld [vmem:[%s8552_s1 + $0x1d58] sm:$0xff]  ;;  %v3370_v18 = vpack.c.bf16 %v319_v7, %v317_v5  ;;  %v4026_v5 = vpack.c.bf16 %v975_v1, %v973_v50  ;;  %v3388_v7 = vpack.c.bf16 %v340_v30, %v338_v54  ;;  %v355_v30 = vld [vmem:[%s8552_s1 + $0xa50] sm:$0xff]  ;;  %v361_v59 = vld [vmem:[%s8552_s1 + $0xa80] sm:$0xff] }
 0x117   :  { %3993 = vmatprep.subr.bf16.mxu0 %v3992_v23  ;;  %v323_v23 = vld [vmem:[%s8552_s1 + $0x950] sm:$0xff]  ;;  %v4012_v26 = vpack.c.bf16 %v964_v17, %v962_v16  ;;  %v342_v16 = vld [vmem:[%s8552_s1 + $0x9e8] sm:$0xff]  ;;  %v344_v17 = vld [vmem:[%s8552_s1 + $0x9f8] sm:$0xff] }
 0x118   :  { %v365_v42 = vld [vmem:[%s8552_s1 + $0xaa0] sm:$0xff] }
 0x119   :  { %3355 = vmatpush1.bf16.msra.mxu1 %v3354_v31  ;;  %v966_v31 = vld [vmem:[%s8552_s1 + $0x1d68] sm:$0xff]  ;;  %v1005_v43 = vld [vmem:[%s8552_s1 + $0x1ea0] sm:$0xff] }
 0x11a   :  { %3995 = vmatpush1.bf16.msra.mxu0 %v3994_v32  ;;  %3357 = vmatprep.subr.bf16.mxu1 %v3356_v34  ;;  %v968_v32 = vld [vmem:[%s8552_s1 + $0x1d78] sm:$0xff]  ;;  %v3374_v34 = vpack.c.bf16 %v323_v23, %v321_v21  ;;  %v4030_v21 = vpack.c.bf16 %v979_v15, %v977_v13  ;;  %v3392_v23 = vpack.c.bf16 %v344_v17, %v342_v16  ;;  %v357_v15 = vld [vmem:[%s8552_s1 + $0xa60] sm:$0xff]  ;;  %v359_v16 = vld [vmem:[%s8552_s1 + $0xa70] sm:$0xff] }
 0x11b   :  { %3997 = vmatprep.subr.bf16.mxu0 %v3996_v38  ;;  %v327_v38 = vld [vmem:[%s8552_s1 + $0x970] sm:$0xff]  ;;  %v4016_v40 = vpack.c.bf16 %v968_v32, %v966_v31  ;;  %v346_v31 = vld [vmem:[%s8552_s1 + $0xa08] sm:$0xff]  ;;  %v348_v32 = vld [vmem:[%s8552_s1 + $0xa18] sm:$0xff] }
 0x11c   :  { %v997_v17 = vld [vmem:[%s8552_s1 + $0x1e60] sm:$0xff] }
 0x11d   :  { %3359 = vmatpush1.bf16.msra.mxu1 %v3358_v44  ;;  %v970_v44 = vld [vmem:[%s8552_s1 + $0x1d88] sm:$0xff] }
 0x11e   :  { %3999 = vmatpush1.bf16.msra.mxu0 %v3998_v4  ;;  %3361 = vmatprep.subr.bf16.mxu1 %v3360_v45  ;;  %v972_v4 = vld [vmem:[%s8552_s1 + $0x1d98] sm:$0xff]  ;;  %v3378_v45 = vpack.c.bf16 %v327_v38, %v325_v37  ;;  %v1463_v37 = vcombine.high %v6087_v12, %v6087_v12 }
 0x11f   :  { %4001 = vmatprep.subr.bf16.mxu0 %v4000_v48  ;;  %v331_v48 = vld [vmem:[%s8552_s1 + $0x990] sm:$0xff]  ;;  %v4020_v25 = vpack.c.bf16 %v972_v4, %v970_v44  ;;  %v350_v44 = vld [vmem:[%s8552_s1 + $0xa28] sm:$0xff]  ;;  %v352_v4 = vld [vmem:[%s8552_s1 + $0xa38] sm:$0xff] }
 0x121   :  { %3363 = vmatpush1.bf16.msra.mxu1 %v3362_v55  ;;  %v974_v55 = vld [vmem:[%s8552_s1 + $0x1da8] sm:$0xff] }
 0x122   :  { %4003 = vmatpush1.bf16.msra.mxu0 %v4002_v56  ;;  %3365 = vmatprep.subr.bf16.mxu1 %v3364_v57  ;;  %v976_v56 = vld [vmem:[%s8552_s1 + $0x1db8] sm:$0xff]  ;;  %v3382_v57 = vpack.c.bf16 %v331_v48, %v329_v6  ;;  %v6519_v6 = vrot.slane %v1463_v37, %v4727_v11 }
 0x123   :  { %4005 = vmatprep.subr.bf16.mxu0 %v4004_v63  ;;  %v335_v63 = vld [vmem:[%s8552_s1 + $0x9b0] sm:$0xff]  ;;  %v4024_v0 = vpack.c.bf16 %v976_v56, %v974_v55  ;;  %v368_v37 = vld [vmem:[%s8552_s1 + $0xab8] sm:$0xff] }
 0x124   :  { %v991_v56 = vld [vmem:[%s8552_s1 + $0x1e30] sm:$0xff]  ;;  %v1479_v50 = vcombine.high %v6519_v6, %v6519_v6 }
 0x125   :  { %3367 = vmatpush1.bf16.msra.mxu1 %v3366_v2  ;;  %v978_v2 = vld [vmem:[%s8552_s1 + $0x1dc8] sm:$0xff]  ;;  %v4042_v1 = vpack.c.bf16 %v991_v56, %v989_v53  ;;  %v369_v53 = vld [vmem:[%s8552_s1 + $0xac0] sm:$0xff] }
 0x126   :  { %4007 = vmatpush1.bf16.msra.mxu0 %v4006_v3  ;;  %3369 = vmatprep.subr.bf16.mxu1 %v3368_v33  ;;  %v980_v3 = vld [vmem:[%s8552_s1 + $0x1dd8] sm:$0xff]  ;;  %v3386_v33 = vpack.c.bf16 %v335_v63, %v333_v62  ;;  %v994_v62 = vld [vmem:[%s8552_s1 + $0x1e48] sm:$0xff]  ;;  %v1009_v56 = vld [vmem:[%s8552_s1 + $0x1ec0] sm:$0xff] }
 0x127   :  { %4009 = vmatprep.subr.bf16.mxu0 %v4008_v10  ;;  %v339_v10 = vld [vmem:[%s8552_s1 + $0x9d0] sm:$0xff]  ;;  %v4028_v14 = vpack.c.bf16 %v980_v3, %v978_v2  ;;  %v996_v63 = vld [vmem:[%s8552_s1 + $0x1e58] sm:$0xff]  ;;  %v993_v2 = vld [vmem:[%s8552_s1 + $0x1e40] sm:$0xff] }
 0x128   :  { %v4044_v3 = vpack.c.bf16 %v996_v63, %v994_v62  ;;  %v376_v62 = vld [vmem:[%s8552_s1 + $0xaf8] sm:$0xff]  ;;  %v1014_v63 = vld [vmem:[%s8552_s1 + $0x1ee8] sm:$0xff] }
 0x129   :  { %3371 = vmatpush1.bf16.msra.mxu1 %v3370_v18  ;;  %v982_v18 = vld [vmem:[%s8552_s1 + $0x1de8] sm:$0xff] }
 0x12a   :  { %4011 = vmatpush1.bf16.msra.mxu0 %v4010_v19  ;;  %3373 = vmatprep.subr.bf16.mxu1 %v3372_v20  ;;  %v984_v19 = vld [vmem:[%s8552_s1 + $0x1df8] sm:$0xff]  ;;  %v3390_v20 = vpack.c.bf16 %v339_v10, %v337_v8 }
 0x12b   :  { %4013 = vmatprep.subr.bf16.mxu0 %v4012_v26  ;;  %v343_v26 = vld [vmem:[%s8552_s1 + $0x9f0] sm:$0xff]  ;;  %v4032_v29 = vpack.c.bf16 %v984_v19, %v982_v18  ;;  %v1000_v8 = vld [vmem:[%s8552_s1 + $0x1e78] sm:$0xff] }
 0x12c   :  { %v3394_v38 = vpack.c.bf16 %v343_v26, %v341_v24  ;;  %v999_v19 = vld [vmem:[%s8552_s1 + $0x1e70] sm:$0xff]  ;;  %v1004_v24 = vld [vmem:[%s8552_s1 + $0x1e98] sm:$0xff]  ;;  %v3410_v26 = vpack.c.bf16 %v359_v16, %v357_v15  ;;  %v377_v15 = vld [vmem:[%s8552_s1 + $0xb00] sm:$0xff] }
 0x12d   :  { %3375 = vmatpush1.bf16.msra.mxu1 %v3374_v34  ;;  %v1378_v34 = vcombine.high %v6082_v9, %v6082_v9  ;;  %v345_v9 = vld [vmem:[%s8552_s1 + $0xa00] sm:$0xff]  ;;  %v4050_v27 = vpack.c.bf16 %v999_v19, %v997_v17  ;;  %v379_v16 = vld [vmem:[%s8552_s1 + $0xb10] sm:$0xff] }
 0x12e   :  { %4015 = vmatpush1.bf16.msra.mxu0 %v4014_v35  ;;  %3377 = vmatprep.subr.bf16.mxu1 %v3376_v36  ;;  %v986_v35 = vld [vmem:[%s8552_s1 + $0x1e08] sm:$0xff]  ;;  %v988_v36 = vld [vmem:[%s8552_s1 + $0x1e18] sm:$0xff]  ;;  %v3398_v48 = vpack.c.bf16 %v347_v41, %v345_v9  ;;  %v1017_v17 = vld [vmem:[%s8552_s1 + $0x1f00] sm:$0xff] }
 0x12f   :  { %4017 = vmatprep.subr.bf16.mxu0 %v4016_v40  ;;  %v3396_v40 = vpack.c.bf16 %v348_v32, %v346_v31  ;;  %v4036_v12 = vpack.c.bf16 %v988_v36, %v986_v35  ;;  %v363_v31 = vld [vmem:[%s8552_s1 + $0xa90] sm:$0xff]  ;;  %v1001_v32 = vld [vmem:[%s8552_s1 + $0x1e80] sm:$0xff]  ;;  %v366_v36 = vld [vmem:[%s8552_s1 + $0xaa8] sm:$0xff] }
 0x130   :  { %v1003_v35 = vld [vmem:[%s8552_s1 + $0x1e90] sm:$0xff]  ;;  %v3416_v41 = vpack.c.bf16 %v368_v37, %v366_v36  ;;  %v386_v36 = vld [vmem:[%s8552_s1 + $0xb48] sm:$0xff]  ;;  %v388_v37 = vld [vmem:[%s8552_s1 + $0xb58] sm:$0xff] }
 0x131   :  { %3379 = vmatpush1.bf16.msra.mxu1 %v3378_v45  ;;  %v6510_v45 = vrot.slane %v1378_v34, %v4727_v11  ;;  %v4054_v9 = vpack.c.bf16 %v1003_v35, %v1001_v32  ;;  %v1019_v19 = vld [vmem:[%s8552_s1 + $0x1f10] sm:$0xff]  ;;  %v1021_v32 = vld [vmem:[%s8552_s1 + $0x1f20] sm:$0xff] }
 0x132   :  { %4019 = vmatpush1.bf16.msra.mxu0 %v4018_v46  ;;  %3381 = vmatprep.subr.bf16.mxu1 %v3380_v47  ;;  %v990_v46 = vld [vmem:[%s8552_s1 + $0x1e28] sm:$0xff]  ;;  %v992_v47 = vld [vmem:[%s8552_s1 + $0x1e38] sm:$0xff]  ;;  %v1023_v35 = vld [vmem:[%s8552_s1 + $0x1f30] sm:$0xff] }
 0x133   :  { %4021 = vmatprep.subr.bf16.mxu0 %v4020_v25  ;;  %v3400_v25 = vpack.c.bf16 %v352_v4, %v350_v44  ;;  %v4040_v55 = vpack.c.bf16 %v992_v47, %v990_v46  ;;  %v1007_v4 = vld [vmem:[%s8552_s1 + $0x1eb0] sm:$0xff]  ;;  %v370_v46 = vld [vmem:[%s8552_s1 + $0xac8] sm:$0xff]  ;;  %v372_v47 = vld [vmem:[%s8552_s1 + $0xad8] sm:$0xff] }
 0x135   :  { %3383 = vmatpush1.bf16.msra.mxu1 %v3382_v57  ;;  %v354_v57 = vld [vmem:[%s8552_s1 + $0xa48] sm:$0xff] }
 0x136   :  { %4023 = vmatpush1.bf16.msra.mxu0 %v4022_v58  ;;  %3385 = vmatprep.subr.bf16.mxu1 %v3384_v60  ;;  %v356_v58 = vld [vmem:[%s8552_s1 + $0xa58] sm:$0xff]  ;;  %v1394_v60 = vcombine.high %v6510_v45, %v6510_v45 }
 0x137   :  { %4025 = vmatprep.subr.bf16.mxu0 %v4024_v0  ;;  %v3402_v0 = vpack.c.bf16 %v351_v52, %v349_v51  ;;  %v3404_v54 = vpack.c.bf16 %v356_v58, %v354_v57  ;;  %v4058_v51 = vpack.c.bf16 %v1007_v4, %v1005_v43  ;;  %v3420_v52 = vpack.c.bf16 %v372_v47, %v370_v46  ;;  %v1011_v58 = vld [vmem:[%s8552_s1 + $0x1ed0] sm:$0xff]  ;;  %v1025_v43 = vld [vmem:[%s8552_s1 + $0x1f40] sm:$0xff]  ;;  %v390_v46 = vld [vmem:[%s8552_s1 + $0xb68] sm:$0xff] }
 0x138   :  { %v1027_v4 = vld [vmem:[%s8552_s1 + $0x1f50] sm:$0xff]  ;;  %v392_v47 = vld [vmem:[%s8552_s1 + $0xb78] sm:$0xff] }
 0x139   :  { %3387 = vmatpush1.bf16.msra.mxu1 %v3386_v33  ;;  %v358_v33 = vld [vmem:[%s8552_s1 + $0xa68] sm:$0xff] }
 0x13a   :  { %4027 = vmatpush1.bf16.msra.mxu0 %v4026_v5  ;;  %3389 = vmatprep.subr.bf16.mxu1 %v3388_v7  ;;  %v360_v5 = vld [vmem:[%s8552_s1 + $0xa78] sm:$0xff]  ;;  %v998_v7 = vld [vmem:[%s8552_s1 + $0x1e68] sm:$0xff] }
 0x13b   :  { %4029 = vmatprep.subr.bf16.mxu0 %v4028_v14  ;;  %v3408_v14 = vpack.c.bf16 %v360_v5, %v358_v33  ;;  %v4048_v18 = vpack.c.bf16 %v1000_v8, %v998_v7  ;;  %v378_v33 = vld [vmem:[%s8552_s1 + $0xb08] sm:$0xff]  ;;  %v380_v5 = vld [vmem:[%s8552_s1 + $0xb18] sm:$0xff] }
 0x13c   :  { %v1018_v7 = vld [vmem:[%s8552_s1 + $0x1f08] sm:$0xff]  ;;  %v1020_v8 = vld [vmem:[%s8552_s1 + $0x1f18] sm:$0xff] }
 0x13d   :  { %3391 = vmatpush1.bf16.msra.mxu1 %v3390_v20  ;;  %v362_v20 = vld [vmem:[%s8552_s1 + $0xa88] sm:$0xff] }
 0x13e   :  { %4031 = vmatpush1.bf16.msra.mxu0 %v4030_v21  ;;  %3393 = vmatprep.subr.bf16.mxu1 %v3392_v23  ;;  %v364_v21 = vld [vmem:[%s8552_s1 + $0xa98] sm:$0xff]  ;;  %v1002_v23 = vld [vmem:[%s8552_s1 + $0x1e88] sm:$0xff] }
 0x13f   :  { %4033 = vmatprep.subr.bf16.mxu0 %v4032_v29  ;;  %v3412_v29 = vpack.c.bf16 %v364_v21, %v362_v20  ;;  %v4052_v34 = vpack.c.bf16 %v1004_v24, %v1002_v23  ;;  %v382_v20 = vld [vmem:[%s8552_s1 + $0xb28] sm:$0xff]  ;;  %v384_v21 = vld [vmem:[%s8552_s1 + $0xb38] sm:$0xff] }
 0x140   :  { %v1022_v23 = vld [vmem:[%s8552_s1 + $0x1f28] sm:$0xff]  ;;  %v1024_v24 = vld [vmem:[%s8552_s1 + $0x1f38] sm:$0xff] }
 0x141   :  { %3395 = vmatpush1.bf16.msra.mxu1 %v3394_v38  ;;  %v1006_v38 = vld [vmem:[%s8552_s1 + $0x1ea8] sm:$0xff] }
 0x142   :  { %4035 = vmatpush1.bf16.msra.mxu0 %v4034_v39  ;;  %3397 = vmatprep.subr.bf16.mxu1 %v3396_v40  ;;  %v1008_v39 = vld [vmem:[%s8552_s1 + $0x1eb8] sm:$0xff]  ;;  %v3414_v40 = vpack.c.bf16 %v363_v31, %v361_v59  ;;  %v381_v59 = vld [vmem:[%s8552_s1 + $0xb20] sm:$0xff]  ;;  %v383_v31 = vld [vmem:[%s8552_s1 + $0xb30] sm:$0xff] }
 0x143   :  { %4037 = vmatprep.subr.bf16.mxu0 %v4036_v12  ;;  %v367_v12 = vld [vmem:[%s8552_s1 + $0xab0] sm:$0xff]  ;;  %v4056_v44 = vpack.c.bf16 %v1008_v39, %v1006_v38  ;;  %v1026_v38 = vld [vmem:[%s8552_s1 + $0x1f48] sm:$0xff]  ;;  %v1028_v39 = vld [vmem:[%s8552_s1 + $0x1f58] sm:$0xff] }
 0x144   :  { %1913 = vmatmul.mubr.f32.vlgmr.msra.gmra.mrb[0].mxu1 %v6109_v22  ;;  %v353_v22 = vld [vmem:[%s8552_s1 + $0xa40] sm:$0xff] }
 0x145   :  { %3399 = vmatpush1.bf16.msra.mxu1 %v3398_v48  ;;  %2623 = vmatmul.mubr.f32.vlgmr.msra.gmra.mrb[0].mxu0 %v6119_v28  ;;  %v995_v28 = vld [vmem:[%s8552_s1 + $0x1e50] sm:$0xff]  ;;  %v3406_v10 = vpack.c.bf16 %v355_v30, %v353_v22  ;;  %v1010_v48 = vld [vmem:[%s8552_s1 + $0x1ec8] sm:$0xff]  ;;  %v373_v22 = vld [vmem:[%s8552_s1 + $0xae0] sm:$0xff] }
 0x146   :  { %4039 = vmatpush1.bf16.msra.mxu0 %v4038_v49  ;;  %3401 = vmatprep.subr.bf16.mxu1 %v3400_v25  ;;  %v4046_v13 = vpack.c.bf16 %v995_v28, %v993_v2  ;;  %v1012_v49 = vld [vmem:[%s8552_s1 + $0x1ed8] sm:$0xff]  ;;  %v3418_v25 = vpack.c.bf16 %v367_v12, %v365_v42  ;;  %v375_v30 = vld [vmem:[%s8552_s1 + $0xaf0] sm:$0xff]  ;;  %v1013_v2 = vld [vmem:[%s8552_s1 + $0x1ee0] sm:$0xff] }
 0x147   :  { %4041 = vmatprep.subr.bf16.mxu0 %v4040_v55  ;;  %1983 = vmatprep.mubr.f32.mxu1 %v1394_v60  ;;  %v371_v55 = vld [vmem:[%s8552_s1 + $0xad0] sm:$0xff]  ;;  %v4060_v57 = vpack.c.bf16 %v1012_v49, %v1010_v48  ;;  %v374_v60 = vld [vmem:[%s8552_s1 + $0xae8] sm:$0xff]  ;;  %v385_v42 = vld [vmem:[%s8552_s1 + $0xb40] sm:$0xff] }
 0x148   :  { %2693 = vmatprep.mubr.f32.mxu0 %v1479_v50  ;;  %v1016_v50 = vld [vmem:[%s8552_s1 + $0x1ef8] sm:$0xff]  ;;  %v1015_v28 = vld [vmem:[%s8552_s1 + $0x1ef0] sm:$0xff]  ;;  %v1030_v48 = vld [vmem:[%s8552_s1 + $0x1f68] sm:$0xff] }
 0x149   :  { %3403 = vmatpush1.bf16.msra.mxu1 %v3402_v0  ;;  %v3422_v0 = vpack.c.bf16 %v371_v55, %v369_v53  ;;  %v387_v12 = vld [vmem:[%s8552_s1 + $0xb50] sm:$0xff]  ;;  %v1032_v49 = vld [vmem:[%s8552_s1 + $0x1f78] sm:$0xff]  ;;  %v389_v53 = vld [vmem:[%s8552_s1 + $0xb60] sm:$0xff] }
 0x14a   :  { %4043 = vmatpush1.bf16.msra.mxu0 %v4042_v1  ;;  %3405 = vmatprep.subr.bf16.mxu1 %v3404_v54  ;;  %v4062_v1 = vpack.c.bf16 %v1011_v58, %v1009_v56  ;;  %v3424_v54 = vpack.c.bf16 %v376_v62, %v374_v60  ;;  %v391_v55 = vld [vmem:[%s8552_s1 + $0xb70] sm:$0xff]  ;;  %v1029_v56 = vld [vmem:[%s8552_s1 + $0x1f60] sm:$0xff]  ;;  %v394_v60 = vld [vmem:[%s8552_s1 + $0xb88] sm:$0xff] }
 0x14b   :  { %4045 = vmatprep.subr.bf16.mxu0 %v4044_v3  ;;  %v4064_v3 = vpack.c.bf16 %v1016_v50, %v1014_v63  ;;  %v1031_v58 = vld [vmem:[%s8552_s1 + $0x1f70] sm:$0xff]  ;;  %v396_v62 = vld [vmem:[%s8552_s1 + $0xb98] sm:$0xff]  ;;  %v1034_v63 = vld [vmem:[%s8552_s1 + $0x1f88] sm:$0xff] }
 0x14c   :  { %v1036_v50 = vld [vmem:[%s8552_s1 + $0x1f98] sm:$0xff] }
 0x14d   :  { %3407 = vmatpush1.bf16.msra.mxu1 %v3406_v10  ;;  %v3426_v10 = vpack.c.bf16 %v375_v30, %v373_v22  ;;  %v393_v22 = vld [vmem:[%s8552_s1 + $0xb80] sm:$0xff]  ;;  %v395_v30 = vld [vmem:[%s8552_s1 + $0xb90] sm:$0xff] }
 0x14e   :  { %4047 = vmatpush1.bf16.msra.mxu0 %v4046_v13  ;;  %3409 = vmatprep.subr.bf16.mxu1 %v3408_v14  ;;  %v4066_v13 = vpack.c.bf16 %v1015_v28, %v1013_v2  ;;  %v3428_v14 = vpack.c.bf16 %v380_v5, %v378_v33  ;;  %v1033_v2 = vld [vmem:[%s8552_s1 + $0x1f80] sm:$0xff]  ;;  %v1035_v28 = vld [vmem:[%s8552_s1 + $0x1f90] sm:$0xff]  ;;  %v398_v33 = vld [vmem:[%s8552_s1 + $0xba8] sm:$0xff] }
 0x14f   :  { %4049 = vmatprep.subr.bf16.mxu0 %v4048_v18  ;;  %v4068_v18 = vpack.c.bf16 %v1020_v8, %v1018_v7  ;;  %v400_v5 = vld [vmem:[%s8552_s1 + $0xbb8] sm:$0xff]  ;;  %v1038_v7 = vld [vmem:[%s8552_s1 + $0x1fa8] sm:$0xff] }
 0x150   :  { %v1040_v8 = vld [vmem:[%s8552_s1 + $0x1fb8] sm:$0xff] }
 0x151   :  { %3411 = vmatpush1.bf16.msra.mxu1 %v3410_v26  ;;  %v3430_v26 = vpack.c.bf16 %v379_v16, %v377_v15  ;;  %v397_v15 = vld [vmem:[%s8552_s1 + $0xba0] sm:$0xff]  ;;  %v399_v16 = vld [vmem:[%s8552_s1 + $0xbb0] sm:$0xff] }
 0x152   :  { %4051 = vmatpush1.bf16.msra.mxu0 %v4050_v27  ;;  %3413 = vmatprep.subr.bf16.mxu1 %v3412_v29  ;;  %v4070_v27 = vpack.c.bf16 %v1019_v19, %v1017_v17  ;;  %v3432_v29 = vpack.c.bf16 %v384_v21, %v382_v20  ;;  %v1037_v17 = vld [vmem:[%s8552_s1 + $0x1fa0] sm:$0xff]  ;;  %v1039_v19 = vld [vmem:[%s8552_s1 + $0x1fb0] sm:$0xff]  ;;  %v402_v20 = vld [vmem:[%s8552_s1 + $0xbc8] sm:$0xff] }
 0x153   :  { %4053 = vmatprep.subr.bf16.mxu0 %v4052_v34  ;;  %v4072_v34 = vpack.c.bf16 %v1024_v24, %v1022_v23  ;;  %v404_v21 = vld [vmem:[%s8552_s1 + $0xbd8] sm:$0xff]  ;;  %v1042_v23 = vld [vmem:[%s8552_s1 + $0x1fc8] sm:$0xff] }
 0x154   :  { %v1044_v24 = vld [vmem:[%s8552_s1 + $0x1fd8] sm:$0xff] }
 0x155   :  { %3415 = vmatpush1.bf16.msra.mxu1 %v3414_v40  ;;  %v3434_v40 = vpack.c.bf16 %v383_v31, %v381_v59  ;;  %v401_v59 = vld [vmem:[%s8552_s1 + $0xbc0] sm:$0xff]  ;;  %v403_v31 = vld [vmem:[%s8552_s1 + $0xbd0] sm:$0xff] }
 0x156   :  { %4055 = vmatpush1.bf16.msra.mxu0 %v4054_v9  ;;  %3417 = vmatprep.subr.bf16.mxu1 %v3416_v41  ;;  %v4074_v9 = vpack.c.bf16 %v1023_v35, %v1021_v32  ;;  %v3436_v41 = vpack.c.bf16 %v388_v37, %v386_v36  ;;  %v1041_v32 = vld [vmem:[%s8552_s1 + $0x1fc0] sm:$0xff]  ;;  %v1043_v35 = vld [vmem:[%s8552_s1 + $0x1fd0] sm:$0xff]  ;;  %v406_v36 = vld [vmem:[%s8552_s1 + $0xbe8] sm:$0xff] }
 0x157   :  { %4057 = vmatprep.subr.bf16.mxu0 %v4056_v44  ;;  %v4076_v44 = vpack.c.bf16 %v1028_v39, %v1026_v38  ;;  %v408_v37 = vld [vmem:[%s8552_s1 + $0xbf8] sm:$0xff]  ;;  %v1046_v38 = vld [vmem:[%s8552_s1 + $0x1fe8] sm:$0xff] }
 0x158   :  { %v1048_v39 = vld [vmem:[%s8552_s1 + $0x1ff8] sm:$0xff] }
 0x159   :  { %3419 = vmatpush1.bf16.msra.mxu1 %v3418_v25  ;;  %v3438_v25 = vpack.c.bf16 %v387_v12, %v385_v42  ;;  %v405_v42 = vld [vmem:[%s8552_s1 + $0xbe0] sm:$0xff]  ;;  %v407_v12 = vld [vmem:[%s8552_s1 + $0xbf0] sm:$0xff] }
 0x15a   :  { %4059 = vmatpush1.bf16.msra.mxu0 %v4058_v51  ;;  %3421 = vmatprep.subr.bf16.mxu1 %v3420_v52  ;;  %v4078_v51 = vpack.c.bf16 %v1027_v4, %v1025_v43  ;;  %v3440_v52 = vpack.c.bf16 %v392_v47, %v390_v46  ;;  %v1045_v43 = vld [vmem:[%s8552_s1 + $0x1fe0] sm:$0xff]  ;;  %v1047_v4 = vld [vmem:[%s8552_s1 + $0x1ff0] sm:$0xff]  ;;  %v410_v46 = vld [vmem:[%s8552_s1 + $0xc08] sm:$0xff] }
 0x15b   :  { %4061 = vmatprep.subr.bf16.mxu0 %v4060_v57  ;;  %v4080_v57 = vpack.c.bf16 %v1032_v49, %v1030_v48  ;;  %v412_v47 = vld [vmem:[%s8552_s1 + $0xc18] sm:$0xff]  ;;  %v1050_v48 = vld [vmem:[%s8552_s1 + $0x2008] sm:$0xff] }
 0x15c   :  { %v1052_v49 = vld [vmem:[%s8552_s1 + $0x2018] sm:$0xff] }
 0x15d   :  { %3423 = vmatpush1.bf16.msra.mxu1 %v3422_v0  ;;  %v3442_v0 = vpack.c.bf16 %v391_v55, %v389_v53  ;;  %v4098_v53 = vpack.c.bf16 %v1047_v4, %v1045_v43  ;;  %v3460_v55 = vpack.c.bf16 %v412_v47, %v410_v46  ;;  %v425_v4 = vld [vmem:[%s8552_s1 + $0xc80] sm:$0xff]  ;;  %v427_v46 = vld [vmem:[%s8552_s1 + $0xc90] sm:$0xff] }
 0x15e   :  { %4063 = vmatpush1.bf16.msra.mxu0 %v4062_v1  ;;  %3425 = vmatprep.subr.bf16.mxu1 %v3424_v54  ;;  %v4082_v1 = vpack.c.bf16 %v1031_v58, %v1029_v56  ;;  %v3444_v54 = vpack.c.bf16 %v396_v62, %v394_v60  ;;  %v409_v56 = vld [vmem:[%s8552_s1 + $0xc00] sm:$0xff]  ;;  %v4100_v60 = vpack.c.bf16 %v1052_v49, %v1050_v48  ;;  %v1051_v62 = vld [vmem:[%s8552_s1 + $0x2010] sm:$0xff] }
 0x15f   :  { %4065 = vmatprep.subr.bf16.mxu0 %v4064_v3  ;;  %v4084_v3 = vpack.c.bf16 %v1036_v50, %v1034_v63  ;;  %v1049_v58 = vld [vmem:[%s8552_s1 + $0x2000] sm:$0xff]  ;;  %v414_v63 = vld [vmem:[%s8552_s1 + $0xc28] sm:$0xff]  ;;  %v416_v50 = vld [vmem:[%s8552_s1 + $0xc38] sm:$0xff] }
 0x160   :  { %v1065_v47 = vld [vmem:[%s8552_s1 + $0x2080] sm:$0xff]  ;;  %v1067_v49 = vld [vmem:[%s8552_s1 + $0x2090] sm:$0xff] }
 0x161   :  { %3427 = vmatpush1.bf16.msra.mxu1 %v3426_v10  ;;  %v3446_v10 = vpack.c.bf16 %v395_v30, %v393_v22 }
 0x162   :  { %4067 = vmatpush1.bf16.msra.mxu0 %v4066_v13  ;;  %3429 = vmatprep.subr.bf16.mxu1 %v3428_v14  ;;  %v4086_v13 = vpack.c.bf16 %v1035_v28, %v1033_v2  ;;  %v3448_v14 = vpack.c.bf16 %v400_v5, %v398_v33  ;;  %v4102_v2 = vpack.c.bf16 %v1051_v62, %v1049_v58  ;;  %v413_v28 = vld [vmem:[%s8552_s1 + $0xc20] sm:$0xff]  ;;  %v415_v33 = vld [vmem:[%s8552_s1 + $0xc30] sm:$0xff] }
 0x163   :  { %4069 = vmatprep.subr.bf16.mxu0 %v4068_v18  ;;  %v4088_v18 = vpack.c.bf16 %v1040_v8, %v1038_v7  ;;  %v1053_v5 = vld [vmem:[%s8552_s1 + $0x2020] sm:$0xff]  ;;  %v1055_v8 = vld [vmem:[%s8552_s1 + $0x2030] sm:$0xff]  ;;  %v4118_v58 = vpack.c.bf16 %v1067_v49, %v1065_v47 }
 0x164   :  { %v429_v62 = vld [vmem:[%s8552_s1 + $0xca0] sm:$0xff] }
 0x165   :  { %3431 = vmatpush1.bf16.msra.mxu1 %v3430_v26  ;;  %v3450_v26 = vpack.c.bf16 %v399_v16, %v397_v15  ;;  %v1058_v15 = vld [vmem:[%s8552_s1 + $0x2048] sm:$0xff]  ;;  %v1060_v16 = vld [vmem:[%s8552_s1 + $0x2058] sm:$0xff]  ;;  %v445_v47 = vld [vmem:[%s8552_s1 + $0xd20] sm:$0xff] }
 0x166   :  { %4071 = vmatpush1.bf16.msra.mxu0 %v4070_v27  ;;  %3433 = vmatprep.subr.bf16.mxu1 %v3432_v29  ;;  %v4090_v27 = vpack.c.bf16 %v1039_v19, %v1037_v17  ;;  %v3452_v29 = vpack.c.bf16 %v404_v21, %v402_v20  ;;  %v4106_v19 = vpack.c.bf16 %v1055_v8, %v1053_v5  ;;  %v419_v21 = vld [vmem:[%s8552_s1 + $0xc50] sm:$0xff]  ;;  %v433_v8 = vld [vmem:[%s8552_s1 + $0xcc0] sm:$0xff] }
 0x167   :  { %4073 = vmatprep.subr.bf16.mxu0 %v4072_v34  ;;  %v4092_v34 = vpack.c.bf16 %v1044_v24, %v1042_v23  ;;  %v1057_v23 = vld [vmem:[%s8552_s1 + $0x2040] sm:$0xff]  ;;  %v4108_v24 = vpack.c.bf16 %v1060_v16, %v1058_v15  ;;  %v1075_v15 = vld [vmem:[%s8552_s1 + $0x20d0] sm:$0xff]  ;;  %v438_v16 = vld [vmem:[%s8552_s1 + $0xce8] sm:$0xff] }
 0x168   :  { %v1085_v49 = vld [vmem:[%s8552_s1 + $0x2120] sm:$0xff] }
 0x169   :  { %3435 = vmatpush1.bf16.msra.mxu1 %v3434_v40  ;;  %v3454_v40 = vpack.c.bf16 %v403_v31, %v401_v59  ;;  %v1064_v59 = vld [vmem:[%s8552_s1 + $0x2078] sm:$0xff] }
 0x16a   :  { %4075 = vmatpush1.bf16.msra.mxu0 %v4074_v9  ;;  %3437 = vmatprep.subr.bf16.mxu1 %v3436_v41  ;;  %v4094_v9 = vpack.c.bf16 %v1043_v35, %v1041_v32  ;;  %v3456_v41 = vpack.c.bf16 %v408_v37, %v406_v36  ;;  %v421_v35 = vld [vmem:[%s8552_s1 + $0xc60] sm:$0xff]  ;;  %v423_v36 = vld [vmem:[%s8552_s1 + $0xc70] sm:$0xff] }
 0x16b   :  { %4077 = vmatprep.subr.bf16.mxu0 %v4076_v44  ;;  %v4096_v44 = vpack.c.bf16 %v1048_v39, %v1046_v38  ;;  %v1061_v37 = vld [vmem:[%s8552_s1 + $0x2060] sm:$0xff]  ;;  %v1063_v39 = vld [vmem:[%s8552_s1 + $0x2070] sm:$0xff] }
 0x16c   :  { %v4114_v43 = vpack.c.bf16 %v1063_v39, %v1061_v37  ;;  %v441_v37 = vld [vmem:[%s8552_s1 + $0xd00] sm:$0xff] }
 0x16d   :  { %3439 = vmatpush1.bf16.msra.mxu1 %v3438_v25  ;;  %v6890_v25 = vld [vmem:[%s8553_s0 + $0x18] sm:$0xff]  ;;  %v1081_v39 = vld [vmem:[%s8552_s1 + $0x2100] sm:$0xff] }
 0x16e   :  { %4079 = vmatpush1.bf16.msra.mxu0 %v4078_v51  ;;  %3441 = vmatprep.subr.bf16.mxu1 %v3440_v52  ;;  %v3458_v51 = vpack.c.bf16 %v407_v12, %v405_v42  ;;  %v6895_v52 = vld [vmem:[%s8553_s0 + $0x40] sm:$0xff]  ;;  %v1068_v42 = vld [vmem:[%s8552_s1 + $0x2098] sm:$0xff]  ;;  %v3474_v12 = vpack.c.bf16 %v423_v36, %v421_v35 }
 0x16f   :  { %4081 = vmatprep.subr.bf16.mxu0 %v4080_v57  ;;  %v411_v57 = vld [vmem:[%s8552_s1 + $0xc10] sm:$0xff]  ;;  %v6927_v22 = vrot.slane %v6895_v52, %v4727_v11 }
 0x170   :  { %v3462_v30 = vpack.c.bf16 %v411_v57, %v409_v56  ;;  %v1072_v56 = vld [vmem:[%s8552_s1 + $0x20b8] sm:$0xff]  ;;  %v3478_v57 = vpack.c.bf16 %v427_v46, %v425_v4 }
 0x171   :  { %3443 = vmatpush1.bf16.msra.mxu1 %v3442_v0  ;;  %v6917_v0 = vrot.slane %v6890_v25, %v4727_v11  ;;  %v1495_v17 = vcombine.high %v6927_v22, %v6927_v22 }
 0x172   :  { %4083 = vmatpush1.bf16.msra.mxu0 %v4082_v1  ;;  %3445 = vmatprep.subr.bf16.mxu1 %v3444_v54  ;;  %v1054_v1 = vld [vmem:[%s8552_s1 + $0x2028] sm:$0xff]  ;;  %v1056_v54 = vld [vmem:[%s8552_s1 + $0x2038] sm:$0xff] }
 0x173   :  { %4085 = vmatprep.subr.bf16.mxu0 %v4084_v3  ;;  %v3464_v3 = vpack.c.bf16 %v416_v50, %v414_v63  ;;  %v4104_v7 = vpack.c.bf16 %v1056_v54, %v1054_v1  ;;  %v431_v63 = vld [vmem:[%s8552_s1 + $0xcb0] sm:$0xff]  ;;  %v1069_v50 = vld [vmem:[%s8552_s1 + $0x20a0] sm:$0xff] }
 0x174   :  { %v1071_v54 = vld [vmem:[%s8552_s1 + $0x20b0] sm:$0xff] }
 0x175   :  { %3447 = vmatpush1.bf16.msra.mxu1 %v3446_v10  ;;  %v418_v10 = vld [vmem:[%s8552_s1 + $0xc48] sm:$0xff]  ;;  %v4122_v5 = vpack.c.bf16 %v1071_v54, %v1069_v50  ;;  %v449_v50 = vld [vmem:[%s8552_s1 + $0xd40] sm:$0xff] }
 0x176   :  { %4087 = vmatpush1.bf16.msra.mxu0 %v4086_v13  ;;  %3449 = vmatprep.subr.bf16.mxu1 %v3448_v14  ;;  %v420_v13 = vld [vmem:[%s8552_s1 + $0xc58] sm:$0xff]  ;;  %v1410_v14 = vcombine.high %v6917_v0, %v6917_v0  ;;  %v1089_v54 = vld [vmem:[%s8552_s1 + $0x2140] sm:$0xff] }
 0x177   :  { %4089 = vmatprep.subr.bf16.mxu0 %v4088_v18  ;;  %v3466_v18 = vpack.c.bf16 %v415_v33, %v413_v28  ;;  %v3468_v20 = vpack.c.bf16 %v420_v13, %v418_v10  ;;  %v1076_v28 = vld [vmem:[%s8552_s1 + $0x20d8] sm:$0xff]  ;;  %v3482_v33 = vpack.c.bf16 %v431_v63, %v429_v62  ;;  %v435_v10 = vld [vmem:[%s8552_s1 + $0xcd0] sm:$0xff]  ;;  %v1073_v13 = vld [vmem:[%s8552_s1 + $0x20c0] sm:$0xff] }
 0x179   :  { %3451 = vmatpush1.bf16.msra.mxu1 %v3450_v26  ;;  %v422_v26 = vld [vmem:[%s8552_s1 + $0xc68] sm:$0xff] }
 0x17a   :  { %4091 = vmatpush1.bf16.msra.mxu0 %v4090_v27  ;;  %3453 = vmatprep.subr.bf16.mxu1 %v3452_v29  ;;  %v424_v27 = vld [vmem:[%s8552_s1 + $0xc78] sm:$0xff]  ;;  %v1062_v29 = vld [vmem:[%s8552_s1 + $0x2068] sm:$0xff] }
 0x17b   :  { %4093 = vmatprep.subr.bf16.mxu0 %v4092_v34  ;;  %v3472_v34 = vpack.c.bf16 %v424_v27, %v422_v26  ;;  %v4112_v38 = vpack.c.bf16 %v1064_v59, %v1062_v29  ;;  %v1079_v27 = vld [vmem:[%s8552_s1 + $0x20f0] sm:$0xff]  ;;  %v442_v29 = vld [vmem:[%s8552_s1 + $0xd08] sm:$0xff]  ;;  %v444_v59 = vld [vmem:[%s8552_s1 + $0xd18] sm:$0xff] }
 0x17c   :  { %v3492_v36 = vpack.c.bf16 %v444_v59, %v442_v29  ;;  %v1099_v59 = vld [vmem:[%s8552_s1 + $0x2190] sm:$0xff] }
 0x17d   :  { %3455 = vmatpush1.bf16.msra.mxu1 %v3454_v40  ;;  %v426_v40 = vld [vmem:[%s8552_s1 + $0xc88] sm:$0xff] }
 0x17e   :  { %4095 = vmatpush1.bf16.msra.mxu0 %v4094_v9  ;;  %3457 = vmatprep.subr.bf16.mxu1 %v3456_v41  ;;  %v428_v9 = vld [vmem:[%s8552_s1 + $0xc98] sm:$0xff]  ;;  %v1066_v41 = vld [vmem:[%s8552_s1 + $0x2088] sm:$0xff] }
 0x17f   :  { %4097 = vmatprep.subr.bf16.mxu0 %v4096_v44  ;;  %v3476_v44 = vpack.c.bf16 %v428_v9, %v426_v40  ;;  %v4116_v48 = vpack.c.bf16 %v1068_v42, %v1066_v41  ;;  %v1083_v9 = vld [vmem:[%s8552_s1 + $0x2110] sm:$0xff]  ;;  %v446_v41 = vld [vmem:[%s8552_s1 + $0xd28] sm:$0xff]  ;;  %v448_v42 = vld [vmem:[%s8552_s1 + $0xd38] sm:$0xff] }
 0x180   :  { %v4134_v4 = vpack.c.bf16 %v1083_v9, %v1081_v39  ;;  %v3496_v46 = vpack.c.bf16 %v448_v42, %v446_v41  ;;  %v461_v39 = vld [vmem:[%s8552_s1 + $0xda0] sm:$0xff]  ;;  %v1103_v42 = vld [vmem:[%s8552_s1 + $0x21b0] sm:$0xff] }
 0x181   :  { %3459 = vmatpush1.bf16.msra.mxu1 %v3458_v51  ;;  %v430_v51 = vld [vmem:[%s8552_s1 + $0xca8] sm:$0xff]  ;;  %v1101_v9 = vld [vmem:[%s8552_s1 + $0x21a0] sm:$0xff] }
 0x182   :  { %4099 = vmatpush1.bf16.msra.mxu0 %v4098_v53  ;;  %3461 = vmatprep.subr.bf16.mxu1 %v3460_v55  ;;  %v432_v53 = vld [vmem:[%s8552_s1 + $0xcb8] sm:$0xff]  ;;  %v1070_v55 = vld [vmem:[%s8552_s1 + $0x20a8] sm:$0xff] }
 0x183   :  { %4101 = vmatprep.subr.bf16.mxu0 %v4100_v60  ;;  %v3480_v60 = vpack.c.bf16 %v432_v53, %v430_v51  ;;  %v4120_v1 = vpack.c.bf16 %v1072_v56, %v1070_v55  ;;  %v1087_v53 = vld [vmem:[%s8552_s1 + $0x2130] sm:$0xff]  ;;  %v450_v55 = vld [vmem:[%s8552_s1 + $0xd48] sm:$0xff]  ;;  %v452_v56 = vld [vmem:[%s8552_s1 + $0xd58] sm:$0xff] }
 0x184   :  { %1984 = vmatmul.mubr.f32.vlgmr.msra.gmra.mrb[0].mxu1 %v6510_v45  ;;  %v417_v45 = vld [vmem:[%s8552_s1 + $0xc40] sm:$0xff]  ;;  %v4138_v62 = vpack.c.bf16 %v1087_v53, %v1085_v49  ;;  %v3500_v63 = vpack.c.bf16 %v452_v56, %v450_v55  ;;  %v1107_v56 = vld [vmem:[%s8552_s1 + $0x21d0] sm:$0xff] }
 0x185   :  { %3463 = vmatpush1.bf16.msra.mxu1 %v3462_v30  ;;  %2694 = vmatmul.mubr.f32.vlgmr.msra.gmra.mrb[0].mxu0 %v6519_v6  ;;  %v1059_v6 = vld [vmem:[%s8552_s1 + $0x2050] sm:$0xff]  ;;  %v3470_v31 = vpack.c.bf16 %v419_v21, %v417_v45  ;;  %v434_v30 = vld [vmem:[%s8552_s1 + $0xcc8] sm:$0xff]  ;;  %v4126_v45 = vpack.c.bf16 %v1075_v15, %v1073_v13  ;;  %v453_v13 = vld [vmem:[%s8552_s1 + $0xd60] sm:$0xff] }
 0x186   :  { %4103 = vmatpush1.bf16.msra.mxu0 %v4102_v2  ;;  %3465 = vmatprep.subr.bf16.mxu1 %v3464_v3  ;;  %v4110_v32 = vpack.c.bf16 %v1059_v6, %v1057_v23  ;;  %v436_v2 = vld [vmem:[%s8552_s1 + $0xcd8] sm:$0xff]  ;;  %v1074_v3 = vld [vmem:[%s8552_s1 + $0x20c8] sm:$0xff]  ;;  %v437_v23 = vld [vmem:[%s8552_s1 + $0xce0] sm:$0xff] }
 0x187   :  { %4105 = vmatprep.subr.bf16.mxu0 %v4104_v7  ;;  %2054 = vmatprep.mubr.f32.mxu1 %v1410_v14  ;;  %v3484_v7 = vpack.c.bf16 %v436_v2, %v434_v30  ;;  %v4124_v14 = vpack.c.bf16 %v1076_v28, %v1074_v3  ;;  %v1077_v6 = vld [vmem:[%s8552_s1 + $0x20e0] sm:$0xff]  ;;  %v1091_v2 = vld [vmem:[%s8552_s1 + $0x2150] sm:$0xff]  ;;  %v454_v3 = vld [vmem:[%s8552_s1 + $0xd68] sm:$0xff] }
 0x188   :  { %2764 = vmatprep.mubr.f32.mxu0 %v1495_v17  ;;  %v440_v17 = vld [vmem:[%s8552_s1 + $0xcf8] sm:$0xff]  ;;  %v4130_v35 = vpack.c.bf16 %v1079_v27, %v1077_v6  ;;  %v1093_v15 = vld [vmem:[%s8552_s1 + $0x2160] sm:$0xff] }
 0x189   :  { %3467 = vmatpush1.bf16.msra.mxu1 %v3466_v18  ;;  %v1078_v18 = vld [vmem:[%s8552_s1 + $0x20e8] sm:$0xff]  ;;  %v3488_v21 = vpack.c.bf16 %v440_v17, %v438_v16  ;;  %v456_v28 = vld [vmem:[%s8552_s1 + $0xd78] sm:$0xff]  ;;  %v1095_v17 = vld [vmem:[%s8552_s1 + $0x2170] sm:$0xff] }
 0x18a   :  { %4107 = vmatpush1.bf16.msra.mxu0 %v4106_v19  ;;  %3469 = vmatprep.subr.bf16.mxu1 %v3468_v20  ;;  %v1080_v19 = vld [vmem:[%s8552_s1 + $0x20f8] sm:$0xff]  ;;  %v3486_v20 = vpack.c.bf16 %v435_v10, %v433_v8  ;;  %v4142_v8 = vpack.c.bf16 %v1091_v2, %v1089_v54  ;;  %v3504_v10 = vpack.c.bf16 %v456_v28, %v454_v3  ;;  %v457_v6 = vld [vmem:[%s8552_s1 + $0xd80] sm:$0xff]  ;;  %v1111_v28 = vld [vmem:[%s8552_s1 + $0x21f0] sm:$0xff] }
 0x18b   :  { %4109 = vmatprep.subr.bf16.mxu0 %v4108_v24  ;;  %v439_v24 = vld [vmem:[%s8552_s1 + $0xcf0] sm:$0xff]  ;;  %v4128_v26 = vpack.c.bf16 %v1080_v19, %v1078_v18  ;;  %v458_v18 = vld [vmem:[%s8552_s1 + $0xd88] sm:$0xff]  ;;  %v460_v19 = vld [vmem:[%s8552_s1 + $0xd98] sm:$0xff] }
 0x18c   :  { %v1097_v27 = vld [vmem:[%s8552_s1 + $0x2180] sm:$0xff] }
 0x18d   :  { %3471 = vmatpush1.bf16.msra.mxu1 %v3470_v31  ;;  %v1082_v31 = vld [vmem:[%s8552_s1 + $0x2108] sm:$0xff]  ;;  %v465_v49 = vld [vmem:[%s8552_s1 + $0xdc0] sm:$0xff] }
 0x18e   :  { %4111 = vmatpush1.bf16.msra.mxu0 %v4110_v32  ;;  %3473 = vmatprep.subr.bf16.mxu1 %v3472_v34  ;;  %v1084_v32 = vld [vmem:[%s8552_s1 + $0x2118] sm:$0xff]  ;;  %v3490_v34 = vpack.c.bf16 %v439_v24, %v437_v23  ;;  %v4146_v23 = vpack.c.bf16 %v1095_v17, %v1093_v15  ;;  %v3508_v24 = vpack.c.bf16 %v460_v19, %v458_v18  ;;  %v1105_v53 = vld [vmem:[%s8552_s1 + $0x21c0] sm:$0xff]  ;;  %v475_v17 = vld [vmem:[%s8552_s1 + $0xe10] sm:$0xff] }
 0x18f   :  { %4113 = vmatprep.subr.bf16.mxu0 %v4112_v38  ;;  %v443_v38 = vld [vmem:[%s8552_s1 + $0xd10] sm:$0xff]  ;;  %v4132_v40 = vpack.c.bf16 %v1084_v32, %v1082_v31  ;;  %v462_v31 = vld [vmem:[%s8552_s1 + $0xda8] sm:$0xff]  ;;  %v464_v32 = vld [vmem:[%s8552_s1 + $0xdb8] sm:$0xff] }
 0x190   :  { %v469_v54 = vld [vmem:[%s8552_s1 + $0xde0] sm:$0xff]  ;;  %v1115_v19 = vld [vmem:[%s8552_s1 + $0x2210] sm:$0xff] }
 0x191   :  { %3475 = vmatpush1.bf16.msra.mxu1 %v3474_v12  ;;  %v1086_v12 = vld [vmem:[%s8552_s1 + $0x2128] sm:$0xff]  ;;  %v1109_v2 = vld [vmem:[%s8552_s1 + $0x21e0] sm:$0xff] }
 0x192   :  { %4115 = vmatpush1.bf16.msra.mxu0 %v4114_v43  ;;  %3477 = vmatprep.subr.bf16.mxu1 %v3476_v44  ;;  %v1088_v43 = vld [vmem:[%s8552_s1 + $0x2138] sm:$0xff]  ;;  %v3494_v44 = vpack.c.bf16 %v443_v38, %v441_v37  ;;  %v4150_v37 = vpack.c.bf16 %v1099_v59, %v1097_v27  ;;  %v3512_v38 = vpack.c.bf16 %v464_v32, %v462_v31  ;;  %v1113_v18 = vld [vmem:[%s8552_s1 + $0x2200] sm:$0xff]  ;;  %v479_v31 = vld [vmem:[%s8552_s1 + $0xe30] sm:$0xff] }
 0x193   :  { %4117 = vmatprep.subr.bf16.mxu0 %v4116_v48  ;;  %v447_v48 = vld [vmem:[%s8552_s1 + $0xd30] sm:$0xff]  ;;  %v4136_v51 = vpack.c.bf16 %v1088_v43, %v1086_v12  ;;  %v466_v12 = vld [vmem:[%s8552_s1 + $0xdc8] sm:$0xff]  ;;  %v468_v43 = vld [vmem:[%s8552_s1 + $0xdd8] sm:$0xff]  ;;  %v4162_v15 = vpack.c.bf16 %v1111_v28, %v1109_v2  ;;  %v4166_v27 = vpack.c.bf16 %v1115_v19, %v1113_v18 }
 0x194   :  { %v477_v59 = vld [vmem:[%s8552_s1 + $0xe20] sm:$0xff] }
 0x195   :  { %3479 = vmatpush1.bf16.msra.mxu1 %v3478_v57  ;;  %v1090_v57 = vld [vmem:[%s8552_s1 + $0x2148] sm:$0xff]  ;;  %v1117_v32 = vld [vmem:[%s8552_s1 + $0x2220] sm:$0xff] }
 0x196   :  { %4119 = vmatpush1.bf16.msra.mxu0 %v4118_v58  ;;  %3481 = vmatprep.subr.bf16.mxu1 %v3480_v60  ;;  %v1092_v58 = vld [vmem:[%s8552_s1 + $0x2158] sm:$0xff]  ;;  %v3498_v60 = vpack.c.bf16 %v447_v48, %v445_v47  ;;  %v4154_v47 = vpack.c.bf16 %v1103_v42, %v1101_v9  ;;  %v3516_v48 = vpack.c.bf16 %v468_v43, %v466_v12  ;;  %v483_v43 = vld [vmem:[%s8552_s1 + $0xe50] sm:$0xff]  ;;  %v489_v28 = vld [vmem:[%s8552_s1 + $0xe80] sm:$0xff] }
 0x197   :  { %4121 = vmatprep.subr.bf16.mxu0 %v4120_v1  ;;  %v451_v1 = vld [vmem:[%s8552_s1 + $0xd50] sm:$0xff]  ;;  %v4140_v30 = vpack.c.bf16 %v1092_v58, %v1090_v57  ;;  %v470_v57 = vld [vmem:[%s8552_s1 + $0xde8] sm:$0xff]  ;;  %v472_v58 = vld [vmem:[%s8552_s1 + $0xdf8] sm:$0xff] }
 0x198   :  { %v493_v18 = vld [vmem:[%s8552_s1 + $0xea0] sm:$0xff] }
 0x199   :  { %3483 = vmatpush1.bf16.msra.mxu1 %v3482_v33  ;;  %v1094_v33 = vld [vmem:[%s8552_s1 + $0x2168] sm:$0xff]  ;;  %v1133_v19 = vld [vmem:[%s8552_s1 + $0x22a0] sm:$0xff] }
 0x19a   :  { %4123 = vmatpush1.bf16.msra.mxu0 %v4122_v5  ;;  %3485 = vmatprep.subr.bf16.mxu1 %v3484_v7  ;;  %v1096_v5 = vld [vmem:[%s8552_s1 + $0x2178] sm:$0xff]  ;;  %v3502_v7 = vpack.c.bf16 %v451_v1, %v449_v50  ;;  %v4158_v50 = vpack.c.bf16 %v1107_v56, %v1105_v53  ;;  %v3520_v1 = vpack.c.bf16 %v472_v58, %v470_v57  ;;  %v485_v56 = vld [vmem:[%s8552_s1 + $0xe60] sm:$0xff]  ;;  %v487_v57 = vld [vmem:[%s8552_s1 + $0xe70] sm:$0xff] }
 0x19b   :  { %4125 = vmatprep.subr.bf16.mxu0 %v4124_v14  ;;  %v455_v14 = vld [vmem:[%s8552_s1 + $0xd70] sm:$0xff]  ;;  %v4144_v16 = vpack.c.bf16 %v1096_v5, %v1094_v33  ;;  %v474_v33 = vld [vmem:[%s8552_s1 + $0xe08] sm:$0xff]  ;;  %v476_v5 = vld [vmem:[%s8552_s1 + $0xe18] sm:$0xff] }
 0x19c   :  { %v1125_v58 = vld [vmem:[%s8552_s1 + $0x2260] sm:$0xff] }
 0x19d   :  { %3487 = vmatpush1.bf16.msra.mxu1 %v3486_v20  ;;  %v1098_v20 = vld [vmem:[%s8552_s1 + $0x2188] sm:$0xff] }
 0x19e   :  { %4127 = vmatpush1.bf16.msra.mxu0 %v4126_v45  ;;  %3489 = vmatprep.subr.bf16.mxu1 %v3488_v21  ;;  %v1100_v45 = vld [vmem:[%s8552_s1 + $0x2198] sm:$0xff]  ;;  %v3506_v21 = vpack.c.bf16 %v455_v14, %v453_v13  ;;  %v1480_v13 = vcombine.high %v6895_v52, %v6895_v52 }
 0x19f   :  { %4129 = vmatprep.subr.bf16.mxu0 %v4128_v26  ;;  %v459_v26 = vld [vmem:[%s8552_s1 + $0xd90] sm:$0xff]  ;;  %v4148_v29 = vpack.c.bf16 %v1100_v45, %v1098_v20  ;;  %v478_v20 = vld [vmem:[%s8552_s1 + $0xe28] sm:$0xff]  ;;  %v480_v45 = vld [vmem:[%s8552_s1 + $0xe38] sm:$0xff] }
 0x1a1   :  { %3491 = vmatpush1.bf16.msra.mxu1 %v3490_v34  ;;  %v1102_v34 = vld [vmem:[%s8552_s1 + $0x21a8] sm:$0xff] }
 0x1a2   :  { %4131 = vmatpush1.bf16.msra.mxu0 %v4130_v35  ;;  %3493 = vmatprep.subr.bf16.mxu1 %v3492_v36  ;;  %v1104_v35 = vld [vmem:[%s8552_s1 + $0x21b8] sm:$0xff]  ;;  %v3510_v36 = vpack.c.bf16 %v459_v26, %v457_v6  ;;  %v7327_v6 = vrot.slane %v1480_v13, %v4727_v11 }
 0x1a3   :  { %4133 = vmatprep.subr.bf16.mxu0 %v4132_v40  ;;  %v463_v40 = vld [vmem:[%s8552_s1 + $0xdb0] sm:$0xff]  ;;  %v4152_v41 = vpack.c.bf16 %v1104_v35, %v1102_v34  ;;  %v496_v13 = vld [vmem:[%s8552_s1 + $0xeb8] sm:$0xff] }
 0x1a4   :  { %v1119_v35 = vld [vmem:[%s8552_s1 + $0x2230] sm:$0xff]  ;;  %v1496_v9 = vcombine.high %v7327_v6, %v7327_v6 }
 0x1a5   :  { %3495 = vmatpush1.bf16.msra.mxu1 %v3494_v44  ;;  %v1106_v44 = vld [vmem:[%s8552_s1 + $0x21c8] sm:$0xff]  ;;  %v4170_v42 = vpack.c.bf16 %v1119_v35, %v1117_v32  ;;  %v497_v32 = vld [vmem:[%s8552_s1 + $0xec0] sm:$0xff] }
 0x1a6   :  { %4135 = vmatpush1.bf16.msra.mxu0 %v4134_v4  ;;  %3497 = vmatprep.subr.bf16.mxu1 %v3496_v46  ;;  %v1108_v4 = vld [vmem:[%s8552_s1 + $0x21d8] sm:$0xff]  ;;  %v3514_v46 = vpack.c.bf16 %v463_v40, %v461_v39  ;;  %v1122_v39 = vld [vmem:[%s8552_s1 + $0x2248] sm:$0xff]  ;;  %v1137_v35 = vld [vmem:[%s8552_s1 + $0x22c0] sm:$0xff] }
 0x1a7   :  { %4137 = vmatprep.subr.bf16.mxu0 %v4136_v51  ;;  %v467_v51 = vld [vmem:[%s8552_s1 + $0xdd0] sm:$0xff]  ;;  %v4156_v55 = vpack.c.bf16 %v1108_v4, %v1106_v44  ;;  %v1124_v40 = vld [vmem:[%s8552_s1 + $0x2258] sm:$0xff]  ;;  %v1121_v44 = vld [vmem:[%s8552_s1 + $0x2240] sm:$0xff] }
 0x1a8   :  { %v4172_v4 = vpack.c.bf16 %v1124_v40, %v1122_v39  ;;  %v504_v39 = vld [vmem:[%s8552_s1 + $0xef8] sm:$0xff]  ;;  %v1142_v40 = vld [vmem:[%s8552_s1 + $0x22e8] sm:$0xff] }
 0x1a9   :  { %3499 = vmatpush1.bf16.msra.mxu1 %v3498_v60  ;;  %v1110_v60 = vld [vmem:[%s8552_s1 + $0x21e8] sm:$0xff] }
 0x1aa   :  { %4139 = vmatpush1.bf16.msra.mxu0 %v4138_v62  ;;  %3501 = vmatprep.subr.bf16.mxu1 %v3500_v63  ;;  %v1112_v62 = vld [vmem:[%s8552_s1 + $0x21f8] sm:$0xff]  ;;  %v3518_v63 = vpack.c.bf16 %v467_v51, %v465_v49 }
 0x1ab   :  { %4141 = vmatprep.subr.bf16.mxu0 %v4140_v30  ;;  %v471_v30 = vld [vmem:[%s8552_s1 + $0xdf0] sm:$0xff]  ;;  %v4160_v3 = vpack.c.bf16 %v1112_v62, %v1110_v60  ;;  %v1128_v49 = vld [vmem:[%s8552_s1 + $0x2278] sm:$0xff] }
 0x1ac   :  { %v3522_v14 = vpack.c.bf16 %v471_v30, %v469_v54  ;;  %v1127_v62 = vld [vmem:[%s8552_s1 + $0x2270] sm:$0xff]  ;;  %v1132_v54 = vld [vmem:[%s8552_s1 + $0x2298] sm:$0xff]  ;;  %v3538_v30 = vpack.c.bf16 %v487_v57, %v485_v56  ;;  %v505_v56 = vld [vmem:[%s8552_s1 + $0xf00] sm:$0xff] }
 0x1ad   :  { %3503 = vmatpush1.bf16.msra.mxu1 %v3502_v7  ;;  %v1395_v7 = vcombine.high %v6890_v25, %v6890_v25  ;;  %v473_v25 = vld [vmem:[%s8552_s1 + $0xe00] sm:$0xff]  ;;  %v4178_v2 = vpack.c.bf16 %v1127_v62, %v1125_v58  ;;  %v507_v57 = vld [vmem:[%s8552_s1 + $0xf10] sm:$0xff] }
 0x1ae   :  { %4143 = vmatpush1.bf16.msra.mxu0 %v4142_v8  ;;  %3505 = vmatprep.subr.bf16.mxu1 %v3504_v10  ;;  %v1114_v8 = vld [vmem:[%s8552_s1 + $0x2208] sm:$0xff]  ;;  %v1116_v10 = vld [vmem:[%s8552_s1 + $0x2218] sm:$0xff]  ;;  %v3526_v26 = vpack.c.bf16 %v475_v17, %v473_v25  ;;  %v1145_v58 = vld [vmem:[%s8552_s1 + $0x2300] sm:$0xff] }
 0x1af   :  { %4145 = vmatprep.subr.bf16.mxu0 %v4144_v16  ;;  %v3524_v16 = vpack.c.bf16 %v476_v5, %v474_v33  ;;  %v4164_v52 = vpack.c.bf16 %v1116_v10, %v1114_v8  ;;  %v491_v33 = vld [vmem:[%s8552_s1 + $0xe90] sm:$0xff]  ;;  %v1129_v5 = vld [vmem:[%s8552_s1 + $0x2280] sm:$0xff]  ;;  %v494_v10 = vld [vmem:[%s8552_s1 + $0xea8] sm:$0xff] }
 0x1b0   :  { %v1131_v8 = vld [vmem:[%s8552_s1 + $0x2290] sm:$0xff]  ;;  %v3544_v17 = vpack.c.bf16 %v496_v13, %v494_v10  ;;  %v514_v10 = vld [vmem:[%s8552_s1 + $0xf48] sm:$0xff]  ;;  %v516_v13 = vld [vmem:[%s8552_s1 + $0xf58] sm:$0xff] }
 0x1b1   :  { %3507 = vmatpush1.bf16.msra.mxu1 %v3506_v21  ;;  %v7318_v21 = vrot.slane %v1395_v7, %v4727_v11  ;;  %v4182_v25 = vpack.c.bf16 %v1131_v8, %v1129_v5  ;;  %v1147_v62 = vld [vmem:[%s8552_s1 + $0x2310] sm:$0xff]  ;;  %v1149_v5 = vld [vmem:[%s8552_s1 + $0x2320] sm:$0xff] }
 0x1b2   :  { %4147 = vmatpush1.bf16.msra.mxu0 %v4146_v23  ;;  %3509 = vmatprep.subr.bf16.mxu1 %v3508_v24  ;;  %v1118_v23 = vld [vmem:[%s8552_s1 + $0x2228] sm:$0xff]  ;;  %v1120_v24 = vld [vmem:[%s8552_s1 + $0x2238] sm:$0xff]  ;;  %v1151_v8 = vld [vmem:[%s8552_s1 + $0x2330] sm:$0xff] }
 0x1b3   :  { %4149 = vmatprep.subr.bf16.mxu0 %v4148_v29  ;;  %v3528_v29 = vpack.c.bf16 %v480_v45, %v478_v20  ;;  %v4168_v34 = vpack.c.bf16 %v1120_v24, %v1118_v23  ;;  %v1135_v45 = vld [vmem:[%s8552_s1 + $0x22b0] sm:$0xff]  ;;  %v498_v23 = vld [vmem:[%s8552_s1 + $0xec8] sm:$0xff]  ;;  %v500_v24 = vld [vmem:[%s8552_s1 + $0xed8] sm:$0xff] }
 0x1b5   :  { %3511 = vmatpush1.bf16.msra.mxu1 %v3510_v36  ;;  %v482_v36 = vld [vmem:[%s8552_s1 + $0xe48] sm:$0xff] }
 0x1b6   :  { %4151 = vmatpush1.bf16.msra.mxu0 %v4150_v37  ;;  %3513 = vmatprep.subr.bf16.mxu1 %v3512_v38  ;;  %v484_v37 = vld [vmem:[%s8552_s1 + $0xe58] sm:$0xff]  ;;  %v1411_v38 = vcombine.high %v7318_v21, %v7318_v21 }
 0x1b7   :  { %4153 = vmatprep.subr.bf16.mxu0 %v4152_v41  ;;  %v3530_v41 = vpack.c.bf16 %v479_v31, %v477_v59  ;;  %v3532_v12 = vpack.c.bf16 %v484_v37, %v482_v36  ;;  %v4186_v59 = vpack.c.bf16 %v1135_v45, %v1133_v19  ;;  %v3548_v31 = vpack.c.bf16 %v500_v24, %v498_v23  ;;  %v1139_v37 = vld [vmem:[%s8552_s1 + $0x22d0] sm:$0xff]  ;;  %v1153_v19 = vld [vmem:[%s8552_s1 + $0x2340] sm:$0xff]  ;;  %v518_v23 = vld [vmem:[%s8552_s1 + $0xf68] sm:$0xff] }
 0x1b8   :  { %v1155_v45 = vld [vmem:[%s8552_s1 + $0x2350] sm:$0xff]  ;;  %v520_v24 = vld [vmem:[%s8552_s1 + $0xf78] sm:$0xff] }
 0x1b9   :  { %3515 = vmatpush1.bf16.msra.mxu1 %v3514_v46  ;;  %v486_v46 = vld [vmem:[%s8552_s1 + $0xe68] sm:$0xff] }
 0x1ba   :  { %4155 = vmatpush1.bf16.msra.mxu0 %v4154_v47  ;;  %3517 = vmatprep.subr.bf16.mxu1 %v3516_v48  ;;  %v488_v47 = vld [vmem:[%s8552_s1 + $0xe78] sm:$0xff]  ;;  %v1126_v48 = vld [vmem:[%s8552_s1 + $0x2268] sm:$0xff] }
 0x1bb   :  { %4157 = vmatprep.subr.bf16.mxu0 %v4156_v55  ;;  %v3536_v55 = vpack.c.bf16 %v488_v47, %v486_v46  ;;  %v4176_v60 = vpack.c.bf16 %v1128_v49, %v1126_v48  ;;  %v506_v46 = vld [vmem:[%s8552_s1 + $0xf08] sm:$0xff]  ;;  %v508_v47 = vld [vmem:[%s8552_s1 + $0xf18] sm:$0xff] }
 0x1bc   :  { %v1146_v48 = vld [vmem:[%s8552_s1 + $0x2308] sm:$0xff]  ;;  %v1148_v49 = vld [vmem:[%s8552_s1 + $0x2318] sm:$0xff] }
 0x1bd   :  { %3519 = vmatpush1.bf16.msra.mxu1 %v3518_v63  ;;  %v490_v63 = vld [vmem:[%s8552_s1 + $0xe88] sm:$0xff] }
 0x1be   :  { %4159 = vmatpush1.bf16.msra.mxu0 %v4158_v50  ;;  %3521 = vmatprep.subr.bf16.mxu1 %v3520_v1  ;;  %v492_v50 = vld [vmem:[%s8552_s1 + $0xe98] sm:$0xff]  ;;  %v1130_v1 = vld [vmem:[%s8552_s1 + $0x2288] sm:$0xff] }
 0x1bf   :  { %4161 = vmatprep.subr.bf16.mxu0 %v4160_v3  ;;  %v3540_v3 = vpack.c.bf16 %v492_v50, %v490_v63  ;;  %v4180_v7 = vpack.c.bf16 %v1132_v54, %v1130_v1  ;;  %v510_v63 = vld [vmem:[%s8552_s1 + $0xf28] sm:$0xff]  ;;  %v512_v50 = vld [vmem:[%s8552_s1 + $0xf38] sm:$0xff] }
 0x1c0   :  { %v1150_v1 = vld [vmem:[%s8552_s1 + $0x2328] sm:$0xff]  ;;  %v1152_v54 = vld [vmem:[%s8552_s1 + $0x2338] sm:$0xff] }
 0x1c1   :  { %3523 = vmatpush1.bf16.msra.mxu1 %v3522_v14  ;;  %v1134_v14 = vld [vmem:[%s8552_s1 + $0x22a8] sm:$0xff] }
 0x1c2   :  { %4163 = vmatpush1.bf16.msra.mxu0 %v4162_v15  ;;  %3525 = vmatprep.subr.bf16.mxu1 %v3524_v16  ;;  %v1136_v15 = vld [vmem:[%s8552_s1 + $0x22b8] sm:$0xff]  ;;  %v3542_v16 = vpack.c.bf16 %v491_v33, %v489_v28  ;;  %v509_v28 = vld [vmem:[%s8552_s1 + $0xf20] sm:$0xff]  ;;  %v511_v33 = vld [vmem:[%s8552_s1 + $0xf30] sm:$0xff] }
 0x1c3   :  { %4165 = vmatprep.subr.bf16.mxu0 %v4164_v52  ;;  %v495_v52 = vld [vmem:[%s8552_s1 + $0xeb0] sm:$0xff]  ;;  %v4184_v20 = vpack.c.bf16 %v1136_v15, %v1134_v14  ;;  %v1154_v14 = vld [vmem:[%s8552_s1 + $0x2348] sm:$0xff]  ;;  %v1156_v15 = vld [vmem:[%s8552_s1 + $0x2358] sm:$0xff] }
 0x1c4   :  { %2055 = vmatmul.mubr.f32.vlgmr.msra.gmra.mrb[0].mxu1 %v6917_v0  ;;  %v481_v0 = vld [vmem:[%s8552_s1 + $0xe40] sm:$0xff] }
 0x1c5   :  { %3527 = vmatpush1.bf16.msra.mxu1 %v3526_v26  ;;  %2765 = vmatmul.mubr.f32.vlgmr.msra.gmra.mrb[0].mxu0 %v6927_v22  ;;  %v1123_v22 = vld [vmem:[%s8552_s1 + $0x2250] sm:$0xff]  ;;  %v3534_v51 = vpack.c.bf16 %v483_v43, %v481_v0  ;;  %v1138_v26 = vld [vmem:[%s8552_s1 + $0x22c8] sm:$0xff]  ;;  %v501_v0 = vld [vmem:[%s8552_s1 + $0xee0] sm:$0xff] }
 0x1c6   :  { %4167 = vmatpush1.bf16.msra.mxu0 %v4166_v27  ;;  %3529 = vmatprep.subr.bf16.mxu1 %v3528_v29  ;;  %v4174_v53 = vpack.c.bf16 %v1123_v22, %v1121_v44  ;;  %v1140_v27 = vld [vmem:[%s8552_s1 + $0x22d8] sm:$0xff]  ;;  %v3546_v29 = vpack.c.bf16 %v495_v52, %v493_v18  ;;  %v503_v43 = vld [vmem:[%s8552_s1 + $0xef0] sm:$0xff]  ;;  %v1141_v44 = vld [vmem:[%s8552_s1 + $0x22e0] sm:$0xff] }
 0x1c7   :  { %4169 = vmatprep.subr.bf16.mxu0 %v4168_v34  ;;  %2125 = vmatprep.mubr.f32.mxu1 %v1411_v38  ;;  %v499_v34 = vld [vmem:[%s8552_s1 + $0xed0] sm:$0xff]  ;;  %v4188_v36 = vpack.c.bf16 %v1140_v27, %v1138_v26  ;;  %v502_v38 = vld [vmem:[%s8552_s1 + $0xee8] sm:$0xff]  ;;  %v513_v18 = vld [vmem:[%s8552_s1 + $0xf40] sm:$0xff] }
 0x1c8   :  { %2835 = vmatprep.mubr.f32.mxu0 %v1496_v9  ;;  %v1144_v9 = vld [vmem:[%s8552_s1 + $0x22f8] sm:$0xff]  ;;  %v1143_v22 = vld [vmem:[%s8552_s1 + $0x22f0] sm:$0xff]  ;;  %v1158_v26 = vld [vmem:[%s8552_s1 + $0x2368] sm:$0xff] }
 0x1c9   :  { %3531 = vmatpush1.bf16.msra.mxu1 %v3530_v41  ;;  %v3550_v41 = vpack.c.bf16 %v499_v34, %v497_v32  ;;  %v515_v52 = vld [vmem:[%s8552_s1 + $0xf50] sm:$0xff]  ;;  %v1160_v27 = vld [vmem:[%s8552_s1 + $0x2378] sm:$0xff]  ;;  %v517_v32 = vld [vmem:[%s8552_s1 + $0xf60] sm:$0xff] }
 0x1ca   :  { %4171 = vmatpush1.bf16.msra.mxu0 %v4170_v42  ;;  %3533 = vmatprep.subr.bf16.mxu1 %v3532_v12  ;;  %v4190_v42 = vpack.c.bf16 %v1139_v37, %v1137_v35  ;;  %v3552_v12 = vpack.c.bf16 %v504_v39, %v502_v38  ;;  %v519_v34 = vld [vmem:[%s8552_s1 + $0xf70] sm:$0xff]  ;;  %v1157_v35 = vld [vmem:[%s8552_s1 + $0x2360] sm:$0xff]  ;;  %v522_v38 = vld [vmem:[%s8552_s1 + $0xf88] sm:$0xff] }
 0x1cb   :  { %4173 = vmatprep.subr.bf16.mxu0 %v4172_v4  ;;  %v4192_v4 = vpack.c.bf16 %v1144_v9, %v1142_v40  ;;  %v1159_v37 = vld [vmem:[%s8552_s1 + $0x2370] sm:$0xff]  ;;  %v524_v39 = vld [vmem:[%s8552_s1 + $0xf98] sm:$0xff]  ;;  %v1162_v40 = vld [vmem:[%s8552_s1 + $0x2388] sm:$0xff] }
 0x1cc   :  { %v1164_v9 = vld [vmem:[%s8552_s1 + $0x2398] sm:$0xff] }
 0x1cd   :  { %3535 = vmatpush1.bf16.msra.mxu1 %v3534_v51  ;;  %v3554_v51 = vpack.c.bf16 %v503_v43, %v501_v0  ;;  %v521_v0 = vld [vmem:[%s8552_s1 + $0xf80] sm:$0xff]  ;;  %v523_v43 = vld [vmem:[%s8552_s1 + $0xf90] sm:$0xff] }
 0x1ce   :  { %4175 = vmatpush1.bf16.msra.mxu0 %v4174_v53  ;;  %3537 = vmatprep.subr.bf16.mxu1 %v3536_v55  ;;  %v4194_v53 = vpack.c.bf16 %v1143_v22, %v1141_v44  ;;  %v3556_v55 = vpack.c.bf16 %v508_v47, %v506_v46  ;;  %v1161_v44 = vld [vmem:[%s8552_s1 + $0x2380] sm:$0xff]  ;;  %v1163_v22 = vld [vmem:[%s8552_s1 + $0x2390] sm:$0xff]  ;;  %v526_v46 = vld [vmem:[%s8552_s1 + $0xfa8] sm:$0xff] }
 0x1cf   :  { %4177 = vmatprep.subr.bf16.mxu0 %v4176_v60  ;;  %v4196_v60 = vpack.c.bf16 %v1148_v49, %v1146_v48  ;;  %v528_v47 = vld [vmem:[%s8552_s1 + $0xfb8] sm:$0xff]  ;;  %v1166_v48 = vld [vmem:[%s8552_s1 + $0x23a8] sm:$0xff] }
 0x1d0   :  { %v1168_v49 = vld [vmem:[%s8552_s1 + $0x23b8] sm:$0xff] }
 0x1d1   :  { %3539 = vmatpush1.bf16.msra.mxu1 %v3538_v30  ;;  %v3558_v30 = vpack.c.bf16 %v507_v57, %v505_v56  ;;  %v525_v56 = vld [vmem:[%s8552_s1 + $0xfa0] sm:$0xff]  ;;  %v527_v57 = vld [vmem:[%s8552_s1 + $0xfb0] sm:$0xff] }
 0x1d2   :  { %4179 = vmatpush1.bf16.msra.mxu0 %v4178_v2  ;;  %3541 = vmatprep.subr.bf16.mxu1 %v3540_v3  ;;  %v4198_v2 = vpack.c.bf16 %v1147_v62, %v1145_v58  ;;  %v3560_v3 = vpack.c.bf16 %v512_v50, %v510_v63  ;;  %v1165_v58 = vld [vmem:[%s8552_s1 + $0x23a0] sm:$0xff]  ;;  %v1167_v62 = vld [vmem:[%s8552_s1 + $0x23b0] sm:$0xff]  ;;  %v530_v63 = vld [vmem:[%s8552_s1 + $0xfc8] sm:$0xff] }
 0x1d3   :  { %4181 = vmatprep.subr.bf16.mxu0 %v4180_v7  ;;  %v4200_v7 = vpack.c.bf16 %v1152_v54, %v1150_v1  ;;  %v532_v50 = vld [vmem:[%s8552_s1 + $0xfd8] sm:$0xff]  ;;  %v1170_v1 = vld [vmem:[%s8552_s1 + $0x23c8] sm:$0xff] }
 0x1d4   :  { %v1172_v54 = vld [vmem:[%s8552_s1 + $0x23d8] sm:$0xff] }
 0x1d5   :  { %3543 = vmatpush1.bf16.msra.mxu1 %v3542_v16  ;;  %v3562_v16 = vpack.c.bf16 %v511_v33, %v509_v28  ;;  %v529_v28 = vld [vmem:[%s8552_s1 + $0xfc0] sm:$0xff]  ;;  %v531_v33 = vld [vmem:[%s8552_s1 + $0xfd0] sm:$0xff] }
 0x1d6   :  { %4183 = vmatpush1.bf16.msra.mxu0 %v4182_v25  ;;  %3545 = vmatprep.subr.bf16.mxu1 %v3544_v17  ;;  %v4202_v25 = vpack.c.bf16 %v1151_v8, %v1149_v5  ;;  %v3564_v17 = vpack.c.bf16 %v516_v13, %v514_v10  ;;  %v1169_v5 = vld [vmem:[%s8552_s1 + $0x23c0] sm:$0xff]  ;;  %v1171_v8 = vld [vmem:[%s8552_s1 + $0x23d0] sm:$0xff]  ;;  %v534_v10 = vld [vmem:[%s8552_s1 + $0xfe8] sm:$0xff] }
 0x1d7   :  { %4185 = vmatprep.subr.bf16.mxu0 %v4184_v20  ;;  %v4204_v20 = vpack.c.bf16 %v1156_v15, %v1154_v14  ;;  %v536_v13 = vld [vmem:[%s8552_s1 + $0xff8] sm:$0xff]  ;;  %v1174_v14 = vld [vmem:[%s8552_s1 + $0x23e8] sm:$0xff] }
 0x1d8   :  { %v1176_v15 = vld [vmem:[%s8552_s1 + $0x23f8] sm:$0xff] }
 0x1d9   :  { %3547 = vmatpush1.bf16.msra.mxu1 %v3546_v29  ;;  %v3566_v29 = vpack.c.bf16 %v515_v52, %v513_v18  ;;  %v533_v18 = vld [vmem:[%s8552_s1 + $0xfe0] sm:$0xff]  ;;  %v535_v52 = vld [vmem:[%s8552_s1 + $0xff0] sm:$0xff] }
 0x1da   :  { %4187 = vmatpush1.bf16.msra.mxu0 %v4186_v59  ;;  %3549 = vmatprep.subr.bf16.mxu1 %v3548_v31  ;;  %v4206_v59 = vpack.c.bf16 %v1155_v45, %v1153_v19  ;;  %v3568_v31 = vpack.c.bf16 %v520_v24, %v518_v23  ;;  %v1173_v19 = vld [vmem:[%s8552_s1 + $0x23e0] sm:$0xff]  ;;  %v1175_v45 = vld [vmem:[%s8552_s1 + $0x23f0] sm:$0xff]  ;;  %v538_v23 = vld [vmem:[%s8552_s1 + $0x1008] sm:$0xff] }
 0x1db   :  { %4189 = vmatprep.subr.bf16.mxu0 %v4188_v36  ;;  %v4208_v36 = vpack.c.bf16 %v1160_v27, %v1158_v26  ;;  %v540_v24 = vld [vmem:[%s8552_s1 + $0x1018] sm:$0xff]  ;;  %v1178_v26 = vld [vmem:[%s8552_s1 + $0x2408] sm:$0xff] }
 0x1dc   :  { %v1180_v27 = vld [vmem:[%s8552_s1 + $0x2418] sm:$0xff] }
 0x1dd   :  { %3551 = vmatpush1.bf16.msra.mxu1 %v3550_v41  ;;  %v3570_v41 = vpack.c.bf16 %v519_v34, %v517_v32  ;;  %v4226_v32 = vpack.c.bf16 %v1175_v45, %v1173_v19  ;;  %v3588_v34 = vpack.c.bf16 %v540_v24, %v538_v23  ;;  %v553_v45 = vld [vmem:[%s8552_s1 + $0x1080] sm:$0xff]  ;;  %v555_v23 = vld [vmem:[%s8552_s1 + $0x1090] sm:$0xff] }
 0x1de   :  { %4191 = vmatpush1.bf16.msra.mxu0 %v4190_v42  ;;  %3553 = vmatprep.subr.bf16.mxu1 %v3552_v12  ;;  %v4210_v42 = vpack.c.bf16 %v1159_v37, %v1157_v35  ;;  %v3572_v12 = vpack.c.bf16 %v524_v39, %v522_v38  ;;  %v537_v35 = vld [vmem:[%s8552_s1 + $0x1000] sm:$0xff]  ;;  %v4228_v38 = vpack.c.bf16 %v1180_v27, %v1178_v26  ;;  %v1179_v39 = vld [vmem:[%s8552_s1 + $0x2410] sm:$0xff] }
 0x1df   :  { %4193 = vmatprep.subr.bf16.mxu0 %v4192_v4  ;;  %v4212_v4 = vpack.c.bf16 %v1164_v9, %v1162_v40  ;;  %v1177_v37 = vld [vmem:[%s8552_s1 + $0x2400] sm:$0xff]  ;;  %v542_v40 = vld [vmem:[%s8552_s1 + $0x1028] sm:$0xff]  ;;  %v544_v9 = vld [vmem:[%s8552_s1 + $0x1038] sm:$0xff] }
 0x1e0   :  { %v1193_v24 = vld [vmem:[%s8552_s1 + $0x2480] sm:$0xff]  ;;  %v1195_v27 = vld [vmem:[%s8552_s1 + $0x2490] sm:$0xff] }
 0x1e1   :  { %3555 = vmatpush1.bf16.msra.mxu1 %v3554_v51  ;;  %v3574_v51 = vpack.c.bf16 %v523_v43, %v521_v0 }
 0x1e2   :  { %4195 = vmatpush1.bf16.msra.mxu0 %v4194_v53  ;;  %3557 = vmatprep.subr.bf16.mxu1 %v3556_v55  ;;  %v4214_v53 = vpack.c.bf16 %v1163_v22, %v1161_v44  ;;  %v3576_v55 = vpack.c.bf16 %v528_v47, %v526_v46  ;;  %v4230_v44 = vpack.c.bf16 %v1179_v39, %v1177_v37  ;;  %v541_v22 = vld [vmem:[%s8552_s1 + $0x1020] sm:$0xff]  ;;  %v543_v46 = vld [vmem:[%s8552_s1 + $0x1030] sm:$0xff] }
 0x1e3   :  { %4197 = vmatprep.subr.bf16.mxu0 %v4196_v60  ;;  %v4216_v60 = vpack.c.bf16 %v1168_v49, %v1166_v48  ;;  %v1181_v47 = vld [vmem:[%s8552_s1 + $0x2420] sm:$0xff]  ;;  %v1183_v49 = vld [vmem:[%s8552_s1 + $0x2430] sm:$0xff]  ;;  %v4246_v37 = vpack.c.bf16 %v1195_v27, %v1193_v24 }
 0x1e4   :  { %v557_v39 = vld [vmem:[%s8552_s1 + $0x10a0] sm:$0xff] }
 0x1e5   :  { %3559 = vmatpush1.bf16.msra.mxu1 %v3558_v30  ;;  %v3578_v30 = vpack.c.bf16 %v527_v57, %v525_v56  ;;  %v1186_v56 = vld [vmem:[%s8552_s1 + $0x2448] sm:$0xff]  ;;  %v1188_v57 = vld [vmem:[%s8552_s1 + $0x2458] sm:$0xff]  ;;  %v573_v24 = vld [vmem:[%s8552_s1 + $0x1120] sm:$0xff] }
 0x1e6   :  { %4199 = vmatpush1.bf16.msra.mxu0 %v4198_v2  ;;  %3561 = vmatprep.subr.bf16.mxu1 %v3560_v3  ;;  %v4218_v2 = vpack.c.bf16 %v1167_v62, %v1165_v58  ;;  %v3580_v3 = vpack.c.bf16 %v532_v50, %v530_v63  ;;  %v4234_v62 = vpack.c.bf16 %v1183_v49, %v1181_v47  ;;  %v547_v50 = vld [vmem:[%s8552_s1 + $0x1050] sm:$0xff]  ;;  %v561_v49 = vld [vmem:[%s8552_s1 + $0x10c0] sm:$0xff] }
 0x1e7   :  { %4201 = vmatprep.subr.bf16.mxu0 %v4200_v7  ;;  %v4220_v7 = vpack.c.bf16 %v1172_v54, %v1170_v1  ;;  %v1185_v1 = vld [vmem:[%s8552_s1 + $0x2440] sm:$0xff]  ;;  %v4236_v54 = vpack.c.bf16 %v1188_v57, %v1186_v56  ;;  %v1203_v56 = vld [vmem:[%s8552_s1 + $0x24d0] sm:$0xff]  ;;  %v566_v57 = vld [vmem:[%s8552_s1 + $0x10e8] sm:$0xff] }
 0x1e8   :  { %v1213_v27 = vld [vmem:[%s8552_s1 + $0x2520] sm:$0xff] }
 0x1e9   :  { %3563 = vmatpush1.bf16.msra.mxu1 %v3562_v16  ;;  %v3582_v16 = vpack.c.bf16 %v531_v33, %v529_v28  ;;  %v1192_v28 = vld [vmem:[%s8552_s1 + $0x2478] sm:$0xff] }
 0x1ea   :  { %4203 = vmatpush1.bf16.msra.mxu0 %v4202_v25  ;;  %3565 = vmatprep.subr.bf16.mxu1 %v3564_v17  ;;  %v4222_v25 = vpack.c.bf16 %v1171_v8, %v1169_v5  ;;  %v3584_v17 = vpack.c.bf16 %v536_v13, %v534_v10  ;;  %v549_v8 = vld [vmem:[%s8552_s1 + $0x1060] sm:$0xff]  ;;  %v551_v10 = vld [vmem:[%s8552_s1 + $0x1070] sm:$0xff] }
 0x1eb   :  { %4205 = vmatprep.subr.bf16.mxu0 %v4204_v20  ;;  %v4224_v20 = vpack.c.bf16 %v1176_v15, %v1174_v14  ;;  %v1189_v13 = vld [vmem:[%s8552_s1 + $0x2460] sm:$0xff]  ;;  %v1191_v15 = vld [vmem:[%s8552_s1 + $0x2470] sm:$0xff] }
 0x1ec   :  { %v4242_v19 = vpack.c.bf16 %v1191_v15, %v1189_v13  ;;  %v569_v13 = vld [vmem:[%s8552_s1 + $0x1100] sm:$0xff] }
 0x1ed   :  { %3567 = vmatpush1.bf16.msra.mxu1 %v3566_v29  ;;  %v7698_v29 = vld [vmem:[%s8553_s0 + $0x20] sm:$0xff] }
 0x1ee   :  { %4207 = vmatpush1.bf16.msra.mxu0 %v4206_v59  ;;  %3569 = vmatprep.subr.bf16.mxu1 %v3568_v31  ;;  %v3586_v59 = vpack.c.bf16 %v535_v52, %v533_v18  ;;  %v7703_v31 = vld [vmem:[%s8553_s0 + $0x48] sm:$0xff]  ;;  %v1196_v18 = vld [vmem:[%s8552_s1 + $0x2498] sm:$0xff]  ;;  %v3602_v52 = vpack.c.bf16 %v551_v10, %v549_v8  ;;  %v1209_v15 = vld [vmem:[%s8552_s1 + $0x2500] sm:$0xff] }
 0x1ef   :  { %4209 = vmatprep.subr.bf16.mxu0 %v4208_v36  ;;  %v539_v36 = vld [vmem:[%s8552_s1 + $0x1010] sm:$0xff]  ;;  %v7735_v0 = vrot.slane %v7703_v31, %v4727_v11 }
 0x1f0   :  { %v3590_v43 = vpack.c.bf16 %v539_v36, %v537_v35  ;;  %v1200_v35 = vld [vmem:[%s8552_s1 + $0x24b8] sm:$0xff]  ;;  %v3606_v36 = vpack.c.bf16 %v555_v23, %v553_v45 }
 0x1f1   :  { %3571 = vmatpush1.bf16.msra.mxu1 %v3570_v41  ;;  %v7725_v41 = vrot.slane %v7698_v29, %v4727_v11  ;;  %v1512_v58 = vcombine.high %v7735_v0, %v7735_v0 }
 0x1f2   :  { %4211 = vmatpush1.bf16.msra.mxu0 %v4210_v42  ;;  %3573 = vmatprep.subr.bf16.mxu1 %v3572_v12  ;;  %v1182_v42 = vld [vmem:[%s8552_s1 + $0x2428] sm:$0xff]  ;;  %v1184_v12 = vld [vmem:[%s8552_s1 + $0x2438] sm:$0xff] }
 0x1f3   :  { %4213 = vmatprep.subr.bf16.mxu0 %v4212_v4  ;;  %v3592_v4 = vpack.c.bf16 %v544_v9, %v542_v40  ;;  %v4232_v48 = vpack.c.bf16 %v1184_v12, %v1182_v42  ;;  %v559_v40 = vld [vmem:[%s8552_s1 + $0x10b0] sm:$0xff]  ;;  %v1197_v9 = vld [vmem:[%s8552_s1 + $0x24a0] sm:$0xff] }
 0x1f4   :  { %v1199_v12 = vld [vmem:[%s8552_s1 + $0x24b0] sm:$0xff] }
 0x1f5   :  { %3575 = vmatpush1.bf16.msra.mxu1 %v3574_v51  ;;  %v546_v51 = vld [vmem:[%s8552_s1 + $0x1048] sm:$0xff]  ;;  %v4250_v47 = vpack.c.bf16 %v1199_v12, %v1197_v9  ;;  %v577_v9 = vld [vmem:[%s8552_s1 + $0x1140] sm:$0xff] }
 0x1f6   :  { %4215 = vmatpush1.bf16.msra.mxu0 %v4214_v53  ;;  %3577 = vmatprep.subr.bf16.mxu1 %v3576_v55  ;;  %v548_v53 = vld [vmem:[%s8552_s1 + $0x1058] sm:$0xff]  ;;  %v1427_v55 = vcombine.high %v7725_v41, %v7725_v41  ;;  %v1217_v12 = vld [vmem:[%s8552_s1 + $0x2540] sm:$0xff] }
 0x1f7   :  { %4217 = vmatprep.subr.bf16.mxu0 %v4216_v60  ;;  %v3594_v60 = vpack.c.bf16 %v543_v46, %v541_v22  ;;  %v3596_v63 = vpack.c.bf16 %v548_v53, %v546_v51  ;;  %v1204_v22 = vld [vmem:[%s8552_s1 + $0x24d8] sm:$0xff]  ;;  %v3610_v46 = vpack.c.bf16 %v559_v40, %v557_v39  ;;  %v563_v51 = vld [vmem:[%s8552_s1 + $0x10d0] sm:$0xff]  ;;  %v1201_v53 = vld [vmem:[%s8552_s1 + $0x24c0] sm:$0xff] }
 0x1f9   :  { %3579 = vmatpush1.bf16.msra.mxu1 %v3578_v30  ;;  %v550_v30 = vld [vmem:[%s8552_s1 + $0x1068] sm:$0xff] }
 0x1fa   :  { %4219 = vmatpush1.bf16.msra.mxu0 %v4218_v2  ;;  %3581 = vmatprep.subr.bf16.mxu1 %v3580_v3  ;;  %v552_v2 = vld [vmem:[%s8552_s1 + $0x1078] sm:$0xff]  ;;  %v1190_v3 = vld [vmem:[%s8552_s1 + $0x2468] sm:$0xff] }
 0x1fb   :  { %4221 = vmatprep.subr.bf16.mxu0 %v4220_v7  ;;  %v3600_v7 = vpack.c.bf16 %v552_v2, %v550_v30  ;;  %v4240_v14 = vpack.c.bf16 %v1192_v28, %v1190_v3  ;;  %v1207_v2 = vld [vmem:[%s8552_s1 + $0x24f0] sm:$0xff]  ;;  %v570_v3 = vld [vmem:[%s8552_s1 + $0x1108] sm:$0xff]  ;;  %v572_v28 = vld [vmem:[%s8552_s1 + $0x1118] sm:$0xff] }
 0x1fc   :  { %v3620_v10 = vpack.c.bf16 %v572_v28, %v570_v3  ;;  %v1227_v28 = vld [vmem:[%s8552_s1 + $0x2590] sm:$0xff] }
 0x1fd   :  { %3583 = vmatpush1.bf16.msra.mxu1 %v3582_v16  ;;  %v554_v16 = vld [vmem:[%s8552_s1 + $0x1088] sm:$0xff] }
 0x1fe   :  { %4223 = vmatpush1.bf16.msra.mxu0 %v4222_v25  ;;  %3585 = vmatprep.subr.bf16.mxu1 %v3584_v17  ;;  %v556_v25 = vld [vmem:[%s8552_s1 + $0x1098] sm:$0xff]  ;;  %v1194_v17 = vld [vmem:[%s8552_s1 + $0x2488] sm:$0xff] }
 0x1ff   :  { %4225 = vmatprep.subr.bf16.mxu0 %v4224_v20  ;;  %v3604_v20 = vpack.c.bf16 %v556_v25, %v554_v16  ;;  %v4244_v26 = vpack.c.bf16 %v1196_v18, %v1194_v17  ;;  %v1211_v25 = vld [vmem:[%s8552_s1 + $0x2510] sm:$0xff]  ;;  %v574_v17 = vld [vmem:[%s8552_s1 + $0x1128] sm:$0xff]  ;;  %v576_v18 = vld [vmem:[%s8552_s1 + $0x1138] sm:$0xff] }
 0x200   :  { %v4262_v45 = vpack.c.bf16 %v1211_v25, %v1209_v15  ;;  %v3624_v23 = vpack.c.bf16 %v576_v18, %v574_v17  ;;  %v589_v15 = vld [vmem:[%s8552_s1 + $0x11a0] sm:$0xff]  ;;  %v1231_v18 = vld [vmem:[%s8552_s1 + $0x25b0] sm:$0xff] }
 0x201   :  { %3587 = vmatpush1.bf16.msra.mxu1 %v3586_v59  ;;  %v558_v59 = vld [vmem:[%s8552_s1 + $0x10a8] sm:$0xff]  ;;  %v1229_v25 = vld [vmem:[%s8552_s1 + $0x25a0] sm:$0xff] }
 0x202   :  { %4227 = vmatpush1.bf16.msra.mxu0 %v4226_v32  ;;  %3589 = vmatprep.subr.bf16.mxu1 %v3588_v34  ;;  %v560_v32 = vld [vmem:[%s8552_s1 + $0x10b8] sm:$0xff]  ;;  %v1198_v34 = vld [vmem:[%s8552_s1 + $0x24a8] sm:$0xff] }
 0x203   :  { %4229 = vmatprep.subr.bf16.mxu0 %v4228_v38  ;;  %v3608_v38 = vpack.c.bf16 %v560_v32, %v558_v59  ;;  %v4248_v42 = vpack.c.bf16 %v1200_v35, %v1198_v34  ;;  %v1215_v32 = vld [vmem:[%s8552_s1 + $0x2530] sm:$0xff]  ;;  %v578_v34 = vld [vmem:[%s8552_s1 + $0x1148] sm:$0xff]  ;;  %v580_v35 = vld [vmem:[%s8552_s1 + $0x1158] sm:$0xff] }
 0x204   :  { %2126 = vmatmul.mubr.f32.vlgmr.msra.gmra.mrb[0].mxu1 %v7318_v21  ;;  %v545_v21 = vld [vmem:[%s8552_s1 + $0x1040] sm:$0xff]  ;;  %v4266_v39 = vpack.c.bf16 %v1215_v32, %v1213_v27  ;;  %v3628_v40 = vpack.c.bf16 %v580_v35, %v578_v34  ;;  %v1235_v35 = vld [vmem:[%s8552_s1 + $0x25d0] sm:$0xff] }
 0x205   :  { %3591 = vmatpush1.bf16.msra.mxu1 %v3590_v43  ;;  %2836 = vmatmul.mubr.f32.vlgmr.msra.gmra.mrb[0].mxu0 %v7327_v6  ;;  %v1187_v6 = vld [vmem:[%s8552_s1 + $0x2450] sm:$0xff]  ;;  %v3598_v33 = vpack.c.bf16 %v547_v50, %v545_v21  ;;  %v562_v43 = vld [vmem:[%s8552_s1 + $0x10c8] sm:$0xff]  ;;  %v4254_v21 = vpack.c.bf16 %v1203_v56, %v1201_v53  ;;  %v581_v53 = vld [vmem:[%s8552_s1 + $0x1160] sm:$0xff] }
 0x206   :  { %4231 = vmatpush1.bf16.msra.mxu0 %v4230_v44  ;;  %3593 = vmatprep.subr.bf16.mxu1 %v3592_v4  ;;  %v4238_v5 = vpack.c.bf16 %v1187_v6, %v1185_v1  ;;  %v564_v44 = vld [vmem:[%s8552_s1 + $0x10d8] sm:$0xff]  ;;  %v1202_v4 = vld [vmem:[%s8552_s1 + $0x24c8] sm:$0xff]  ;;  %v565_v1 = vld [vmem:[%s8552_s1 + $0x10e0] sm:$0xff] }
 0x207   :  { %4233 = vmatprep.subr.bf16.mxu0 %v4232_v48  ;;  %2196 = vmatprep.mubr.f32.mxu1 %v1427_v55  ;;  %v3612_v48 = vpack.c.bf16 %v564_v44, %v562_v43  ;;  %v4252_v55 = vpack.c.bf16 %v1204_v22, %v1202_v4  ;;  %v1205_v6 = vld [vmem:[%s8552_s1 + $0x24e0] sm:$0xff]  ;;  %v1219_v44 = vld [vmem:[%s8552_s1 + $0x2550] sm:$0xff]  ;;  %v582_v4 = vld [vmem:[%s8552_s1 + $0x1168] sm:$0xff] }
 0x208   :  { %2906 = vmatprep.mubr.f32.mxu0 %v1512_v58  ;;  %v568_v58 = vld [vmem:[%s8552_s1 + $0x10f8] sm:$0xff]  ;;  %v4258_v8 = vpack.c.bf16 %v1207_v2, %v1205_v6  ;;  %v1221_v56 = vld [vmem:[%s8552_s1 + $0x2560] sm:$0xff] }
 0x209   :  { %3595 = vmatpush1.bf16.msra.mxu1 %v3594_v60  ;;  %v1206_v60 = vld [vmem:[%s8552_s1 + $0x24e8] sm:$0xff]  ;;  %v3616_v50 = vpack.c.bf16 %v568_v58, %v566_v57  ;;  %v584_v22 = vld [vmem:[%s8552_s1 + $0x1178] sm:$0xff]  ;;  %v1223_v58 = vld [vmem:[%s8552_s1 + $0x2570] sm:$0xff] }
 0x20a   :  { %4235 = vmatpush1.bf16.msra.mxu0 %v4234_v62  ;;  %3597 = vmatprep.subr.bf16.mxu1 %v3596_v63  ;;  %v1208_v62 = vld [vmem:[%s8552_s1 + $0x24f8] sm:$0xff]  ;;  %v3614_v63 = vpack.c.bf16 %v563_v51, %v561_v49  ;;  %v4270_v49 = vpack.c.bf16 %v1219_v44, %v1217_v12  ;;  %v3632_v51 = vpack.c.bf16 %v584_v22, %v582_v4  ;;  %v585_v6 = vld [vmem:[%s8552_s1 + $0x1180] sm:$0xff]  ;;  %v1239_v22 = vld [vmem:[%s8552_s1 + $0x25f0] sm:$0xff] }
 0x20b   :  { %4237 = vmatprep.subr.bf16.mxu0 %v4236_v54  ;;  %v567_v54 = vld [vmem:[%s8552_s1 + $0x10f0] sm:$0xff]  ;;  %v4256_v30 = vpack.c.bf16 %v1208_v62, %v1206_v60  ;;  %v586_v60 = vld [vmem:[%s8552_s1 + $0x1188] sm:$0xff]  ;;  %v588_v62 = vld [vmem:[%s8552_s1 + $0x1198] sm:$0xff] }
 0x20c   :  { %v1225_v2 = vld [vmem:[%s8552_s1 + $0x2580] sm:$0xff] }
 0x20d   :  { %3599 = vmatpush1.bf16.msra.mxu1 %v3598_v33  ;;  %v1210_v33 = vld [vmem:[%s8552_s1 + $0x2508] sm:$0xff]  ;;  %v593_v27 = vld [vmem:[%s8552_s1 + $0x11c0] sm:$0xff] }
 0x20e   :  { %4239 = vmatpush1.bf16.msra.mxu0 %v4238_v5  ;;  %3601 = vmatprep.subr.bf16.mxu1 %v3600_v7  ;;  %v1212_v5 = vld [vmem:[%s8552_s1 + $0x2518] sm:$0xff]  ;;  %v3618_v7 = vpack.c.bf16 %v567_v54, %v565_v1  ;;  %v4274_v1 = vpack.c.bf16 %v1223_v58, %v1221_v56  ;;  %v3636_v54 = vpack.c.bf16 %v588_v62, %v586_v60  ;;  %v1233_v32 = vld [vmem:[%s8552_s1 + $0x25c0] sm:$0xff]  ;;  %v603_v58 = vld [vmem:[%s8552_s1 + $0x1210] sm:$0xff] }
 0x20f   :  { %4241 = vmatprep.subr.bf16.mxu0 %v4240_v14  ;;  %v571_v14 = vld [vmem:[%s8552_s1 + $0x1110] sm:$0xff]  ;;  %v4260_v16 = vpack.c.bf16 %v1212_v5, %v1210_v33  ;;  %v590_v33 = vld [vmem:[%s8552_s1 + $0x11a8] sm:$0xff]  ;;  %v592_v5 = vld [vmem:[%s8552_s1 + $0x11b8] sm:$0xff] }
 0x210   :  { %v597_v12 = vld [vmem:[%s8552_s1 + $0x11e0] sm:$0xff]  ;;  %v1243_v62 = vld [vmem:[%s8552_s1 + $0x2610] sm:$0xff] }
 0x211   :  { %3603 = vmatpush1.bf16.msra.mxu1 %v3602_v52  ;;  %v1214_v52 = vld [vmem:[%s8552_s1 + $0x2528] sm:$0xff]  ;;  %v1237_v44 = vld [vmem:[%s8552_s1 + $0x25e0] sm:$0xff] }
 0x212   :  { %4243 = vmatpush1.bf16.msra.mxu0 %v4242_v19  ;;  %3605 = vmatprep.subr.bf16.mxu1 %v3604_v20  ;;  %v1216_v19 = vld [vmem:[%s8552_s1 + $0x2538] sm:$0xff]  ;;  %v3622_v20 = vpack.c.bf16 %v571_v14, %v569_v13  ;;  %v4278_v13 = vpack.c.bf16 %v1227_v28, %v1225_v2  ;;  %v3640_v14 = vpack.c.bf16 %v592_v5, %v590_v33  ;;  %v1241_v60 = vld [vmem:[%s8552_s1 + $0x2600] sm:$0xff]  ;;  %v607_v33 = vld [vmem:[%s8552_s1 + $0x1230] sm:$0xff] }
 0x213   :  { %4245 = vmatprep.subr.bf16.mxu0 %v4244_v26  ;;  %v575_v26 = vld [vmem:[%s8552_s1 + $0x1130] sm:$0xff]  ;;  %v4264_v59 = vpack.c.bf16 %v1216_v19, %v1214_v52  ;;  %v594_v52 = vld [vmem:[%s8552_s1 + $0x11c8] sm:$0xff]  ;;  %v596_v19 = vld [vmem:[%s8552_s1 + $0x11d8] sm:$0xff]  ;;  %v4290_v56 = vpack.c.bf16 %v1239_v22, %v1237_v44  ;;  %v4294_v2 = vpack.c.bf16 %v1243_v62, %v1241_v60 }
 0x214   :  { %v605_v28 = vld [vmem:[%s8552_s1 + $0x1220] sm:$0xff]  ;;  %v619_v22 = vld [vmem:[%s8552_s1 + $0x1290] sm:$0xff] }
 0x215   :  { %3607 = vmatpush1.bf16.msra.mxu1 %v3606_v36  ;;  %v1218_v36 = vld [vmem:[%s8552_s1 + $0x2548] sm:$0xff]  ;;  %v1245_v5 = vld [vmem:[%s8552_s1 + $0x2620] sm:$0xff]  ;;  %v623_v60 = vld [vmem:[%s8552_s1 + $0x12b0] sm:$0xff] }
 0x216   :  { %4247 = vmatpush1.bf16.msra.mxu0 %v4246_v37  ;;  %3609 = vmatprep.subr.bf16.mxu1 %v3608_v38  ;;  %v1220_v37 = vld [vmem:[%s8552_s1 + $0x2558] sm:$0xff]  ;;  %v3626_v38 = vpack.c.bf16 %v575_v26, %v573_v24  ;;  %v4282_v24 = vpack.c.bf16 %v1231_v18, %v1229_v25  ;;  %v3644_v26 = vpack.c.bf16 %v596_v19, %v594_v52  ;;  %v611_v52 = vld [vmem:[%s8552_s1 + $0x1250] sm:$0xff]  ;;  %v1249_v19 = vld [vmem:[%s8552_s1 + $0x2640] sm:$0xff] }
 0x217   :  { %4249 = vmatprep.subr.bf16.mxu0 %v4248_v42  ;;  %v579_v42 = vld [vmem:[%s8552_s1 + $0x1150] sm:$0xff]  ;;  %v4268_v43 = vpack.c.bf16 %v1220_v37, %v1218_v36  ;;  %v598_v36 = vld [vmem:[%s8552_s1 + $0x11e8] sm:$0xff]  ;;  %v600_v37 = vld [vmem:[%s8552_s1 + $0x11f8] sm:$0xff]  ;;  %v3658_v25 = vpack.c.bf16 %v607_v33, %v605_v28 }
 0x218   :  { %v625_v33 = vld [vmem:[%s8552_s1 + $0x12c0] sm:$0xff] }
 0x219   :  { %3611 = vmatpush1.bf16.msra.mxu1 %v3610_v46  ;;  %v1222_v46 = vld [vmem:[%s8552_s1 + $0x2568] sm:$0xff] }
 0x21a   :  { %4251 = vmatpush1.bf16.msra.mxu0 %v4250_v47  ;;  %3613 = vmatprep.subr.bf16.mxu1 %v3612_v48  ;;  %v1224_v47 = vld [vmem:[%s8552_s1 + $0x2578] sm:$0xff]  ;;  %v3630_v48 = vpack.c.bf16 %v579_v42, %v577_v9  ;;  %v4286_v9 = vpack.c.bf16 %v1235_v35, %v1233_v32  ;;  %v3648_v42 = vpack.c.bf16 %v600_v37, %v598_v36  ;;  %v615_v35 = vld [vmem:[%s8552_s1 + $0x1270] sm:$0xff]  ;;  %v1253_v36 = vld [vmem:[%s8552_s1 + $0x2660] sm:$0xff] }
 0x21b   :  { %4253 = vmatprep.subr.bf16.mxu0 %v4252_v55  ;;  %v583_v55 = vld [vmem:[%s8552_s1 + $0x1170] sm:$0xff]  ;;  %v4272_v57 = vpack.c.bf16 %v1224_v47, %v1222_v46  ;;  %v602_v46 = vld [vmem:[%s8552_s1 + $0x1208] sm:$0xff]  ;;  %v604_v47 = vld [vmem:[%s8552_s1 + $0x1218] sm:$0xff] }
 0x21d   :  { %3615 = vmatpush1.bf16.msra.mxu1 %v3614_v63  ;;  %v1226_v63 = vld [vmem:[%s8552_s1 + $0x2588] sm:$0xff] }
 0x21e   :  { %4255 = vmatpush1.bf16.msra.mxu0 %v4254_v21  ;;  %3617 = vmatprep.subr.bf16.mxu1 %v3616_v50  ;;  %v1228_v21 = vld [vmem:[%s8552_s1 + $0x2598] sm:$0xff]  ;;  %v3634_v50 = vpack.c.bf16 %v583_v55, %v581_v53  ;;  %v1497_v53 = vcombine.high %v7703_v31, %v7703_v31 }
 0x21f   :  { %4257 = vmatprep.subr.bf16.mxu0 %v4256_v30  ;;  %v587_v30 = vld [vmem:[%s8552_s1 + $0x1190] sm:$0xff]  ;;  %v4276_v3 = vpack.c.bf16 %v1228_v21, %v1226_v63  ;;  %v606_v63 = vld [vmem:[%s8552_s1 + $0x1228] sm:$0xff]  ;;  %v608_v21 = vld [vmem:[%s8552_s1 + $0x1238] sm:$0xff] }
 0x221   :  { %3619 = vmatpush1.bf16.msra.mxu1 %v3618_v7  ;;  %v1230_v7 = vld [vmem:[%s8552_s1 + $0x25a8] sm:$0xff] }
 0x222   :  { %4259 = vmatpush1.bf16.msra.mxu0 %v4258_v8  ;;  %3621 = vmatprep.subr.bf16.mxu1 %v3620_v10  ;;  %v1232_v8 = vld [vmem:[%s8552_s1 + $0x25b8] sm:$0xff]  ;;  %v3638_v10 = vpack.c.bf16 %v587_v30, %v585_v6  ;;  %v8135_v6 = vrot.slane %v1497_v53, %v4727_v11  ;;  %v1262_v53 = vld [vmem:[%s8552_s1 + $0x26a8] sm:$0xff] }
 0x223   :  { %4261 = vmatprep.subr.bf16.mxu0 %v4260_v16  ;;  %v591_v16 = vld [vmem:[%s8552_s1 + $0x11b0] sm:$0xff]  ;;  %v4280_v17 = vpack.c.bf16 %v1232_v8, %v1230_v7  ;;  %v610_v8 = vld [vmem:[%s8552_s1 + $0x1248] sm:$0xff] }
 0x224   :  { %v1247_v7 = vld [vmem:[%s8552_s1 + $0x2630] sm:$0xff] }
 0x225   :  { %3623 = vmatpush1.bf16.msra.mxu1 %v3622_v20  ;;  %v1234_v20 = vld [vmem:[%s8552_s1 + $0x25c8] sm:$0xff] }
 0x226   :  { %4263 = vmatpush1.bf16.msra.mxu0 %v4262_v45  ;;  %3625 = vmatprep.subr.bf16.mxu1 %v3624_v23  ;;  %v1236_v45 = vld [vmem:[%s8552_s1 + $0x25d8] sm:$0xff]  ;;  %v3642_v23 = vpack.c.bf16 %v591_v16, %v589_v15  ;;  %v1513_v16 = vcombine.high %v8135_v6, %v8135_v6 }
 0x227   :  { %4265 = vmatprep.subr.bf16.mxu0 %v4264_v59  ;;  %v595_v59 = vld [vmem:[%s8552_s1 + $0x11d0] sm:$0xff]  ;;  %v4284_v34 = vpack.c.bf16 %v1236_v45, %v1234_v20  ;;  %v1252_v15 = vld [vmem:[%s8552_s1 + $0x2658] sm:$0xff]  ;;  %v614_v45 = vld [vmem:[%s8552_s1 + $0x1268] sm:$0xff] }
 0x229   :  { %3627 = vmatpush1.bf16.msra.mxu1 %v3626_v38  ;;  %v1238_v38 = vld [vmem:[%s8552_s1 + $0x25e8] sm:$0xff] }
 0x22a   :  { %4267 = vmatpush1.bf16.msra.mxu0 %v4266_v39  ;;  %3629 = vmatprep.subr.bf16.mxu1 %v3628_v40  ;;  %v1240_v39 = vld [vmem:[%s8552_s1 + $0x25f8] sm:$0xff]  ;;  %v3646_v40 = vpack.c.bf16 %v595_v59, %v593_v27 }
 0x22b   :  { %4269 = vmatprep.subr.bf16.mxu0 %v4268_v43  ;;  %v599_v43 = vld [vmem:[%s8552_s1 + $0x11f0] sm:$0xff]  ;;  %v4288_v4 = vpack.c.bf16 %v1240_v39, %v1238_v38  ;;  %v618_v39 = vld [vmem:[%s8552_s1 + $0x1288] sm:$0xff] }
 0x22c   :  { %v3650_v55 = vpack.c.bf16 %v599_v43, %v597_v12  ;;  %v1255_v38 = vld [vmem:[%s8552_s1 + $0x2670] sm:$0xff] }
 0x22d   :  { %3631 = vmatpush1.bf16.msra.mxu1 %v3630_v48  ;;  %v1412_v48 = vcombine.high %v7698_v29, %v7698_v29  ;;  %v601_v29 = vld [vmem:[%s8552_s1 + $0x1200] sm:$0xff]  ;;  %v4306_v43 = vpack.c.bf16 %v1255_v38, %v1253_v36  ;;  %v638_v38 = vld [vmem:[%s8552_s1 + $0x1328] sm:$0xff] }
 0x22e   :  { %4271 = vmatpush1.bf16.msra.mxu0 %v4270_v49  ;;  %3633 = vmatprep.subr.bf16.mxu1 %v3632_v51  ;;  %v1242_v49 = vld [vmem:[%s8552_s1 + $0x2608] sm:$0xff]  ;;  %v1244_v51 = vld [vmem:[%s8552_s1 + $0x2618] sm:$0xff]  ;;  %v3654_v30 = vpack.c.bf16 %v603_v58, %v601_v29  ;;  %v621_v58 = vld [vmem:[%s8552_s1 + $0x12a0] sm:$0xff] }
 0x22f   :  { %4273 = vmatprep.subr.bf16.mxu0 %v4272_v57  ;;  %v3652_v57 = vpack.c.bf16 %v604_v47, %v602_v46  ;;  %v4292_v31 = vpack.c.bf16 %v1244_v51, %v1242_v49  ;;  %v1257_v46 = vld [vmem:[%s8552_s1 + $0x2680] sm:$0xff]  ;;  %v622_v49 = vld [vmem:[%s8552_s1 + $0x12a8] sm:$0xff]  ;;  %v624_v51 = vld [vmem:[%s8552_s1 + $0x12b8] sm:$0xff] }
 0x230   :  { %v3672_v29 = vpack.c.bf16 %v624_v51, %v622_v49  ;;  %v644_v49 = vld [vmem:[%s8552_s1 + $0x1358] sm:$0xff]  ;;  %v1282_v51 = vld [vmem:[%s8552_s1 + $0x2748] sm:$0xff] }
 0x231   :  { %3635 = vmatpush1.bf16.msra.mxu1 %v3634_v50  ;;  %v8126_v50 = vrot.slane %v1412_v48, %v4727_v11  ;;  %v1259_v48 = vld [vmem:[%s8552_s1 + $0x2690] sm:$0xff] }
 0x232   :  { %4275 = vmatpush1.bf16.msra.mxu0 %v4274_v1  ;;  %3637 = vmatprep.subr.bf16.mxu1 %v3636_v54  ;;  %v1246_v1 = vld [vmem:[%s8552_s1 + $0x2628] sm:$0xff]  ;;  %v1248_v54 = vld [vmem:[%s8552_s1 + $0x2638] sm:$0xff] }
 0x233   :  { %4277 = vmatprep.subr.bf16.mxu0 %v4276_v3  ;;  %v3656_v3 = vpack.c.bf16 %v608_v21, %v606_v63  ;;  %v4296_v11 = vpack.c.bf16 %v1248_v54, %v1246_v1  ;;  %v1263_v63 = vld [vmem:[%s8552_s1 + $0x26b0] sm:$0xff]  ;;  %v626_v21 = vld [vmem:[%s8552_s1 + $0x12c8] sm:$0xff]  ;;  %v628_v1 = vld [vmem:[%s8552_s1 + $0x12d8] sm:$0xff] }
 0x234   :  { %v1266_v54 = vld [vmem:[%s8552_s1 + $0x26c8] sm:$0xff]  ;;  %v3676_v28 = vpack.c.bf16 %v628_v1, %v626_v21  ;;  %v648_v21 = vld [vmem:[%s8552_s1 + $0x1378] sm:$0xff] }
 0x235   :  { %3639 = vmatpush1.bf16.msra.mxu1 %v3638_v10  ;;  %v612_v10 = vld [vmem:[%s8552_s1 + $0x1258] sm:$0xff]  ;;  %v1286_v1 = vld [vmem:[%s8552_s1 + $0x2768] sm:$0xff] }
 0x236   :  { %4279 = vmatpush1.bf16.msra.mxu0 %v4278_v13  ;;  %3641 = vmatprep.subr.bf16.mxu1 %v3640_v14  ;;  %v1428_v13 = vcombine.high %v8126_v50, %v8126_v50  ;;  %v1250_v14 = vld [vmem:[%s8552_s1 + $0x2648] sm:$0xff]  ;;  %v3660_v18 = vpack.c.bf16 %v612_v10, %v610_v8  ;;  %v1267_v8 = vld [vmem:[%s8552_s1 + $0x26d0] sm:$0xff] }
 0x237   :  { %4281 = vmatprep.subr.bf16.mxu0 %v4280_v17  ;;  %v4298_v17 = vpack.c.bf16 %v1247_v7, %v1245_v5  ;;  %v4300_v20 = vpack.c.bf16 %v1252_v15, %v1250_v14  ;;  %v627_v5 = vld [vmem:[%s8552_s1 + $0x12d0] sm:$0xff]  ;;  %v630_v10 = vld [vmem:[%s8552_s1 + $0x12e8] sm:$0xff]  ;;  %v1272_v15 = vld [vmem:[%s8552_s1 + $0x26f8] sm:$0xff] }
 0x238   :  { %v1270_v14 = vld [vmem:[%s8552_s1 + $0x26e8] sm:$0xff] }
 0x239   :  { %3643 = vmatpush1.bf16.msra.mxu1 %v3642_v23  ;;  %v616_v23 = vld [vmem:[%s8552_s1 + $0x1278] sm:$0xff] }
 0x23a   :  { %4283 = vmatpush1.bf16.msra.mxu0 %v4282_v24  ;;  %3645 = vmatprep.subr.bf16.mxu1 %v3644_v26  ;;  %v1254_v24 = vld [vmem:[%s8552_s1 + $0x2668] sm:$0xff]  ;;  %v1256_v26 = vld [vmem:[%s8552_s1 + $0x2678] sm:$0xff]  ;;  %v3664_v32 = vpack.c.bf16 %v616_v23, %v614_v45 }
 0x23b   :  { %4285 = vmatprep.subr.bf16.mxu0 %v4284_v34  ;;  %v613_v34 = vld [vmem:[%s8552_s1 + $0x1260] sm:$0xff]  ;;  %v4304_v37 = vpack.c.bf16 %v1256_v26, %v1254_v24  ;;  %v636_v45 = vld [vmem:[%s8552_s1 + $0x1318] sm:$0xff]  ;;  %v1274_v23 = vld [vmem:[%s8552_s1 + $0x2708] sm:$0xff] }
 0x23c   :  { %v3666_v12 = vpack.c.bf16 %v615_v35, %v613_v34  ;;  %v1276_v24 = vld [vmem:[%s8552_s1 + $0x2718] sm:$0xff]  ;;  %v635_v34 = vld [vmem:[%s8552_s1 + $0x1310] sm:$0xff]  ;;  %v1273_v35 = vld [vmem:[%s8552_s1 + $0x2700] sm:$0xff] }
 0x23d   :  { %3647 = vmatpush1.bf16.msra.mxu1 %v3646_v40  ;;  %v620_v40 = vld [vmem:[%s8552_s1 + $0x1298] sm:$0xff]  ;;  %v4324_v36 = vpack.c.bf16 %v1276_v24, %v1274_v23 }
 0x23e   :  { %4287 = vmatpush1.bf16.msra.mxu0 %v4286_v9  ;;  %3649 = vmatprep.subr.bf16.mxu1 %v3648_v42  ;;  %v1258_v9 = vld [vmem:[%s8552_s1 + $0x2688] sm:$0xff]  ;;  %v1260_v42 = vld [vmem:[%s8552_s1 + $0x2698] sm:$0xff]  ;;  %v3668_v44 = vpack.c.bf16 %v620_v40, %v618_v39 }
 0x23f   :  { %4289 = vmatprep.subr.bf16.mxu0 %v4288_v4  ;;  %v617_v4 = vld [vmem:[%s8552_s1 + $0x1280] sm:$0xff]  ;;  %v4308_v47 = vpack.c.bf16 %v1260_v42, %v1258_v9  ;;  %v640_v39 = vld [vmem:[%s8552_s1 + $0x1338] sm:$0xff]  ;;  %v1278_v40 = vld [vmem:[%s8552_s1 + $0x2728] sm:$0xff] }
 0x240   :  { %v1280_v9 = vld [vmem:[%s8552_s1 + $0x2738] sm:$0xff] }
 0x241   :  { %3651 = vmatpush1.bf16.msra.mxu1 %v3650_v55  ;;  %v1264_v55 = vld [vmem:[%s8552_s1 + $0x26b8] sm:$0xff] }
 0x242   :  { %4291 = vmatpush1.bf16.msra.mxu0 %v4290_v56  ;;  %3653 = vmatprep.subr.bf16.mxu1 %v3652_v57  ;;  %v3670_v56 = vpack.c.bf16 %v619_v22, %v617_v4  ;;  %v4310_v57 = vpack.c.bf16 %v1259_v48, %v1257_v46  ;;  %v4312_v62 = vpack.c.bf16 %v1264_v55, %v1262_v53  ;;  %v639_v4 = vld [vmem:[%s8552_s1 + $0x1330] sm:$0xff]  ;;  %v1277_v22 = vld [vmem:[%s8552_s1 + $0x2720] sm:$0xff]  ;;  %v642_v48 = vld [vmem:[%s8552_s1 + $0x1348] sm:$0xff] }
 0x243   :  { %4293 = vmatprep.subr.bf16.mxu0 %v4292_v31  ;;  %v1261_v31 = vld [vmem:[%s8552_s1 + $0x26a0] sm:$0xff]  ;;  %v4328_v46 = vpack.c.bf16 %v1280_v9, %v1278_v40  ;;  %v1284_v53 = vld [vmem:[%s8552_s1 + $0x2758] sm:$0xff] }
 0x244   :  { %2197 = vmatmul.mubr.f32.vlgmr.msra.gmra.mrb[0].mxu1 %v7725_v41  ;;  %v609_v41 = vld [vmem:[%s8552_s1 + $0x1240] sm:$0xff]  ;;  %v1296_v23 = vld [vmem:[%s8552_s1 + $0x27b8] sm:$0xff] }
 0x245   :  { %3655 = vmatpush1.bf16.msra.mxu1 %v3654_v30  ;;  %2907 = vmatmul.mubr.f32.vlgmr.msra.gmra.mrb[0].mxu0 %v7735_v0  ;;  %v1251_v0 = vld [vmem:[%s8552_s1 + $0x2650] sm:$0xff]  ;;  %v3662_v27 = vpack.c.bf16 %v611_v52, %v609_v41  ;;  %v1268_v30 = vld [vmem:[%s8552_s1 + $0x26d8] sm:$0xff]  ;;  %v1269_v52 = vld [vmem:[%s8552_s1 + $0x26e0] sm:$0xff] }
 0x246   :  { %4295 = vmatpush1.bf16.msra.mxu0 %v4294_v2  ;;  %3657 = vmatprep.subr.bf16.mxu1 %v3656_v3  ;;  %v4302_v59 = vpack.c.bf16 %v1251_v0, %v1249_v19  ;;  %v3674_v2 = vpack.c.bf16 %v623_v60, %v621_v58  ;;  %v4314_v3 = vpack.c.bf16 %v1263_v63, %v1261_v31  ;;  %v631_v41 = vld [vmem:[%s8552_s1 + $0x12f0] sm:$0xff]  ;;  %v634_v0 = vld [vmem:[%s8552_s1 + $0x1308] sm:$0xff]  ;;  %v1281_v60 = vld [vmem:[%s8552_s1 + $0x2740] sm:$0xff] }
 0x247   :  { %4297 = vmatprep.subr.bf16.mxu0 %v4296_v11  ;;  %2267 = vmatprep.mubr.f32.mxu1 %v1428_v13  ;;  %v1265_v11 = vld [vmem:[%s8552_s1 + $0x26c0] sm:$0xff]  ;;  %v4316_v7 = vpack.c.bf16 %v1268_v30, %v1266_v54  ;;  %v632_v13 = vld [vmem:[%s8552_s1 + $0x12f8] sm:$0xff]  ;;  %v4320_v19 = vpack.c.bf16 %v1272_v15, %v1270_v14  ;;  %v643_v58 = vld [vmem:[%s8552_s1 + $0x1350] sm:$0xff]  ;;  %v4332_v31 = vpack.c.bf16 %v1284_v53, %v1282_v51 }
 0x248   :  { %2977 = vmatprep.mubr.f32.mxu0 %v1513_v16  ;;  %v3678_v16 = vpack.c.bf16 %v627_v5, %v625_v33  ;;  %v646_v63 = vld [vmem:[%s8552_s1 + $0x1368] sm:$0xff]  ;;  %v1288_v54 = vld [vmem:[%s8552_s1 + $0x2778] sm:$0xff]  ;;  %v647_v33 = vld [vmem:[%s8552_s1 + $0x1370] sm:$0xff] }
 0x249   :  { %3659 = vmatpush1.bf16.msra.mxu1 %v3658_v25  ;;  %v4318_v25 = vpack.c.bf16 %v1267_v8, %v1265_v11  ;;  %v1285_v5 = vld [vmem:[%s8552_s1 + $0x2760] sm:$0xff]  ;;  %v4336_v11 = vpack.c.bf16 %v1288_v54, %v1286_v1  ;;  %v650_v8 = vld [vmem:[%s8552_s1 + $0x1388] sm:$0xff]  ;;  %v1292_v14 = vld [vmem:[%s8552_s1 + $0x2798] sm:$0xff] }
 0x24a   :  { %4299 = vmatpush1.bf16.msra.mxu0 %v4298_v17  ;;  %3661 = vmatprep.subr.bf16.mxu1 %v3660_v18  ;;  %v3680_v17 = vpack.c.bf16 %v632_v13, %v630_v10  ;;  %v629_v18 = vld [vmem:[%s8552_s1 + $0x12e0] sm:$0xff]  ;;  %v652_v10 = vld [vmem:[%s8552_s1 + $0x1398] sm:$0xff]  ;;  %v1290_v13 = vld [vmem:[%s8552_s1 + $0x2788] sm:$0xff] }
 0x24b   :  { %4301 = vmatprep.subr.bf16.mxu0 %v4300_v20  ;;  %v1271_v20 = vld [vmem:[%s8552_s1 + $0x26f0] sm:$0xff]  ;;  %v3682_v26 = vpack.c.bf16 %v631_v41, %v629_v18  ;;  %v1289_v41 = vld [vmem:[%s8552_s1 + $0x2780] sm:$0xff]  ;;  %v1300_v40 = vld [vmem:[%s8552_s1 + $0x27d8] sm:$0xff] }
 0x24c   :  { %v651_v18 = vld [vmem:[%s8552_s1 + $0x1390] sm:$0xff]  ;;  %v1304_v51 = vld [vmem:[%s8552_s1 + $0x27f8] sm:$0xff] }
 0x24d   :  { %3663 = vmatpush1.bf16.msra.mxu1 %v3662_v27  ;;  %v4322_v27 = vpack.c.bf16 %v1271_v20, %v1269_v52  ;;  %v4340_v52 = vpack.c.bf16 %v1292_v14, %v1290_v13  ;;  %v654_v20 = vld [vmem:[%s8552_s1 + $0x13a8] sm:$0xff]  ;;  %v4427_v14 = vmov 0.0  }
 0x24e   :  { %4303 = vmatpush1.bf16.msra.mxu0 %v4302_v59  ;;  %3665 = vmatprep.subr.bf16.mxu1 %v3664_v32  ;;  %v3684_v59 = vpack.c.bf16 %v636_v45, %v634_v0  ;;  %v633_v32 = vld [vmem:[%s8552_s1 + $0x1300] sm:$0xff]  ;;  %v656_v0 = vld [vmem:[%s8552_s1 + $0x13b8] sm:$0xff]  ;;  %v1294_v45 = vld [vmem:[%s8552_s1 + $0x27a8] sm:$0xff] }
 0x24f   :  { %4305 = vmatprep.subr.bf16.mxu0 %v4304_v37  ;;  %v1275_v37 = vld [vmem:[%s8552_s1 + $0x2710] sm:$0xff]  ;;  %v3686_v42 = vpack.c.bf16 %v635_v34, %v633_v32  ;;  %v1293_v34 = vld [vmem:[%s8552_s1 + $0x27a0] sm:$0xff] }
 0x250   :  { %v655_v32 = vld [vmem:[%s8552_s1 + $0x13b0] sm:$0xff] }
 0x251   :  { %3667 = vmatpush1.bf16.msra.mxu1 %v3666_v12  ;;  %v4326_v12 = vpack.c.bf16 %v1275_v37, %v1273_v35  ;;  %v4344_v35 = vpack.c.bf16 %v1296_v23, %v1294_v45  ;;  %v658_v37 = vld [vmem:[%s8552_s1 + $0x13c8] sm:$0xff]  ;;  %v1325_v23 = vsub.s32 0, %v4700_v61 }
 0x252   :  { %4307 = vmatpush1.bf16.msra.mxu0 %v4306_v43  ;;  %3669 = vmatprep.subr.bf16.mxu1 %v3668_v44  ;;  %v3688_v43 = vpack.c.bf16 %v640_v39, %v638_v38  ;;  %v637_v44 = vld [vmem:[%s8552_s1 + $0x1320] sm:$0xff]  ;;  %v660_v38 = vld [vmem:[%s8552_s1 + $0x13d8] sm:$0xff]  ;;  %v1298_v39 = vld [vmem:[%s8552_s1 + $0x27c8] sm:$0xff] }
 0x253   :  { %4309 = vmatprep.subr.bf16.mxu0 %v4308_v47  ;;  %v1279_v47 = vld [vmem:[%s8552_s1 + $0x2730] sm:$0xff]  ;;  %v3690_v55 = vpack.c.bf16 %v639_v4, %v637_v44  ;;  %v1297_v4 = vld [vmem:[%s8552_s1 + $0x27c0] sm:$0xff] }
 0x254   :  { %v659_v44 = vld [vmem:[%s8552_s1 + $0x13d0] sm:$0xff] }
 0x255   :  { %3671 = vmatpush1.bf16.msra.mxu1 %v3670_v56  ;;  %v4330_v56 = vpack.c.bf16 %v1279_v47, %v1277_v22  ;;  %v4348_v22 = vpack.c.bf16 %v1300_v40, %v1298_v39  ;;  %v662_v47 = vld [vmem:[%s8552_s1 + $0x13e8] sm:$0xff] }
 0x256   :  { %4311 = vmatpush1.bf16.msra.mxu0 %v4310_v57  ;;  %3673 = vmatprep.subr.bf16.mxu1 %v3672_v29  ;;  %v3692_v57 = vpack.c.bf16 %v644_v49, %v642_v48  ;;  %v641_v29 = vld [vmem:[%s8552_s1 + $0x1340] sm:$0xff]  ;;  %v664_v48 = vld [vmem:[%s8552_s1 + $0x13f8] sm:$0xff]  ;;  %v1302_v49 = vld [vmem:[%s8552_s1 + $0x27e8] sm:$0xff] }
 0x257   :  { %4313 = vmatprep.subr.bf16.mxu0 %v4312_v62  ;;  %v1283_v62 = vld [vmem:[%s8552_s1 + $0x2750] sm:$0xff]  ;;  %v3694_v30 = vpack.c.bf16 %v643_v58, %v641_v29  ;;  %v4352_v58 = vpack.c.bf16 %v1304_v51, %v1302_v49 }
 0x258   :  { %v663_v29 = vld [vmem:[%s8552_s1 + $0x13f0] sm:$0xff] }
 0x259   :  { %3675 = vmatpush1.bf16.msra.mxu1 %v3674_v2  ;;  %v4334_v2 = vpack.c.bf16 %v1283_v62, %v1281_v60  ;;  %v1301_v60 = vld [vmem:[%s8552_s1 + $0x27e0] sm:$0xff]  ;;  %v1306_v62 = vld [vmem:[%s8552_s1 + $0x2808] sm:$0xff] }
 0x25a   :  { %4315 = vmatpush1.bf16.msra.mxu0 %v4314_v3  ;;  %3677 = vmatprep.subr.bf16.mxu1 %v3676_v28  ;;  %v3696_v3 = vpack.c.bf16 %v648_v21, %v646_v63  ;;  %v645_v28 = vld [vmem:[%s8552_s1 + $0x1360] sm:$0xff]  ;;  %v1308_v63 = vld [vmem:[%s8552_s1 + $0x2818] sm:$0xff] }
 0x25b   :  { %4317 = vmatprep.subr.bf16.mxu0 %v4316_v7  ;;  %v1287_v7 = vld [vmem:[%s8552_s1 + $0x2770] sm:$0xff]  ;;  %v3698_v15 = vpack.c.bf16 %v647_v33, %v645_v28  ;;  %v4356_v54 = vpack.c.bf16 %v1308_v63, %v1306_v62  ;;  %v1312_v28 = vld [vmem:[%s8552_s1 + $0x2838] sm:$0xff] }
 0x25d   :  { %3679 = vmatpush1.bf16.msra.mxu1 %v3678_v16  ;;  %v4338_v16 = vpack.c.bf16 %v1287_v7, %v1285_v5  ;;  %v1311_v7 = vld [vmem:[%s8552_s1 + $0x2830] sm:$0xff] }
 0x25e   :  { %4319 = vmatpush1.bf16.msra.mxu0 %v4318_v25  ;;  %3681 = vmatprep.subr.bf16.mxu1 %v3680_v17  ;;  %v3700_v25 = vpack.c.bf16 %v652_v10, %v650_v8  ;;  %v649_v17 = vld [vmem:[%s8552_s1 + $0x1380] sm:$0xff]  ;;  %v1314_v8 = vld [vmem:[%s8552_s1 + $0x2848] sm:$0xff]  ;;  %v1316_v10 = vld [vmem:[%s8552_s1 + $0x2858] sm:$0xff] }
 0x25f   :  { %4321 = vmatprep.subr.bf16.mxu0 %v4320_v19  ;;  %v1291_v19 = vld [vmem:[%s8552_s1 + $0x2790] sm:$0xff]  ;;  %v3702_v24 = vpack.c.bf16 %v651_v18, %v649_v17 }
 0x261   :  { %3683 = vmatpush1.bf16.msra.mxu1 %v3682_v26  ;;  %v4342_v26 = vpack.c.bf16 %v1291_v19, %v1289_v41  ;;  %v1317_v41 = vld [vmem:[%s8552_s1 + $0x2860] sm:$0xff] }
 0x262   :  { %4323 = vmatpush1.bf16.msra.mxu0 %v4322_v27  ;;  %3685 = vmatprep.subr.bf16.mxu1 %v3684_v59  ;;  %v3704_v27 = vpack.c.bf16 %v656_v0, %v654_v20  ;;  %v653_v59 = vld [vmem:[%s8552_s1 + $0x13a0] sm:$0xff]  ;;  %v3073_v20 = vld.sshfl [vmem:[%s8553_s0 + $0x50] sm:$0x3 pattern:$0x76325410] }
 0x263   :  { %4325 = vmatprep.subr.bf16.mxu0 %v4324_v36  ;;  %v1295_v36 = vld [vmem:[%s8552_s1 + $0x27b0] sm:$0xff]  ;;  %v3706_v9 = vpack.c.bf16 %v655_v32, %v653_v59 }
 0x265   :  { %3687 = vmatpush1.bf16.msra.mxu1 %v3686_v42  ;;  %v4346_v42 = vpack.c.bf16 %v1295_v36, %v1293_v34 }
 0x266   :  { %4327 = vmatpush1.bf16.msra.mxu0 %v4326_v12  ;;  %3689 = vmatprep.subr.bf16.mxu1 %v3688_v43  ;;  %v3708_v12 = vpack.c.bf16 %v660_v38, %v658_v37  ;;  %v657_v43 = vld [vmem:[%s8552_s1 + $0x13c0] sm:$0xff] }
 0x267   :  { %4329 = vmatprep.subr.bf16.mxu0 %v4328_v46  ;;  %v1299_v46 = vld [vmem:[%s8552_s1 + $0x27d0] sm:$0xff]  ;;  %v3710_v53 = vpack.c.bf16 %v659_v44, %v657_v43 }
 0x269   :  { %3691 = vmatpush1.bf16.msra.mxu1 %v3690_v55  ;;  %v4350_v55 = vpack.c.bf16 %v1299_v46, %v1297_v4 }
 0x26a   :  { %4331 = vmatpush1.bf16.msra.mxu0 %v4330_v56  ;;  %3693 = vmatprep.subr.bf16.mxu1 %v3692_v57  ;;  %v3712_v56 = vpack.c.bf16 %v664_v48, %v662_v47  ;;  %v661_v57 = vld [vmem:[%s8552_s1 + $0x13e0] sm:$0xff] }
 0x26b   :  { %4333 = vmatprep.subr.bf16.mxu0 %v4332_v31  ;;  %v1303_v31 = vld [vmem:[%s8552_s1 + $0x27f0] sm:$0xff]  ;;  %v3714_v21 = vpack.c.bf16 %v663_v29, %v661_v57 }
 0x26c   :  { %v4354_v1 = vpack.c.bf16 %v1303_v31, %v1301_v60 }
 0x26d   :  { %3695 = vmatpush1.bf16.msra.mxu1 %v3694_v30  ;;  %v1305_v30 = vld [vmem:[%s8552_s1 + $0x2800] sm:$0xff] }
 0x26e   :  { %4335 = vmatpush1.bf16.msra.mxu0 %v4334_v2  ;;  %3697 = vmatprep.subr.bf16.mxu1 %v3696_v3  ;;  %v1307_v2 = vld [vmem:[%s8552_s1 + $0x2810] sm:$0xff]  ;;  %v1310_v3 = vld [vmem:[%s8552_s1 + $0x2828] sm:$0xff] }
 0x26f   :  { %4337 = vmatprep.subr.bf16.mxu0 %v4336_v11  ;;  %v4358_v33 = vpack.c.bf16 %v1307_v2, %v1305_v30  ;;  %v4360_v5 = vpack.c.bf16 %v1312_v28, %v1310_v3  ;;  %v1309_v11 = vld [vmem:[%s8552_s1 + $0x2820] sm:$0xff] }
 0x270   :  { %v4362_v13 = vpack.c.bf16 %v1311_v7, %v1309_v11 }
 0x271   :  { %3699 = vmatpush1.bf16.msra.mxu1 %v3698_v15  ;;  %v4364_v15 = vpack.c.bf16 %v1316_v10, %v1314_v8 }
 0x272   :  { %4339 = vmatpush1.bf16.msra.mxu0 %v4338_v16  ;;  %3701 = vmatprep.subr.bf16.mxu1 %v3700_v25  ;;  %v1315_v16 = vld [vmem:[%s8552_s1 + $0x2850] sm:$0xff]  ;;  %v1318_v25 = vld [vmem:[%s8552_s1 + $0x2868] sm:$0xff] }
 0x273   :  { %4341 = vmatprep.subr.bf16.mxu0 %v4340_v52  ;;  %v1319_v52 = vld [vmem:[%s8552_s1 + $0x2870] sm:$0xff] }
 0x274   :  { %v4370_v19 = vpack.c.bf16 %v1319_v52, %v1317_v41 }
 0x275   :  { %3703 = vmatpush1.bf16.msra.mxu1 %v3702_v24  ;;  %v1321_v24 = vld [vmem:[%s8554_s2] sm:$0x3] }
 0x276   :  { %4343 = vmatpush1.bf16.msra.mxu0 %v4342_v26  ;;  %3705 = vmatprep.subr.bf16.mxu1 %v3704_v27  ;;  %v1329_v26 = vsub.s32 1, %v4700_v61  ;;  %v1326_v27 = vrot.slane %v1321_v24, %v1325_v23 }
 0x277   :  { %4345 = vmatprep.subr.bf16.mxu0 %v4344_v35 }
 0x278   :  { %v1330_v59 = vrot.slane %v1321_v24, %v1329_v26 }
 0x279   :  { %3707 = vmatpush1.bf16.msra.mxu1 %v3706_v9 }
 0x27a   :  { %4347 = vmatpush1.bf16.msra.mxu0 %v4346_v42  ;;  %3709 = vmatprep.subr.bf16.mxu1 %v3708_v12 }
 0x27b   :  { %4349 = vmatprep.subr.bf16.mxu0 %v4348_v22 }
 0x27d   :  { %3711 = vmatpush1.bf16.msra.mxu1 %v3710_v53 }
 0x27e   :  { %4351 = vmatpush1.bf16.msra.mxu0 %v4350_v55  ;;  %3713 = vmatprep.subr.bf16.mxu1 %v3712_v56 }
 0x27f   :  { %4353 = vmatprep.subr.bf16.mxu0 %v4352_v58 }
 0x281   :  { %3715 = vmatpush1.bf16.msra.mxu1 %v3714_v21 }
 0x282   :  { %4355 = vmatpush1.bf16.msra.mxu0 %v4354_v1 }
 0x283   :  { %4357 = vmatprep.subr.bf16.mxu0 %v4356_v54 }
 0x284   :  { %2268 = vmatmul.mubr.f32.vlgmr.msra.gmra.mrb[0].mxu1 %v8126_v50  ;;  %v1313_v50 = vld [vmem:[%s8552_s1 + $0x2840] sm:$0xff] }
 0x285   :  { %2978 = vmatmul.mubr.f32.vlgmr.msra.gmra.mrb[0].mxu0 %v8135_v6  ;;  %v1320_v6 = vld [vmem:[%s8552_s1 + $0x2878] sm:$0xff]  ;;  %v4366_v17 = vpack.c.bf16 %v1315_v16, %v1313_v50 }
 0x286   :  { %4359 = vmatpush1.bf16.msra.mxu0 %v4358_v33  ;;  %3048 = vmatprep.mubr.f32.mxu0 %v4427_v14  ;;  %v4368_v18 = vpack.c.bf16 %v1320_v6, %v1318_v25 }
 0x287   :  { %4361 = vmatprep.subr.bf16.mxu0 %v4360_v5 }
 0x28a   :  { %4363 = vmatpush1.bf16.msra.mxu0 %v4362_v13 }
 0x28b   :  { %4365 = vmatprep.subr.bf16.mxu0 %v4364_v15 }
 0x28e   :  { %4367 = vmatpush1.bf16.msra.mxu0 %v4366_v17 }
 0x28f   :  { %4369 = vmatprep.subr.bf16.mxu0 %v4368_v18 }
 0x292   :  { %4371 = vmatpush1.bf16.msra.mxu0 %v4370_v19 }
 0x295   :  { %3074 = vmatmul.mubr.msk.f32.vlgmr.msra.gmra.mrb[0].mxu0 %vm1561_vm0, %v3073_v20 }
 0x357   :  { %v2269_v0 = vpop.f32.mrb[0].mxu1 }
 0x358   :  { %v2271_v45 = vpop.f32.mrb[1].mxu1  ;;  %v4372_v32 = vadd.f32 %v2269_v0, %v1326_v27 }
 0x359   :  { %v4374_v34 = vadd.f32 %v2271_v45, %v1330_v59 }
 0x368   :  { %v3050_v35 = vpop.f32.mrb[0].mxu0 }
 0x369   :  { %v4373_v36 = vadd.f32 %v4372_v32, %v3050_v35  ;;  %v3052_v37 = vpop.f32.mrb[1].mxu0 }
 0x36a   :  { %v4375_v38 = vadd.f32 %v4374_v34, %v3052_v37 }
 0x36b   :  { %v3055_v39 = vmax.f32 %v4373_v36, 0.0 }
 0x36c   :  { %v3056_v40 = vmax.f32 %v4375_v38, 0.0 }
 0x36e   :  { %v3059_v9 = vcombine.low %v3055_v39, %v3056_v40 }
 0x370   :  { %3075 = vst.sshfl [vmem:[%s8555_s3] sm:$0x33 pattern:$0x76325410] %v3059_v9 }

// kernel: cvae_model_forward.9
= control target key start
LH: loop header
LB: loop body
LE: loop exit
PB: predicated region body
PF: predicated region fallthrough
CT: control target
= control target key end

     0   :  { %s1710_s0 = inlined_call_operand.vmem [shape: f32[2,256], index: 0, kind: input, shape index: {}]   ;;  %s1711_s1 = inlined_call_operand.vmem [shape: f32[2,2], index: 1, kind: input, shape index: {}]   ;;  %s1712_s2 = inlined_call_operand.vmem [shape: f32[2,20], index: 2, kind: input, shape index: {}]   ;;  %s1713_s3 = inlined_call_operand.vmem [shape: f32[2,8], index: 3, kind: input, shape index: {}]   ;;  %s1714_s4 = inlined_call_operand.vmem [shape: f32[20,32], index: 4, kind: input, shape index: {}]   ;;  %s1715_s5 = inlined_call_operand.vmem [shape: f32[256,32], index: 5, kind: input, shape index: {}]   ;;  %s1716_s6 = inlined_call_operand.vmem [shape: f32[2,32], index: 6, kind: input, shape index: {}]   ;;  %s1717_s7 = inlined_call_operand.vmem [shape: f32[1,32], index: 7, kind: input, shape index: {}]   ;;  %s1718_s8 = inlined_call_operand.vmem [shape: f32[32,8], index: 8, kind: input, shape index: {}]   ;;  %s1719_s9 = inlined_call_operand.vmem [shape: f32[1,8], index: 9, kind: input, shape index: {}]   ;;  %s1720_s10 = inlined_call_operand.vmem [shape: f32[32,8], index: 10, kind: input, shape index: {}]   ;;  %s1721_s11 = inlined_call_operand.vmem [shape: f32[1,8], index: 11, kind: input, shape index: {}]   ;;  %s1722_s12 = inlined_call_operand.vmem [shape: f32[8,32], index: 12, kind: input, shape index: {}]   ;;  %s1723_s13 = inlined_call_operand.vmem [shape: f32[256,32], index: 13, kind: input, shape index: {}]   ;;  %s1724_s14 = inlined_call_operand.vmem [shape: f32[2,32], index: 14, kind: input, shape index: {}]   ;;  %s1725_s15 = inlined_call_operand.vmem [shape: f32[1,32], index: 15, kind: input, shape index: {}]   ;;  %s1726_s16 = inlined_call_operand.vmem [shape: f32[32,20], index: 16, kind: input, shape index: {}]   ;;  %s1727_s17 = inlined_call_operand.vmem [shape: f32[1,20], index: 17, kind: input, shape index: {}]   ;;  %s1728_s18 = inlined_call_operand.hbm [shape: f32[2,8], index: 18, kind: output, shape index: {0}]   ;;  %s1729_s19 = inlined_call_operand.hbm [shape: f32[2,8], index: 19, kind: output, shape index: {1}]   ;;  %s1730_s20 = inlined_call_operand.hbm [shape: f32[2,20], index: 20, kind: output, shape index: {2}]  }
   0x1   :  { %1732 = sst [smem:[#allocation9_spill]] %s1710_s0 }
   0x2   :  { %1733 = sst [smem:[#allocation10_spill]] %s1711_s1 }
   0x3   :  { %1734 = sst [smem:[#allocation11_spill]] %s1712_s2 }
   0x4   :  { %1735 = sst [smem:[#allocation12_spill]] %s1713_s3 }
   0x5   :  { %1736 = sst [smem:[#allocation13_spill]] %s1714_s4 }
   0x6   :  { %26 = vsyncpa [#allocation3], 0  ;;  %v86_v0 = vld [vmem:[%s1715_s5 + $0x80] sm:$0xff]  ;;  %v87_v1 = vld [vmem:[%s1715_s5 + $0x88] sm:$0xff]  ;;  %v1244_v7 = vmov 0.0   ;;  %vm1245_vm0 = vmmov 0  }
   0x7   :  { %v70_v2 = vld [vmem:[%s1715_s5] sm:$0xff]  ;;  %v1081_v3 = vpack.c.bf16 %v87_v1, %v86_v0  ;;  %v71_v4 = vld [vmem:[%s1715_s5 + $0x8] sm:$0xff]  ;;  %v88_v5 = vld [vmem:[%s1715_s5 + $0x90] sm:$0xff]  ;;  %1033 = vmatprep.subr.mxu1 %v1244_v7  ;;  %1035 = vmatprep.mubr.msk.f32.mxu1 %vm1245_vm0, %v1244_v7  ;;  %s1737_s27 = sld [smem:[#allocation9_spill]]  ;;  %vm266_vm1 = vcmask 1041408   ;;  %s1738_s0 = sld [smem:[#allocation10_spill]] }
   0x8   :  { %v89_v6 = vld [vmem:[%s1715_s5 + $0x98] sm:$0xff]  ;;  %v1083_v8 = vpack.c.bf16 %v71_v4, %v70_v2  ;;  %v72_v10 = vld [vmem:[%s1715_s5 + $0x10] sm:$0xff]  ;;  %v90_v12 = vld [vmem:[%s1715_s5 + $0xa0] sm:$0xff]  ;;  %vm262_vm2 = vcmask 15360  }
   0x9   :  { %v1085_v9 = vpack.c.bf16 %v89_v6, %v88_v5  ;;  %v73_v11 = vld [vmem:[%s1715_s5 + $0x18] sm:$0xff]  ;;  %1082 = vmatprep.subr.bf16.mxu0 %v1081_v3  ;;  %v91_v13 = vld [vmem:[%s1715_s5 + $0xa8] sm:$0xff]  ;;  %v74_v16 = vld [vmem:[%s1715_s5 + $0x20] sm:$0xff] }
   0xa   :  { %1084 = vmatpush3.bf16.msra.mxu0 %v1083_v8  ;;  %v1087_v14 = vpack.c.bf16 %v73_v11, %v72_v10  ;;  %v1089_v15 = vpack.c.bf16 %v91_v13, %v90_v12  ;;  %v75_v17 = vld [vmem:[%s1715_s5 + $0x28] sm:$0xff]  ;;  %v92_v18 = vld [vmem:[%s1715_s5 + $0xb0] sm:$0xff]  ;;  %v93_v19 = vld [vmem:[%s1715_s5 + $0xb8] sm:$0xff] }
   0xb   :  { %1086 = vmatprep.subr.bf16.mxu0 %v1085_v9  ;;  %v1091_v20 = vpack.c.bf16 %v75_v17, %v74_v16  ;;  %v1093_v21 = vpack.c.bf16 %v93_v19, %v92_v18  ;;  %v76_v22 = vld [vmem:[%s1715_s5 + $0x30] sm:$0xff]  ;;  %v77_v23 = vld [vmem:[%s1715_s5 + $0x38] sm:$0xff]  ;;  %v94_v24 = vld [vmem:[%s1715_s5 + $0xc0] sm:$0xff] }
   0xc   :  { %v95_v25 = vld [vmem:[%s1715_s5 + $0xc8] sm:$0xff]  ;;  %v1095_v28 = vpack.c.bf16 %v77_v23, %v76_v22  ;;  %v261_v29 = vld [vmem:[%s1716_s6] sm:$0x3] }
   0xd   :  { %v1415_v26 = vld.sshfl [vmem:[%s1737_s27] sm:$0x33 pattern:$0x76325410]  ;;  %v1097_v31 = vpack.c.bf16 %v95_v25, %v94_v24  ;;  %v79_v33 = vld [vmem:[%s1715_s5 + $0x48] sm:$0xff] }
   0xe   :  { %1088 = vmatpush3.bf16.msra.mxu0 %v1087_v14  ;;  %v1419_v27 = vcombine.high %v1415_v26, %v1415_v26  ;;  %v1427_v30 = vld [vmem:[%s1738_s0] sm:$0x3] }
   0xf   :  { %1090 = vmatprep.subr.bf16.mxu0 %v1089_v15  ;;  %v78_v32 = vld [vmem:[%s1715_s5 + $0x40] sm:$0xff] }
  0x10   :  { %177 = vmatprep.mubr.f32.mxu0 %v1419_v27 }
  0x12   :  { %1092 = vmatpush3.bf16.msra.mxu0 %v1091_v20 }
  0x13   :  { %1094 = vmatprep.subr.bf16.mxu0 %v1093_v21 }
  0x14   :  { %27 = vsyncpa [#allocation5], 0  ;;  %v96_v34 = vld [vmem:[%s1715_s5 + $0xd0] sm:$0xff]  ;;  %v97_v35 = vld [vmem:[%s1715_s5 + $0xd8] sm:$0xff]  ;;  %1034 = vmatpush3.msk.msra.mxu1 %vm266_vm1, %v261_v29  ;;  %v1246_v36 = vmov 0.0|0.0   ;;  %v1099_v37 = vpack.c.bf16 %v79_v33, %v78_v32  ;;  %s1739_s30 = sld [smem:[#allocation13_spill]] }
  0x15   :  { %1036 = vmatmul.mubr.msk.f32.vlgmr.msra.gmra.mrb[0].mxu1 %vm262_vm2, %v1427_v30  ;;  %1116 = vmatprep.subr.bf16.mxu1 %v1246_v36  ;;  %v1101_v38 = vpack.c.bf16 %v97_v35, %v96_v34  ;;  %v80_v39 = vld [vmem:[%s1715_s5 + $0x50] sm:$0xff]  ;;  %v81_v40 = vld [vmem:[%s1715_s5 + $0x58] sm:$0xff]  ;;  %v98_v41 = vld [vmem:[%s1715_s5 + $0xe0] sm:$0xff]  ;;  %vm187_vm3 = vcmask 1043456   ;;  %s1740_s6 = sld [smem:[#allocation11_spill]]  ;;  %vm183_vm4 = vcmask 162816  }
  0x16   :  { %1096 = vmatpush3.bf16.msra.mxu0 %v1095_v28  ;;  %1046 = vmatprep.mubr.msk.f32.mxu1 %vm1245_vm0, %v1244_v7  ;;  %v99_v42 = vld [vmem:[%s1715_s5 + $0xe8] sm:$0xff]  ;;  %v1103_v43 = vpack.c.bf16 %v81_v40, %v80_v39  ;;  %v82_v45 = vld [vmem:[%s1715_s5 + $0x60] sm:$0xff]  ;;  %v100_v47 = vld [vmem:[%s1715_s5 + $0xf0] sm:$0xff]  ;;  %vm361_vm5 = vcmask 261120   ;;  %vm867_vm6 = vcmask 58368   ;;  %s1741_s29 = sld [smem:[#allocation12_spill]] }
  0x17   :  { %1098 = vmatprep.subr.bf16.mxu0 %v1097_v31  ;;  %v1105_v44 = vpack.c.bf16 %v99_v42, %v98_v41  ;;  %v83_v46 = vld [vmem:[%s1715_s5 + $0x68] sm:$0xff]  ;;  %v101_v48 = vld [vmem:[%s1715_s5 + $0xf8] sm:$0xff]  ;;  %v84_v51 = vld [vmem:[%s1715_s5 + $0x70] sm:$0xff]  ;;  %vm625_vm7 = vcmask 64512  }
  0x18   :  { %v1107_v49 = vpack.c.bf16 %v83_v46, %v82_v45  ;;  %v1109_v50 = vpack.c.bf16 %v101_v48, %v100_v47  ;;  %v85_v52 = vld [vmem:[%s1715_s5 + $0x78] sm:$0xff]  ;;  %v350_v59 = vld [vmem:[%s1718_s8] sm:$0xff]  ;;  %v351_v60 = vld [vmem:[%s1718_s8 + $0x8] sm:$0xff] }
  0x19   :  { %v1111_v53 = vpack.c.bf16 %v85_v52, %v84_v51  ;;  %v1117_v61 = vpack.c.bf16 %v351_v60, %v350_v59  ;;  %v352_v62 = vld [vmem:[%s1718_s8 + $0x10] sm:$0xff]  ;;  %v353_v63 = vld [vmem:[%s1718_s8 + $0x18] sm:$0xff]  ;;  %v918_v10 = vld [vmem:[%s1717_s7] ss:$0 sm:$0xff]  ;;  %s1247_s7 = smov [#allocation4]  }
  0x1a   :  { %1100 = vmatpush3.bf16.msra.mxu0 %v1099_v37  ;;  %v67_v54 = vld [vmem:[%s1739_s30] sm:$0xff]  ;;  %v68_v55 = vld [vmem:[%s1739_s30 + $0x8] sm:$0xff]  ;;  %v69_v57 = vld [vmem:[%s1739_s30 + $0x10] sm:$0xf]  ;;  %v1120_v0 = vpack.c.bf16 %v353_v63, %v352_v62  ;;  %s888_s24 = sshll.u32 %s1247_s7, 4  ;;  %s889_s24 = int_to_ptr.vmem [resolvable:$true] %s888_s24 }
  0x1b   :  { %1102 = vmatprep.subr.bf16.mxu0 %v1101_v38  ;;  %v1114_v56 = vpack.c.bf16 %v68_v55, %v67_v54  ;;  %v66_v58 = vld [vmem:[%s1740_s6] sm:$0x3]  ;;  %1118 = vmatpush3.bf16.msra.mxu1 %v1117_v61  ;;  %v436_v13 = vld [vmem:[%s1720_s10 + $0x8] sm:$0xff]  ;;  %v437_v17 = vld [vmem:[%s1720_s10 + $0x10] sm:$0xff]  ;;  %s1174_s25 = scalar_lea.vmem %s889_s24, 32  ;;  %p1179_p1 = scmp.lt.s32.totalorder %s889_s24, %s889_s24 }
  0x1c   :  { %1119 = vmatprep.subr.bf16.mxu1 %v1246_v36  ;;  %v435_v12 = vld [vmem:[%s1720_s10] sm:$0xff]  ;;  %v438_v18 = vld [vmem:[%s1720_s10 + $0x18] sm:$0xff]  ;;  %v540_v20 = vld [vmem:[%s1723_s13 + $0x88] sm:$0xff]  ;;  %p1175_p0 = scmp.ne.s32.totalorder %s889_s24, %s1174_s25  ;;  %p1180_p2 = scmp.lt.s32.totalorder %s1174_s25, %s1174_s25 }
  0x1d   :  { %v1123_v15 = vpack.c.bf16 %v436_v13, %v435_v12  ;;  %v539_v19 = vld [vmem:[%s1723_s13 + $0x80] sm:$0xff]  ;;  %v1126_v21 = vpack.c.bf16 %v438_v18, %v437_v17  ;;  %v524_v24 = vld [vmem:[%s1723_s13 + $0x8] sm:$0xff]  ;;  %v541_v25 = vld [vmem:[%s1723_s13 + $0x90] sm:$0xff] }
  0x1e   :  { %1104 = vmatpush3.bf16.msra.mxu0 %v1103_v43  ;;  %v1128_v22 = vpack.c.bf16 %v540_v20, %v539_v19  ;;  %v523_v23 = vld [vmem:[%s1723_s13] sm:$0xff]  ;;  %v542_v28 = vld [vmem:[%s1723_s13 + $0x98] sm:$0xff]  ;;  %v525_v32 = vld [vmem:[%s1723_s13 + $0x10] sm:$0xff]  ;;  %p1181_p3 = por %p1180_p2, %p1179_p1 }
  0x1f   :  { %1106 = vmatprep.subr.bf16.mxu0 %v1105_v44  ;;  %1121 = vmatpush3.bf16.msra.mxu1 %v1120_v0  ;;  %v1130_v29 = vpack.c.bf16 %v524_v24, %v523_v23  ;;  %v1132_v31 = vpack.c.bf16 %v542_v28, %v541_v25  ;;  %v526_v33 = vld [vmem:[%s1723_s13 + $0x18] sm:$0xff]  ;;  %v543_v35 = vld [vmem:[%s1723_s13 + $0xa0] sm:$0xff]  ;;  %v544_v37 = vld [vmem:[%s1723_s13 + $0xa8] sm:$0xff] }
  0x20   :  { %1122 = vmatprep.subr.bf16.mxu1 %v1246_v36  ;;  %v1134_v34 = vpack.c.bf16 %v526_v33, %v525_v32  ;;  %v1136_v38 = vpack.c.bf16 %v544_v37, %v543_v35  ;;  %v527_v39 = vld [vmem:[%s1723_s13 + $0x20] sm:$0xff]  ;;  %v528_v40 = vld [vmem:[%s1723_s13 + $0x28] sm:$0xff]  ;;  %v546_v42 = vld [vmem:[%s1723_s13 + $0xb8] sm:$0xff]  ;;  %p1182_p4 = pnand %p1181_p3, %p1175_p0 }
  0x21   :  { %v1138_v41 = vpack.c.bf16 %v528_v40, %v527_v39  ;;  %v529_v44 = vld [vmem:[%s1723_s13 + $0x30] sm:$0xff]  ;;  %v530_v45 = vld [vmem:[%s1723_s13 + $0x38] sm:$0xff]  ;;  %v547_v47 = vld [vmem:[%s1723_s13 + $0xc0] sm:$0xff] }
  0x22   :  { %1108 = vmatpush3.bf16.msra.mxu0 %v1107_v49  ;;  %v1142_v46 = vpack.c.bf16 %v530_v45, %v529_v44  ;;  %v548_v48 = vld [vmem:[%s1723_s13 + $0xc8] sm:$0xff]  ;;  %v550_v54 = vld [vmem:[%s1723_s13 + $0xd8] sm:$0xff]  ;;  %v551_v59 = vld [vmem:[%s1723_s13 + $0xe0] sm:$0xff] }
  0x23   :  { %1110 = vmatprep.subr.bf16.mxu0 %v1109_v50  ;;  %v1144_v49 = vpack.c.bf16 %v548_v48, %v547_v47  ;;  %v531_v50 = vld [vmem:[%s1723_s13 + $0x40] sm:$0xff]  ;;  %v532_v51 = vld [vmem:[%s1723_s13 + $0x48] sm:$0xff]  ;;  %v553_v0 = vld [vmem:[%s1723_s13 + $0xf0] sm:$0xff] }
  0x24   :  { %v1146_v52 = vpack.c.bf16 %v532_v51, %v531_v50  ;;  %v552_v60 = vld [vmem:[%s1723_s13 + $0xe8] sm:$0xff]  ;;  %v535_v61 = vld [vmem:[%s1723_s13 + $0x60] sm:$0xff] }
  0x25   :  { %v1152_v62 = vpack.c.bf16 %v552_v60, %v551_v59  ;;  %v536_v63 = vld [vmem:[%s1723_s13 + $0x68] sm:$0xff]  ;;  %v921_v13 = vld [vmem:[%s1721_s11] ss:$0 sm:$0xff] }
  0x26   :  { %1112 = vmatpush3.bf16.msra.mxu0 %v1111_v53  ;;  %v549_v53 = vld [vmem:[%s1723_s13 + $0xd0] sm:$0xff]  ;;  %v783_v28 = vld [vmem:[%s1726_s16] sm:$0xff] }
  0x27   :  { %1113 = vmatprep.subr.bf16.mxu0 %v1246_v36  ;;  %v1148_v55 = vpack.c.bf16 %v550_v54, %v549_v53 }
  0x29   :  { %178 = vmatmul.mubr.f32.vlgmr.msra.gmra.mrb[0].mxu0 %v1415_v26 }
  0x2a   :  { %1115 = vmatpush3.bf16.msra.mxu0 %v1114_v56  ;;  %1030 = vmatprep.mubr.msk.f32.mxu0 %vm1245_vm0, %v1244_v7  ;;  %v533_v56 = vld [vmem:[%s1723_s13 + $0x50] sm:$0xff] }
  0x2b   :  { %1028 = vmatprep.subr.mxu0 %v1244_v7 }
  0x2e   :  { %1029 = vmatpush3.msk.msra.mxu0 %vm187_vm3, %v69_v57  ;;  %v534_v57 = vld [vmem:[%s1723_s13 + $0x58] sm:$0xff] }
  0x2f   :  { %1031 = vmatmul.mubr.msk.f32.vlgmr.msra.gmra.mrb[2].mxu0 %vm183_vm4, %v66_v58  ;;  %1060 = vmatprep.subr.mxu0 %v1244_v7  ;;  %v1150_v58 = vpack.c.bf16 %v534_v57, %v533_v56 }
  0x30   :  { %1062 = vmatprep.mubr.msk.f32.mxu0 %vm1245_vm0, %v1244_v7 }
  0xe8   :  { %v336_v1 = vpop.f32.mrb[0].mxu1 }
  0xe9   :  { %v1037_v2 = vpop.f32.mrb[1].mxu1 }
  0xea   :  { %v1154_v2 = vpack.c.bf16 %v536_v63, %v535_v61 }
  0xfc   :  { %v961_v3 = vpop.f32.mrb[0].mxu0 }
  0xfd   :  { %v962_v4 = vpop.f32.mrb[1].mxu0 }
  0xfe   :  { %v963_v5 = vadd.f32 %v962_v4, %v961_v3  ;;  %v537_v4 = vld [vmem:[%s1723_s13 + $0x70] sm:$0xff] }
 0x102   :  { %v257_v6 = vpop.f32.mrb[2].mxu0 }
 0x103   :  { %v258_v8 = vadd.f32 %v963_v5, %v257_v6  ;;  %v1032_v9 = vpop.f32.mrb[3].mxu0  ;;  %v538_v5 = vld [vmem:[%s1723_s13 + $0x78] sm:$0xff]  ;;  %v522_v6 = vld [vmem:[%s1722_s12] sm:$0xff] }
 0x104   :  { %1061 = vmatpush3.msra.mxu0 %v522_v6  ;;  %v919_v9 = vld [vmem:[%s1719_s9] ss:$0 sm:$0xff] }
 0x105   :  { %v340_v11 = vadd.f32 %v336_v1, %v258_v8  ;;  %v554_v1 = vld [vmem:[%s1723_s13 + $0xf8] sm:$0xff]  ;;  %1065 = vmatprep.subr.mxu0 %v1244_v7  ;;  %v1158_v8 = vpack.c.bf16 %v538_v5, %v537_v4 }
 0x106   :  { %v1156_v3 = vpack.c.bf16 %v554_v1, %v553_v0 }
 0x107   :  { %v348_v14 = vadd.f32 %v918_v10, %v340_v11 }
 0x109   :  { %v349_v16 = vmax.f32 %v348_v14, 0.0 }
 0x10b   :  { %1047 = vmatmul.mubr.msk.f32.vlgmr.msra.gmra.mrb[2].mxu1 %vm361_vm5, %v349_v16 }
 0x10c   :  { %1124 = vmatpush3.bf16.msra.mxu1 %v1123_v15  ;;  %1057 = vmatprep.mubr.msk.f32.mxu1 %vm1245_vm0, %v1244_v7 }
 0x10d   :  { %1125 = vmatprep.subr.bf16.mxu1 %v1246_v36 }
 0x110   :  { %1127 = vmatpush3.bf16.msra.mxu1 %v1126_v21 }
 0x111   :  { %1129 = vmatprep.subr.bf16.mxu1 %v1128_v22  ;;  %v699_v22 = vld [vmem:[%s1724_s14] sm:$0x3] }
 0x113   :  { %1058 = vmatmul.mubr.msk.f32.vlgmr.msra.gmra.mrb[4].mxu1 %vm361_vm5, %v349_v16 }
 0x114   :  { %1131 = vmatpush3.bf16.msra.mxu1 %v1130_v29  ;;  %619 = vmatprep.mubr.f32.mxu1 %v1419_v27  ;;  %v545_v27 = vld [vmem:[%s1723_s13 + $0xb0] sm:$0xff]  ;;  %v784_v29 = vld [vmem:[%s1726_s16 + $0x8] sm:$0xff] }
 0x115   :  { %1133 = vmatprep.subr.bf16.mxu1 %v1132_v31  ;;  %v1140_v43 = vpack.c.bf16 %v546_v42, %v545_v27  ;;  %v1161_v31 = vpack.c.bf16 %v784_v29, %v783_v28 }
 0x118   :  { %1135 = vmatpush3.bf16.msra.mxu1 %v1134_v34 }
 0x119   :  { %1137 = vmatprep.subr.bf16.mxu1 %v1136_v38  ;;  %v926_v38 = vld [vmem:[%s1725_s15] ss:$0 sm:$0xff] }
 0x11c   :  { %1139 = vmatpush3.bf16.msra.mxu1 %v1138_v41 }
 0x11d   :  { %1141 = vmatprep.subr.bf16.mxu1 %v1140_v43 }
 0x120   :  { %1143 = vmatpush3.bf16.msra.mxu1 %v1142_v46 }
 0x121   :  { %1145 = vmatprep.subr.bf16.mxu1 %v1144_v49 }
 0x124   :  { %1147 = vmatpush3.bf16.msra.mxu1 %v1146_v52 }
 0x125   :  { %1149 = vmatprep.subr.bf16.mxu1 %v1148_v55 }
 0x128   :  { %1151 = vmatpush3.bf16.msra.mxu1 %v1150_v58 }
 0x129   :  { %1153 = vmatprep.subr.bf16.mxu1 %v1152_v62 }
 0x12c   :  { %1155 = vmatpush3.bf16.msra.mxu1 %v1154_v2 }
 0x12d   :  { %1157 = vmatprep.subr.bf16.mxu1 %v1156_v3 }
 0x130   :  { %1159 = vmatpush3.bf16.msra.mxu1 %v1158_v8 }
 0x133   :  { %620 = vmatmul.mubr.f32.vlgmr.msra.gmra.mrb[6].mxu1 %v1415_v26  ;;  %v516_v26 = vld [vmem:[%s1741_s29] sm:$0x3] }
 0x1de   :  { %v431_v10 = vpop.f32.mrb[2].mxu1 }
 0x1df   :  { %v432_v11 = vadd.f32 %v919_v9, %v431_v10  ;;  %v1048_v12 = vpop.f32.mrb[3].mxu1 }
 0x1e1   :  { %868 = vst.msk [vmem:[#allocation2] sm:$0x3] %vm867_vm6, %v432_v11 }
 0x1e6   :  { %v512_v14 = vpop.f32.mrb[4].mxu1 }
 0x1e7   :  { %v513_v15 = vadd.f32 %v921_v13, %v512_v14  ;;  %v1059_v16 = vpop.f32.mrb[5].mxu1 }
 0x1e9   :  { %v517_v17 = vmul.f32 0.5, %v513_v15  ;;  %869 = vst.msk [vmem:[#allocation4] sm:$0x3] %vm867_vm6, %v513_v15 }
 0x1eb   :  { %v518_v18 = vmul.f32 1.442695, %v517_v17 }
 0x1ed   :  { %1172 = vpow2.f32 %v518_v18 }
 0x1f7   :  { %v1173_v19 = vpop.eup %1172 }
 0x1f8   :  { %v520_v20 = vmul.f32 %v1173_v19, %v516_v26 }
 0x1fa   :  { %v521_v21 = vadd.f32 %v520_v20, %v432_v11 }
 0x1fc   :  { %1063 = vmatmul.mubr.msk.f32.vlgmr.msra.gmra.mrb[4].mxu0 %vm625_vm7, %v521_v21 }
 0x1fd   :  { %1066 = vmatpush3.msk.msra.mxu0 %vm266_vm1, %v699_v22  ;;  %1067 = vmatprep.mubr.msk.f32.mxu0 %vm1245_vm0, %v1244_v7 }
 0x1fe   :  { %1160 = vmatprep.subr.bf16.mxu0 %v1246_v36 }
 0x200   :  { %1068 = vmatmul.mubr.msk.f32.vlgmr.msra.gmra.mrb[6].mxu0 %vm262_vm2, %v1427_v30  ;;  %v785_v30 = vld [vmem:[%s1726_s16 + $0x10] sm:$0xff] }
 0x201   :  { %1078 = vmatprep.mubr.msk.f32.mxu0 %vm1245_vm0, %v1244_v7  ;;  %1162 = vmatpush3.bf16.msra.mxu0 %v1161_v31  ;;  %v786_v7 = vld [vmem:[%s1726_s16 + $0x18] sm:$0xff]  ;;  %s1248_s16 = smov [#allocation2]  }
 0x202   :  { %1163 = vmatprep.subr.bf16.mxu0 %v1246_v36  ;;  %v1164_v32 = vpack.c.bf16 %v786_v7, %v785_v30  ;;  %s878_s2 = sshll.u32 %s1248_s16, 4  ;;  %s879_s2 = int_to_ptr.vmem [resolvable:$true] %s878_s2 }
 0x205   :  { %1165 = vmatpush3.bf16.msra.mxu0 %v1164_v32 }
 0x206   :  { %v1012_v23 = vpop.f32.mrb[6].mxu1 }
 0x207   :  { %v1013_v24 = vpop.f32.mrb[7].mxu1 }
 0x208   :  { %v1014_v25 = vadd.f32 %v1013_v24, %v1012_v23 }
 0x2cf   :  { %v695_v33 = vpop.f32.mrb[4].mxu0 }
 0x2d0   :  { %v696_v34 = vadd.f32 %v1014_v25, %v695_v33  ;;  %v1064_v35 = vpop.f32.mrb[5].mxu0 }
 0x2d3   :  { %v769_v37 = vpop.f32.mrb[6].mxu0 }
 0x2d4   :  { %v773_v39 = vadd.f32 %v769_v37, %v696_v34  ;;  %v1069_v36 = vpop.f32.mrb[7].mxu0 }
 0x2d6   :  { %v781_v40 = vadd.f32 %v926_v38, %v773_v39 }
 0x2d8   :  { %v782_v27 = vmax.f32 %v781_v40, 0.0 }
 0x2da   :  { %1079 = vmatmul.mubr.msk.f32.vlgmr.msra.gmra.mrb[8].mxu0 %vm361_vm5, %v782_v27 }
 0x2db   :  { %1185 = shalt.err (!%p1182_p4)
}
 0x2dc   :  { %s1186_s10 = scalar_lea.hbm %s1729_s19, 32 }
 0x2dd   :  { %p1187_p5 = scmp.ne.s32.totalorder %s1729_s19, %s1186_s10  ;;  %p1190_p6 = scmp.lt.u32.totalorder %s1186_s10, %s1729_s19 }
 0x2df   :  { %p1192_p7 = pnand %p1190_p6, %p1187_p5 }
 0x2e1   :  { %1195 = shalt.err (!%p1192_p7)
}
 0x2e2   :  { %891 = dma.vmem_to_hbm [thread:$0]  %s889_s24, 32, %s1729_s19, [#allocation5]  }
 0x2e3   :  { %s1196_s29 = scalar_lea.vmem %s879_s2, 32  ;;  %p1201_p9 = scmp.lt.s32.totalorder %s879_s2, %s879_s2 }
 0x2e4   :  { %p1197_p8 = scmp.ne.s32.totalorder %s879_s2, %s1196_s29  ;;  %p1202_p10 = scmp.lt.s32.totalorder %s1196_s29, %s1196_s29 }
 0x2e6   :  { %p1203_p11 = por %p1202_p10, %p1201_p9 }
 0x2e8   :  { %p1204_p12 = pnand %p1203_p11, %p1197_p8 }
 0x2ea   :  { %1207 = shalt.err (!%p1204_p12)
}
 0x2eb   :  { %s1208_s11 = scalar_lea.hbm %s1728_s18, 32 }
 0x2ec   :  { %p1209_p13 = scmp.ne.s32.totalorder %s1728_s18, %s1208_s11  ;;  %p1212_p0 = scmp.lt.u32.totalorder %s1208_s11, %s1728_s18 }
 0x2ee   :  { %p1214_p1 = pnand %p1212_p0, %p1209_p13 }
 0x2f0   :  { %1217 = shalt.err (!%p1214_p1)
}
 0x2f1   :  { %881 = dma.vmem_to_hbm [thread:$0]  %s879_s2, 32, %s1728_s18, [#allocation3]   ;;  %v927_v41 = vld [vmem:[%s1727_s17] ss:$0 sm:$0xff]  ;;  %vm870_vm8 = vcmask 156672  }
 0x2f2   :  { %s1249_s23 = smov [#allocation6]  }
 0x2f3   :  { %s898_s6 = sshll.u32 %s1249_s23, 4  ;;  %s899_s6 = int_to_ptr.vmem [resolvable:$true] %s898_s6 }
 0x2f4   :  { %s1218_s7 = scalar_lea.vmem %s899_s6, 32  ;;  %p1223_p3 = scmp.lt.s32.totalorder %s899_s6, %s899_s6 }
 0x2f5   :  { %p1219_p2 = scmp.ne.s32.totalorder %s899_s6, %s1218_s7  ;;  %p1224_p4 = scmp.lt.s32.totalorder %s1218_s7, %s1218_s7 }
 0x2f7   :  { %p1225_p5 = por %p1224_p4, %p1223_p3 }
 0x2f9   :  { %p1226_p6 = pnand %p1225_p5, %p1219_p2 }
 0x3ad   :  { %v863_v42 = vpop.f32.mrb[8].mxu0 }
 0x3ae   :  { %v864_v43 = vadd.f32 %v927_v41, %v863_v42  ;;  %v1080_v44 = vpop.f32.mrb[9].mxu0 }
 0x3b0   :  { %871 = vst.msk [vmem:[#allocation6] sm:$0x3] %vm870_vm8, %v864_v43 }
 0x3b1   :  { %1229 = shalt.err (!%p1226_p6)
}
 0x3b2   :  { %s1230_s16 = scalar_lea.hbm %s1730_s20, 32 }
 0x3b3   :  { %p1231_p7 = scmp.ne.s32.totalorder %s1730_s20, %s1230_s16  ;;  %p1234_p8 = scmp.lt.u32.totalorder %s1230_s16, %s1730_s20 }
 0x3b5   :  { %p1236_p9 = pnand %p1234_p8, %p1231_p7 }
 0x3b7   :  { %1239 = shalt.err (!%p1236_p9)
}
 0x3b8   :  { %901 = dma.vmem_to_hbm [thread:$0]  %s899_s6, 32, %s1730_s20, [#allocation5]  }
 0x3b9   :  { %1240 = dma.done.wait [#allocation3], 32  }
 0x3ba   :  { %1241 = vsyncadd [#allocation3], 4294967264 }
 0x3bb   :  { %1242 = dma.done.wait [#allocation5], 64  }
 0x3bc   :  { %1243 = vsyncadd [#allocation5], 4294967232 }
 0x3bd   :  { %911 = vsyncpa [#allocation3], 1 }
 0x3be   :  { %912 = vsyncpa [#allocation5], 1 }

</bundles_post_ra>
